<compile_context>
chip_gen: v7x
topology: tpu7x:2x2x1
jax: 0.10.0
libtpu: 0.0.40
codegen_flags: <defaults>
</compile_context>

<pallas_src>
import functools

import jax
import jax.numpy as jnp
import numpy as np
from jax import lax
from jax.experimental import pallas as pl
from jax.experimental.pallas import tpu as pltpu

LANE = 128


def _pad_dim(d):
    return ((d + LANE - 1) // LANE) * LANE


# ----------------------------------------------------------------------------
# Fused forward kernel: conv1 -> conv2 -> conv3(+flatten) -> dense stack
# ----------------------------------------------------------------------------
def _balanced_sum(xs):
    xs = list(xs)
    while len(xs) > 1:
        nxt = [xs[i] + xs[i + 1] for i in range(0, len(xs) - 1, 2)]
        if len(xs) % 2:
            nxt.append(xs[-1])
        xs = nxt
    return xs[0]


def _fused_forward_kernel(n_dense, oh1, kh2, s2, oh2, l2p, *refs):
    (p1_ref, w1_ref, b1_ref, w2_ref, b2_ref, w3_ref, b3_ref) = refs[:7]
    dense_refs = refs[7:7 + 2 * n_dense]
    out_ref = refs[7 + 2 * n_dense]
    a1_ref, a2_ref = refs[8 + 2 * n_dense], refs[9 + 2 * n_dense]

    f32, bf16 = jnp.float32, jnp.bfloat16

    # ---- conv1: one banded row-GEMM per output row r1 ----------------------
    # lhs row (n) holds input rows [s1*r1, s1*r1+kh1) x full width x channels;
    # the banded weight places each output column c1's window.  Output lanes
    # are (c1, oc1) -- exactly the layout conv2 consumes.
    for r1 in range(oh1):
        z = jnp.dot(p1_ref[r1], w1_ref[...], preferred_element_type=f32)
        a1_ref[r1] = jnp.maximum(z + b1_ref[...], 0.0).astype(bf16)

    # ---- conv2: per output row r2, accumulate kh2 kernel-row GEMMs ----------
    # w2_ref[dr] is banded over (c1, ic) -> (c2, oc2); taps are folded into K,
    # partial sums are combined with a balanced tree (no long serial add chain).
    for r2 in range(oh2):
        parts = [jnp.dot(a1_ref[s2 * r2 + dr], w2_ref[dr],
                         preferred_element_type=f32)
                 for dr in range(kh2)]
        acc = _balanced_sum(parts)
        act2 = jnp.maximum(acc + b2_ref[...], 0.0).astype(bf16)
        a2_ref[:, r2 * l2p:(r2 + 1) * l2p] = act2       # 128-aligned lane slice

    # ---- conv3 + flatten: full-window conv == one dense GEMM ----------------
    a = jnp.dot(a2_ref[...], w3_ref[...], preferred_element_type=f32)
    a = jnp.maximum(a + b3_ref[...], 0.0).astype(bf16)

    # ---- dense stack (ReLU on all but the last layer) -----------------------
    for d in range(n_dense):
        w_ref = dense_refs[2 * d]
        b_ref = dense_refs[2 * d + 1]
        z = jnp.dot(a, w_ref[...], preferred_element_type=f32) + b_ref[...]
        if d < n_dense - 1:
            a = jnp.maximum(z, 0.0).astype(bf16)
        else:
            out_ref[...] = z.astype(out_ref.dtype)


# ----------------------------------------------------------------------------
# Host-side packing helpers (traced once, constant-folded under jit)
# ----------------------------------------------------------------------------
def _conv1_row_patches(x_nhwc, kh, s, oh1):
    """(N, H, W, C) -> (oh1, N, kh*W*C) row patches; row (r1, n) = input rows
    [s*r1, s*r1+kh) x full width, column order (dr, w, c)."""
    n, h, w, c = x_nhwc.shape
    slabs = [x_nhwc[:, dr:dr + s * (oh1 - 1) + 1:s, :, :] for dr in range(kh)]
    p = jnp.stack(slabs, axis=2)               # (n, oh1, kh, w, c)
    p = jnp.transpose(p, (1, 0, 2, 3, 4))      # (oh1, n, kh, w, c)
    return p.reshape(oh1, n, kh * w * c)


def _pack_conv1_row_weight(w, in_w, s, ow1):
    """torch (OC, IC, KH, KW) -> banded (KH*in_w*IC, ow1*OC) row-GEMM weight."""
    oc, ic, kh, kw = w.shape
    wm = jnp.transpose(w, (2, 3, 1, 0))        # (kh, kw, ic, oc)
    out = jnp.zeros((kh * in_w * ic, ow1 * oc), jnp.float32)
    for dr in range(kh):
        blk = wm[dr].reshape(kw * ic, oc)      # rows ordered (dc, ic)
        for c1 in range(ow1):
            r0 = dr * in_w * ic + s * c1 * ic
            out = out.at[r0:r0 + kw * ic, c1 * oc:(c1 + 1) * oc].set(blk)
    return out.astype(jnp.bfloat16)


def _pack_conv2_row_weights(w, ow1, s, ow2, l2p):
    """torch (OC2, IC, KH, KW) -> (KH, ow1*IC, l2p) banded per-kernel-row weights."""
    oc2, ic, kh, kw = w.shape
    wm = jnp.transpose(w, (2, 3, 1, 0))        # (kh, kw, ic, oc2)
    out = jnp.zeros((kh, ow1 * ic, l2p), jnp.float32)
    for dr in range(kh):
        blk = wm[dr].reshape(kw * ic, oc2)     # rows ordered (dc, ic)
        for c2 in range(ow2):
            r0 = s * c2 * ic
            out = out.at[dr, r0:r0 + kw * ic, c2 * oc2:(c2 + 1) * oc2].set(blk)
    return out.astype(jnp.bfloat16)


def _pack_conv3_weight(w, l2p, ocp):
    """torch (OC3, IC, KH, KW) with KHxKW == full conv2 spatial -> (KH*l2p, ocp)."""
    oc3, ic, kh, kw = w.shape
    wm = jnp.transpose(w, (2, 3, 1, 0))        # (kh, kw, ic, oc3)
    out = jnp.zeros((kh * l2p, ocp), jnp.float32)
    for r2 in range(kh):
        for c2 in range(kw):
            r0 = r2 * l2p + c2 * ic
            out = out.at[r0:r0 + ic, :oc3].set(wm[r2, c2])
    return out.astype(jnp.bfloat16)


def _tile_bias(b, reps, width):
    t = jnp.tile(b, reps)
    return jnp.pad(t, (0, width - t.shape[0])).reshape(1, width).astype(jnp.float32)


def _pack_dense(w_t):                           # torch (OUT, IN)
    o, i = w_t.shape
    wm = jnp.pad(w_t.T, ((0, _pad_dim(i) - i), (0, _pad_dim(o) - o)))
    return wm.astype(jnp.bfloat16)              # (INp, OUTp)


def _pack_bias(b):
    n = b.shape[0]
    return jnp.pad(b, (0, _pad_dim(n) - n)).reshape(1, _pad_dim(n)).astype(jnp.float32)


# ----------------------------------------------------------------------------
# Parameter init: orthogonal with gain sqrt(2), bias = 0 (as init_weights)
# ----------------------------------------------------------------------------
def orthogonal_init(key, shape, gain):
    rows = shape[0]
    cols = int(np.prod(shape[1:]))
    a = jax.random.normal(key, (max(rows, cols), min(rows, cols)), jnp.float32)
    q, r = jnp.linalg.qr(a)
    q = q * jnp.sign(jnp.diagonal(r))
    if rows < cols:
        q = q.T
    return (gain * q[:rows, :cols]).reshape(shape).astype(jnp.float32)


def make_params(key, input_shape, output_class, hidden_units):
    gain = float(np.sqrt(2.0))
    n_dense = len(hidden_units) + 1
    keys = jax.random.split(key, 3 + n_dense)
    p = {}
    # conv_layers: Conv2d(4,32,8,s4) / Conv2d(32,64,4,s2) / Conv2d(64,64,3,s1)
    p["c1_w"] = orthogonal_init(keys[0], (32, 4, 8, 8), gain)
    p["c1_b"] = jnp.zeros((32,), jnp.float32)
    p["c2_w"] = orthogonal_init(keys[1], (64, 32, 4, 4), gain)
    p["c2_b"] = jnp.zeros((64,), jnp.float32)
    p["c3_w"] = orthogonal_init(keys[2], (64, 64, 3, 3), gain)
    p["c3_b"] = jnp.zeros((64,), jnp.float32)

    c, h, w = input_shape
    for k, s in ((8, 4), (4, 2), (3, 1)):
        h = (h - k) // s + 1
        w = (w - k) // s + 1
    p["feature_size"] = 64 * h * w

    dims = [p["feature_size"]] + list(hidden_units) + [output_class]
    for i in range(n_dense):
        p[f"l{i}_w"] = orthogonal_init(keys[3 + i], (dims[i + 1], dims[i]), gain)
        p[f"l{i}_b"] = jnp.zeros((dims[i + 1],), jnp.float32)
    p["n_dense"] = n_dense
    return p


# ----------------------------------------------------------------------------
# Forward pass (softmax=False, open_ended=False -> no activation on last layer)
# ----------------------------------------------------------------------------
def cnn_forward(params, x, *, batch_tile=128):
    """x: (N, 4, H, W) f32 (PyTorch NCHW).  Returns (N, output_class) f32."""
    n, c_in, h, w = x.shape
    (k1, s1), (k2, s2), (k3, s3) = (8, 4), (4, 2), (3, 1)
    oh1, ow1 = (h - k1) // s1 + 1, (w - k1) // s1 + 1
    oh2, ow2 = (oh1 - k2) // s2 + 1, (ow1 - k2) // s2 + 1
    oh3, ow3 = (oh2 - k3) // s3 + 1, (ow2 - k3) // s3 + 1
    assert oh3 == 1 and ow3 == 1, "fused kernel supports 1x1 final conv spatial only"
    # TODO(synk): general flatten (final conv spatial > 1x1) needs an extra gather stage.

    oc1 = params["c1_w"].shape[0]
    oc2 = params["c2_w"].shape[0]
    oc3 = params["c3_w"].shape[0]
    L1 = ow1 * oc1                       # conv1 output lanes per row (c1, oc1)
    l2p = _pad_dim(ow2 * oc2)            # conv2 output lanes per row, 128-aligned
    ocp3 = _pad_dim(oc3)
    k1dim = k1 * w * c_in                # conv1 row-GEMM contraction dim

    # ---- batch tile: blocks need tb % 8 == 0 whenever the grid has > 1 step --
    tb = n if n <= batch_tile else batch_tile
    if n % tb != 0 or (n // tb > 1 and tb % 8 != 0):
        tb = n
        for cand in range(min(batch_tile, n - 1), 7, -1):
            if n % cand == 0 and cand % 8 == 0:
                tb = cand
                break
    n_tiles = n // tb

    # ---- host prologue: NCHW -> NHWC bf16, conv1 row patches -----------------
    # TODO(synk): this prologue (~1.8x input inflation) could move in-kernel via
    # a manual DMA of NHWC rows + in-kernel tap slicing to cut HBM traffic further.
    x_nhwc = jnp.transpose(x, (0, 2, 3, 1)).astype(jnp.bfloat16)
    p1 = _conv1_row_patches(x_nhwc, k1, s1, oh1)         # (oh1, N, k1dim)

    # ---- packed weights (banded row-GEMM forms, bf16) + f32 biases -----------
    w1 = _pack_conv1_row_weight(params["c1_w"], w, s1, ow1)
    b1 = _tile_bias(params["c1_b"], ow1, L1)
    w2 = _pack_conv2_row_weights(params["c2_w"], ow1, s2, ow2, l2p)
    b2 = _tile_bias(params["c2_b"], ow2, l2p)
    w3 = _pack_conv3_weight(params["c3_w"], l2p, ocp3)
    b3 = _tile_bias(params["c3_b"], 1, ocp3)

    n_dense = params["n_dense"]
    dense_ops = []
    for d in range(n_dense):
        dense_ops.append(_pack_dense(params[f"l{d}_w"]))
        dense_ops.append(_pack_bias(params[f"l{d}_b"]))
    out_pad = dense_ops[-2].shape[1]
    n_classes = params[f"l{n_dense - 1}_b"].shape[0]

    inputs = [p1, w1, b1, w2, b2, w3, b3] + dense_ops

    def _const_spec(arr):                 # same (whole-array) block every step
        nd = arr.ndim
        return pl.BlockSpec(arr.shape, lambda b, _n=nd: (0,) * _n)

    in_specs = [pl.BlockSpec((oh1, tb, k1dim), lambda b: (0, b, 0))]
    in_specs += [_const_spec(a) for a in inputs[1:]]
    out_specs = pl.BlockSpec((tb, out_pad), lambda b: (b, 0))

    # ---- honest advisory cost estimate ---------------------------------------
    flops_tile = oh1 * 2 * tb * k1dim * L1
    flops_tile += oh2 * k2 * 2 * tb * L1 * l2p
    flops_tile += 2 * tb * (oh2 * l2p) * ocp3
    prev = ocp3
    for d in range(n_dense):
        nxt = dense_ops[2 * d].shape[1]
        flops_tile += 2 * tb * prev * nxt
        prev = nxt
    bytes_accessed = sum(int(np.prod(a.shape)) * a.dtype.itemsize for a in inputs)
    bytes_accessed += n * out_pad * 4
    cost = pl.CostEstimate(flops=int(n_tiles * flops_tile), transcendentals=0,
                           bytes_accessed=int(bytes_accessed))

    out = pl.pallas_call(
        functools.partial(_fused_forward_kernel, n_dense, oh1, k2, s2, oh2, l2p),
        out_shape=jax.ShapeDtypeStruct((n, out_pad), jnp.float32),
        grid=(n_tiles,),
        in_specs=in_specs,
        out_specs=out_specs,
        scratch_shapes=[pltpu.VMEM((oh1, tb, L1), jnp.bfloat16),
                        pltpu.VMEM((tb, oh2 * l2p), jnp.bfloat16)],
        compiler_params=pltpu.CompilerParams(
            dimension_semantics=("parallel",),
            vmem_limit_bytes=48 * 1024 * 1024),
        cost_estimate=cost,
    )(*inputs)

    return out[:, :n_classes]              # drop the lane padding


# ----------------------------------------------------------------------------
# Pure-JAX f32 reference (NCHW, same semantics as the PyTorch module)
# ----------------------------------------------------------------------------
def _reference_forward(params, x):
    a = lax.conv(x, params["c1_w"], (4, 4), "VALID")
    a = jax.nn.relu(a + params["c1_b"][None, :, None, None])
    a = lax.conv(a, params["c2_w"], (2, 2), "VALID")
    a = jax.nn.relu(a + params["c2_b"][None, :, None, None])
    a = lax.conv(a, params["c3_w"], (1, 1), "VALID")
    a = jax.nn.relu(a + params["c3_b"][None, :, None, None])
    a = a.reshape(a.shape[0], -1)
    n_dense = params["n_dense"]
    for d in range(n_dense):
        a = a @ params[f"l{d}_w"].T + params[f"l{d}_b"]
        if d < n_dense - 1:
            a = jax.nn.relu(a)
    return a


if __name__ == "__main__":
    key = jax.random.PRNGKey(0)
    k_param, k_x = jax.random.split(key)

    # Smallest valid spatial for this conv stack: 36x36 -> 8x8 -> 3x3 -> 1x1.
    input_shape = (4, 36, 36)
    output_class = 6
    hidden_units = [32, 32]
    batch = 16

    params = make_params(k_param, input_shape, output_class, hidden_units)
    x = jax.random.normal(k_x, (batch,) + input_shape, jnp.float32)

    # batch_tile=8 here just to exercise the multi-step grid on a tiny demo
    # batch; production default is 128 (use 256 on v6e/v7x for a 256-wide MXU M).
    fwd = jax.jit(functools.partial(cnn_forward, params, batch_tile=8))
    out = jax.block_until_ready(fwd(x))

    assert out.shape == (batch, output_class), out.shape
    assert out.dtype == jnp.float32
    assert bool(jnp.all(jnp.isfinite(out)))

    ref = jax.block_until_ready(jax.jit(functools.partial(_reference_forward, params))(x))
    np.testing.assert_allclose(np.asarray(out), np.asarray(ref), rtol=0.1, atol=0.25)

    print("KERNEL_OK")
</pallas_src>

<mosaic_0001>
module attributes {stable_mosaic.version = 11 : i64} {
  func.func @_fused_forward_kernel(%arg0: i32, %arg1: memref<8x8x1152xbf16, #tpu.memory_space<vmem>>, %arg2: memref<1152x256xbf16, #tpu.memory_space<vmem>>, %arg3: memref<1x256xf32, #tpu.memory_space<vmem>>, %arg4: memref<4x256x256xbf16, #tpu.memory_space<vmem>>, %arg5: memref<1x256xf32, #tpu.memory_space<vmem>>, %arg6: memref<768x128xbf16, #tpu.memory_space<vmem>>, %arg7: memref<1x128xf32, #tpu.memory_space<vmem>>, %arg8: memref<128x128xbf16, #tpu.memory_space<vmem>>, %arg9: memref<1x128xf32, #tpu.memory_space<vmem>>, %arg10: memref<128x128xbf16, #tpu.memory_space<vmem>>, %arg11: memref<1x128xf32, #tpu.memory_space<vmem>>, %arg12: memref<128x128xbf16, #tpu.memory_space<vmem>>, %arg13: memref<1x128xf32, #tpu.memory_space<vmem>>, %arg14: memref<8x128xf32, #tpu.memory_space<vmem>>, %arg15: memref<8x8x256xbf16, #tpu.memory_space<vmem>>, %arg16: memref<8x768xbf16, #tpu.memory_space<vmem>>) attributes {dimension_semantics = [#tpu.dimension_semantics<parallel>], iteration_bounds = array<i64: 2>, scalar_prefetch = 0 : i64, scratch_operands = 2 : i64, tpu.core_type = #tpu.core_type<tc>, window_params = [{transform_indices = @transform_0, window_bounds = array<i64: 8, 8, 1152>}, {pipeline_mode = #tpu.pipeline_mode<synchronous>, transform_indices = @transform_1, window_bounds = array<i64: 1152, 256>}, {pipeline_mode = #tpu.pipeline_mode<synchronous>, transform_indices = @transform_2, window_bounds = array<i64: 1, 256>}, {pipeline_mode = #tpu.pipeline_mode<synchronous>, transform_indices = @transform_3, window_bounds = array<i64: 4, 256, 256>}, {pipeline_mode = #tpu.pipeline_mode<synchronous>, transform_indices = @transform_4, window_bounds = array<i64: 1, 256>}, {pipeline_mode = #tpu.pipeline_mode<synchronous>, transform_indices = @transform_5, window_bounds = array<i64: 768, 128>}, {pipeline_mode = #tpu.pipeline_mode<synchronous>, transform_indices = @transform_6, window_bounds = array<i64: 1, 128>}, {pipeline_mode = #tpu.pipeline_mode<synchronous>, transform_indices = @transform_7, window_bounds = array<i64: 128, 128>}, {pipeline_mode = #tpu.pipeline_mode<synchronous>, transform_indices = @transform_8, window_bounds = array<i64: 1, 128>}, {pipeline_mode = #tpu.pipeline_mode<synchronous>, transform_indices = @transform_9, window_bounds = array<i64: 128, 128>}, {pipeline_mode = #tpu.pipeline_mode<synchronous>, transform_indices = @transform_10, window_bounds = array<i64: 1, 128>}, {pipeline_mode = #tpu.pipeline_mode<synchronous>, transform_indices = @transform_11, window_bounds = array<i64: 128, 128>}, {pipeline_mode = #tpu.pipeline_mode<synchronous>, transform_indices = @transform_12, window_bounds = array<i64: 1, 128>}, {transform_indices = @transform_13, window_bounds = array<i64: 8, 128>}]} {
    %c0 = arith.constant 0 : index
    %c0_0 = arith.constant 0 : index
    %c0_1 = arith.constant 0 : index
    %0 = vector.load %arg1[%c0, %c0_0, %c0_1] : memref<8x8x1152xbf16, #tpu.memory_space<vmem>>, vector<1x8x1152xbf16>
    %1 = vector.shape_cast %0 : vector<1x8x1152xbf16> to vector<8x1152xbf16>
    %c0_2 = arith.constant 0 : index
    %c0_3 = arith.constant 0 : index
    %2 = vector.load %arg2[%c0_2, %c0_3] : memref<1152x256xbf16, #tpu.memory_space<vmem>>, vector<1152x256xbf16>
    %cst = arith.constant dense<0.000000e+00> : vector<8x256xf32>
    %3 = tpu.matmul %1, %2, %cst {dimension_numbers = #tpu.dot_dimension_numbers<[1], [0], [0], [1], [0, 0, 1, 1], [], []>} : vector<8x1152xbf16>, vector<1152x256xbf16>, vector<8x256xf32> -> vector<8x256xf32>
    %c0_4 = arith.constant 0 : index
    %c0_5 = arith.constant 0 : index
    %4 = vector.load %arg3[%c0_4, %c0_5] : memref<1x256xf32, #tpu.memory_space<vmem>>, vector<1x256xf32>
    %5 = vector.broadcast %4 : vector<1x256xf32> to vector<8x256xf32>
    %6 = arith.addf %3, %5 : vector<8x256xf32>
    %cst_6 = arith.constant 0.000000e+00 : f32
    %7 = vector.broadcast %cst_6 : f32 to vector<8x256xf32>
    %8 = arith.maximumf %6, %7 : vector<8x256xf32>
    %9 = arith.truncf %8 : vector<8x256xf32> to vector<8x256xbf16>
    %c0_7 = arith.constant 0 : index
    %c0_8 = arith.constant 0 : index
    %c0_9 = arith.constant 0 : index
    %10 = vector.load %arg15[%c0_7, %c0_8, %c0_9] : memref<8x8x256xbf16, #tpu.memory_space<vmem>>, vector<1x8x256xbf16>
    %11 = vector.shape_cast %10 : vector<1x8x256xbf16> to vector<8x256xbf16>
    %12 = vector.shape_cast %9 : vector<8x256xbf16> to vector<1x8x256xbf16>
    tpu.vector_store %arg15[%c0_7, %c0_8, %c0_9], %12 {strides = array<i32>} : memref<8x8x256xbf16, #tpu.memory_space<vmem>>, vector<1x8x256xbf16>,
    %c1 = arith.constant 1 : index
    %c0_10 = arith.constant 0 : index
    %c0_11 = arith.constant 0 : index
    %13 = vector.load %arg1[%c1, %c0_10, %c0_11] : memref<8x8x1152xbf16, #tpu.memory_space<vmem>>, vector<1x8x1152xbf16>
    %14 = vector.shape_cast %13 : vector<1x8x1152xbf16> to vector<8x1152xbf16>
    %c0_12 = arith.constant 0 : index
    %c0_13 = arith.constant 0 : index
    %15 = vector.load %arg2[%c0_12, %c0_13] : memref<1152x256xbf16, #tpu.memory_space<vmem>>, vector<1152x256xbf16>
    %cst_14 = arith.constant dense<0.000000e+00> : vector<8x256xf32>
    %16 = tpu.matmul %14, %15, %cst_14 {dimension_numbers = #tpu.dot_dimension_numbers<[1], [0], [0], [1], [0, 0, 1, 1], [], []>} : vector<8x1152xbf16>, vector<1152x256xbf16>, vector<8x256xf32> -> vector<8x256xf32>
    %c0_15 = arith.constant 0 : index
    %c0_16 = arith.constant 0 : index
    %17 = vector.load %arg3[%c0_15, %c0_16] : memref<1x256xf32, #tpu.memory_space<vmem>>, vector<1x256xf32>
    %18 = vector.broadcast %17 : vector<1x256xf32> to vector<8x256xf32>
    %19 = arith.addf %16, %18 : vector<8x256xf32>
    %cst_17 = arith.constant 0.000000e+00 : f32
    %20 = vector.broadcast %cst_17 : f32 to vector<8x256xf32>
    %21 = arith.maximumf %19, %20 : vector<8x256xf32>
    %22 = arith.truncf %21 : vector<8x256xf32> to vector<8x256xbf16>
    %c1_18 = arith.constant 1 : index
    %c0_19 = arith.constant 0 : index
    %c0_20 = arith.constant 0 : index
    %23 = vector.load %arg15[%c1_18, %c0_19, %c0_20] : memref<8x8x256xbf16, #tpu.memory_space<vmem>>, vector<1x8x256xbf16>
    %24 = vector.shape_cast %23 : vector<1x8x256xbf16> to vector<8x256xbf16>
    %25 = vector.shape_cast %22 : vector<8x256xbf16> to vector<1x8x256xbf16>
    tpu.vector_store %arg15[%c1_18, %c0_19, %c0_20], %25 {strides = array<i32>} : memref<8x8x256xbf16, #tpu.memory_space<vmem>>, vector<1x8x256xbf16>,
    %c2 = arith.constant 2 : index
    %c0_21 = arith.constant 0 : index
    %c0_22 = arith.constant 0 : index
    %26 = vector.load %arg1[%c2, %c0_21, %c0_22] : memref<8x8x1152xbf16, #tpu.memory_space<vmem>>, vector<1x8x1152xbf16>
    %27 = vector.shape_cast %26 : vector<1x8x1152xbf16> to vector<8x1152xbf16>
    %c0_23 = arith.constant 0 : index
    %c0_24 = arith.constant 0 : index
    %28 = vector.load %arg2[%c0_23, %c0_24] : memref<1152x256xbf16, #tpu.memory_space<vmem>>, vector<1152x256xbf16>
    %cst_25 = arith.constant dense<0.000000e+00> : vector<8x256xf32>
    %29 = tpu.matmul %27, %28, %cst_25 {dimension_numbers = #tpu.dot_dimension_numbers<[1], [0], [0], [1], [0, 0, 1, 1], [], []>} : vector<8x1152xbf16>, vector<1152x256xbf16>, vector<8x256xf32> -> vector<8x256xf32>
    %c0_26 = arith.constant 0 : index
    %c0_27 = arith.constant 0 : index
    %30 = vector.load %arg3[%c0_26, %c0_27] : memref<1x256xf32, #tpu.memory_space<vmem>>, vector<1x256xf32>
    %31 = vector.broadcast %30 : vector<1x256xf32> to vector<8x256xf32>
    %32 = arith.addf %29, %31 : vector<8x256xf32>
    %cst_28 = arith.constant 0.000000e+00 : f32
    %33 = vector.broadcast %cst_28 : f32 to vector<8x256xf32>
    %34 = arith.maximumf %32, %33 : vector<8x256xf32>
    %35 = arith.truncf %34 : vector<8x256xf32> to vector<8x256xbf16>
    %c2_29 = arith.constant 2 : index
    %c0_30 = arith.constant 0 : index
    %c0_31 = arith.constant 0 : index
    %36 = vector.load %arg15[%c2_29, %c0_30, %c0_31] : memref<8x8x256xbf16, #tpu.memory_space<vmem>>, vector<1x8x256xbf16>
    %37 = vector.shape_cast %36 : vector<1x8x256xbf16> to vector<8x256xbf16>
    %38 = vector.shape_cast %35 : vector<8x256xbf16> to vector<1x8x256xbf16>
    tpu.vector_store %arg15[%c2_29, %c0_30, %c0_31], %38 {strides = array<i32>} : memref<8x8x256xbf16, #tpu.memory_space<vmem>>, vector<1x8x256xbf16>,
    %c3 = arith.constant 3 : index
    %c0_32 = arith.constant 0 : index
    %c0_33 = arith.constant 0 : index
    %39 = vector.load %arg1[%c3, %c0_32, %c0_33] : memref<8x8x1152xbf16, #tpu.memory_space<vmem>>, vector<1x8x1152xbf16>
    %40 = vector.shape_cast %39 : vector<1x8x1152xbf16> to vector<8x1152xbf16>
    %c0_34 = arith.constant 0 : index
    %c0_35 = arith.constant 0 : index
    %41 = vector.load %arg2[%c0_34, %c0_35] : memref<1152x256xbf16, #tpu.memory_space<vmem>>, vector<1152x256xbf16>
    %cst_36 = arith.constant dense<0.000000e+00> : vector<8x256xf32>
    %42 = tpu.matmul %40, %41, %cst_36 {dimension_numbers = #tpu.dot_dimension_numbers<[1], [0], [0], [1], [0, 0, 1, 1], [], []>} : vector<8x1152xbf16>, vector<1152x256xbf16>, vector<8x256xf32> -> vector<8x256xf32>
    %c0_37 = arith.constant 0 : index
    %c0_38 = arith.constant 0 : index
    %43 = vector.load %arg3[%c0_37, %c0_38] : memref<1x256xf32, #tpu.memory_space<vmem>>, vector<1x256xf32>
    %44 = vector.broadcast %43 : vector<1x256xf32> to vector<8x256xf32>
    %45 = arith.addf %42, %44 : vector<8x256xf32>
    %cst_39 = arith.constant 0.000000e+00 : f32
    %46 = vector.broadcast %cst_39 : f32 to vector<8x256xf32>
    %47 = arith.maximumf %45, %46 : vector<8x256xf32>
    %48 = arith.truncf %47 : vector<8x256xf32> to vector<8x256xbf16>
    %c3_40 = arith.constant 3 : index
    %c0_41 = arith.constant 0 : index
    %c0_42 = arith.constant 0 : index
    %49 = vector.load %arg15[%c3_40, %c0_41, %c0_42] : memref<8x8x256xbf16, #tpu.memory_space<vmem>>, vector<1x8x256xbf16>
    %50 = vector.shape_cast %49 : vector<1x8x256xbf16> to vector<8x256xbf16>
    %51 = vector.shape_cast %48 : vector<8x256xbf16> to vector<1x8x256xbf16>
    tpu.vector_store %arg15[%c3_40, %c0_41, %c0_42], %51 {strides = array<i32>} : memref<8x8x256xbf16, #tpu.memory_space<vmem>>, vector<1x8x256xbf16>,
    %c4 = arith.constant 4 : index
    %c0_43 = arith.constant 0 : index
    %c0_44 = arith.constant 0 : index
    %52 = vector.load %arg1[%c4, %c0_43, %c0_44] : memref<8x8x1152xbf16, #tpu.memory_space<vmem>>, vector<1x8x1152xbf16>
    %53 = vector.shape_cast %52 : vector<1x8x1152xbf16> to vector<8x1152xbf16>
    %c0_45 = arith.constant 0 : index
    %c0_46 = arith.constant 0 : index
    %54 = vector.load %arg2[%c0_45, %c0_46] : memref<1152x256xbf16, #tpu.memory_space<vmem>>, vector<1152x256xbf16>
    %cst_47 = arith.constant dense<0.000000e+00> : vector<8x256xf32>
    %55 = tpu.matmul %53, %54, %cst_47 {dimension_numbers = #tpu.dot_dimension_numbers<[1], [0], [0], [1], [0, 0, 1, 1], [], []>} : vector<8x1152xbf16>, vector<1152x256xbf16>, vector<8x256xf32> -> vector<8x256xf32>
    %c0_48 = arith.constant 0 : index
    %c0_49 = arith.constant 0 : index
    %56 = vector.load %arg3[%c0_48, %c0_49] : memref<1x256xf32, #tpu.memory_space<vmem>>, vector<1x256xf32>
    %57 = vector.broadcast %56 : vector<1x256xf32> to vector<8x256xf32>
    %58 = arith.addf %55, %57 : vector<8x256xf32>
    %cst_50 = arith.constant 0.000000e+00 : f32
    %59 = vector.broadcast %cst_50 : f32 to vector<8x256xf32>
    %60 = arith.maximumf %58, %59 : vector<8x256xf32>
    %61 = arith.truncf %60 : vector<8x256xf32> to vector<8x256xbf16>
    %c4_51 = arith.constant 4 : index
    %c0_52 = arith.constant 0 : index
    %c0_53 = arith.constant 0 : index
    %62 = vector.load %arg15[%c4_51, %c0_52, %c0_53] : memref<8x8x256xbf16, #tpu.memory_space<vmem>>, vector<1x8x256xbf16>
    %63 = vector.shape_cast %62 : vector<1x8x256xbf16> to vector<8x256xbf16>
    %64 = vector.shape_cast %61 : vector<8x256xbf16> to vector<1x8x256xbf16>
    tpu.vector_store %arg15[%c4_51, %c0_52, %c0_53], %64 {strides = array<i32>} : memref<8x8x256xbf16, #tpu.memory_space<vmem>>, vector<1x8x256xbf16>,
    %c5 = arith.constant 5 : index
    %c0_54 = arith.constant 0 : index
    %c0_55 = arith.constant 0 : index
    %65 = vector.load %arg1[%c5, %c0_54, %c0_55] : memref<8x8x1152xbf16, #tpu.memory_space<vmem>>, vector<1x8x1152xbf16>
    %66 = vector.shape_cast %65 : vector<1x8x1152xbf16> to vector<8x1152xbf16>
    %c0_56 = arith.constant 0 : index
    %c0_57 = arith.constant 0 : index
    %67 = vector.load %arg2[%c0_56, %c0_57] : memref<1152x256xbf16, #tpu.memory_space<vmem>>, vector<1152x256xbf16>
    %cst_58 = arith.constant dense<0.000000e+00> : vector<8x256xf32>
    %68 = tpu.matmul %66, %67, %cst_58 {dimension_numbers = #tpu.dot_dimension_numbers<[1], [0], [0], [1], [0, 0, 1, 1], [], []>} : vector<8x1152xbf16>, vector<1152x256xbf16>, vector<8x256xf32> -> vector<8x256xf32>
    %c0_59 = arith.constant 0 : index
    %c0_60 = arith.constant 0 : index
    %69 = vector.load %arg3[%c0_59, %c0_60] : memref<1x256xf32, #tpu.memory_space<vmem>>, vector<1x256xf32>
    %70 = vector.broadcast %69 : vector<1x256xf32> to vector<8x256xf32>
    %71 = arith.addf %68, %70 : vector<8x256xf32>
    %cst_61 = arith.constant 0.000000e+00 : f32
    %72 = vector.broadcast %cst_61 : f32 to vector<8x256xf32>
    %73 = arith.maximumf %71, %72 : vector<8x256xf32>
    %74 = arith.truncf %73 : vector<8x256xf32> to vector<8x256xbf16>
    %c5_62 = arith.constant 5 : index
    %c0_63 = arith.constant 0 : index
    %c0_64 = arith.constant 0 : index
    %75 = vector.load %arg15[%c5_62, %c0_63, %c0_64] : memref<8x8x256xbf16, #tpu.memory_space<vmem>>, vector<1x8x256xbf16>
    %76 = vector.shape_cast %75 : vector<1x8x256xbf16> to vector<8x256xbf16>
    %77 = vector.shape_cast %74 : vector<8x256xbf16> to vector<1x8x256xbf16>
    tpu.vector_store %arg15[%c5_62, %c0_63, %c0_64], %77 {strides = array<i32>} : memref<8x8x256xbf16, #tpu.memory_space<vmem>>, vector<1x8x256xbf16>,
    %c6 = arith.constant 6 : index
    %c0_65 = arith.constant 0 : index
    %c0_66 = arith.constant 0 : index
    %78 = vector.load %arg1[%c6, %c0_65, %c0_66] : memref<8x8x1152xbf16, #tpu.memory_space<vmem>>, vector<1x8x1152xbf16>
    %79 = vector.shape_cast %78 : vector<1x8x1152xbf16> to vector<8x1152xbf16>
    %c0_67 = arith.constant 0 : index
    %c0_68 = arith.constant 0 : index
    %80 = vector.load %arg2[%c0_67, %c0_68] : memref<1152x256xbf16, #tpu.memory_space<vmem>>, vector<1152x256xbf16>
    %cst_69 = arith.constant dense<0.000000e+00> : vector<8x256xf32>
    %81 = tpu.matmul %79, %80, %cst_69 {dimension_numbers = #tpu.dot_dimension_numbers<[1], [0], [0], [1], [0, 0, 1, 1], [], []>} : vector<8x1152xbf16>, vector<1152x256xbf16>, vector<8x256xf32> -> vector<8x256xf32>
    %c0_70 = arith.constant 0 : index
    %c0_71 = arith.constant 0 : index
    %82 = vector.load %arg3[%c0_70, %c0_71] : memref<1x256xf32, #tpu.memory_space<vmem>>, vector<1x256xf32>
    %83 = vector.broadcast %82 : vector<1x256xf32> to vector<8x256xf32>
    %84 = arith.addf %81, %83 : vector<8x256xf32>
    %cst_72 = arith.constant 0.000000e+00 : f32
    %85 = vector.broadcast %cst_72 : f32 to vector<8x256xf32>
    %86 = arith.maximumf %84, %85 : vector<8x256xf32>
    %87 = arith.truncf %86 : vector<8x256xf32> to vector<8x256xbf16>
    %c6_73 = arith.constant 6 : index
    %c0_74 = arith.constant 0 : index
    %c0_75 = arith.constant 0 : index
    %88 = vector.load %arg15[%c6_73, %c0_74, %c0_75] : memref<8x8x256xbf16, #tpu.memory_space<vmem>>, vector<1x8x256xbf16>
    %89 = vector.shape_cast %88 : vector<1x8x256xbf16> to vector<8x256xbf16>
    %90 = vector.shape_cast %87 : vector<8x256xbf16> to vector<1x8x256xbf16>
    tpu.vector_store %arg15[%c6_73, %c0_74, %c0_75], %90 {strides = array<i32>} : memref<8x8x256xbf16, #tpu.memory_space<vmem>>, vector<1x8x256xbf16>,
    %c7 = arith.constant 7 : index
    %c0_76 = arith.constant 0 : index
    %c0_77 = arith.constant 0 : index
    %91 = vector.load %arg1[%c7, %c0_76, %c0_77] : memref<8x8x1152xbf16, #tpu.memory_space<vmem>>, vector<1x8x1152xbf16>
    %92 = vector.shape_cast %91 : vector<1x8x1152xbf16> to vector<8x1152xbf16>
    %c0_78 = arith.constant 0 : index
    %c0_79 = arith.constant 0 : index
    %93 = vector.load %arg2[%c0_78, %c0_79] : memref<1152x256xbf16, #tpu.memory_space<vmem>>, vector<1152x256xbf16>
    %cst_80 = arith.constant dense<0.000000e+00> : vector<8x256xf32>
    %94 = tpu.matmul %92, %93, %cst_80 {dimension_numbers = #tpu.dot_dimension_numbers<[1], [0], [0], [1], [0, 0, 1, 1], [], []>} : vector<8x1152xbf16>, vector<1152x256xbf16>, vector<8x256xf32> -> vector<8x256xf32>
    %c0_81 = arith.constant 0 : index
    %c0_82 = arith.constant 0 : index
    %95 = vector.load %arg3[%c0_81, %c0_82] : memref<1x256xf32, #tpu.memory_space<vmem>>, vector<1x256xf32>
    %96 = vector.broadcast %95 : vector<1x256xf32> to vector<8x256xf32>
    %97 = arith.addf %94, %96 : vector<8x256xf32>
    %cst_83 = arith.constant 0.000000e+00 : f32
    %98 = vector.broadcast %cst_83 : f32 to vector<8x256xf32>
    %99 = arith.maximumf %97, %98 : vector<8x256xf32>
    %100 = arith.truncf %99 : vector<8x256xf32> to vector<8x256xbf16>
    %c7_84 = arith.constant 7 : index
    %c0_85 = arith.constant 0 : index
    %c0_86 = arith.constant 0 : index
    %101 = vector.load %arg15[%c7_84, %c0_85, %c0_86] : memref<8x8x256xbf16, #tpu.memory_space<vmem>>, vector<1x8x256xbf16>
    %102 = vector.shape_cast %101 : vector<1x8x256xbf16> to vector<8x256xbf16>
    %103 = vector.shape_cast %100 : vector<8x256xbf16> to vector<1x8x256xbf16>
    tpu.vector_store %arg15[%c7_84, %c0_85, %c0_86], %103 {strides = array<i32>} : memref<8x8x256xbf16, #tpu.memory_space<vmem>>, vector<1x8x256xbf16>,
    %c0_87 = arith.constant 0 : index
    %c0_88 = arith.constant 0 : index
    %c0_89 = arith.constant 0 : index
    %104 = vector.load %arg15[%c0_87, %c0_88, %c0_89] : memref<8x8x256xbf16, #tpu.memory_space<vmem>>, vector<1x8x256xbf16>
    %105 = vector.shape_cast %104 : vector<1x8x256xbf16> to vector<8x256xbf16>
    %c0_90 = arith.constant 0 : index
    %c0_91 = arith.constant 0 : index
    %c0_92 = arith.constant 0 : index
    %106 = vector.load %arg4[%c0_90, %c0_91, %c0_92] : memref<4x256x256xbf16, #tpu.memory_space<vmem>>, vector<1x256x256xbf16>
    %107 = vector.shape_cast %106 : vector<1x256x256xbf16> to vector<256x256xbf16>
    %cst_93 = arith.constant dense<0.000000e+00> : vector<8x256xf32>
    %108 = tpu.matmul %105, %107, %cst_93 {dimension_numbers = #tpu.dot_dimension_numbers<[1], [0], [0], [1], [0, 0, 1, 1], [], []>} : vector<8x256xbf16>, vector<256x256xbf16>, vector<8x256xf32> -> vector<8x256xf32>
    %c1_94 = arith.constant 1 : index
    %c0_95 = arith.constant 0 : index
    %c0_96 = arith.constant 0 : index
    %109 = vector.load %arg15[%c1_94, %c0_95, %c0_96] : memref<8x8x256xbf16, #tpu.memory_space<vmem>>, vector<1x8x256xbf16>
    %110 = vector.shape_cast %109 : vector<1x8x256xbf16> to vector<8x256xbf16>
    %c1_97 = arith.constant 1 : index
    %c0_98 = arith.constant 0 : index
    %c0_99 = arith.constant 0 : index
    %111 = vector.load %arg4[%c1_97, %c0_98, %c0_99] : memref<4x256x256xbf16, #tpu.memory_space<vmem>>, vector<1x256x256xbf16>
    %112 = vector.shape_cast %111 : vector<1x256x256xbf16> to vector<256x256xbf16>
    %cst_100 = arith.constant dense<0.000000e+00> : vector<8x256xf32>
    %113 = tpu.matmul %110, %112, %cst_100 {dimension_numbers = #tpu.dot_dimension_numbers<[1], [0], [0], [1], [0, 0, 1, 1], [], []>} : vector<8x256xbf16>, vector<256x256xbf16>, vector<8x256xf32> -> vector<8x256xf32>
    %c2_101 = arith.constant 2 : index
    %c0_102 = arith.constant 0 : index
    %c0_103 = arith.constant 0 : index
    %114 = vector.load %arg15[%c2_101, %c0_102, %c0_103] : memref<8x8x256xbf16, #tpu.memory_space<vmem>>, vector<1x8x256xbf16>
    %115 = vector.shape_cast %114 : vector<1x8x256xbf16> to vector<8x256xbf16>
    %c2_104 = arith.constant 2 : index
    %c0_105 = arith.constant 0 : index
    %c0_106 = arith.constant 0 : index
    %116 = vector.load %arg4[%c2_104, %c0_105, %c0_106] : memref<4x256x256xbf16, #tpu.memory_space<vmem>>, vector<1x256x256xbf16>
    %117 = vector.shape_cast %116 : vector<1x256x256xbf16> to vector<256x256xbf16>
    %cst_107 = arith.constant dense<0.000000e+00> : vector<8x256xf32>
    %118 = tpu.matmul %115, %117, %cst_107 {dimension_numbers = #tpu.dot_dimension_numbers<[1], [0], [0], [1], [0, 0, 1, 1], [], []>} : vector<8x256xbf16>, vector<256x256xbf16>, vector<8x256xf32> -> vector<8x256xf32>
    %c3_108 = arith.constant 3 : index
    %c0_109 = arith.constant 0 : index
    %c0_110 = arith.constant 0 : index
    %119 = vector.load %arg15[%c3_108, %c0_109, %c0_110] : memref<8x8x256xbf16, #tpu.memory_space<vmem>>, vector<1x8x256xbf16>
    %120 = vector.shape_cast %119 : vector<1x8x256xbf16> to vector<8x256xbf16>
    %c3_111 = arith.constant 3 : index
    %c0_112 = arith.constant 0 : index
    %c0_113 = arith.constant 0 : index
    %121 = vector.load %arg4[%c3_111, %c0_112, %c0_113] : memref<4x256x256xbf16, #tpu.memory_space<vmem>>, vector<1x256x256xbf16>
    %122 = vector.shape_cast %121 : vector<1x256x256xbf16> to vector<256x256xbf16>
    %cst_114 = arith.constant dense<0.000000e+00> : vector<8x256xf32>
    %123 = tpu.matmul %120, %122, %cst_114 {dimension_numbers = #tpu.dot_dimension_numbers<[1], [0], [0], [1], [0, 0, 1, 1], [], []>} : vector<8x256xbf16>, vector<256x256xbf16>, vector<8x256xf32> -> vector<8x256xf32>
    %124 = arith.addf %108, %113 : vector<8x256xf32>
    %125 = arith.addf %118, %123 : vector<8x256xf32>
    %126 = arith.addf %124, %125 : vector<8x256xf32>
    %c0_115 = arith.constant 0 : index
    %c0_116 = arith.constant 0 : index
    %127 = vector.load %arg5[%c0_115, %c0_116] : memref<1x256xf32, #tpu.memory_space<vmem>>, vector<1x256xf32>
    %128 = vector.broadcast %127 : vector<1x256xf32> to vector<8x256xf32>
    %129 = arith.addf %126, %128 : vector<8x256xf32>
    %cst_117 = arith.constant 0.000000e+00 : f32
    %130 = vector.broadcast %cst_117 : f32 to vector<8x256xf32>
    %131 = arith.maximumf %129, %130 : vector<8x256xf32>
    %132 = arith.truncf %131 : vector<8x256xf32> to vector<8x256xbf16>
    %c0_118 = arith.constant 0 : index
    %c0_119 = arith.constant 0 : index
    %133 = vector.load %arg16[%c0_118, %c0_119] : memref<8x768xbf16, #tpu.memory_space<vmem>>, vector<8x256xbf16>
    tpu.vector_store %arg16[%c0_118, %c0_119], %132 {strides = array<i32>} : memref<8x768xbf16, #tpu.memory_space<vmem>>, vector<8x256xbf16>,
    %c2_120 = arith.constant 2 : index
    %c0_121 = arith.constant 0 : index
    %c0_122 = arith.constant 0 : index
    %134 = vector.load %arg15[%c2_120, %c0_121, %c0_122] : memref<8x8x256xbf16, #tpu.memory_space<vmem>>, vector<1x8x256xbf16>
    %135 = vector.shape_cast %134 : vector<1x8x256xbf16> to vector<8x256xbf16>
    %c0_123 = arith.constant 0 : index
    %c0_124 = arith.constant 0 : index
    %c0_125 = arith.constant 0 : index
    %136 = vector.load %arg4[%c0_123, %c0_124, %c0_125] : memref<4x256x256xbf16, #tpu.memory_space<vmem>>, vector<1x256x256xbf16>
    %137 = vector.shape_cast %136 : vector<1x256x256xbf16> to vector<256x256xbf16>
    %cst_126 = arith.constant dense<0.000000e+00> : vector<8x256xf32>
    %138 = tpu.matmul %135, %137, %cst_126 {dimension_numbers = #tpu.dot_dimension_numbers<[1], [0], [0], [1], [0, 0, 1, 1], [], []>} : vector<8x256xbf16>, vector<256x256xbf16>, vector<8x256xf32> -> vector<8x256xf32>
    %c3_127 = arith.constant 3 : index
    %c0_128 = arith.constant 0 : index
    %c0_129 = arith.constant 0 : index
    %139 = vector.load %arg15[%c3_127, %c0_128, %c0_129] : memref<8x8x256xbf16, #tpu.memory_space<vmem>>, vector<1x8x256xbf16>
    %140 = vector.shape_cast %139 : vector<1x8x256xbf16> to vector<8x256xbf16>
    %c1_130 = arith.constant 1 : index
    %c0_131 = arith.constant 0 : index
    %c0_132 = arith.constant 0 : index
    %141 = vector.load %arg4[%c1_130, %c0_131, %c0_132] : memref<4x256x256xbf16, #tpu.memory_space<vmem>>, vector<1x256x256xbf16>
    %142 = vector.shape_cast %141 : vector<1x256x256xbf16> to vector<256x256xbf16>
    %cst_133 = arith.constant dense<0.000000e+00> : vector<8x256xf32>
    %143 = tpu.matmul %140, %142, %cst_133 {dimension_numbers = #tpu.dot_dimension_numbers<[1], [0], [0], [1], [0, 0, 1, 1], [], []>} : vector<8x256xbf16>, vector<256x256xbf16>, vector<8x256xf32> -> vector<8x256xf32>
    %c4_134 = arith.constant 4 : index
    %c0_135 = arith.constant 0 : index
    %c0_136 = arith.constant 0 : index
    %144 = vector.load %arg15[%c4_134, %c0_135, %c0_136] : memref<8x8x256xbf16, #tpu.memory_space<vmem>>, vector<1x8x256xbf16>
    %145 = vector.shape_cast %144 : vector<1x8x256xbf16> to vector<8x256xbf16>
    %c2_137 = arith.constant 2 : index
    %c0_138 = arith.constant 0 : index
    %c0_139 = arith.constant 0 : index
    %146 = vector.load %arg4[%c2_137, %c0_138, %c0_139] : memref<4x256x256xbf16, #tpu.memory_space<vmem>>, vector<1x256x256xbf16>
    %147 = vector.shape_cast %146 : vector<1x256x256xbf16> to vector<256x256xbf16>
    %cst_140 = arith.constant dense<0.000000e+00> : vector<8x256xf32>
    %148 = tpu.matmul %145, %147, %cst_140 {dimension_numbers = #tpu.dot_dimension_numbers<[1], [0], [0], [1], [0, 0, 1, 1], [], []>} : vector<8x256xbf16>, vector<256x256xbf16>, vector<8x256xf32> -> vector<8x256xf32>
    %c5_141 = arith.constant 5 : index
    %c0_142 = arith.constant 0 : index
    %c0_143 = arith.constant 0 : index
    %149 = vector.load %arg15[%c5_141, %c0_142, %c0_143] : memref<8x8x256xbf16, #tpu.memory_space<vmem>>, vector<1x8x256xbf16>
    %150 = vector.shape_cast %149 : vector<1x8x256xbf16> to vector<8x256xbf16>
    %c3_144 = arith.constant 3 : index
    %c0_145 = arith.constant 0 : index
    %c0_146 = arith.constant 0 : index
    %151 = vector.load %arg4[%c3_144, %c0_145, %c0_146] : memref<4x256x256xbf16, #tpu.memory_space<vmem>>, vector<1x256x256xbf16>
    %152 = vector.shape_cast %151 : vector<1x256x256xbf16> to vector<256x256xbf16>
    %cst_147 = arith.constant dense<0.000000e+00> : vector<8x256xf32>
    %153 = tpu.matmul %150, %152, %cst_147 {dimension_numbers = #tpu.dot_dimension_numbers<[1], [0], [0], [1], [0, 0, 1, 1], [], []>} : vector<8x256xbf16>, vector<256x256xbf16>, vector<8x256xf32> -> vector<8x256xf32>
    %154 = arith.addf %138, %143 : vector<8x256xf32>
    %155 = arith.addf %148, %153 : vector<8x256xf32>
    %156 = arith.addf %154, %155 : vector<8x256xf32>
    %c0_148 = arith.constant 0 : index
    %c0_149 = arith.constant 0 : index
    %157 = vector.load %arg5[%c0_148, %c0_149] : memref<1x256xf32, #tpu.memory_space<vmem>>, vector<1x256xf32>
    %158 = vector.broadcast %157 : vector<1x256xf32> to vector<8x256xf32>
    %159 = arith.addf %156, %158 : vector<8x256xf32>
    %cst_150 = arith.constant 0.000000e+00 : f32
    %160 = vector.broadcast %cst_150 : f32 to vector<8x256xf32>
    %161 = arith.maximumf %159, %160 : vector<8x256xf32>
    %162 = arith.truncf %161 : vector<8x256xf32> to vector<8x256xbf16>
    %c0_151 = arith.constant 0 : index
    %c256 = arith.constant 256 : index
    %163 = vector.load %arg16[%c0_151, %c256] : memref<8x768xbf16, #tpu.memory_space<vmem>>, vector<8x256xbf16>
    tpu.vector_store %arg16[%c0_151, %c256], %162 {strides = array<i32>} : memref<8x768xbf16, #tpu.memory_space<vmem>>, vector<8x256xbf16>,
    %c4_152 = arith.constant 4 : index
    %c0_153 = arith.constant 0 : index
    %c0_154 = arith.constant 0 : index
    %164 = vector.load %arg15[%c4_152, %c0_153, %c0_154] : memref<8x8x256xbf16, #tpu.memory_space<vmem>>, vector<1x8x256xbf16>
    %165 = vector.shape_cast %164 : vector<1x8x256xbf16> to vector<8x256xbf16>
    %c0_155 = arith.constant 0 : index
    %c0_156 = arith.constant 0 : index
    %c0_157 = arith.constant 0 : index
    %166 = vector.load %arg4[%c0_155, %c0_156, %c0_157] : memref<4x256x256xbf16, #tpu.memory_space<vmem>>, vector<1x256x256xbf16>
    %167 = vector.shape_cast %166 : vector<1x256x256xbf16> to vector<256x256xbf16>
    %cst_158 = arith.constant dense<0.000000e+00> : vector<8x256xf32>
    %168 = tpu.matmul %165, %167, %cst_158 {dimension_numbers = #tpu.dot_dimension_numbers<[1], [0], [0], [1], [0, 0, 1, 1], [], []>} : vector<8x256xbf16>, vector<256x256xbf16>, vector<8x256xf32> -> vector<8x256xf32>
    %c5_159 = arith.constant 5 : index
    %c0_160 = arith.constant 0 : index
    %c0_161 = arith.constant 0 : index
    %169 = vector.load %arg15[%c5_159, %c0_160, %c0_161] : memref<8x8x256xbf16, #tpu.memory_space<vmem>>, vector<1x8x256xbf16>
    %170 = vector.shape_cast %169 : vector<1x8x256xbf16> to vector<8x256xbf16>
    %c1_162 = arith.constant 1 : index
    %c0_163 = arith.constant 0 : index
    %c0_164 = arith.constant 0 : index
    %171 = vector.load %arg4[%c1_162, %c0_163, %c0_164] : memref<4x256x256xbf16, #tpu.memory_space<vmem>>, vector<1x256x256xbf16>
    %172 = vector.shape_cast %171 : vector<1x256x256xbf16> to vector<256x256xbf16>
    %cst_165 = arith.constant dense<0.000000e+00> : vector<8x256xf32>
    %173 = tpu.matmul %170, %172, %cst_165 {dimension_numbers = #tpu.dot_dimension_numbers<[1], [0], [0], [1], [0, 0, 1, 1], [], []>} : vector<8x256xbf16>, vector<256x256xbf16>, vector<8x256xf32> -> vector<8x256xf32>
    %c6_166 = arith.constant 6 : index
    %c0_167 = arith.constant 0 : index
    %c0_168 = arith.constant 0 : index
    %174 = vector.load %arg15[%c6_166, %c0_167, %c0_168] : memref<8x8x256xbf16, #tpu.memory_space<vmem>>, vector<1x8x256xbf16>
    %175 = vector.shape_cast %174 : vector<1x8x256xbf16> to vector<8x256xbf16>
    %c2_169 = arith.constant 2 : index
    %c0_170 = arith.constant 0 : index
    %c0_171 = arith.constant 0 : index
    %176 = vector.load %arg4[%c2_169, %c0_170, %c0_171] : memref<4x256x256xbf16, #tpu.memory_space<vmem>>, vector<1x256x256xbf16>
    %177 = vector.shape_cast %176 : vector<1x256x256xbf16> to vector<256x256xbf16>
    %cst_172 = arith.constant dense<0.000000e+00> : vector<8x256xf32>
    %178 = tpu.matmul %175, %177, %cst_172 {dimension_numbers = #tpu.dot_dimension_numbers<[1], [0], [0], [1], [0, 0, 1, 1], [], []>} : vector<8x256xbf16>, vector<256x256xbf16>, vector<8x256xf32> -> vector<8x256xf32>
    %c7_173 = arith.constant 7 : index
    %c0_174 = arith.constant 0 : index
    %c0_175 = arith.constant 0 : index
    %179 = vector.load %arg15[%c7_173, %c0_174, %c0_175] : memref<8x8x256xbf16, #tpu.memory_space<vmem>>, vector<1x8x256xbf16>
    %180 = vector.shape_cast %179 : vector<1x8x256xbf16> to vector<8x256xbf16>
    %c3_176 = arith.constant 3 : index
    %c0_177 = arith.constant 0 : index
    %c0_178 = arith.constant 0 : index
    %181 = vector.load %arg4[%c3_176, %c0_177, %c0_178] : memref<4x256x256xbf16, #tpu.memory_space<vmem>>, vector<1x256x256xbf16>
    %182 = vector.shape_cast %181 : vector<1x256x256xbf16> to vector<256x256xbf16>
    %cst_179 = arith.constant dense<0.000000e+00> : vector<8x256xf32>
    %183 = tpu.matmul %180, %182, %cst_179 {dimension_numbers = #tpu.dot_dimension_numbers<[1], [0], [0], [1], [0, 0, 1, 1], [], []>} : vector<8x256xbf16>, vector<256x256xbf16>, vector<8x256xf32> -> vector<8x256xf32>
    %184 = arith.addf %168, %173 : vector<8x256xf32>
    %185 = arith.addf %178, %183 : vector<8x256xf32>
    %186 = arith.addf %184, %185 : vector<8x256xf32>
    %c0_180 = arith.constant 0 : index
    %c0_181 = arith.constant 0 : index
    %187 = vector.load %arg5[%c0_180, %c0_181] : memref<1x256xf32, #tpu.memory_space<vmem>>, vector<1x256xf32>
    %188 = vector.broadcast %187 : vector<1x256xf32> to vector<8x256xf32>
    %189 = arith.addf %186, %188 : vector<8x256xf32>
    %cst_182 = arith.constant 0.000000e+00 : f32
    %190 = vector.broadcast %cst_182 : f32 to vector<8x256xf32>
    %191 = arith.maximumf %189, %190 : vector<8x256xf32>
    %192 = arith.truncf %191 : vector<8x256xf32> to vector<8x256xbf16>
    %c0_183 = arith.constant 0 : index
    %c512 = arith.constant 512 : index
    %193 = vector.load %arg16[%c0_183, %c512] : memref<8x768xbf16, #tpu.memory_space<vmem>>, vector<8x256xbf16>
    tpu.vector_store %arg16[%c0_183, %c512], %192 {strides = array<i32>} : memref<8x768xbf16, #tpu.memory_space<vmem>>, vector<8x256xbf16>,
    %c0_184 = arith.constant 0 : index
    %c0_185 = arith.constant 0 : index
    %194 = vector.load %arg16[%c0_184, %c0_185] : memref<8x768xbf16, #tpu.memory_space<vmem>>, vector<8x768xbf16>
    %c0_186 = arith.constant 0 : index
    %c0_187 = arith.constant 0 : index
    %195 = vector.load %arg6[%c0_186, %c0_187] : memref<768x128xbf16, #tpu.memory_space<vmem>>, vector<768x128xbf16>
    %cst_188 = arith.constant dense<0.000000e+00> : vector<8x128xf32>
    %196 = tpu.matmul %194, %195, %cst_188 {dimension_numbers = #tpu.dot_dimension_numbers<[1], [0], [0], [1], [0, 0, 1, 1], [], []>} : vector<8x768xbf16>, vector<768x128xbf16>, vector<8x128xf32> -> vector<8x128xf32>
    %c0_189 = arith.constant 0 : index
    %c0_190 = arith.constant 0 : index
    %197 = vector.load %arg7[%c0_189, %c0_190] : memref<1x128xf32, #tpu.memory_space<vmem>>, vector<1x128xf32>
    %198 = vector.broadcast %197 : vector<1x128xf32> to vector<8x128xf32>
    %199 = arith.addf %196, %198 : vector<8x128xf32>
    %cst_191 = arith.constant 0.000000e+00 : f32
    %200 = vector.broadcast %cst_191 : f32 to vector<8x128xf32>
    %201 = arith.maximumf %199, %200 : vector<8x128xf32>
    %202 = arith.truncf %201 : vector<8x128xf32> to vector<8x128xbf16>
    %c0_192 = arith.constant 0 : index
    %c0_193 = arith.constant 0 : index
    %203 = vector.load %arg8[%c0_192, %c0_193] : memref<128x128xbf16, #tpu.memory_space<vmem>>, vector<128x128xbf16>
    %cst_194 = arith.constant dense<0.000000e+00> : vector<8x128xf32>
    %204 = tpu.matmul %202, %203, %cst_194 {dimension_numbers = #tpu.dot_dimension_numbers<[1], [0], [0], [1], [0, 0, 1, 1], [], []>} : vector<8x128xbf16>, vector<128x128xbf16>, vector<8x128xf32> -> vector<8x128xf32>
    %c0_195 = arith.constant 0 : index
    %c0_196 = arith.constant 0 : index
    %205 = vector.load %arg9[%c0_195, %c0_196] : memref<1x128xf32, #tpu.memory_space<vmem>>, vector<1x128xf32>
    %206 = vector.broadcast %205 : vector<1x128xf32> to vector<8x128xf32>
    %207 = arith.addf %204, %206 : vector<8x128xf32>
    %cst_197 = arith.constant 0.000000e+00 : f32
    %208 = vector.broadcast %cst_197 : f32 to vector<8x128xf32>
    %209 = arith.maximumf %207, %208 : vector<8x128xf32>
    %210 = arith.truncf %209 : vector<8x128xf32> to vector<8x128xbf16>
    %c0_198 = arith.constant 0 : index
    %c0_199 = arith.constant 0 : index
    %211 = vector.load %arg10[%c0_198, %c0_199] : memref<128x128xbf16, #tpu.memory_space<vmem>>, vector<128x128xbf16>
    %cst_200 = arith.constant dense<0.000000e+00> : vector<8x128xf32>
    %212 = tpu.matmul %210, %211, %cst_200 {dimension_numbers = #tpu.dot_dimension_numbers<[1], [0], [0], [1], [0, 0, 1, 1], [], []>} : vector<8x128xbf16>, vector<128x128xbf16>, vector<8x128xf32> -> vector<8x128xf32>
    %c0_201 = arith.constant 0 : index
    %c0_202 = arith.constant 0 : index
    %213 = vector.load %arg11[%c0_201, %c0_202] : memref<1x128xf32, #tpu.memory_space<vmem>>, vector<1x128xf32>
    %214 = vector.broadcast %213 : vector<1x128xf32> to vector<8x128xf32>
    %215 = arith.addf %212, %214 : vector<8x128xf32>
    %cst_203 = arith.constant 0.000000e+00 : f32
    %216 = vector.broadcast %cst_203 : f32 to vector<8x128xf32>
    %217 = arith.maximumf %215, %216 : vector<8x128xf32>
    %218 = arith.truncf %217 : vector<8x128xf32> to vector<8x128xbf16>
    %c0_204 = arith.constant 0 : index
    %c0_205 = arith.constant 0 : index
    %219 = vector.load %arg12[%c0_204, %c0_205] : memref<128x128xbf16, #tpu.memory_space<vmem>>, vector<128x128xbf16>
    %cst_206 = arith.constant dense<0.000000e+00> : vector<8x128xf32>
    %220 = tpu.matmul %218, %219, %cst_206 {dimension_numbers = #tpu.dot_dimension_numbers<[1], [0], [0], [1], [0, 0, 1, 1], [], []>} : vector<8x128xbf16>, vector<128x128xbf16>, vector<8x128xf32> -> vector<8x128xf32>
    %c0_207 = arith.constant 0 : index
    %c0_208 = arith.constant 0 : index
    %221 = vector.load %arg13[%c0_207, %c0_208] : memref<1x128xf32, #tpu.memory_space<vmem>>, vector<1x128xf32>
    %222 = vector.broadcast %221 : vector<1x128xf32> to vector<8x128xf32>
    %223 = arith.addf %220, %222 : vector<8x128xf32>
    %c0_209 = arith.constant 0 : index
    %c0_210 = arith.constant 0 : index
    %224 = vector.load %arg14[%c0_209, %c0_210] : memref<8x128xf32, #tpu.memory_space<vmem>>, vector<8x128xf32>
    tpu.vector_store %arg14[%c0_209, %c0_210], %223 {strides = array<i32>} : memref<8x128xf32, #tpu.memory_space<vmem>>, vector<8x128xf32>,
    return
  }
  func.func @transform_0(%arg0: i32) -> (i32, i32, i32) {
    %c0_i32 = arith.constant 0 : i32
    %c0_i32_0 = arith.constant 0 : i32
    %c0_i32_1 = arith.constant 0 : i32
    return %c0_i32, %arg0, %c0_i32_0 : i32, i32, i32
  }
  func.func @transform_1(%arg0: i32) -> (i32, i32) {
    %c0_i32 = arith.constant 0 : i32
    %c0_i32_0 = arith.constant 0 : i32
    %c0_i32_1 = arith.constant 0 : i32
    return %c0_i32, %c0_i32_0 : i32, i32
  }
  func.func @transform_2(%arg0: i32) -> (i32, i32) {
    %c0_i32 = arith.constant 0 : i32
    %c0_i32_0 = arith.constant 0 : i32
    %c0_i32_1 = arith.constant 0 : i32
    return %c0_i32, %c0_i32_0 : i32, i32
  }
  func.func @transform_3(%arg0: i32) -> (i32, i32, i32) {
    %c0_i32 = arith.constant 0 : i32
    %c0_i32_0 = arith.constant 0 : i32
    %c0_i32_1 = arith.constant 0 : i32
    %c0_i32_2 = arith.constant 0 : i32
    return %c0_i32, %c0_i32_0, %c0_i32_1 : i32, i32, i32
  }
  func.func @transform_4(%arg0: i32) -> (i32, i32) {
    %c0_i32 = arith.constant 0 : i32
    %c0_i32_0 = arith.constant 0 : i32
    %c0_i32_1 = arith.constant 0 : i32
    return %c0_i32, %c0_i32_0 : i32, i32
  }
  func.func @transform_5(%arg0: i32) -> (i32, i32) {
    %c0_i32 = arith.constant 0 : i32
    %c0_i32_0 = arith.constant 0 : i32
    %c0_i32_1 = arith.constant 0 : i32
    return %c0_i32, %c0_i32_0 : i32, i32
  }
  func.func @transform_6(%arg0: i32) -> (i32, i32) {
    %c0_i32 = arith.constant 0 : i32
    %c0_i32_0 = arith.constant 0 : i32
    %c0_i32_1 = arith.constant 0 : i32
    return %c0_i32, %c0_i32_0 : i32, i32
  }
  func.func @transform_7(%arg0: i32) -> (i32, i32) {
    %c0_i32 = arith.constant 0 : i32
    %c0_i32_0 = arith.constant 0 : i32
    %c0_i32_1 = arith.constant 0 : i32
    return %c0_i32, %c0_i32_0 : i32, i32
  }
  func.func @transform_8(%arg0: i32) -> (i32, i32) {
    %c0_i32 = arith.constant 0 : i32
    %c0_i32_0 = arith.constant 0 : i32
    %c0_i32_1 = arith.constant 0 : i32
    return %c0_i32, %c0_i32_0 : i32, i32
  }
  func.func @transform_9(%arg0: i32) -> (i32, i32) {
    %c0_i32 = arith.constant 0 : i32
    %c0_i32_0 = arith.constant 0 : i32
    %c0_i32_1 = arith.constant 0 : i32
    return %c0_i32, %c0_i32_0 : i32, i32
  }
  func.func @transform_10(%arg0: i32) -> (i32, i32) {
    %c0_i32 = arith.constant 0 : i32
    %c0_i32_0 = arith.constant 0 : i32
    %c0_i32_1 = arith.constant 0 : i32
    return %c0_i32, %c0_i32_0 : i32, i32
  }
  func.func @transform_11(%arg0: i32) -> (i32, i32) {
    %c0_i32 = arith.constant 0 : i32
    %c0_i32_0 = arith.constant 0 : i32
    %c0_i32_1 = arith.constant 0 : i32
    return %c0_i32, %c0_i32_0 : i32, i32
  }
  func.func @transform_12(%arg0: i32) -> (i32, i32) {
    %c0_i32 = arith.constant 0 : i32
    %c0_i32_0 = arith.constant 0 : i32
    %c0_i32_1 = arith.constant 0 : i32
    return %c0_i32, %c0_i32_0 : i32, i32
  }
  func.func @transform_13(%arg0: i32) -> (i32, i32) {
    %c0_i32 = arith.constant 0 : i32
    %c0_i32_0 = arith.constant 0 : i32
    return %arg0, %c0_i32 : i32, i32
  }
}

</mosaic_0001>

<bundles_post_ra>
// kernel: tile.4
= control target key start
LH: loop header
LB: loop body
LE: loop exit
PB: predicated region body
PF: predicated region fallthrough
CT: control target
= control target key end

     0   :  { %s20_s0 = inlined_call_operand.<no memory space> [shape: f32[], index: 0, kind: input, shape index: {}]   ;;  %s21_s1 = inlined_call_operand.vmem [shape: f32[192], index: 1, kind: output, shape index: {}]  }
   0x1   :  { %v2_v0 = vstv %s20_s0 }
   0x2   :  { %3 = vst [vmem:[%s21_s1] sm:$0x3] %v2_v0 }

// kernel: tile.3
= control target key start
LH: loop header
LB: loop body
LE: loop exit
PB: predicated region body
PF: predicated region fallthrough
CT: control target
= control target key end

     0   :  { %s20_s0 = inlined_call_operand.<no memory space> [shape: f32[], index: 0, kind: input, shape index: {}]   ;;  %s21_s1 = inlined_call_operand.vmem [shape: f32[64], index: 1, kind: output, shape index: {}]  }
   0x1   :  { %v2_v0 = vstv %s20_s0 }
   0x2   :  { %3 = vst [vmem:[%s21_s1] sm:$0x1] %v2_v0 }

// kernel: cnn_forward.1
= control target key start
LH: loop header
LB: loop body
LE: loop exit
PB: predicated region body
PF: predicated region fallthrough
CT: control target
= control target key end

     0   :  { %s17429_s25 = smov 0   ;;  %s17431_s26 = smov 0   ;;  %s21269_s0 = inlined_call_operand.vmem [shape: bf16[8,16,1152], index: 0, kind: input, shape index: {}]   ;;  %s21270_s1 = inlined_call_operand.vmem [shape: bf16[1152,256], index: 1, kind: input, shape index: {}]   ;;  %s21271_s2 = inlined_call_operand.vmem [shape: f32[1,256], index: 2, kind: input, shape index: {}]   ;;  %s21272_s3 = inlined_call_operand.vmem [shape: bf16[4,256,256], index: 3, kind: input, shape index: {}]   ;;  %s21273_s4 = inlined_call_operand.vmem [shape: f32[1,256], index: 4, kind: input, shape index: {}]   ;;  %s21274_s5 = inlined_call_operand.vmem [shape: bf16[768,128], index: 5, kind: input, shape index: {}]   ;;  %s21275_s6 = inlined_call_operand.vmem [shape: f32[1,128], index: 6, kind: input, shape index: {}]   ;;  %s21276_s7 = inlined_call_operand.vmem [shape: bf16[128,128], index: 7, kind: input, shape index: {}]   ;;  %s21277_s8 = inlined_call_operand.vmem [shape: f32[1,128], index: 8, kind: input, shape index: {}, may-alias: {8,10}]   ;;  %s21278_s9 = inlined_call_operand.vmem [shape: bf16[128,128], index: 9, kind: input, shape index: {}]   ;;  %s21279_s10 = inlined_call_operand.vmem [shape: f32[1,128], index: 10, kind: input, shape index: {}, may-alias: {8,10}]   ;;  %s21280_s11 = inlined_call_operand.vmem [shape: bf16[128,128], index: 11, kind: input, shape index: {}]   ;;  %s21281_s12 = inlined_call_operand.vmem [shape: f32[1,128], index: 12, kind: input, shape index: {}]   ;;  %s21282_s13 = inlined_call_operand.vmem [shape: f32[16,128], index: 13, kind: output, shape index: {}]  }
   0x1   :  { %s17433_s27 = smov 0  }
   0x2 LB: > { %s13507_s28 = sadd.s32 4294967295, %s17354_s27   ;;  %s17446_s29 = sadd.s32 1, %s17354_s27   ;;  %s17354_s27 = sphi %s17433_s27, %s21525_s27   ;;  %s17350_s26 = sphi %s17431_s26, %s21524_s26   ;;  %s17346_s25 = sphi %s17429_s25, %s21523_s25  }
   0x3   : > { %s27_s30 = ssub.s32 %s17354_s27, %s17446_s29  ;;  %s30_s14 = sadd.s32 1, %s17350_s26 }
   0x4   : > { %p28_p0 = scmp.eq.s32.totalorder %s27_s30, 0  ;;  %p37_p1 = scmp.ne.s32.totalorder %s17350_s26, %s17346_s25 }
   0x5   : > { %p38_p2 = scmp.eq.s32.totalorder %s17354_s27, 0  ;;  %p13510_p4 = scmp.ge.s32.totalorder %s17354_s27, 2 }
   0x6   : > { %s17455_s15 = scalar_select %p28_p0, %s17350_s26, %s30_s14  }
   0x7   : > { %p39_p3 = por %p38_p2, %p37_p1  ;;  %377 = sbr.rel (%p13510_p4) target bundleno = 40 (0x28), region = 64 }
   0xe   : > { %380 = sbr.rel (!%p39_p3) target bundleno = 40 (0x28), region = 68  ;;  %s382_s16 = sand.u32 (%p39_p3), 1, %s17350_s26  }
   0xf   : > { %s15911_s17 = smul.u32 (%p39_p3), 36, %s17354_s27 }
  0x10   : > { %s15910_s18 = smul.u32 (%p39_p3), 288, %s382_s16 }
  0x11   : > { %s17463_s21 = scalar_lea.vmem (%p39_p3), %s21269_s0, %s15911_s17 }
  0x12   : > { %v402_v0 = vld [vmem:[%s17463_s21] sm:$0xff] (%p39_p3)  ;;  %v404_v1 = vld [vmem:[%s17463_s21 + $0x8] sm:$0xff] (%p39_p3)  ;;  %v406_v2 = vld [vmem:[%s17463_s21 + $0x10] sm:$0xff] (%p39_p3)  ;;  %s17468_s22 = scalar_lea.vmem (%p39_p3), [#allocation4], %s15910_s18 }
  0x13   : > { %403 = vst [vmem:[%s17468_s22] sm:$0xff] (%p39_p3), %v402_v0  ;;  %405 = vst [vmem:[%s17468_s22 + $0x8] sm:$0xff] (%p39_p3), %v404_v1  ;;  %v408_v3 = vld [vmem:[%s17463_s21 + $0x18] sm:$0xff] (%p39_p3)  ;;  %v410_v4 = vld [vmem:[%s17463_s21 + $0x48] sm:$0xff] (%p39_p3) }
  0x14   : > { %407 = vst [vmem:[%s17468_s22 + $0x10] sm:$0xff] (%p39_p3), %v406_v2  ;;  %v412_v5 = vld [vmem:[%s17463_s21 + $0x50] sm:$0xff] (%p39_p3)  ;;  %409 = vst [vmem:[%s17468_s22 + $0x18] sm:$0xff] (%p39_p3), %v408_v3  ;;  %v414_v6 = vld [vmem:[%s17463_s21 + $0x58] sm:$0xff] (%p39_p3) }
  0x15   : > { %411 = vst [vmem:[%s17468_s22 + $0x24] sm:$0xff] %v410_v4  ;;  %413 = vst [vmem:[%s17468_s22 + $0x2c] sm:$0xff] %v412_v5  ;;  %v416_v7 = vld [vmem:[%s17463_s21 + $0x60] sm:$0xff]  ;;  %v418_v8 = vld [vmem:[%s17463_s21 + $0x90] sm:$0xff] }
  0x16   : > { %415 = vst [vmem:[%s17468_s22 + $0x34] sm:$0xff] %v414_v6  ;;  %417 = vst [vmem:[%s17468_s22 + $0x3c] sm:$0xff] %v416_v7  ;;  %v420_v9 = vld [vmem:[%s17463_s21 + $0x98] sm:$0xff]  ;;  %v422_v10 = vld [vmem:[%s17463_s21 + $0xa0] sm:$0xff] }
  0x17   : > { %419 = vst [vmem:[%s17468_s22 + $0x48] sm:$0xff] %v418_v8  ;;  %v424_v11 = vld [vmem:[%s17463_s21 + $0xa8] sm:$0xff]  ;;  %421 = vst [vmem:[%s17468_s22 + $0x50] sm:$0xff] %v420_v9  ;;  %v426_v12 = vld [vmem:[%s17463_s21 + $0xd8] sm:$0xff] }
  0x18   : > { %423 = vst [vmem:[%s17468_s22 + $0x58] sm:$0xff] %v422_v10  ;;  %425 = vst [vmem:[%s17468_s22 + $0x60] sm:$0xff] %v424_v11  ;;  %v428_v13 = vld [vmem:[%s17463_s21 + $0xe0] sm:$0xff]  ;;  %v430_v14 = vld [vmem:[%s17463_s21 + $0xe8] sm:$0xff] }
  0x19   : > { %427 = vst [vmem:[%s17468_s22 + $0x6c] sm:$0xff] %v426_v12  ;;  %429 = vst [vmem:[%s17468_s22 + $0x74] sm:$0xff] %v428_v13  ;;  %v432_v15 = vld [vmem:[%s17463_s21 + $0xf0] sm:$0xff]  ;;  %v434_v16 = vld [vmem:[%s17463_s21 + $0x120] sm:$0xff] }
  0x1a   : > { %431 = vst [vmem:[%s17468_s22 + $0x7c] sm:$0xff] %v430_v14  ;;  %v436_v17 = vld [vmem:[%s17463_s21 + $0x128] sm:$0xff]  ;;  %433 = vst [vmem:[%s17468_s22 + $0x84] sm:$0xff] %v432_v15  ;;  %v438_v18 = vld [vmem:[%s17463_s21 + $0x130] sm:$0xff] }
  0x1b   : > { %435 = vst [vmem:[%s17468_s22 + $0x90] sm:$0xff] %v434_v16  ;;  %437 = vst [vmem:[%s17468_s22 + $0x98] sm:$0xff] %v436_v17  ;;  %v440_v19 = vld [vmem:[%s17463_s21 + $0x138] sm:$0xff]  ;;  %v442_v20 = vld [vmem:[%s17463_s21 + $0x168] sm:$0xff] }
  0x1c   : > { %439 = vst [vmem:[%s17468_s22 + $0xa0] sm:$0xff] %v438_v18  ;;  %441 = vst [vmem:[%s17468_s22 + $0xa8] sm:$0xff] %v440_v19  ;;  %v444_v21 = vld [vmem:[%s17463_s21 + $0x170] sm:$0xff]  ;;  %v446_v22 = vld [vmem:[%s17463_s21 + $0x178] sm:$0xff] }
  0x1d   : > { %443 = vst [vmem:[%s17468_s22 + $0xb4] sm:$0xff] %v442_v20  ;;  %v448_v23 = vld [vmem:[%s17463_s21 + $0x180] sm:$0xff]  ;;  %445 = vst [vmem:[%s17468_s22 + $0xbc] sm:$0xff] %v444_v21  ;;  %v450_v24 = vld [vmem:[%s17463_s21 + $0x1b0] sm:$0xff] }
  0x1e   : > { %447 = vst [vmem:[%s17468_s22 + $0xc4] sm:$0xff] %v446_v22  ;;  %449 = vst [vmem:[%s17468_s22 + $0xcc] sm:$0xff] %v448_v23  ;;  %v452_v25 = vld [vmem:[%s17463_s21 + $0x1b8] sm:$0xff]  ;;  %v454_v26 = vld [vmem:[%s17463_s21 + $0x1c0] sm:$0xff] }
  0x1f   : > { %451 = vst [vmem:[%s17468_s22 + $0xd8] sm:$0xff] %v450_v24  ;;  %453 = vst [vmem:[%s17468_s22 + $0xe0] sm:$0xff] %v452_v25  ;;  %v456_v27 = vld [vmem:[%s17463_s21 + $0x1c8] sm:$0xff]  ;;  %v458_v28 = vld [vmem:[%s17463_s21 + $0x1f8] sm:$0xff] }
  0x20   : > { %455 = vst [vmem:[%s17468_s22 + $0xe8] sm:$0xff] %v454_v26  ;;  %v460_v29 = vld [vmem:[%s17463_s21 + $0x200] sm:$0xff]  ;;  %457 = vst [vmem:[%s17468_s22 + $0xf0] sm:$0xff] %v456_v27  ;;  %v462_v30 = vld [vmem:[%s17463_s21 + $0x208] sm:$0xff] }
  0x21   : > { %459 = vst [vmem:[%s17468_s22 + $0xfc] sm:$0xff] %v458_v28  ;;  %461 = vst [vmem:[%s17468_s22 + $0x104] sm:$0xff] %v460_v29  ;;  %v464_v31 = vld [vmem:[%s17463_s21 + $0x210] sm:$0xff]  ;;  %v13512_v32 = vld [vmem:[%s17463_s21 + $0x20] sm:$0xf] }
  0x22   : > { %463 = vst [vmem:[%s17468_s22 + $0x10c] sm:$0xff] %v462_v30  ;;  %465 = vst [vmem:[%s17468_s22 + $0x114] sm:$0xff] %v464_v31  ;;  %v13514_v33 = vld [vmem:[%s17463_s21 + $0x68] sm:$0xf]  ;;  %v13516_v34 = vld [vmem:[%s17463_s21 + $0xb0] sm:$0xf] }
  0x23   : > { %13513 = vst [vmem:[%s17468_s22 + $0x20] sm:$0xf] %v13512_v32  ;;  %v13518_v35 = vld [vmem:[%s17463_s21 + $0xf8] sm:$0xf]  ;;  %13515 = vst [vmem:[%s17468_s22 + $0x44] sm:$0xf] %v13514_v33 }
  0x24   : > { %13517 = vst [vmem:[%s17468_s22 + $0x68] sm:$0xf] %v13516_v34  ;;  %13519 = vst [vmem:[%s17468_s22 + $0x8c] sm:$0xf] %v13518_v35  ;;  %v13520_v36 = vld [vmem:[%s17463_s21 + $0x140] sm:$0xf] }
  0x25   : > { %v13522_v37 = vld [vmem:[%s17463_s21 + $0x188] sm:$0xf]  ;;  %v13524_v38 = vld [vmem:[%s17463_s21 + $0x1d0] sm:$0xf]  ;;  %13521 = vst [vmem:[%s17468_s22 + $0xb0] sm:$0xf] %v13520_v36 }
  0x26   : > { %13523 = vst [vmem:[%s17468_s22 + $0xd4] sm:$0xf] %v13522_v37  ;;  %13525 = vst [vmem:[%s17468_s22 + $0xf8] sm:$0xf] %v13524_v38  ;;  %v13526_v39 = vld [vmem:[%s17463_s21 + $0x218] sm:$0xf] }
  0x27   : > { %13527 = vst [vmem:[%s17468_s22 + $0x11c] sm:$0xf] %v13526_v39 }
  0x28 PF: > { %p13528_p5 = scmp.ge.s32.totalorder %s17354_s27, 1  ;;  %p493_p6 = scmp.lt.s32.totalorder %s17354_s27, 3 }
  0x2a   : > { %p494_p7 = pnand %p13528_p5, %p493_p6 }
  0x2c   : > { %497 = sbr.rel (%p494_p7) target bundleno = 2685 (0xa7d), region = 94 }
  0x33   : > { %v15940_v40 = vld [vmem:[%s21270_s1 + $0x4] ss:$8 sps:$4 sm:$0xff]   ;;  %v15942_v41 = vld [vmem:[%s21270_s1] ss:$8 sps:$4 sm:$0xff]   ;;  %v15943_v42 = vld [vmem:[%s21270_s1 + $0x14] ss:$8 sps:$4 sm:$0xff]  }
  0x34   : > { %1460 = vmatprep.subr.bf16.mxu0 %v15940_v40  ;;  %2590 = vmatprep.subr.bf16.mxu1 %v15940_v40  ;;  %v15945_v43 = vld [vmem:[%s21270_s1 + $0x10] ss:$8 sps:$4 sm:$0xff]   ;;  %v15946_v44 = vld [vmem:[%s21270_s1 + $0x24] ss:$8 sps:$4 sm:$0xff]   ;;  %v15948_v45 = vld [vmem:[%s21270_s1 + $0x20] ss:$8 sps:$4 sm:$0xff]  }
  0x35   : > { %1461 = vmatpush1.bf16.msra.mxu0 %v15942_v41  ;;  %2591 = vmatpush1.bf16.msra.mxu1 %v15942_v41  ;;  %v15949_v46 = vld [vmem:[%s21270_s1 + $0x34] ss:$8 sps:$4 sm:$0xff]   ;;  %v15951_v47 = vld [vmem:[%s21270_s1 + $0x30] ss:$8 sps:$4 sm:$0xff]   ;;  %s500_s17 = sand.u32 1, %s17346_s25   ;;  %vm17358_vm0 = vmmov 0  }
  0x36   : > { %1462 = vmatprep.subr.bf16.mxu0 %v15943_v42  ;;  %2592 = vmatprep.subr.bf16.mxu1 %v15943_v42  ;;  %v15952_v48 = vld [vmem:[%s21270_s1 + $0x44] ss:$8 sps:$4 sm:$0xff]   ;;  %s15912_s20 = smul.u32 288, %s500_s17  ;;  %v15954_v49 = vld [vmem:[%s21270_s1 + $0x40] ss:$8 sps:$4 sm:$0xff]   ;;  %p542_p8 = scmp.lt.s32.totalorder %s13507_s28, 1 }
  0x37   : > { %v15955_v50 = vld [vmem:[%s21270_s1 + $0x54] ss:$8 sps:$4 sm:$0xff]   ;;  %v15957_v51 = vld [vmem:[%s21270_s1 + $0x50] ss:$8 sps:$4 sm:$0xff]   ;;  %v15958_v52 = vld [vmem:[%s21270_s1 + $0x64] ss:$8 sps:$4 sm:$0xff]  }
  0x38   : > { %s17589_s17 = scalar_lea.vmem [#allocation4], %s15912_s20  ;;  %v15960_v54 = vld [vmem:[%s21270_s1 + $0x60] ss:$8 sps:$4 sm:$0xff]   ;;  %v15961_v57 = vld [vmem:[%s21270_s1 + $0x74] ss:$8 sps:$4 sm:$0xff]   ;;  %s21527_s28 = smov (!%p542_p8, %s13507_s28), 1 }
  0x39   : > { %1463 = vmatpush1.bf16.msra.mxu0 %v15945_v43  ;;  %2593 = vmatpush1.bf16.msra.mxu1 %v15945_v43  ;;  %v17592_v53 = vld [vmem:[%s17589_s17] sm:$0xff]  ;;  %v15963_v59 = vld [vmem:[%s21270_s1 + $0x70] ss:$8 sps:$4 sm:$0xff]   ;;  %v15967_v62 = vld [vmem:[%s21270_s1 + $0x94] ss:$8 sps:$4 sm:$0xff]   ;;  %s13529_s23 = sshll.u32 %s21527_s28, 3 }
  0x3a   : > { %1464 = vmatprep.subr.bf16.mxu0 %v15946_v44  ;;  %2594 = vmatprep.subr.bf16.mxu1 %v15946_v44  ;;  %v13531_v55 = vcombine.high %v17592_v53, %v17592_v53  ;;  %v17600_v56 = vld [vmem:[%s17589_s17 + $0x24] sm:$0xff]  ;;  %v15969_v63 = vld [vmem:[%s21270_s1 + $0x90] ss:$8 sps:$4 sm:$0xff]   ;;  %v15973_v2 = vld [vmem:[%s21270_s1 + $0xb4] ss:$8 sps:$4 sm:$0xff]   ;;  %v13530_v13 = vcombine.low %v17592_v53, %v17592_v53  ;;  %s545_s14 = scalar_lea.vmem %s21282_s13, %s13529_s23 }
  0x3b   : > { %v13690_v58 = vcombine.high %v17600_v56, %v17600_v56  ;;  %v15964_v60 = vld [vmem:[%s21270_s1 + $0x84] ss:$8 sps:$4 sm:$0xff]   ;;  %v15966_v61 = vld [vmem:[%s21270_s1 + $0x80] ss:$8 sps:$4 sm:$0xff]   ;;  %v15975_v3 = vld [vmem:[%s21270_s1 + $0xb0] ss:$8 sps:$4 sm:$0xff]   ;;  %v13689_v14 = vcombine.low %v17600_v56, %v17600_v56 }
  0x3c   : > { %1492 = vmatprep.mubr.bf16.mxu0 %v13531_v55  ;;  %v15970_v0 = vld [vmem:[%s21270_s1 + $0xa4] ss:$8 sps:$4 sm:$0xff]   ;;  %v15972_v1 = vld [vmem:[%s21270_s1 + $0xa0] ss:$8 sps:$4 sm:$0xff]   ;;  %v15979_v6 = vld [vmem:[%s21270_s1 + $0xd4] ss:$8 sps:$4 sm:$0xff]  }
  0x3d   : > { %1465 = vmatpush1.bf16.msra.mxu0 %v15948_v45  ;;  %2595 = vmatpush1.bf16.msra.mxu1 %v15948_v45  ;;  %v15976_v4 = vld [vmem:[%s21270_s1 + $0xc4] ss:$8 sps:$4 sm:$0xff]   ;;  %v15978_v5 = vld [vmem:[%s21270_s1 + $0xc0] ss:$8 sps:$4 sm:$0xff]   ;;  %v15981_v7 = vld [vmem:[%s21270_s1 + $0xd0] ss:$8 sps:$4 sm:$0xff]  }
  0x3e   : > { %1466 = vmatprep.subr.bf16.mxu0 %v15949_v46  ;;  %2596 = vmatprep.subr.bf16.mxu1 %v15949_v46  ;;  %v15982_v8 = vld [vmem:[%s21270_s1 + $0xe4] ss:$8 sps:$4 sm:$0xff]   ;;  %v15984_v9 = vld [vmem:[%s21270_s1 + $0xe0] ss:$8 sps:$4 sm:$0xff]   ;;  %v15985_v10 = vld [vmem:[%s21270_s1 + $0xf4] ss:$8 sps:$4 sm:$0xff]  }
  0x3f   : > { %2622 = vmatprep.mubr.bf16.mxu1 %v13690_v58  ;;  %v15987_v11 = vld [vmem:[%s21270_s1 + $0xf0] ss:$8 sps:$4 sm:$0xff]   ;;  %v15992_v12 = vld [vmem:[%s21270_s1 + $0x104] ss:$8 sps:$4 sm:$0xff]   ;;  %v15990_v17 = vld [vmem:[%s21270_s1 + $0x100] ss:$8 sps:$4 sm:$0xff]  }
  0x40   : > { %v17666_v15 = vld [vmem:[%s17589_s17 + $0x8] sm:$0xff]  ;;  %v15997_v18 = vld [vmem:[%s21270_s1 + $0x114] ss:$8 sps:$4 sm:$0xff]   ;;  %v15995_v21 = vld [vmem:[%s21270_s1 + $0x110] ss:$8 sps:$4 sm:$0xff]  }
  0x41   : > { %1467 = vmatpush1.bf16.msra.mxu0 %v15951_v47  ;;  %2597 = vmatpush1.bf16.msra.mxu1 %v15951_v47  ;;  %v17669_v16 = vld [vmem:[%s17589_s17 + $0x2c] sm:$0xff]  ;;  %v13533_v19 = vcombine.high %v17666_v15, %v17666_v15  ;;  %v15998_v23 = vld [vmem:[%s21270_s1 + $0x120] ss:$8 sps:$4 sm:$0xff]   ;;  %v16003_v24 = vld [vmem:[%s21270_s1 + $0x134] ss:$8 sps:$4 sm:$0xff]   ;;  %v13532_v53 = vcombine.low %v17666_v15, %v17666_v15 }
  0x42   : > { %1468 = vmatprep.subr.bf16.mxu0 %v15952_v48  ;;  %2598 = vmatprep.subr.bf16.mxu1 %v15952_v48  ;;  %v13692_v20 = vcombine.high %v17669_v16, %v17669_v16  ;;  %v16000_v22 = vld [vmem:[%s21270_s1 + $0x124] ss:$8 sps:$4 sm:$0xff]   ;;  %v16001_v25 = vld [vmem:[%s21270_s1 + $0x130] ss:$8 sps:$4 sm:$0xff]   ;;  %v16004_v27 = vld [vmem:[%s21270_s1 + $0x140] ss:$8 sps:$4 sm:$0xff]  }
  0x43   : > { %v16006_v26 = vld [vmem:[%s21270_s1 + $0x144] ss:$8 sps:$4 sm:$0xff]   ;;  %v16009_v28 = vld [vmem:[%s21270_s1 + $0x154] ss:$8 sps:$4 sm:$0xff]   ;;  %v16007_v29 = vld [vmem:[%s21270_s1 + $0x150] ss:$8 sps:$4 sm:$0xff]  }
  0x44   : > { %v16012_v30 = vld [vmem:[%s21270_s1 + $0x164] ss:$8 sps:$4 sm:$0xff]   ;;  %v16010_v31 = vld [vmem:[%s21270_s1 + $0x160] ss:$8 sps:$4 sm:$0xff]   ;;  %v16015_v32 = vld [vmem:[%s21270_s1 + $0x174] ss:$8 sps:$4 sm:$0xff]  }
  0x45   : > { %1469 = vmatpush1.bf16.msra.mxu0 %v15954_v49  ;;  %2599 = vmatpush1.bf16.msra.mxu1 %v15954_v49  ;;  %v16013_v33 = vld [vmem:[%s21270_s1 + $0x170] ss:$8 sps:$4 sm:$0xff]   ;;  %v16018_v34 = vld [vmem:[%s21270_s1 + $0x184] ss:$8 sps:$4 sm:$0xff]   ;;  %v16016_v35 = vld [vmem:[%s21270_s1 + $0x180] ss:$8 sps:$4 sm:$0xff]  }
  0x46   : > { %1470 = vmatprep.subr.bf16.mxu0 %v15955_v50  ;;  %2600 = vmatprep.subr.bf16.mxu1 %v15955_v50  ;;  %v16021_v36 = vld [vmem:[%s21270_s1 + $0x194] ss:$8 sps:$4 sm:$0xff]   ;;  %v16019_v37 = vld [vmem:[%s21270_s1 + $0x190] ss:$8 sps:$4 sm:$0xff]   ;;  %v16024_v38 = vld [vmem:[%s21270_s1 + $0x1a4] ss:$8 sps:$4 sm:$0xff]  }
  0x47   : > { %v16022_v39 = vld [vmem:[%s21270_s1 + $0x1a0] ss:$8 sps:$4 sm:$0xff]   ;;  %v16027_v40 = vld [vmem:[%s21270_s1 + $0x1b4] ss:$8 sps:$4 sm:$0xff]   ;;  %v16025_v41 = vld [vmem:[%s21270_s1 + $0x1b0] ss:$8 sps:$4 sm:$0xff]  }
  0x48   : > { %v16030_v42 = vld [vmem:[%s21270_s1 + $0x1c4] ss:$8 sps:$4 sm:$0xff]   ;;  %v16028_v43 = vld [vmem:[%s21270_s1 + $0x1c0] ss:$8 sps:$4 sm:$0xff]   ;;  %v16033_v44 = vld [vmem:[%s21270_s1 + $0x1d4] ss:$8 sps:$4 sm:$0xff]  }
  0x49   : > { %1471 = vmatpush1.bf16.msra.mxu0 %v15957_v51  ;;  %2601 = vmatpush1.bf16.msra.mxu1 %v15957_v51  ;;  %v16031_v45 = vld [vmem:[%s21270_s1 + $0x1d0] ss:$8 sps:$4 sm:$0xff]   ;;  %v16036_v46 = vld [vmem:[%s21270_s1 + $0x1e4] ss:$8 sps:$4 sm:$0xff]   ;;  %v16034_v47 = vld [vmem:[%s21270_s1 + $0x1e0] ss:$8 sps:$4 sm:$0xff]  }
  0x4a   : > { %1472 = vmatprep.subr.bf16.mxu0 %v15958_v52  ;;  %2602 = vmatprep.subr.bf16.mxu1 %v15958_v52  ;;  %v16039_v48 = vld [vmem:[%s21270_s1 + $0x1f4] ss:$8 sps:$4 sm:$0xff]   ;;  %v16037_v49 = vld [vmem:[%s21270_s1 + $0x1f0] ss:$8 sps:$4 sm:$0xff]   ;;  %v16044_v50 = vld [vmem:[%s21270_s1 + $0x204] ss:$8 sps:$4 sm:$0xff]  }
  0x4b   : > { %v17772_v51 = vld [vmem:[%s17589_s17 + $0x10] sm:$0xff]  ;;  %v16042_v55 = vld [vmem:[%s21270_s1 + $0x200] ss:$8 sps:$4 sm:$0xff]  }
  0x4c   : > { %v17775_v52 = vld [vmem:[%s17589_s17 + $0x34] sm:$0xff] }
  0x4d   : > { %1473 = vmatpush1.bf16.msra.mxu0 %v15960_v54  ;;  %2603 = vmatpush1.bf16.msra.mxu1 %v15960_v54  ;;  %v13691_v54 = vcombine.low %v17669_v16, %v17669_v16  ;;  %v16049_v56 = vld [vmem:[%s21270_s1 + $0x214] ss:$8 sps:$4 sm:$0xff]   ;;  %v13694_v58 = vcombine.high %v17775_v52, %v17775_v52  ;;  %v16077_v15 = vld [vmem:[%s21270_s1 + $0x2b0] ss:$8 sps:$4 sm:$0xff]   ;;  %v16082_v16 = vld [vmem:[%s21270_s1 + $0x2c4] ss:$8 sps:$4 sm:$0xff]  }
  0x4e   : > { %1474 = vmatprep.subr.bf16.mxu0 %v15961_v57  ;;  %2604 = vmatprep.subr.bf16.mxu1 %v15961_v57  ;;  %v13535_v57 = vcombine.high %v17772_v51, %v17772_v51 }
  0x51   : > { %1475 = vmatpush1.bf16.msra.mxu0 %v15963_v59  ;;  %2605 = vmatpush1.bf16.msra.mxu1 %v15963_v59  ;;  %v16047_v59 = vld [vmem:[%s21270_s1 + $0x210] ss:$8 sps:$4 sm:$0xff]  }
  0x52   : > { %1476 = vmatprep.subr.bf16.mxu0 %v15964_v60  ;;  %2606 = vmatprep.subr.bf16.mxu1 %v15964_v60  ;;  %v16052_v60 = vld [vmem:[%s21270_s1 + $0x224] ss:$8 sps:$4 sm:$0xff]  }
  0x55   : > { %1477 = vmatpush1.bf16.msra.mxu0 %v15966_v61  ;;  %2607 = vmatpush1.bf16.msra.mxu1 %v15966_v61  ;;  %v16050_v61 = vld [vmem:[%s21270_s1 + $0x220] ss:$8 sps:$4 sm:$0xff]  }
  0x56   : > { %1478 = vmatprep.subr.bf16.mxu0 %v15967_v62  ;;  %2608 = vmatprep.subr.bf16.mxu1 %v15967_v62  ;;  %v16055_v62 = vld [vmem:[%s21270_s1 + $0x234] ss:$8 sps:$4 sm:$0xff]  }
  0x59   : > { %1479 = vmatpush1.bf16.msra.mxu0 %v15969_v63  ;;  %2609 = vmatpush1.bf16.msra.mxu1 %v15969_v63  ;;  %v16053_v63 = vld [vmem:[%s21270_s1 + $0x230] ss:$8 sps:$4 sm:$0xff]  }
  0x5a   : > { %1480 = vmatprep.subr.bf16.mxu0 %v15970_v0  ;;  %2610 = vmatprep.subr.bf16.mxu1 %v15970_v0  ;;  %v16058_v0 = vld [vmem:[%s21270_s1 + $0x244] ss:$8 sps:$4 sm:$0xff]  }
  0x5d   : > { %1481 = vmatpush1.bf16.msra.mxu0 %v15972_v1  ;;  %2611 = vmatpush1.bf16.msra.mxu1 %v15972_v1  ;;  %v16056_v1 = vld [vmem:[%s21270_s1 + $0x240] ss:$8 sps:$4 sm:$0xff]  }
  0x5e   : > { %1482 = vmatprep.subr.bf16.mxu0 %v15973_v2  ;;  %2612 = vmatprep.subr.bf16.mxu1 %v15973_v2  ;;  %v16061_v2 = vld [vmem:[%s21270_s1 + $0x254] ss:$8 sps:$4 sm:$0xff]  }
  0x61   : > { %1483 = vmatpush1.bf16.msra.mxu0 %v15975_v3  ;;  %2613 = vmatpush1.bf16.msra.mxu1 %v15975_v3  ;;  %v16059_v3 = vld [vmem:[%s21270_s1 + $0x250] ss:$8 sps:$4 sm:$0xff]  }
  0x62   : > { %1484 = vmatprep.subr.bf16.mxu0 %v15976_v4  ;;  %2614 = vmatprep.subr.bf16.mxu1 %v15976_v4  ;;  %v16064_v4 = vld [vmem:[%s21270_s1 + $0x264] ss:$8 sps:$4 sm:$0xff]  }
  0x65   : > { %1485 = vmatpush1.bf16.msra.mxu0 %v15978_v5  ;;  %2615 = vmatpush1.bf16.msra.mxu1 %v15978_v5  ;;  %v16062_v5 = vld [vmem:[%s21270_s1 + $0x260] ss:$8 sps:$4 sm:$0xff]  }
  0x66   : > { %1486 = vmatprep.subr.bf16.mxu0 %v15979_v6  ;;  %2616 = vmatprep.subr.bf16.mxu1 %v15979_v6  ;;  %v16067_v6 = vld [vmem:[%s21270_s1 + $0x274] ss:$8 sps:$4 sm:$0xff]  }
  0x69   : > { %1487 = vmatpush1.bf16.msra.mxu0 %v15981_v7  ;;  %2617 = vmatpush1.bf16.msra.mxu1 %v15981_v7  ;;  %v16065_v7 = vld [vmem:[%s21270_s1 + $0x270] ss:$8 sps:$4 sm:$0xff]  }
  0x6a   : > { %1488 = vmatprep.subr.bf16.mxu0 %v15982_v8  ;;  %2618 = vmatprep.subr.bf16.mxu1 %v15982_v8  ;;  %v16070_v8 = vld [vmem:[%s21270_s1 + $0x284] ss:$8 sps:$4 sm:$0xff]  }
  0x6d   : > { %1489 = vmatpush1.bf16.msra.mxu0 %v15984_v9  ;;  %2619 = vmatpush1.bf16.msra.mxu1 %v15984_v9  ;;  %v16068_v9 = vld [vmem:[%s21270_s1 + $0x280] ss:$8 sps:$4 sm:$0xff]  }
  0x6e   : > { %1490 = vmatprep.subr.bf16.mxu0 %v15985_v10  ;;  %2620 = vmatprep.subr.bf16.mxu1 %v15985_v10  ;;  %v16073_v10 = vld [vmem:[%s21270_s1 + $0x294] ss:$8 sps:$4 sm:$0xff]  }
  0x71   : > { %1491 = vmatpush1.bf16.msra.mxu0 %v15987_v11  ;;  %2621 = vmatpush1.bf16.msra.mxu1 %v15987_v11  ;;  %v16071_v11 = vld [vmem:[%s21270_s1 + $0x290] ss:$8 sps:$4 sm:$0xff]  }
  0x72   : > { %1501 = vmatprep.subr.bf16.mxu0 %v15992_v12  ;;  %2631 = vmatprep.subr.bf16.mxu1 %v15992_v12  ;;  %v16076_v12 = vld [vmem:[%s21270_s1 + $0x2a4] ss:$8 sps:$4 sm:$0xff]  }
  0x74   : > { %1493 = vmatmul.mubr.bf16.vlgmr.msra.gmra.mrb[0].mxu0 %v13530_v13  ;;  %2623 = vmatmul.mubr.bf16.vlgmr.msra.gmra.mrb[0].mxu1 %v13689_v14  ;;  %v16074_v13 = vld [vmem:[%s21270_s1 + $0x2a0] ss:$8 sps:$4 sm:$0xff]   ;;  %v16079_v14 = vld [vmem:[%s21270_s1 + $0x2b4] ss:$8 sps:$4 sm:$0xff]  }
  0x75   : > { %1502 = vmatpush1.bf16.msra.mxu0 %v15990_v17  ;;  %2632 = vmatpush1.bf16.msra.mxu1 %v15990_v17  ;;  %v16080_v17 = vld [vmem:[%s21270_s1 + $0x2c0] ss:$8 sps:$4 sm:$0xff]  }
  0x76   : > { %1503 = vmatprep.subr.bf16.mxu0 %v15997_v18  ;;  %2633 = vmatprep.subr.bf16.mxu1 %v15997_v18  ;;  %v16085_v18 = vld [vmem:[%s21270_s1 + $0x2d4] ss:$8 sps:$4 sm:$0xff]  }
  0x77   : > { %1533 = vmatprep.mubr.bf16.mxu0 %v13533_v19  ;;  %2663 = vmatprep.mubr.bf16.mxu1 %v13692_v20  ;;  %v16083_v19 = vld [vmem:[%s21270_s1 + $0x2d0] ss:$8 sps:$4 sm:$0xff]   ;;  %v16088_v20 = vld [vmem:[%s21270_s1 + $0x2e4] ss:$8 sps:$4 sm:$0xff]  }
  0x79   : > { %1504 = vmatpush1.bf16.msra.mxu0 %v15995_v21  ;;  %2634 = vmatpush1.bf16.msra.mxu1 %v15995_v21  ;;  %v16086_v21 = vld [vmem:[%s21270_s1 + $0x2e0] ss:$8 sps:$4 sm:$0xff]  }
  0x7a   : > { %1505 = vmatprep.subr.bf16.mxu0 %v16000_v22  ;;  %2635 = vmatprep.subr.bf16.mxu1 %v16000_v22  ;;  %v16091_v22 = vld [vmem:[%s21270_s1 + $0x2f4] ss:$8 sps:$4 sm:$0xff]  }
  0x7d   : > { %1506 = vmatpush1.bf16.msra.mxu0 %v15998_v23  ;;  %2636 = vmatpush1.bf16.msra.mxu1 %v15998_v23  ;;  %v16089_v23 = vld [vmem:[%s21270_s1 + $0x2f0] ss:$8 sps:$4 sm:$0xff]  }
  0x7e   : > { %1507 = vmatprep.subr.bf16.mxu0 %v16003_v24  ;;  %2637 = vmatprep.subr.bf16.mxu1 %v16003_v24  ;;  %v16096_v24 = vld [vmem:[%s21270_s1 + $0x304] ss:$8 sps:$4 sm:$0xff]  }
  0x81   : > { %1508 = vmatpush1.bf16.msra.mxu0 %v16001_v25  ;;  %2638 = vmatpush1.bf16.msra.mxu1 %v16001_v25  ;;  %v17882_v25 = vld [vmem:[%s17589_s17 + $0x18] sm:$0xff] }
  0x82   : > { %1509 = vmatprep.subr.bf16.mxu0 %v16006_v26  ;;  %2639 = vmatprep.subr.bf16.mxu1 %v16006_v26  ;;  %v17885_v26 = vld [vmem:[%s17589_s17 + $0x3c] sm:$0xff] }
  0x85   : > { %1510 = vmatpush1.bf16.msra.mxu0 %v16004_v27  ;;  %2640 = vmatpush1.bf16.msra.mxu1 %v16004_v27  ;;  %v13534_v27 = vcombine.low %v17772_v51, %v17772_v51  ;;  %v16126_v51 = vld [vmem:[%s21270_s1 + $0x3a0] ss:$8 sps:$4 sm:$0xff]  }
  0x86   : > { %1511 = vmatprep.subr.bf16.mxu0 %v16009_v28  ;;  %2641 = vmatprep.subr.bf16.mxu1 %v16009_v28  ;;  %v13693_v28 = vcombine.low %v17775_v52, %v17775_v52  ;;  %v16131_v52 = vld [vmem:[%s21270_s1 + $0x3b4] ss:$8 sps:$4 sm:$0xff]  }
  0x89   : > { %1512 = vmatpush1.bf16.msra.mxu0 %v16007_v29  ;;  %2642 = vmatpush1.bf16.msra.mxu1 %v16007_v29  ;;  %v16094_v29 = vld [vmem:[%s21270_s1 + $0x300] ss:$8 sps:$4 sm:$0xff]  }
  0x8a   : > { %1513 = vmatprep.subr.bf16.mxu0 %v16012_v30  ;;  %2643 = vmatprep.subr.bf16.mxu1 %v16012_v30  ;;  %v16101_v30 = vld [vmem:[%s21270_s1 + $0x314] ss:$8 sps:$4 sm:$0xff]  }
  0x8d   : > { %1514 = vmatpush1.bf16.msra.mxu0 %v16010_v31  ;;  %2644 = vmatpush1.bf16.msra.mxu1 %v16010_v31  ;;  %v13537_v31 = vcombine.high %v17882_v25, %v17882_v25 }
  0x8e   : > { %1515 = vmatprep.subr.bf16.mxu0 %v16015_v32  ;;  %2645 = vmatprep.subr.bf16.mxu1 %v16015_v32  ;;  %v13696_v32 = vcombine.high %v17885_v26, %v17885_v26 }
  0x91   : > { %1516 = vmatpush1.bf16.msra.mxu0 %v16013_v33  ;;  %2646 = vmatpush1.bf16.msra.mxu1 %v16013_v33  ;;  %v16099_v33 = vld [vmem:[%s21270_s1 + $0x310] ss:$8 sps:$4 sm:$0xff]  }
  0x92   : > { %1517 = vmatprep.subr.bf16.mxu0 %v16018_v34  ;;  %2647 = vmatprep.subr.bf16.mxu1 %v16018_v34  ;;  %v16104_v34 = vld [vmem:[%s21270_s1 + $0x324] ss:$8 sps:$4 sm:$0xff]  }
  0x95   : > { %1518 = vmatpush1.bf16.msra.mxu0 %v16016_v35  ;;  %2648 = vmatpush1.bf16.msra.mxu1 %v16016_v35  ;;  %v16102_v35 = vld [vmem:[%s21270_s1 + $0x320] ss:$8 sps:$4 sm:$0xff]  }
  0x96   : > { %1519 = vmatprep.subr.bf16.mxu0 %v16021_v36  ;;  %2649 = vmatprep.subr.bf16.mxu1 %v16021_v36  ;;  %v16107_v36 = vld [vmem:[%s21270_s1 + $0x334] ss:$8 sps:$4 sm:$0xff]  }
  0x99   : > { %1520 = vmatpush1.bf16.msra.mxu0 %v16019_v37  ;;  %2650 = vmatpush1.bf16.msra.mxu1 %v16019_v37  ;;  %v16105_v37 = vld [vmem:[%s21270_s1 + $0x330] ss:$8 sps:$4 sm:$0xff]  }
  0x9a   : > { %1521 = vmatprep.subr.bf16.mxu0 %v16024_v38  ;;  %2651 = vmatprep.subr.bf16.mxu1 %v16024_v38  ;;  %v16110_v38 = vld [vmem:[%s21270_s1 + $0x344] ss:$8 sps:$4 sm:$0xff]  }
  0x9d   : > { %1522 = vmatpush1.bf16.msra.mxu0 %v16022_v39  ;;  %2652 = vmatpush1.bf16.msra.mxu1 %v16022_v39  ;;  %v16108_v39 = vld [vmem:[%s21270_s1 + $0x340] ss:$8 sps:$4 sm:$0xff]  }
  0x9e   : > { %1523 = vmatprep.subr.bf16.mxu0 %v16027_v40  ;;  %2653 = vmatprep.subr.bf16.mxu1 %v16027_v40  ;;  %v16113_v40 = vld [vmem:[%s21270_s1 + $0x354] ss:$8 sps:$4 sm:$0xff]  }
  0xa1   : > { %1524 = vmatpush1.bf16.msra.mxu0 %v16025_v41  ;;  %2654 = vmatpush1.bf16.msra.mxu1 %v16025_v41  ;;  %v16111_v41 = vld [vmem:[%s21270_s1 + $0x350] ss:$8 sps:$4 sm:$0xff]  }
  0xa2   : > { %1525 = vmatprep.subr.bf16.mxu0 %v16030_v42  ;;  %2655 = vmatprep.subr.bf16.mxu1 %v16030_v42  ;;  %v16116_v42 = vld [vmem:[%s21270_s1 + $0x364] ss:$8 sps:$4 sm:$0xff]  }
  0xa5   : > { %1526 = vmatpush1.bf16.msra.mxu0 %v16028_v43  ;;  %2656 = vmatpush1.bf16.msra.mxu1 %v16028_v43  ;;  %v16114_v43 = vld [vmem:[%s21270_s1 + $0x360] ss:$8 sps:$4 sm:$0xff]  }
  0xa6   : > { %1527 = vmatprep.subr.bf16.mxu0 %v16033_v44  ;;  %2657 = vmatprep.subr.bf16.mxu1 %v16033_v44  ;;  %v16119_v44 = vld [vmem:[%s21270_s1 + $0x374] ss:$8 sps:$4 sm:$0xff]  }
  0xa9   : > { %1528 = vmatpush1.bf16.msra.mxu0 %v16031_v45  ;;  %2658 = vmatpush1.bf16.msra.mxu1 %v16031_v45  ;;  %v16117_v45 = vld [vmem:[%s21270_s1 + $0x370] ss:$8 sps:$4 sm:$0xff]  }
  0xaa   : > { %1529 = vmatprep.subr.bf16.mxu0 %v16036_v46  ;;  %2659 = vmatprep.subr.bf16.mxu1 %v16036_v46  ;;  %v16122_v46 = vld [vmem:[%s21270_s1 + $0x384] ss:$8 sps:$4 sm:$0xff]  }
  0xad   : > { %1530 = vmatpush1.bf16.msra.mxu0 %v16034_v47  ;;  %2660 = vmatpush1.bf16.msra.mxu1 %v16034_v47  ;;  %v16120_v47 = vld [vmem:[%s21270_s1 + $0x380] ss:$8 sps:$4 sm:$0xff]  }
  0xae   : > { %1531 = vmatprep.subr.bf16.mxu0 %v16039_v48  ;;  %2661 = vmatprep.subr.bf16.mxu1 %v16039_v48  ;;  %v16125_v48 = vld [vmem:[%s21270_s1 + $0x394] ss:$8 sps:$4 sm:$0xff]  }
  0xb1   : > { %1532 = vmatpush1.bf16.msra.mxu0 %v16037_v49  ;;  %2662 = vmatpush1.bf16.msra.mxu1 %v16037_v49  ;;  %v16123_v49 = vld [vmem:[%s21270_s1 + $0x390] ss:$8 sps:$4 sm:$0xff]  }
  0xb2   : > { %1542 = vmatprep.subr.bf16.mxu0 %v16044_v50  ;;  %2672 = vmatprep.subr.bf16.mxu1 %v16044_v50  ;;  %v16128_v50 = vld [vmem:[%s21270_s1 + $0x3a4] ss:$8 sps:$4 sm:$0xff]  }
  0xb4   : > { %1534 = vmatmul.mubr.bf16.vlgmr.msra.gmra.mrb[0].mxu0 %v13532_v53  ;;  %2664 = vmatmul.mubr.bf16.vlgmr.msra.gmra.mrb[0].mxu1 %v13691_v54  ;;  %v16129_v53 = vld [vmem:[%s21270_s1 + $0x3b0] ss:$8 sps:$4 sm:$0xff]   ;;  %v16134_v54 = vld [vmem:[%s21270_s1 + $0x3c4] ss:$8 sps:$4 sm:$0xff]  }
  0xb5   : > { %1543 = vmatpush1.bf16.msra.mxu0 %v16042_v55  ;;  %2673 = vmatpush1.bf16.msra.mxu1 %v16042_v55  ;;  %v16132_v55 = vld [vmem:[%s21270_s1 + $0x3c0] ss:$8 sps:$4 sm:$0xff]  }
  0xb6   : > { %1544 = vmatprep.subr.bf16.mxu0 %v16049_v56  ;;  %2674 = vmatprep.subr.bf16.mxu1 %v16049_v56  ;;  %v16137_v56 = vld [vmem:[%s21270_s1 + $0x3d4] ss:$8 sps:$4 sm:$0xff]  }
  0xb7   : > { %1574 = vmatprep.mubr.bf16.mxu0 %v13535_v57  ;;  %2704 = vmatprep.mubr.bf16.mxu1 %v13694_v58  ;;  %v16135_v57 = vld [vmem:[%s21270_s1 + $0x3d0] ss:$8 sps:$4 sm:$0xff]   ;;  %v16140_v58 = vld [vmem:[%s21270_s1 + $0x3e4] ss:$8 sps:$4 sm:$0xff]  }
  0xb9   : > { %1545 = vmatpush1.bf16.msra.mxu0 %v16047_v59  ;;  %2675 = vmatpush1.bf16.msra.mxu1 %v16047_v59  ;;  %v16138_v59 = vld [vmem:[%s21270_s1 + $0x3e0] ss:$8 sps:$4 sm:$0xff]  }
  0xba   : > { %1546 = vmatprep.subr.bf16.mxu0 %v16052_v60  ;;  %2676 = vmatprep.subr.bf16.mxu1 %v16052_v60  ;;  %v16143_v60 = vld [vmem:[%s21270_s1 + $0x3f4] ss:$8 sps:$4 sm:$0xff]  }
  0xbd   : > { %1547 = vmatpush1.bf16.msra.mxu0 %v16050_v61  ;;  %2677 = vmatpush1.bf16.msra.mxu1 %v16050_v61  ;;  %v16141_v61 = vld [vmem:[%s21270_s1 + $0x3f0] ss:$8 sps:$4 sm:$0xff]  }
  0xbe   : > { %1548 = vmatprep.subr.bf16.mxu0 %v16055_v62  ;;  %2678 = vmatprep.subr.bf16.mxu1 %v16055_v62  ;;  %v16148_v62 = vld [vmem:[%s21270_s1 + $0x404] ss:$8 sps:$4 sm:$0xff]  }
  0xc1   : > { %1549 = vmatpush1.bf16.msra.mxu0 %v16053_v63  ;;  %2679 = vmatpush1.bf16.msra.mxu1 %v16053_v63  ;;  %v13536_v63 = vcombine.low %v17882_v25, %v17882_v25 }
  0xc2   : > { %1550 = vmatprep.subr.bf16.mxu0 %v16058_v0  ;;  %2680 = vmatprep.subr.bf16.mxu1 %v16058_v0  ;;  %v13695_v0 = vcombine.low %v17885_v26, %v17885_v26  ;;  %v16177_v26 = vld [vmem:[%s21270_s1 + $0x10] ss:$8 sps:$4 sm:$0xff]  }
  0xc5   : > { %1551 = vmatpush1.bf16.msra.mxu0 %v16056_v1  ;;  %2681 = vmatpush1.bf16.msra.mxu1 %v16056_v1  ;;  %v16146_v1 = vld [vmem:[%s21270_s1 + $0x400] ss:$8 sps:$4 sm:$0xff]  }
  0xc6   : > { %1552 = vmatprep.subr.bf16.mxu0 %v16061_v2  ;;  %2682 = vmatprep.subr.bf16.mxu1 %v16061_v2  ;;  %v16153_v2 = vld [vmem:[%s21270_s1 + $0x414] ss:$8 sps:$4 sm:$0xff]  }
  0xc9   : > { %1553 = vmatpush1.bf16.msra.mxu0 %v16059_v3  ;;  %2683 = vmatpush1.bf16.msra.mxu1 %v16059_v3  ;;  %v16151_v3 = vld [vmem:[%s21270_s1 + $0x410] ss:$8 sps:$4 sm:$0xff]  }
  0xca   : > { %1554 = vmatprep.subr.bf16.mxu0 %v16064_v4  ;;  %2684 = vmatprep.subr.bf16.mxu1 %v16064_v4  ;;  %v16156_v4 = vld [vmem:[%s21270_s1 + $0x424] ss:$8 sps:$4 sm:$0xff]  }
  0xcd   : > { %1555 = vmatpush1.bf16.msra.mxu0 %v16062_v5  ;;  %2685 = vmatpush1.bf16.msra.mxu1 %v16062_v5  ;;  %v17356_v5 = vmov 0  }
  0xce   : > { %1556 = vmatprep.subr.bf16.mxu0 %v16067_v6  ;;  %2686 = vmatprep.subr.bf16.mxu1 %v16067_v6  ;;  %v16154_v6 = vld [vmem:[%s21270_s1 + $0x420] ss:$8 sps:$4 sm:$0xff]  }
  0xd1   : > { %1557 = vmatpush1.bf16.msra.mxu0 %v16065_v7  ;;  %2687 = vmatpush1.bf16.msra.mxu1 %v16065_v7  ;;  %v16159_v7 = vld [vmem:[%s21270_s1 + $0x434] ss:$8 sps:$4 sm:$0xff]  }
  0xd2   : > { %1558 = vmatprep.subr.bf16.mxu0 %v16070_v8  ;;  %2688 = vmatprep.subr.bf16.mxu1 %v16070_v8  ;;  %v16157_v8 = vld [vmem:[%s21270_s1 + $0x430] ss:$8 sps:$4 sm:$0xff]  }
  0xd5   : > { %1559 = vmatpush1.bf16.msra.mxu0 %v16068_v9  ;;  %2689 = vmatpush1.bf16.msra.mxu1 %v16068_v9  ;;  %v16162_v9 = vld [vmem:[%s21270_s1 + $0x444] ss:$8 sps:$4 sm:$0xff]  }
  0xd6   : > { %1560 = vmatprep.subr.bf16.mxu0 %v16073_v10  ;;  %2690 = vmatprep.subr.bf16.mxu1 %v16073_v10  ;;  %v16160_v10 = vld [vmem:[%s21270_s1 + $0x440] ss:$8 sps:$4 sm:$0xff]  }
  0xd9   : > { %1561 = vmatpush1.bf16.msra.mxu0 %v16071_v11  ;;  %2691 = vmatpush1.bf16.msra.mxu1 %v16071_v11  ;;  %v16165_v11 = vld [vmem:[%s21270_s1 + $0x454] ss:$8 sps:$4 sm:$0xff]  }
  0xda   : > { %1562 = vmatprep.subr.bf16.mxu0 %v16076_v12  ;;  %2692 = vmatprep.subr.bf16.mxu1 %v16076_v12  ;;  %v16163_v12 = vld [vmem:[%s21270_s1 + $0x450] ss:$8 sps:$4 sm:$0xff]  }
  0xdd   : > { %1563 = vmatpush1.bf16.msra.mxu0 %v16074_v13  ;;  %2693 = vmatpush1.bf16.msra.mxu1 %v16074_v13  ;;  %v16168_v13 = vld [vmem:[%s21270_s1 + $0x464] ss:$8 sps:$4 sm:$0xff]  }
  0xde   : > { %1564 = vmatprep.subr.bf16.mxu0 %v16079_v14  ;;  %2694 = vmatprep.subr.bf16.mxu1 %v16079_v14  ;;  %v16166_v14 = vld [vmem:[%s21270_s1 + $0x460] ss:$8 sps:$4 sm:$0xff]  }
  0xe1   : > { %1565 = vmatpush1.bf16.msra.mxu0 %v16077_v15  ;;  %2695 = vmatpush1.bf16.msra.mxu1 %v16077_v15  ;;  %v16171_v15 = vld [vmem:[%s21270_s1 + $0x474] ss:$8 sps:$4 sm:$0xff]  }
  0xe2   : > { %1566 = vmatprep.subr.bf16.mxu0 %v16082_v16  ;;  %2696 = vmatprep.subr.bf16.mxu1 %v16082_v16  ;;  %v16169_v16 = vld [vmem:[%s21270_s1 + $0x470] ss:$8 sps:$4 sm:$0xff]  }
  0xe5   : > { %1567 = vmatpush1.bf16.msra.mxu0 %v16080_v17  ;;  %2697 = vmatpush1.bf16.msra.mxu1 %v16080_v17  ;;  %v16176_v17 = vld [vmem:[%s21270_s1 + $0x4] ss:$8 sps:$4 sm:$0xff]  }
  0xe6   : > { %1568 = vmatprep.subr.bf16.mxu0 %v16085_v18  ;;  %2698 = vmatprep.subr.bf16.mxu1 %v16085_v18  ;;  %v16172_v18 = vld [vmem:[%s17589_s17 + $0x20] ss:$0 sps:$4 sm:$0xff]  }
  0xe9   : > { %1569 = vmatpush1.bf16.msra.mxu0 %v16083_v19  ;;  %2699 = vmatpush1.bf16.msra.mxu1 %v16083_v19  ;;  %v16173_v19 = vld [vmem:[%s17589_s17 + $0x44] ss:$0 sps:$4 sm:$0xff]  }
  0xea   : > { %1570 = vmatprep.subr.bf16.mxu0 %v16088_v20  ;;  %2700 = vmatprep.subr.bf16.mxu1 %v16088_v20  ;;  %v18048_v20 = vld [vmem:[%s17589_s17 + $0x48] sm:$0xff] }
  0xed   : > { %1571 = vmatpush1.bf16.msra.mxu0 %v16086_v21  ;;  %2701 = vmatpush1.bf16.msra.mxu1 %v16086_v21  ;;  %v18051_v21 = vld [vmem:[%s17589_s17 + $0x6c] sm:$0xff] }
  0xee   : > { %1572 = vmatprep.subr.bf16.mxu0 %v16091_v22  ;;  %2702 = vmatprep.subr.bf16.mxu1 %v16091_v22  ;;  %v16174_v22 = vld [vmem:[%s21270_s1] ss:$8 sps:$4 sm:$0xff]   ;;  %v14008_v25 = vcombine.high %v18051_v21, %v18051_v21 }
  0xf1   : > { %1573 = vmatpush1.bf16.msra.mxu0 %v16089_v23  ;;  %2703 = vmatpush1.bf16.msra.mxu1 %v16089_v23  ;;  %v16179_v23 = vld [vmem:[%s21270_s1 + $0x14] ss:$8 sps:$4 sm:$0xff]  }
  0xf2   : > { %1583 = vmatprep.subr.bf16.mxu0 %v16096_v24  ;;  %2713 = vmatprep.subr.bf16.mxu1 %v16096_v24  ;;  %v13849_v24 = vcombine.high %v18048_v20, %v18048_v20 }
  0xf4   : > { %1575 = vmatmul.mubr.bf16.vlgmr.msra.gmra.mrb[0].mxu0 %v13534_v27  ;;  %2705 = vmatmul.mubr.bf16.vlgmr.msra.gmra.mrb[0].mxu1 %v13693_v28  ;;  %v16182_v27 = vld [vmem:[%s21270_s1 + $0x24] ss:$8 sps:$4 sm:$0xff]   ;;  %v16180_v28 = vld [vmem:[%s21270_s1 + $0x20] ss:$8 sps:$4 sm:$0xff]  }
  0xf5   : > { %1584 = vmatpush1.bf16.msra.mxu0 %v16094_v29  ;;  %2714 = vmatpush1.bf16.msra.mxu1 %v16094_v29  ;;  %v16185_v29 = vld [vmem:[%s21270_s1 + $0x34] ss:$8 sps:$4 sm:$0xff]  }
  0xf6   : > { %1585 = vmatprep.subr.bf16.mxu0 %v16101_v30  ;;  %2715 = vmatprep.subr.bf16.mxu1 %v16101_v30  ;;  %v16183_v30 = vld [vmem:[%s21270_s1 + $0x30] ss:$8 sps:$4 sm:$0xff]  }
  0xf7   : > { %1615 = vmatprep.mubr.bf16.mxu0 %v13537_v31  ;;  %2745 = vmatprep.mubr.bf16.mxu1 %v13696_v32  ;;  %v16188_v31 = vld [vmem:[%s21270_s1 + $0x44] ss:$8 sps:$4 sm:$0xff]   ;;  %v16186_v32 = vld [vmem:[%s21270_s1 + $0x40] ss:$8 sps:$4 sm:$0xff]  }
  0xf9   : > { %1586 = vmatpush1.bf16.msra.mxu0 %v16099_v33  ;;  %2716 = vmatpush1.bf16.msra.mxu1 %v16099_v33  ;;  %v16191_v33 = vld [vmem:[%s21270_s1 + $0x54] ss:$8 sps:$4 sm:$0xff]  }
  0xfa   : > { %1587 = vmatprep.subr.bf16.mxu0 %v16104_v34  ;;  %2717 = vmatprep.subr.bf16.mxu1 %v16104_v34  ;;  %v16189_v34 = vld [vmem:[%s21270_s1 + $0x50] ss:$8 sps:$4 sm:$0xff]  }
  0xfd   : > { %1588 = vmatpush1.bf16.msra.mxu0 %v16102_v35  ;;  %2718 = vmatpush1.bf16.msra.mxu1 %v16102_v35  ;;  %v16194_v35 = vld [vmem:[%s21270_s1 + $0x64] ss:$8 sps:$4 sm:$0xff]  }
  0xfe   : > { %1589 = vmatprep.subr.bf16.mxu0 %v16107_v36  ;;  %2719 = vmatprep.subr.bf16.mxu1 %v16107_v36  ;;  %v16192_v36 = vld [vmem:[%s21270_s1 + $0x60] ss:$8 sps:$4 sm:$0xff]  }
 0x101   : > { %1590 = vmatpush1.bf16.msra.mxu0 %v16105_v37  ;;  %2720 = vmatpush1.bf16.msra.mxu1 %v16105_v37  ;;  %v16197_v37 = vld [vmem:[%s21270_s1 + $0x74] ss:$8 sps:$4 sm:$0xff]  }
 0x102   : > { %1591 = vmatprep.subr.bf16.mxu0 %v16110_v38  ;;  %2721 = vmatprep.subr.bf16.mxu1 %v16110_v38  ;;  %v16195_v38 = vld [vmem:[%s21270_s1 + $0x70] ss:$8 sps:$4 sm:$0xff]  }
 0x105   : > { %1592 = vmatpush1.bf16.msra.mxu0 %v16108_v39  ;;  %2722 = vmatpush1.bf16.msra.mxu1 %v16108_v39  ;;  %v16200_v39 = vld [vmem:[%s21270_s1 + $0x84] ss:$8 sps:$4 sm:$0xff]  }
 0x106   : > { %1593 = vmatprep.subr.bf16.mxu0 %v16113_v40  ;;  %2723 = vmatprep.subr.bf16.mxu1 %v16113_v40  ;;  %v16198_v40 = vld [vmem:[%s21270_s1 + $0x80] ss:$8 sps:$4 sm:$0xff]  }
 0x109   : > { %1594 = vmatpush1.bf16.msra.mxu0 %v16111_v41  ;;  %2724 = vmatpush1.bf16.msra.mxu1 %v16111_v41  ;;  %v16203_v41 = vld [vmem:[%s21270_s1 + $0x94] ss:$8 sps:$4 sm:$0xff]  }
 0x10a   : > { %1595 = vmatprep.subr.bf16.mxu0 %v16116_v42  ;;  %2725 = vmatprep.subr.bf16.mxu1 %v16116_v42  ;;  %v16201_v42 = vld [vmem:[%s21270_s1 + $0x90] ss:$8 sps:$4 sm:$0xff]  }
 0x10d   : > { %1596 = vmatpush1.bf16.msra.mxu0 %v16114_v43  ;;  %2726 = vmatpush1.bf16.msra.mxu1 %v16114_v43  ;;  %v16206_v43 = vld [vmem:[%s21270_s1 + $0xa4] ss:$8 sps:$4 sm:$0xff]  }
 0x10e   : > { %1597 = vmatprep.subr.bf16.mxu0 %v16119_v44  ;;  %2727 = vmatprep.subr.bf16.mxu1 %v16119_v44  ;;  %v16204_v44 = vld [vmem:[%s21270_s1 + $0xa0] ss:$8 sps:$4 sm:$0xff]  }
 0x111   : > { %1598 = vmatpush1.bf16.msra.mxu0 %v16117_v45  ;;  %2728 = vmatpush1.bf16.msra.mxu1 %v16117_v45  ;;  %v16209_v45 = vld [vmem:[%s21270_s1 + $0xb4] ss:$8 sps:$4 sm:$0xff]  }
 0x112   : > { %1599 = vmatprep.subr.bf16.mxu0 %v16122_v46  ;;  %2729 = vmatprep.subr.bf16.mxu1 %v16122_v46  ;;  %v16207_v46 = vld [vmem:[%s21270_s1 + $0xb0] ss:$8 sps:$4 sm:$0xff]  }
 0x115   : > { %1600 = vmatpush1.bf16.msra.mxu0 %v16120_v47  ;;  %2730 = vmatpush1.bf16.msra.mxu1 %v16120_v47  ;;  %v16212_v47 = vld [vmem:[%s21270_s1 + $0xc4] ss:$8 sps:$4 sm:$0xff]  }
 0x116   : > { %1601 = vmatprep.subr.bf16.mxu0 %v16125_v48  ;;  %2731 = vmatprep.subr.bf16.mxu1 %v16125_v48  ;;  %v16210_v48 = vld [vmem:[%s21270_s1 + $0xc0] ss:$8 sps:$4 sm:$0xff]  }
 0x119   : > { %1602 = vmatpush1.bf16.msra.mxu0 %v16123_v49  ;;  %2732 = vmatpush1.bf16.msra.mxu1 %v16123_v49  ;;  %v16215_v49 = vld [vmem:[%s21270_s1 + $0xd4] ss:$8 sps:$4 sm:$0xff]  }
 0x11a   : > { %1603 = vmatprep.subr.bf16.mxu0 %v16128_v50  ;;  %2733 = vmatprep.subr.bf16.mxu1 %v16128_v50  ;;  %v16213_v50 = vld [vmem:[%s21270_s1 + $0xd0] ss:$8 sps:$4 sm:$0xff]  }
 0x11d   : > { %1604 = vmatpush1.bf16.msra.mxu0 %v16126_v51  ;;  %2734 = vmatpush1.bf16.msra.mxu1 %v16126_v51  ;;  %v16218_v51 = vld [vmem:[%s21270_s1 + $0xe4] ss:$8 sps:$4 sm:$0xff]  }
 0x11e   : > { %1605 = vmatprep.subr.bf16.mxu0 %v16131_v52  ;;  %2735 = vmatprep.subr.bf16.mxu1 %v16131_v52  ;;  %v16216_v52 = vld [vmem:[%s21270_s1 + $0xe0] ss:$8 sps:$4 sm:$0xff]  }
 0x121   : > { %1606 = vmatpush1.bf16.msra.mxu0 %v16129_v53  ;;  %2736 = vmatpush1.bf16.msra.mxu1 %v16129_v53  ;;  %v16221_v53 = vld [vmem:[%s21270_s1 + $0xf4] ss:$8 sps:$4 sm:$0xff]  }
 0x122   : > { %1607 = vmatprep.subr.bf16.mxu0 %v16134_v54  ;;  %2737 = vmatprep.subr.bf16.mxu1 %v16134_v54  ;;  %v16219_v54 = vld [vmem:[%s21270_s1 + $0xf0] ss:$8 sps:$4 sm:$0xff]  }
 0x125   : > { %1608 = vmatpush1.bf16.msra.mxu0 %v16132_v55  ;;  %2738 = vmatpush1.bf16.msra.mxu1 %v16132_v55  ;;  %v16226_v55 = vld [vmem:[%s21270_s1 + $0x104] ss:$8 sps:$4 sm:$0xff]  }
 0x126   : > { %1609 = vmatprep.subr.bf16.mxu0 %v16137_v56  ;;  %2739 = vmatprep.subr.bf16.mxu1 %v16137_v56  ;;  %v18154_v56 = vld [vmem:[%s17589_s17 + $0x50] sm:$0xff] }
 0x129   : > { %1610 = vmatpush1.bf16.msra.mxu0 %v16135_v57  ;;  %2740 = vmatpush1.bf16.msra.mxu1 %v16135_v57  ;;  %v18157_v57 = vld [vmem:[%s17589_s17 + $0x74] sm:$0xff] }
 0x12a   : > { %1611 = vmatprep.subr.bf16.mxu0 %v16140_v58  ;;  %2741 = vmatprep.subr.bf16.mxu1 %v16140_v58  ;;  %v13848_v58 = vcombine.low %v18048_v20, %v18048_v20  ;;  %v16261_v20 = vld [vmem:[%s21270_s1 + $0x1b4] ss:$8 sps:$4 sm:$0xff]  }
 0x12d   : > { %1612 = vmatpush1.bf16.msra.mxu0 %v16138_v59  ;;  %2742 = vmatpush1.bf16.msra.mxu1 %v16138_v59  ;;  %v14007_v59 = vcombine.low %v18051_v21, %v18051_v21  ;;  %v16259_v21 = vld [vmem:[%s21270_s1 + $0x1b0] ss:$8 sps:$4 sm:$0xff]  }
 0x12e   : > { %1613 = vmatprep.subr.bf16.mxu0 %v16143_v60  ;;  %2743 = vmatprep.subr.bf16.mxu1 %v16143_v60  ;;  %v16224_v60 = vld [vmem:[%s21270_s1 + $0x100] ss:$8 sps:$4 sm:$0xff]  }
 0x131   : > { %1614 = vmatpush1.bf16.msra.mxu0 %v16141_v61  ;;  %2744 = vmatpush1.bf16.msra.mxu1 %v16141_v61  ;;  %v16231_v61 = vld [vmem:[%s21270_s1 + $0x114] ss:$8 sps:$4 sm:$0xff]  }
 0x132   : > { %1624 = vmatprep.subr.bf16.mxu0 %v16148_v62  ;;  %2754 = vmatprep.subr.bf16.mxu1 %v16148_v62  ;;  %v13851_v62 = vcombine.high %v18154_v56, %v18154_v56 }
 0x134   : > { %1616 = vmatmul.mubr.bf16.vlgmr.msra.gmra.mrb[0].mxu0 %v13536_v63  ;;  %2746 = vmatmul.mubr.bf16.vlgmr.msra.gmra.mrb[0].mxu1 %v13695_v0  ;;  %v14010_v63 = vcombine.high %v18157_v57, %v18157_v57  ;;  %v16229_v0 = vld [vmem:[%s21270_s1 + $0x110] ss:$8 sps:$4 sm:$0xff]  }
 0x135   : > { %1625 = vmatpush1.bf16.msra.mxu0 %v16146_v1  ;;  %2755 = vmatpush1.bf16.msra.mxu1 %v16146_v1  ;;  %v16234_v1 = vld [vmem:[%s21270_s1 + $0x124] ss:$8 sps:$4 sm:$0xff]  }
 0x136   : > { %1626 = vmatprep.subr.bf16.mxu0 %v16153_v2  ;;  %2756 = vmatprep.subr.bf16.mxu1 %v16153_v2  ;;  %v16232_v2 = vld [vmem:[%s21270_s1 + $0x120] ss:$8 sps:$4 sm:$0xff]  }
 0x137   : > { %1656 = vmatprep.mubr.bf16.mxu0 %v17356_v5  ;;  %2786 = vmatprep.mubr.bf16.mxu1 %v17356_v5 }
 0x139   : > { %1627 = vmatpush1.bf16.msra.mxu0 %v16151_v3  ;;  %2757 = vmatpush1.bf16.msra.mxu1 %v16151_v3  ;;  %v16237_v3 = vld [vmem:[%s21270_s1 + $0x134] ss:$8 sps:$4 sm:$0xff]  }
 0x13a   : > { %1628 = vmatprep.subr.bf16.mxu0 %v16156_v4  ;;  %2758 = vmatprep.subr.bf16.mxu1 %v16156_v4  ;;  %v16235_v4 = vld [vmem:[%s21270_s1 + $0x130] ss:$8 sps:$4 sm:$0xff]  }
 0x13d   : > { %1629 = vmatpush1.bf16.msra.mxu0 %v16154_v6  ;;  %2759 = vmatpush1.bf16.msra.mxu1 %v16154_v6  ;;  %v16240_v6 = vld [vmem:[%s21270_s1 + $0x144] ss:$8 sps:$4 sm:$0xff]  }
 0x13e   : > { %1630 = vmatprep.subr.bf16.mxu0 %v16159_v7  ;;  %2760 = vmatprep.subr.bf16.mxu1 %v16159_v7  ;;  %v16238_v7 = vld [vmem:[%s21270_s1 + $0x140] ss:$8 sps:$4 sm:$0xff]  }
 0x141   : > { %1631 = vmatpush1.bf16.msra.mxu0 %v16157_v8  ;;  %2761 = vmatpush1.bf16.msra.mxu1 %v16157_v8  ;;  %v16243_v8 = vld [vmem:[%s21270_s1 + $0x154] ss:$8 sps:$4 sm:$0xff]  }
 0x142   : > { %1632 = vmatprep.subr.bf16.mxu0 %v16162_v9  ;;  %2762 = vmatprep.subr.bf16.mxu1 %v16162_v9  ;;  %v16241_v9 = vld [vmem:[%s21270_s1 + $0x150] ss:$8 sps:$4 sm:$0xff]  }
 0x145   : > { %1633 = vmatpush1.bf16.msra.mxu0 %v16160_v10  ;;  %2763 = vmatpush1.bf16.msra.mxu1 %v16160_v10  ;;  %v16246_v10 = vld [vmem:[%s21270_s1 + $0x164] ss:$8 sps:$4 sm:$0xff]  }
 0x146   : > { %1634 = vmatprep.subr.bf16.mxu0 %v16165_v11  ;;  %2764 = vmatprep.subr.bf16.mxu1 %v16165_v11  ;;  %v16244_v11 = vld [vmem:[%s21270_s1 + $0x160] ss:$8 sps:$4 sm:$0xff]  }
 0x149   : > { %1635 = vmatpush1.bf16.msra.mxu0 %v16163_v12  ;;  %2765 = vmatpush1.bf16.msra.mxu1 %v16163_v12  ;;  %v16249_v12 = vld [vmem:[%s21270_s1 + $0x174] ss:$8 sps:$4 sm:$0xff]  }
 0x14a   : > { %1636 = vmatprep.subr.bf16.mxu0 %v16168_v13  ;;  %2766 = vmatprep.subr.bf16.mxu1 %v16168_v13  ;;  %v16247_v13 = vld [vmem:[%s21270_s1 + $0x170] ss:$8 sps:$4 sm:$0xff]  }
 0x14d   : > { %1637 = vmatpush1.bf16.msra.mxu0 %v16166_v14  ;;  %2767 = vmatpush1.bf16.msra.mxu1 %v16166_v14  ;;  %v16252_v14 = vld [vmem:[%s21270_s1 + $0x184] ss:$8 sps:$4 sm:$0xff]  }
 0x14e   : > { %1638 = vmatprep.subr.bf16.mxu0 %v16171_v15  ;;  %2768 = vmatprep.subr.bf16.mxu1 %v16171_v15  ;;  %v16250_v15 = vld [vmem:[%s21270_s1 + $0x180] ss:$8 sps:$4 sm:$0xff]  }
 0x151   : > { %1639 = vmatpush1.bf16.msra.mxu0 %v16169_v16  ;;  %2769 = vmatpush1.bf16.msra.mxu1 %v16169_v16  ;;  %v16255_v16 = vld [vmem:[%s21270_s1 + $0x194] ss:$8 sps:$4 sm:$0xff]  }
 0x152   : > { %3721 = vmatprep.subr.bf16.mxu0 %v16176_v17  ;;  %4852 = vmatprep.subr.bf16.mxu1 %v16176_v17  ;;  %v16253_v17 = vld [vmem:[%s21270_s1 + $0x190] ss:$8 sps:$4 sm:$0xff]  }
 0x154   : > { %1657 = vmatmul.mubr.bf16.vlgmr.msra.gmra.mrb[0].mxu0 %v16172_v18  ;;  %2787 = vmatmul.mubr.bf16.vlgmr.msra.gmra.mrb[0].mxu1 %v16173_v19  ;;  %v16258_v18 = vld [vmem:[%s21270_s1 + $0x1a4] ss:$8 sps:$4 sm:$0xff]   ;;  %v16256_v19 = vld [vmem:[%s21270_s1 + $0x1a0] ss:$8 sps:$4 sm:$0xff]  }
 0x155   : > { %3722 = vmatpush1.bf16.msra.mxu0 %v16174_v22  ;;  %4853 = vmatpush1.bf16.msra.mxu1 %v16174_v22  ;;  %v16264_v22 = vld [vmem:[%s21270_s1 + $0x1c4] ss:$8 sps:$4 sm:$0xff]  }
 0x156   : > { %3723 = vmatprep.subr.bf16.mxu0 %v16179_v23  ;;  %4854 = vmatprep.subr.bf16.mxu1 %v16179_v23  ;;  %v16262_v23 = vld [vmem:[%s21270_s1 + $0x1c0] ss:$8 sps:$4 sm:$0xff]  }
 0x157   : > { %3753 = vmatprep.mubr.bf16.mxu0 %v13849_v24  ;;  %4884 = vmatprep.mubr.bf16.mxu1 %v14008_v25  ;;  %v16267_v24 = vld [vmem:[%s21270_s1 + $0x1d4] ss:$8 sps:$4 sm:$0xff]   ;;  %v16265_v25 = vld [vmem:[%s21270_s1 + $0x1d0] ss:$8 sps:$4 sm:$0xff]  }
 0x159   : > { %3724 = vmatpush1.bf16.msra.mxu0 %v16177_v26  ;;  %4855 = vmatpush1.bf16.msra.mxu1 %v16177_v26  ;;  %v16270_v26 = vld [vmem:[%s21270_s1 + $0x1e4] ss:$8 sps:$4 sm:$0xff]  }
 0x15a   : > { %3725 = vmatprep.subr.bf16.mxu0 %v16182_v27  ;;  %4856 = vmatprep.subr.bf16.mxu1 %v16182_v27  ;;  %v16268_v27 = vld [vmem:[%s21270_s1 + $0x1e0] ss:$8 sps:$4 sm:$0xff]  }
 0x15d   : > { %3726 = vmatpush1.bf16.msra.mxu0 %v16180_v28  ;;  %4857 = vmatpush1.bf16.msra.mxu1 %v16180_v28  ;;  %v16273_v28 = vld [vmem:[%s21270_s1 + $0x1f4] ss:$8 sps:$4 sm:$0xff]  }
 0x15e   : > { %3727 = vmatprep.subr.bf16.mxu0 %v16185_v29  ;;  %4858 = vmatprep.subr.bf16.mxu1 %v16185_v29  ;;  %v16271_v29 = vld [vmem:[%s21270_s1 + $0x1f0] ss:$8 sps:$4 sm:$0xff]  }
 0x161   : > { %3728 = vmatpush1.bf16.msra.mxu0 %v16183_v30  ;;  %4859 = vmatpush1.bf16.msra.mxu1 %v16183_v30  ;;  %v16278_v30 = vld [vmem:[%s21270_s1 + $0x204] ss:$8 sps:$4 sm:$0xff]  }
 0x162   : > { %3729 = vmatprep.subr.bf16.mxu0 %v16188_v31  ;;  %4860 = vmatprep.subr.bf16.mxu1 %v16188_v31  ;;  %v18264_v31 = vld [vmem:[%s17589_s17 + $0x58] sm:$0xff] }
 0x165   : > { %3730 = vmatpush1.bf16.msra.mxu0 %v16186_v32  ;;  %4861 = vmatpush1.bf16.msra.mxu1 %v16186_v32  ;;  %v18267_v32 = vld [vmem:[%s17589_s17 + $0x7c] sm:$0xff] }
 0x166   : > { %3731 = vmatprep.subr.bf16.mxu0 %v16191_v33  ;;  %4862 = vmatprep.subr.bf16.mxu1 %v16191_v33  ;;  %v13850_v33 = vcombine.low %v18154_v56, %v18154_v56  ;;  %v16310_v56 = vld [vmem:[%s21270_s1 + $0x2a4] ss:$8 sps:$4 sm:$0xff]  }
 0x169   : > { %3732 = vmatpush1.bf16.msra.mxu0 %v16189_v34  ;;  %4863 = vmatpush1.bf16.msra.mxu1 %v16189_v34  ;;  %v14009_v34 = vcombine.low %v18157_v57, %v18157_v57  ;;  %v16308_v57 = vld [vmem:[%s21270_s1 + $0x2a0] ss:$8 sps:$4 sm:$0xff]  }
 0x16a   : > { %3733 = vmatprep.subr.bf16.mxu0 %v16194_v35  ;;  %4864 = vmatprep.subr.bf16.mxu1 %v16194_v35  ;;  %v16276_v35 = vld [vmem:[%s21270_s1 + $0x200] ss:$8 sps:$4 sm:$0xff]  }
 0x16d   : > { %3734 = vmatpush1.bf16.msra.mxu0 %v16192_v36  ;;  %4865 = vmatpush1.bf16.msra.mxu1 %v16192_v36  ;;  %v16283_v36 = vld [vmem:[%s21270_s1 + $0x214] ss:$8 sps:$4 sm:$0xff]  }
 0x16e   : > { %3735 = vmatprep.subr.bf16.mxu0 %v16197_v37  ;;  %4866 = vmatprep.subr.bf16.mxu1 %v16197_v37  ;;  %v13853_v37 = vcombine.high %v18264_v31, %v18264_v31 }
 0x171   : > { %3736 = vmatpush1.bf16.msra.mxu0 %v16195_v38  ;;  %4867 = vmatpush1.bf16.msra.mxu1 %v16195_v38  ;;  %v14012_v38 = vcombine.high %v18267_v32, %v18267_v32 }
 0x172   : > { %3737 = vmatprep.subr.bf16.mxu0 %v16200_v39  ;;  %4868 = vmatprep.subr.bf16.mxu1 %v16200_v39  ;;  %v16281_v39 = vld [vmem:[%s21270_s1 + $0x210] ss:$8 sps:$4 sm:$0xff]  }
 0x175   : > { %3738 = vmatpush1.bf16.msra.mxu0 %v16198_v40  ;;  %4869 = vmatpush1.bf16.msra.mxu1 %v16198_v40  ;;  %v16286_v40 = vld [vmem:[%s21270_s1 + $0x224] ss:$8 sps:$4 sm:$0xff]  }
 0x176   : > { %3739 = vmatprep.subr.bf16.mxu0 %v16203_v41  ;;  %4870 = vmatprep.subr.bf16.mxu1 %v16203_v41  ;;  %v16284_v41 = vld [vmem:[%s21270_s1 + $0x220] ss:$8 sps:$4 sm:$0xff]  }
 0x179   : > { %3740 = vmatpush1.bf16.msra.mxu0 %v16201_v42  ;;  %4871 = vmatpush1.bf16.msra.mxu1 %v16201_v42  ;;  %v16289_v42 = vld [vmem:[%s21270_s1 + $0x234] ss:$8 sps:$4 sm:$0xff]  }
 0x17a   : > { %3741 = vmatprep.subr.bf16.mxu0 %v16206_v43  ;;  %4872 = vmatprep.subr.bf16.mxu1 %v16206_v43  ;;  %v16287_v43 = vld [vmem:[%s21270_s1 + $0x230] ss:$8 sps:$4 sm:$0xff]  }
 0x17d   : > { %3742 = vmatpush1.bf16.msra.mxu0 %v16204_v44  ;;  %4873 = vmatpush1.bf16.msra.mxu1 %v16204_v44  ;;  %v16292_v44 = vld [vmem:[%s21270_s1 + $0x244] ss:$8 sps:$4 sm:$0xff]  }
 0x17e   : > { %3743 = vmatprep.subr.bf16.mxu0 %v16209_v45  ;;  %4874 = vmatprep.subr.bf16.mxu1 %v16209_v45  ;;  %v16290_v45 = vld [vmem:[%s21270_s1 + $0x240] ss:$8 sps:$4 sm:$0xff]  }
 0x181   : > { %3744 = vmatpush1.bf16.msra.mxu0 %v16207_v46  ;;  %4875 = vmatpush1.bf16.msra.mxu1 %v16207_v46  ;;  %v16295_v46 = vld [vmem:[%s21270_s1 + $0x254] ss:$8 sps:$4 sm:$0xff]  }
 0x182   : > { %3745 = vmatprep.subr.bf16.mxu0 %v16212_v47  ;;  %4876 = vmatprep.subr.bf16.mxu1 %v16212_v47  ;;  %v16293_v47 = vld [vmem:[%s21270_s1 + $0x250] ss:$8 sps:$4 sm:$0xff]  }
 0x185   : > { %3746 = vmatpush1.bf16.msra.mxu0 %v16210_v48  ;;  %4877 = vmatpush1.bf16.msra.mxu1 %v16210_v48  ;;  %v16298_v48 = vld [vmem:[%s21270_s1 + $0x264] ss:$8 sps:$4 sm:$0xff]  }
 0x186   : > { %3747 = vmatprep.subr.bf16.mxu0 %v16215_v49  ;;  %4878 = vmatprep.subr.bf16.mxu1 %v16215_v49  ;;  %v16296_v49 = vld [vmem:[%s21270_s1 + $0x260] ss:$8 sps:$4 sm:$0xff]  }
 0x189   : > { %3748 = vmatpush1.bf16.msra.mxu0 %v16213_v50  ;;  %4879 = vmatpush1.bf16.msra.mxu1 %v16213_v50  ;;  %v16301_v50 = vld [vmem:[%s21270_s1 + $0x274] ss:$8 sps:$4 sm:$0xff]  }
 0x18a   : > { %3749 = vmatprep.subr.bf16.mxu0 %v16218_v51  ;;  %4880 = vmatprep.subr.bf16.mxu1 %v16218_v51  ;;  %v16299_v51 = vld [vmem:[%s21270_s1 + $0x270] ss:$8 sps:$4 sm:$0xff]  }
 0x18d   : > { %3750 = vmatpush1.bf16.msra.mxu0 %v16216_v52  ;;  %4881 = vmatpush1.bf16.msra.mxu1 %v16216_v52  ;;  %v16304_v52 = vld [vmem:[%s21270_s1 + $0x284] ss:$8 sps:$4 sm:$0xff]  }
 0x18e   : > { %3751 = vmatprep.subr.bf16.mxu0 %v16221_v53  ;;  %4882 = vmatprep.subr.bf16.mxu1 %v16221_v53  ;;  %v16302_v53 = vld [vmem:[%s21270_s1 + $0x280] ss:$8 sps:$4 sm:$0xff]  }
 0x191   : > { %3752 = vmatpush1.bf16.msra.mxu0 %v16219_v54  ;;  %4883 = vmatpush1.bf16.msra.mxu1 %v16219_v54  ;;  %v16307_v54 = vld [vmem:[%s21270_s1 + $0x294] ss:$8 sps:$4 sm:$0xff]  }
 0x192   : > { %3762 = vmatprep.subr.bf16.mxu0 %v16226_v55  ;;  %4893 = vmatprep.subr.bf16.mxu1 %v16226_v55  ;;  %v16305_v55 = vld [vmem:[%s21270_s1 + $0x290] ss:$8 sps:$4 sm:$0xff]  }
 0x194   : > { %3754 = vmatmul.mubr.bf16.vlgmr.msra.gmra.mrb[4].mxu0 %v13848_v58  ;;  %4885 = vmatmul.mubr.bf16.vlgmr.msra.gmra.mrb[4].mxu1 %v14007_v59  ;;  %v16313_v58 = vld [vmem:[%s21270_s1 + $0x2b4] ss:$8 sps:$4 sm:$0xff]   ;;  %v16311_v59 = vld [vmem:[%s21270_s1 + $0x2b0] ss:$8 sps:$4 sm:$0xff]  }
 0x195   : > { %3763 = vmatpush1.bf16.msra.mxu0 %v16224_v60  ;;  %4894 = vmatpush1.bf16.msra.mxu1 %v16224_v60  ;;  %v16316_v60 = vld [vmem:[%s21270_s1 + $0x2c4] ss:$8 sps:$4 sm:$0xff]  }
 0x196   : > { %3764 = vmatprep.subr.bf16.mxu0 %v16231_v61  ;;  %4895 = vmatprep.subr.bf16.mxu1 %v16231_v61  ;;  %v16314_v61 = vld [vmem:[%s21270_s1 + $0x2c0] ss:$8 sps:$4 sm:$0xff]  }
 0x197   : > { %3794 = vmatprep.mubr.bf16.mxu0 %v13851_v62  ;;  %4925 = vmatprep.mubr.bf16.mxu1 %v14010_v63  ;;  %v16319_v62 = vld [vmem:[%s21270_s1 + $0x2d4] ss:$8 sps:$4 sm:$0xff]   ;;  %v16317_v63 = vld [vmem:[%s21270_s1 + $0x2d0] ss:$8 sps:$4 sm:$0xff]  }
 0x199   : > { %3765 = vmatpush1.bf16.msra.mxu0 %v16229_v0  ;;  %4896 = vmatpush1.bf16.msra.mxu1 %v16229_v0  ;;  %v16322_v0 = vld [vmem:[%s21270_s1 + $0x2e4] ss:$8 sps:$4 sm:$0xff]  }
 0x19a   : > { %3766 = vmatprep.subr.bf16.mxu0 %v16234_v1  ;;  %4897 = vmatprep.subr.bf16.mxu1 %v16234_v1  ;;  %v16320_v1 = vld [vmem:[%s21270_s1 + $0x2e0] ss:$8 sps:$4 sm:$0xff]  }
 0x19d   : > { %3767 = vmatpush1.bf16.msra.mxu0 %v16232_v2  ;;  %4898 = vmatpush1.bf16.msra.mxu1 %v16232_v2  ;;  %v16325_v2 = vld [vmem:[%s21270_s1 + $0x2f4] ss:$8 sps:$4 sm:$0xff]  }
 0x19e   : > { %3768 = vmatprep.subr.bf16.mxu0 %v16237_v3  ;;  %4899 = vmatprep.subr.bf16.mxu1 %v16237_v3  ;;  %v16323_v3 = vld [vmem:[%s21270_s1 + $0x2f0] ss:$8 sps:$4 sm:$0xff]  }
 0x1a1   : > { %3769 = vmatpush1.bf16.msra.mxu0 %v16235_v4  ;;  %4900 = vmatpush1.bf16.msra.mxu1 %v16235_v4  ;;  %v16330_v4 = vld [vmem:[%s21270_s1 + $0x304] ss:$8 sps:$4 sm:$0xff]  }
 0x1a2   : > { %3770 = vmatprep.subr.bf16.mxu0 %v16240_v6  ;;  %4901 = vmatprep.subr.bf16.mxu1 %v16240_v6  ;;  %v13852_v6 = vcombine.low %v18264_v31, %v18264_v31 }
 0x1a5   : > { %3771 = vmatpush1.bf16.msra.mxu0 %v16238_v7  ;;  %4902 = vmatpush1.bf16.msra.mxu1 %v16238_v7  ;;  %v14011_v7 = vcombine.low %v18267_v32, %v18267_v32 }
 0x1a6   : > { %3772 = vmatprep.subr.bf16.mxu0 %v16243_v8  ;;  %4903 = vmatprep.subr.bf16.mxu1 %v16243_v8  ;;  %v18378_v8 = vld [vmem:[%s17589_s17 + $0x60] sm:$0xff] }
 0x1a9   : > { %3773 = vmatpush1.bf16.msra.mxu0 %v16241_v9  ;;  %4904 = vmatpush1.bf16.msra.mxu1 %v16241_v9  ;;  %v18381_v9 = vld [vmem:[%s17589_s17 + $0x84] sm:$0xff] }
 0x1aa   : > { %3774 = vmatprep.subr.bf16.mxu0 %v16246_v10  ;;  %4905 = vmatprep.subr.bf16.mxu1 %v16246_v10  ;;  %v16328_v10 = vld [vmem:[%s21270_s1 + $0x300] ss:$8 sps:$4 sm:$0xff]  }
 0x1ad   : > { %3775 = vmatpush1.bf16.msra.mxu0 %v16244_v11  ;;  %4906 = vmatpush1.bf16.msra.mxu1 %v16244_v11  ;;  %v16335_v11 = vld [vmem:[%s21270_s1 + $0x314] ss:$8 sps:$4 sm:$0xff]  }
 0x1ae   : > { %3776 = vmatprep.subr.bf16.mxu0 %v16249_v12  ;;  %4907 = vmatprep.subr.bf16.mxu1 %v16249_v12  ;;  %v13855_v12 = vcombine.high %v18378_v8, %v18378_v8 }
 0x1b1   : > { %3777 = vmatpush1.bf16.msra.mxu0 %v16247_v13  ;;  %4908 = vmatpush1.bf16.msra.mxu1 %v16247_v13  ;;  %v14014_v13 = vcombine.high %v18381_v9, %v18381_v9 }
 0x1b2   : > { %3778 = vmatprep.subr.bf16.mxu0 %v16252_v14  ;;  %4909 = vmatprep.subr.bf16.mxu1 %v16252_v14  ;;  %v16333_v14 = vld [vmem:[%s21270_s1 + $0x310] ss:$8 sps:$4 sm:$0xff]  }
 0x1b5   : > { %3779 = vmatpush1.bf16.msra.mxu0 %v16250_v15  ;;  %4910 = vmatpush1.bf16.msra.mxu1 %v16250_v15  ;;  %v16338_v15 = vld [vmem:[%s21270_s1 + $0x324] ss:$8 sps:$4 sm:$0xff]  }
 0x1b6   : > { %3780 = vmatprep.subr.bf16.mxu0 %v16255_v16  ;;  %4911 = vmatprep.subr.bf16.mxu1 %v16255_v16  ;;  %v16336_v16 = vld [vmem:[%s21270_s1 + $0x320] ss:$8 sps:$4 sm:$0xff]  }
 0x1b9   : > { %3781 = vmatpush1.bf16.msra.mxu0 %v16253_v17  ;;  %4912 = vmatpush1.bf16.msra.mxu1 %v16253_v17  ;;  %v16341_v17 = vld [vmem:[%s21270_s1 + $0x334] ss:$8 sps:$4 sm:$0xff]  }
 0x1ba   : > { %3782 = vmatprep.subr.bf16.mxu0 %v16258_v18  ;;  %4913 = vmatprep.subr.bf16.mxu1 %v16258_v18  ;;  %v16339_v18 = vld [vmem:[%s21270_s1 + $0x330] ss:$8 sps:$4 sm:$0xff]  }
 0x1bd   : > { %3783 = vmatpush1.bf16.msra.mxu0 %v16256_v19  ;;  %4914 = vmatpush1.bf16.msra.mxu1 %v16256_v19  ;;  %v16344_v19 = vld [vmem:[%s21270_s1 + $0x344] ss:$8 sps:$4 sm:$0xff]  }
 0x1be   : > { %3784 = vmatprep.subr.bf16.mxu0 %v16261_v20  ;;  %4915 = vmatprep.subr.bf16.mxu1 %v16261_v20  ;;  %v16342_v20 = vld [vmem:[%s21270_s1 + $0x340] ss:$8 sps:$4 sm:$0xff]  }
 0x1c1   : > { %3785 = vmatpush1.bf16.msra.mxu0 %v16259_v21  ;;  %4916 = vmatpush1.bf16.msra.mxu1 %v16259_v21  ;;  %v16347_v21 = vld [vmem:[%s21270_s1 + $0x354] ss:$8 sps:$4 sm:$0xff]  }
 0x1c2   : > { %3786 = vmatprep.subr.bf16.mxu0 %v16264_v22  ;;  %4917 = vmatprep.subr.bf16.mxu1 %v16264_v22  ;;  %v16345_v22 = vld [vmem:[%s21270_s1 + $0x350] ss:$8 sps:$4 sm:$0xff]  }
 0x1c5   : > { %3787 = vmatpush1.bf16.msra.mxu0 %v16262_v23  ;;  %4918 = vmatpush1.bf16.msra.mxu1 %v16262_v23  ;;  %v16350_v23 = vld [vmem:[%s21270_s1 + $0x364] ss:$8 sps:$4 sm:$0xff]  }
 0x1c6   : > { %3788 = vmatprep.subr.bf16.mxu0 %v16267_v24  ;;  %4919 = vmatprep.subr.bf16.mxu1 %v16267_v24 }
 0x1c9   : > { %3789 = vmatpush1.bf16.msra.mxu0 %v16265_v25  ;;  %4920 = vmatpush1.bf16.msra.mxu1 %v16265_v25 }
 0x1ca   : > { %3790 = vmatprep.subr.bf16.mxu0 %v16270_v26  ;;  %4921 = vmatprep.subr.bf16.mxu1 %v16270_v26 }
 0x1cd   : > { %3791 = vmatpush1.bf16.msra.mxu0 %v16268_v27  ;;  %4922 = vmatpush1.bf16.msra.mxu1 %v16268_v27 }
 0x1ce   : > { %3792 = vmatprep.subr.bf16.mxu0 %v16273_v28  ;;  %4923 = vmatprep.subr.bf16.mxu1 %v16273_v28 }
 0x1d1   : > { %3793 = vmatpush1.bf16.msra.mxu0 %v16271_v29  ;;  %4924 = vmatpush1.bf16.msra.mxu1 %v16271_v29 }
 0x1d2   : > { %3803 = vmatprep.subr.bf16.mxu0 %v16278_v30  ;;  %4934 = vmatprep.subr.bf16.mxu1 %v16278_v30  ;;  %v16348_v30 = vld [vmem:[%s21270_s1 + $0x360] ss:$8 sps:$4 sm:$0xff]  }
 0x1d4   : > { %3795 = vmatmul.mubr.bf16.vlgmr.msra.gmra.mrb[4].mxu0 %v13850_v33  ;;  %4926 = vmatmul.mubr.bf16.vlgmr.msra.gmra.mrb[4].mxu1 %v14009_v34  ;;  %v16353_v33 = vld [vmem:[%s21270_s1 + $0x374] ss:$8 sps:$4 sm:$0xff]   ;;  %v16351_v34 = vld [vmem:[%s21270_s1 + $0x370] ss:$8 sps:$4 sm:$0xff]  }
 0x1d5   : > { %3804 = vmatpush1.bf16.msra.mxu0 %v16276_v35  ;;  %4935 = vmatpush1.bf16.msra.mxu1 %v16276_v35  ;;  %v16356_v35 = vld [vmem:[%s21270_s1 + $0x384] ss:$8 sps:$4 sm:$0xff]  }
 0x1d6   : > { %3805 = vmatprep.subr.bf16.mxu0 %v16283_v36  ;;  %4936 = vmatprep.subr.bf16.mxu1 %v16283_v36  ;;  %v16354_v36 = vld [vmem:[%s21270_s1 + $0x380] ss:$8 sps:$4 sm:$0xff]  }
 0x1d7   : > { %3835 = vmatprep.mubr.bf16.mxu0 %v13853_v37  ;;  %4966 = vmatprep.mubr.bf16.mxu1 %v14012_v38  ;;  %v16359_v37 = vld [vmem:[%s21270_s1 + $0x394] ss:$8 sps:$4 sm:$0xff]   ;;  %v16357_v38 = vld [vmem:[%s21270_s1 + $0x390] ss:$8 sps:$4 sm:$0xff]  }
 0x1d9   : > { %3806 = vmatpush1.bf16.msra.mxu0 %v16281_v39  ;;  %4937 = vmatpush1.bf16.msra.mxu1 %v16281_v39  ;;  %v16362_v39 = vld [vmem:[%s21270_s1 + $0x3a4] ss:$8 sps:$4 sm:$0xff]  }
 0x1da   : > { %3807 = vmatprep.subr.bf16.mxu0 %v16286_v40  ;;  %4938 = vmatprep.subr.bf16.mxu1 %v16286_v40  ;;  %v16360_v40 = vld [vmem:[%s21270_s1 + $0x3a0] ss:$8 sps:$4 sm:$0xff]  }
 0x1dd   : > { %3808 = vmatpush1.bf16.msra.mxu0 %v16284_v41  ;;  %4939 = vmatpush1.bf16.msra.mxu1 %v16284_v41  ;;  %v16365_v41 = vld [vmem:[%s21270_s1 + $0x3b4] ss:$8 sps:$4 sm:$0xff]  }
 0x1de   : > { %3809 = vmatprep.subr.bf16.mxu0 %v16289_v42  ;;  %4940 = vmatprep.subr.bf16.mxu1 %v16289_v42  ;;  %v16363_v42 = vld [vmem:[%s21270_s1 + $0x3b0] ss:$8 sps:$4 sm:$0xff]  }
 0x1e1   : > { %3810 = vmatpush1.bf16.msra.mxu0 %v16287_v43  ;;  %4941 = vmatpush1.bf16.msra.mxu1 %v16287_v43  ;;  %v16368_v43 = vld [vmem:[%s21270_s1 + $0x3c4] ss:$8 sps:$4 sm:$0xff]  }
 0x1e2   : > { %3811 = vmatprep.subr.bf16.mxu0 %v16292_v44  ;;  %4942 = vmatprep.subr.bf16.mxu1 %v16292_v44  ;;  %v16366_v44 = vld [vmem:[%s21270_s1 + $0x3c0] ss:$8 sps:$4 sm:$0xff]  }
 0x1e5   : > { %3812 = vmatpush1.bf16.msra.mxu0 %v16290_v45  ;;  %4943 = vmatpush1.bf16.msra.mxu1 %v16290_v45  ;;  %v16371_v45 = vld [vmem:[%s21270_s1 + $0x3d4] ss:$8 sps:$4 sm:$0xff]  }
 0x1e6   : > { %3813 = vmatprep.subr.bf16.mxu0 %v16295_v46  ;;  %4944 = vmatprep.subr.bf16.mxu1 %v16295_v46  ;;  %v16369_v46 = vld [vmem:[%s21270_s1 + $0x3d0] ss:$8 sps:$4 sm:$0xff]  }
 0x1e9   : > { %3814 = vmatpush1.bf16.msra.mxu0 %v16293_v47  ;;  %4945 = vmatpush1.bf16.msra.mxu1 %v16293_v47  ;;  %v16374_v47 = vld [vmem:[%s21270_s1 + $0x3e4] ss:$8 sps:$4 sm:$0xff]  }
 0x1ea   : > { %3815 = vmatprep.subr.bf16.mxu0 %v16298_v48  ;;  %4946 = vmatprep.subr.bf16.mxu1 %v16298_v48  ;;  %v16372_v48 = vld [vmem:[%s21270_s1 + $0x3e0] ss:$8 sps:$4 sm:$0xff]  }
 0x1ed   : > { %3816 = vmatpush1.bf16.msra.mxu0 %v16296_v49  ;;  %4947 = vmatpush1.bf16.msra.mxu1 %v16296_v49  ;;  %v16377_v49 = vld [vmem:[%s21270_s1 + $0x3f4] ss:$8 sps:$4 sm:$0xff]  }
 0x1ee   : > { %3817 = vmatprep.subr.bf16.mxu0 %v16301_v50  ;;  %4948 = vmatprep.subr.bf16.mxu1 %v16301_v50  ;;  %v16375_v50 = vld [vmem:[%s21270_s1 + $0x3f0] ss:$8 sps:$4 sm:$0xff]  }
 0x1f1   : > { %3818 = vmatpush1.bf16.msra.mxu0 %v16299_v51  ;;  %4949 = vmatpush1.bf16.msra.mxu1 %v16299_v51  ;;  %v16382_v51 = vld [vmem:[%s21270_s1 + $0x404] ss:$8 sps:$4 sm:$0xff]  }
 0x1f2   : > { %3819 = vmatprep.subr.bf16.mxu0 %v16304_v52  ;;  %4950 = vmatprep.subr.bf16.mxu1 %v16304_v52  ;;  %v13854_v52 = vcombine.low %v18378_v8, %v18378_v8  ;;  %v16407_v8 = vld [vmem:[%s17589_s17 + $0x8c] ss:$0 sps:$4 sm:$0xff]  }
 0x1f5   : > { %3820 = vmatpush1.bf16.msra.mxu0 %v16302_v53  ;;  %4951 = vmatpush1.bf16.msra.mxu1 %v16302_v53  ;;  %v14013_v53 = vcombine.low %v18381_v9, %v18381_v9  ;;  %v18548_v9 = vld [vmem:[%s17589_s17 + $0x90] sm:$0xff] }
 0x1f6   : > { %3821 = vmatprep.subr.bf16.mxu0 %v16307_v54  ;;  %4952 = vmatprep.subr.bf16.mxu1 %v16307_v54  ;;  %v16380_v54 = vld [vmem:[%s21270_s1 + $0x400] ss:$8 sps:$4 sm:$0xff]  }
 0x1f9   : > { %3822 = vmatpush1.bf16.msra.mxu0 %v16305_v55  ;;  %4953 = vmatpush1.bf16.msra.mxu1 %v16305_v55  ;;  %v16387_v55 = vld [vmem:[%s21270_s1 + $0x414] ss:$8 sps:$4 sm:$0xff]  }
 0x1fa   : > { %3823 = vmatprep.subr.bf16.mxu0 %v16310_v56  ;;  %4954 = vmatprep.subr.bf16.mxu1 %v16310_v56  ;;  %v16385_v56 = vld [vmem:[%s21270_s1 + $0x410] ss:$8 sps:$4 sm:$0xff]  }
 0x1fd   : > { %3824 = vmatpush1.bf16.msra.mxu0 %v16308_v57  ;;  %4955 = vmatpush1.bf16.msra.mxu1 %v16308_v57  ;;  %v16390_v57 = vld [vmem:[%s21270_s1 + $0x424] ss:$8 sps:$4 sm:$0xff]  }
 0x1fe   : > { %3825 = vmatprep.subr.bf16.mxu0 %v16313_v58  ;;  %4956 = vmatprep.subr.bf16.mxu1 %v16313_v58  ;;  %v16388_v58 = vld [vmem:[%s21270_s1 + $0x420] ss:$8 sps:$4 sm:$0xff]  }
 0x201   : > { %3826 = vmatpush1.bf16.msra.mxu0 %v16311_v59  ;;  %4957 = vmatpush1.bf16.msra.mxu1 %v16311_v59  ;;  %v16393_v59 = vld [vmem:[%s21270_s1 + $0x434] ss:$8 sps:$4 sm:$0xff]  }
 0x202   : > { %3827 = vmatprep.subr.bf16.mxu0 %v16316_v60  ;;  %4958 = vmatprep.subr.bf16.mxu1 %v16316_v60  ;;  %v16391_v60 = vld [vmem:[%s21270_s1 + $0x430] ss:$8 sps:$4 sm:$0xff]  }
 0x205   : > { %3828 = vmatpush1.bf16.msra.mxu0 %v16314_v61  ;;  %4959 = vmatpush1.bf16.msra.mxu1 %v16314_v61  ;;  %v16396_v61 = vld [vmem:[%s21270_s1 + $0x444] ss:$8 sps:$4 sm:$0xff]  }
 0x206   : > { %3829 = vmatprep.subr.bf16.mxu0 %v16319_v62  ;;  %4960 = vmatprep.subr.bf16.mxu1 %v16319_v62  ;;  %v16394_v62 = vld [vmem:[%s21270_s1 + $0x440] ss:$8 sps:$4 sm:$0xff]  }
 0x209   : > { %3830 = vmatpush1.bf16.msra.mxu0 %v16317_v63  ;;  %4961 = vmatpush1.bf16.msra.mxu1 %v16317_v63  ;;  %v16399_v63 = vld [vmem:[%s21270_s1 + $0x454] ss:$8 sps:$4 sm:$0xff]  }
 0x20a   : > { %3831 = vmatprep.subr.bf16.mxu0 %v16322_v0  ;;  %4962 = vmatprep.subr.bf16.mxu1 %v16322_v0  ;;  %v16397_v0 = vld [vmem:[%s21270_s1 + $0x450] ss:$8 sps:$4 sm:$0xff]  }
 0x20d   : > { %3832 = vmatpush1.bf16.msra.mxu0 %v16320_v1  ;;  %4963 = vmatpush1.bf16.msra.mxu1 %v16320_v1  ;;  %v16402_v1 = vld [vmem:[%s21270_s1 + $0x464] ss:$8 sps:$4 sm:$0xff]  }
 0x20e   : > { %3833 = vmatprep.subr.bf16.mxu0 %v16325_v2  ;;  %4964 = vmatprep.subr.bf16.mxu1 %v16325_v2  ;;  %v16400_v2 = vld [vmem:[%s21270_s1 + $0x460] ss:$8 sps:$4 sm:$0xff]  }
 0x211   : > { %3834 = vmatpush1.bf16.msra.mxu0 %v16323_v3  ;;  %4965 = vmatpush1.bf16.msra.mxu1 %v16323_v3  ;;  %v16405_v3 = vld [vmem:[%s21270_s1 + $0x474] ss:$8 sps:$4 sm:$0xff]  }
 0x212   : > { %3844 = vmatprep.subr.bf16.mxu0 %v16330_v4  ;;  %4975 = vmatprep.subr.bf16.mxu1 %v16330_v4  ;;  %v16403_v4 = vld [vmem:[%s21270_s1 + $0x470] ss:$8 sps:$4 sm:$0xff]  }
 0x214   : > { %3836 = vmatmul.mubr.bf16.vlgmr.msra.gmra.mrb[4].mxu0 %v13852_v6  ;;  %4967 = vmatmul.mubr.bf16.vlgmr.msra.gmra.mrb[4].mxu1 %v14011_v7  ;;  %v16410_v6 = vld [vmem:[%s21270_s1 + $0x4] ss:$8 sps:$4 sm:$0xff]   ;;  %v16406_v7 = vld [vmem:[%s17589_s17 + $0x68] ss:$0 sps:$4 sm:$0xff]  }
 0x215   : > { %3845 = vmatpush1.bf16.msra.mxu0 %v16328_v10  ;;  %4976 = vmatpush1.bf16.msra.mxu1 %v16328_v10  ;;  %v18551_v10 = vld [vmem:[%s17589_s17 + $0xb4] sm:$0xff] }
 0x216   : > { %3846 = vmatprep.subr.bf16.mxu0 %v16335_v11  ;;  %4977 = vmatprep.subr.bf16.mxu1 %v16335_v11  ;;  %v16408_v11 = vld [vmem:[%s21270_s1] ss:$8 sps:$4 sm:$0xff]  }
 0x217   : > { %3876 = vmatprep.mubr.bf16.mxu0 %v13855_v12  ;;  %5007 = vmatprep.mubr.bf16.mxu1 %v14014_v13  ;;  %v16413_v12 = vld [vmem:[%s21270_s1 + $0x14] ss:$8 sps:$4 sm:$0xff]   ;;  %v14167_v13 = vcombine.high %v18548_v9, %v18548_v9 }
 0x219   : > { %3847 = vmatpush1.bf16.msra.mxu0 %v16333_v14  ;;  %4978 = vmatpush1.bf16.msra.mxu1 %v16333_v14  ;;  %v14326_v14 = vcombine.high %v18551_v10, %v18551_v10 }
 0x21a   : > { %3848 = vmatprep.subr.bf16.mxu0 %v16338_v15  ;;  %4979 = vmatprep.subr.bf16.mxu1 %v16338_v15  ;;  %v16411_v15 = vld [vmem:[%s21270_s1 + $0x10] ss:$8 sps:$4 sm:$0xff]  }
 0x21d   : > { %3849 = vmatpush1.bf16.msra.mxu0 %v16336_v16  ;;  %4980 = vmatpush1.bf16.msra.mxu1 %v16336_v16  ;;  %v16416_v16 = vld [vmem:[%s21270_s1 + $0x24] ss:$8 sps:$4 sm:$0xff]  }
 0x21e   : > { %3850 = vmatprep.subr.bf16.mxu0 %v16341_v17  ;;  %4981 = vmatprep.subr.bf16.mxu1 %v16341_v17  ;;  %v16414_v17 = vld [vmem:[%s21270_s1 + $0x20] ss:$8 sps:$4 sm:$0xff]  }
 0x221   : > { %3851 = vmatpush1.bf16.msra.mxu0 %v16339_v18  ;;  %4982 = vmatpush1.bf16.msra.mxu1 %v16339_v18  ;;  %v16419_v18 = vld [vmem:[%s21270_s1 + $0x34] ss:$8 sps:$4 sm:$0xff]  }
 0x222   : > { %3852 = vmatprep.subr.bf16.mxu0 %v16344_v19  ;;  %4983 = vmatprep.subr.bf16.mxu1 %v16344_v19  ;;  %v16417_v19 = vld [vmem:[%s21270_s1 + $0x30] ss:$8 sps:$4 sm:$0xff]  }
 0x225   : > { %3853 = vmatpush1.bf16.msra.mxu0 %v16342_v20  ;;  %4984 = vmatpush1.bf16.msra.mxu1 %v16342_v20  ;;  %v16422_v20 = vld [vmem:[%s21270_s1 + $0x44] ss:$8 sps:$4 sm:$0xff]  }
 0x226   : > { %3854 = vmatprep.subr.bf16.mxu0 %v16347_v21  ;;  %4985 = vmatprep.subr.bf16.mxu1 %v16347_v21  ;;  %v16420_v21 = vld [vmem:[%s21270_s1 + $0x40] ss:$8 sps:$4 sm:$0xff]  }
 0x227   : > { %v18423_v24 = vpop.f32.mrb[0].mxu0  ;;  %v18425_v25 = vpop.f32.mrb[0].mxu1 }
 0x228   : > { %v18427_v26 = vpop.f32.mrb[1].mxu0  ;;  %v18429_v27 = vpop.f32.mrb[1].mxu1 }
 0x229   : > { %v1662_v28 = vpop.f32.mrb[2].mxu0  ;;  %v2792_v29 = vpop.f32.mrb[2].mxu1  ;;  %3855 = vmatpush1.bf16.msra.mxu0 %v16345_v22  ;;  %4986 = vmatpush1.bf16.msra.mxu1 %v16345_v22  ;;  %v16425_v22 = vld [vmem:[%s21270_s1 + $0x54] ss:$8 sps:$4 sm:$0xff]  }
 0x22a   : > { %v1663_v31 = vpop.f32.mrb[3].mxu0  ;;  %v2793_v32 = vpop.f32.mrb[3].mxu1  ;;  %3856 = vmatprep.subr.bf16.mxu0 %v16350_v23  ;;  %4987 = vmatprep.subr.bf16.mxu1 %v16350_v23  ;;  %v16423_v23 = vld [vmem:[%s21270_s1 + $0x50] ss:$8 sps:$4 sm:$0xff]   ;;  %v16428_v28 = vld [vmem:[%s21270_s1 + $0x64] ss:$8 sps:$4 sm:$0xff]  }
 0x22b   : > { %v16426_v29 = vld [vmem:[%s21270_s1 + $0x60] ss:$8 sps:$4 sm:$0xff]   ;;  %v16429_v31 = vld [vmem:[%s21270_s1 + $0x70] ss:$8 sps:$4 sm:$0xff]   ;;  %v16434_v32 = vld [vmem:[%s21270_s1 + $0x84] ss:$8 sps:$4 sm:$0xff]  }
 0x22d   : > { %3857 = vmatpush1.bf16.msra.mxu0 %v16348_v30  ;;  %4988 = vmatpush1.bf16.msra.mxu1 %v16348_v30  ;;  %v16431_v30 = vld [vmem:[%s21270_s1 + $0x74] ss:$8 sps:$4 sm:$0xff]  }
 0x22e   : > { %3858 = vmatprep.subr.bf16.mxu0 %v16353_v33  ;;  %4989 = vmatprep.subr.bf16.mxu1 %v16353_v33  ;;  %v16432_v33 = vld [vmem:[%s21270_s1 + $0x80] ss:$8 sps:$4 sm:$0xff]  }
 0x231   : > { %3859 = vmatpush1.bf16.msra.mxu0 %v16351_v34  ;;  %4990 = vmatpush1.bf16.msra.mxu1 %v16351_v34  ;;  %v16437_v34 = vld [vmem:[%s21270_s1 + $0x94] ss:$8 sps:$4 sm:$0xff]  }
 0x232   : > { %3860 = vmatprep.subr.bf16.mxu0 %v16356_v35  ;;  %4991 = vmatprep.subr.bf16.mxu1 %v16356_v35  ;;  %v16435_v35 = vld [vmem:[%s21270_s1 + $0x90] ss:$8 sps:$4 sm:$0xff]  }
 0x235   : > { %3861 = vmatpush1.bf16.msra.mxu0 %v16354_v36  ;;  %4992 = vmatpush1.bf16.msra.mxu1 %v16354_v36  ;;  %v16440_v36 = vld [vmem:[%s21270_s1 + $0xa4] ss:$8 sps:$4 sm:$0xff]  }
 0x236   : > { %3862 = vmatprep.subr.bf16.mxu0 %v16359_v37  ;;  %4993 = vmatprep.subr.bf16.mxu1 %v16359_v37  ;;  %v16438_v37 = vld [vmem:[%s21270_s1 + $0xa0] ss:$8 sps:$4 sm:$0xff]  }
 0x239   : > { %3863 = vmatpush1.bf16.msra.mxu0 %v16357_v38  ;;  %4994 = vmatpush1.bf16.msra.mxu1 %v16357_v38  ;;  %v16443_v38 = vld [vmem:[%s21270_s1 + $0xb4] ss:$8 sps:$4 sm:$0xff]  }
 0x23a   : > { %3864 = vmatprep.subr.bf16.mxu0 %v16362_v39  ;;  %4995 = vmatprep.subr.bf16.mxu1 %v16362_v39  ;;  %v16441_v39 = vld [vmem:[%s21270_s1 + $0xb0] ss:$8 sps:$4 sm:$0xff]  }
 0x23d   : > { %3865 = vmatpush1.bf16.msra.mxu0 %v16360_v40  ;;  %4996 = vmatpush1.bf16.msra.mxu1 %v16360_v40  ;;  %v16446_v40 = vld [vmem:[%s21270_s1 + $0xc4] ss:$8 sps:$4 sm:$0xff]  }
 0x23e   : > { %3866 = vmatprep.subr.bf16.mxu0 %v16365_v41  ;;  %4997 = vmatprep.subr.bf16.mxu1 %v16365_v41  ;;  %v16444_v41 = vld [vmem:[%s21270_s1 + $0xc0] ss:$8 sps:$4 sm:$0xff]  }
 0x241   : > { %3867 = vmatpush1.bf16.msra.mxu0 %v16363_v42  ;;  %4998 = vmatpush1.bf16.msra.mxu1 %v16363_v42  ;;  %v16449_v42 = vld [vmem:[%s21270_s1 + $0xd4] ss:$8 sps:$4 sm:$0xff]  }
 0x242   : > { %3868 = vmatprep.subr.bf16.mxu0 %v16368_v43  ;;  %4999 = vmatprep.subr.bf16.mxu1 %v16368_v43  ;;  %v16447_v43 = vld [vmem:[%s21270_s1 + $0xd0] ss:$8 sps:$4 sm:$0xff]  }
 0x245   : > { %3869 = vmatpush1.bf16.msra.mxu0 %v16366_v44  ;;  %5000 = vmatpush1.bf16.msra.mxu1 %v16366_v44  ;;  %v16452_v44 = vld [vmem:[%s21270_s1 + $0xe4] ss:$8 sps:$4 sm:$0xff]  }
 0x246   : > { %3870 = vmatprep.subr.bf16.mxu0 %v16371_v45  ;;  %5001 = vmatprep.subr.bf16.mxu1 %v16371_v45  ;;  %v16450_v45 = vld [vmem:[%s21270_s1 + $0xe0] ss:$8 sps:$4 sm:$0xff]  }
 0x249   : > { %3871 = vmatpush1.bf16.msra.mxu0 %v16369_v46  ;;  %5002 = vmatpush1.bf16.msra.mxu1 %v16369_v46  ;;  %v16455_v46 = vld [vmem:[%s21270_s1 + $0xf4] ss:$8 sps:$4 sm:$0xff]  }
 0x24a   : > { %3872 = vmatprep.subr.bf16.mxu0 %v16374_v47  ;;  %5003 = vmatprep.subr.bf16.mxu1 %v16374_v47  ;;  %v16453_v47 = vld [vmem:[%s21270_s1 + $0xf0] ss:$8 sps:$4 sm:$0xff]  }
 0x24d   : > { %3873 = vmatpush1.bf16.msra.mxu0 %v16372_v48  ;;  %5004 = vmatpush1.bf16.msra.mxu1 %v16372_v48  ;;  %v16460_v48 = vld [vmem:[%s21270_s1 + $0x104] ss:$8 sps:$4 sm:$0xff]  }
 0x24e   : > { %3874 = vmatprep.subr.bf16.mxu0 %v16377_v49  ;;  %5005 = vmatprep.subr.bf16.mxu1 %v16377_v49  ;;  %v14166_v49 = vcombine.low %v18548_v9, %v18548_v9  ;;  %v16489_v9 = vld [vmem:[%s21270_s1 + $0x194] ss:$8 sps:$4 sm:$0xff]  }
 0x251   : > { %3875 = vmatpush1.bf16.msra.mxu0 %v16375_v50  ;;  %5006 = vmatpush1.bf16.msra.mxu1 %v16375_v50  ;;  %v14325_v50 = vcombine.low %v18551_v10, %v18551_v10  ;;  %v16487_v10 = vld [vmem:[%s21270_s1 + $0x190] ss:$8 sps:$4 sm:$0xff]  }
 0x252   : > { %3885 = vmatprep.subr.bf16.mxu0 %v16382_v51  ;;  %5016 = vmatprep.subr.bf16.mxu1 %v16382_v51  ;;  %v18658_v51 = vld [vmem:[%s17589_s17 + $0x98] sm:$0xff] }
 0x254   : > { %3877 = vmatmul.mubr.bf16.vlgmr.msra.gmra.mrb[4].mxu0 %v13854_v52  ;;  %5008 = vmatmul.mubr.bf16.vlgmr.msra.gmra.mrb[4].mxu1 %v14013_v53  ;;  %v18661_v52 = vld [vmem:[%s17589_s17 + $0xbc] sm:$0xff] }
 0x255   : > { %3886 = vmatpush1.bf16.msra.mxu0 %v16380_v54  ;;  %5017 = vmatpush1.bf16.msra.mxu1 %v16380_v54  ;;  %v16458_v53 = vld [vmem:[%s21270_s1 + $0x100] ss:$8 sps:$4 sm:$0xff]   ;;  %v16465_v54 = vld [vmem:[%s21270_s1 + $0x114] ss:$8 sps:$4 sm:$0xff]  }
 0x256   : > { %3887 = vmatprep.subr.bf16.mxu0 %v16387_v55  ;;  %5018 = vmatprep.subr.bf16.mxu1 %v16387_v55  ;;  %v14169_v55 = vcombine.high %v18658_v51, %v18658_v51 }
 0x257   : > { %3917 = vmatprep.mubr.bf16.mxu0 %v17356_v5  ;;  %5048 = vmatprep.mubr.bf16.mxu1 %v17356_v5 }
 0x259   : > { %3888 = vmatpush1.bf16.msra.mxu0 %v16385_v56  ;;  %5019 = vmatpush1.bf16.msra.mxu1 %v16385_v56  ;;  %v14328_v56 = vcombine.high %v18661_v52, %v18661_v52 }
 0x25a   : > { %3889 = vmatprep.subr.bf16.mxu0 %v16390_v57  ;;  %5020 = vmatprep.subr.bf16.mxu1 %v16390_v57  ;;  %v16463_v57 = vld [vmem:[%s21270_s1 + $0x110] ss:$8 sps:$4 sm:$0xff]  }
 0x25d   : > { %3890 = vmatpush1.bf16.msra.mxu0 %v16388_v58  ;;  %5021 = vmatpush1.bf16.msra.mxu1 %v16388_v58  ;;  %v16468_v58 = vld [vmem:[%s21270_s1 + $0x124] ss:$8 sps:$4 sm:$0xff]  }
 0x25e   : > { %3891 = vmatprep.subr.bf16.mxu0 %v16393_v59  ;;  %5022 = vmatprep.subr.bf16.mxu1 %v16393_v59  ;;  %v16466_v59 = vld [vmem:[%s21270_s1 + $0x120] ss:$8 sps:$4 sm:$0xff]  }
 0x261   : > { %3892 = vmatpush1.bf16.msra.mxu0 %v16391_v60  ;;  %5023 = vmatpush1.bf16.msra.mxu1 %v16391_v60  ;;  %v16471_v60 = vld [vmem:[%s21270_s1 + $0x134] ss:$8 sps:$4 sm:$0xff]  }
 0x262   : > { %3893 = vmatprep.subr.bf16.mxu0 %v16396_v61  ;;  %5024 = vmatprep.subr.bf16.mxu1 %v16396_v61  ;;  %v16469_v61 = vld [vmem:[%s21270_s1 + $0x130] ss:$8 sps:$4 sm:$0xff]  }
 0x265   : > { %3894 = vmatpush1.bf16.msra.mxu0 %v16394_v62  ;;  %5025 = vmatpush1.bf16.msra.mxu1 %v16394_v62  ;;  %v16474_v62 = vld [vmem:[%s21270_s1 + $0x144] ss:$8 sps:$4 sm:$0xff]  }
 0x266   : > { %3895 = vmatprep.subr.bf16.mxu0 %v16399_v63  ;;  %5026 = vmatprep.subr.bf16.mxu1 %v16399_v63  ;;  %v16472_v63 = vld [vmem:[%s21270_s1 + $0x140] ss:$8 sps:$4 sm:$0xff]  }
 0x269   : > { %3896 = vmatpush1.bf16.msra.mxu0 %v16397_v0  ;;  %5027 = vmatpush1.bf16.msra.mxu1 %v16397_v0  ;;  %v16477_v0 = vld [vmem:[%s21270_s1 + $0x154] ss:$8 sps:$4 sm:$0xff]  }
 0x26a   : > { %3897 = vmatprep.subr.bf16.mxu0 %v16402_v1  ;;  %5028 = vmatprep.subr.bf16.mxu1 %v16402_v1  ;;  %v16475_v1 = vld [vmem:[%s21270_s1 + $0x150] ss:$8 sps:$4 sm:$0xff]  }
 0x26d   : > { %3898 = vmatpush1.bf16.msra.mxu0 %v16400_v2  ;;  %5029 = vmatpush1.bf16.msra.mxu1 %v16400_v2  ;;  %v16480_v2 = vld [vmem:[%s21270_s1 + $0x164] ss:$8 sps:$4 sm:$0xff]  }
 0x26e   : > { %3899 = vmatprep.subr.bf16.mxu0 %v16405_v3  ;;  %5030 = vmatprep.subr.bf16.mxu1 %v16405_v3  ;;  %v16478_v3 = vld [vmem:[%s21270_s1 + $0x160] ss:$8 sps:$4 sm:$0xff]  }
 0x271   : > { %3900 = vmatpush1.bf16.msra.mxu0 %v16403_v4  ;;  %5031 = vmatpush1.bf16.msra.mxu1 %v16403_v4  ;;  %v16483_v4 = vld [vmem:[%s21270_s1 + $0x174] ss:$8 sps:$4 sm:$0xff]  }
 0x272   : > { %5983 = vmatprep.subr.bf16.mxu0 %v16410_v6  ;;  %7114 = vmatprep.subr.bf16.mxu1 %v16410_v6  ;;  %v16481_v6 = vld [vmem:[%s21270_s1 + $0x170] ss:$8 sps:$4 sm:$0xff]  }
 0x274   : > { %3918 = vmatmul.mubr.bf16.vlgmr.msra.gmra.mrb[4].mxu0 %v16406_v7  ;;  %5049 = vmatmul.mubr.bf16.vlgmr.msra.gmra.mrb[4].mxu1 %v16407_v8  ;;  %v16486_v7 = vld [vmem:[%s21270_s1 + $0x184] ss:$8 sps:$4 sm:$0xff]   ;;  %v16484_v8 = vld [vmem:[%s21270_s1 + $0x180] ss:$8 sps:$4 sm:$0xff]  }
 0x275   : > { %5984 = vmatpush1.bf16.msra.mxu0 %v16408_v11  ;;  %7115 = vmatpush1.bf16.msra.mxu1 %v16408_v11  ;;  %v16492_v11 = vld [vmem:[%s21270_s1 + $0x1a4] ss:$8 sps:$4 sm:$0xff]  }
 0x276   : > { %5985 = vmatprep.subr.bf16.mxu0 %v16413_v12  ;;  %7116 = vmatprep.subr.bf16.mxu1 %v16413_v12  ;;  %v16490_v12 = vld [vmem:[%s21270_s1 + $0x1a0] ss:$8 sps:$4 sm:$0xff]  }
 0x277   : > { %6015 = vmatprep.mubr.bf16.mxu0 %v14167_v13  ;;  %7146 = vmatprep.mubr.bf16.mxu1 %v14326_v14  ;;  %v16495_v13 = vld [vmem:[%s21270_s1 + $0x1b4] ss:$8 sps:$4 sm:$0xff]   ;;  %v16493_v14 = vld [vmem:[%s21270_s1 + $0x1b0] ss:$8 sps:$4 sm:$0xff]  }
 0x279   : > { %5986 = vmatpush1.bf16.msra.mxu0 %v16411_v15  ;;  %7117 = vmatpush1.bf16.msra.mxu1 %v16411_v15  ;;  %v16498_v15 = vld [vmem:[%s21270_s1 + $0x1c4] ss:$8 sps:$4 sm:$0xff]  }
 0x27a   : > { %5987 = vmatprep.subr.bf16.mxu0 %v16416_v16  ;;  %7118 = vmatprep.subr.bf16.mxu1 %v16416_v16  ;;  %v16496_v16 = vld [vmem:[%s21270_s1 + $0x1c0] ss:$8 sps:$4 sm:$0xff]  }
 0x27d   : > { %5988 = vmatpush1.bf16.msra.mxu0 %v16414_v17  ;;  %7119 = vmatpush1.bf16.msra.mxu1 %v16414_v17  ;;  %v16501_v17 = vld [vmem:[%s21270_s1 + $0x1d4] ss:$8 sps:$4 sm:$0xff]  }
 0x27e   : > { %5989 = vmatprep.subr.bf16.mxu0 %v16419_v18  ;;  %7120 = vmatprep.subr.bf16.mxu1 %v16419_v18  ;;  %v16499_v18 = vld [vmem:[%s21270_s1 + $0x1d0] ss:$8 sps:$4 sm:$0xff]  }
 0x281   : > { %5990 = vmatpush1.bf16.msra.mxu0 %v16417_v19  ;;  %7121 = vmatpush1.bf16.msra.mxu1 %v16417_v19  ;;  %v16504_v19 = vld [vmem:[%s21270_s1 + $0x1e4] ss:$8 sps:$4 sm:$0xff]  }
 0x282   : > { %5991 = vmatprep.subr.bf16.mxu0 %v16422_v20  ;;  %7122 = vmatprep.subr.bf16.mxu1 %v16422_v20  ;;  %v16502_v20 = vld [vmem:[%s21270_s1 + $0x1e0] ss:$8 sps:$4 sm:$0xff]  }
 0x285   : > { %5992 = vmatpush1.bf16.msra.mxu0 %v16420_v21  ;;  %7123 = vmatpush1.bf16.msra.mxu1 %v16420_v21  ;;  %v16507_v21 = vld [vmem:[%s21270_s1 + $0x1f4] ss:$8 sps:$4 sm:$0xff]  }
 0x286   : > { %5993 = vmatprep.subr.bf16.mxu0 %v16425_v22  ;;  %7124 = vmatprep.subr.bf16.mxu1 %v16425_v22  ;;  %v16505_v22 = vld [vmem:[%s21270_s1 + $0x1f0] ss:$8 sps:$4 sm:$0xff]  }
 0x289   : > { %5994 = vmatpush1.bf16.msra.mxu0 %v16423_v23  ;;  %7125 = vmatpush1.bf16.msra.mxu1 %v16423_v23  ;;  %v16512_v23 = vld [vmem:[%s21270_s1 + $0x204] ss:$8 sps:$4 sm:$0xff]  }
 0x28a   : > { %5995 = vmatprep.subr.bf16.mxu0 %v16428_v28  ;;  %7126 = vmatprep.subr.bf16.mxu1 %v16428_v28  ;;  %v14168_v28 = vcombine.low %v18658_v51, %v18658_v51  ;;  %v16541_v51 = vld [vmem:[%s21270_s1 + $0x294] ss:$8 sps:$4 sm:$0xff]  }
 0x28d   : > { %5996 = vmatpush1.bf16.msra.mxu0 %v16426_v29  ;;  %7127 = vmatpush1.bf16.msra.mxu1 %v16426_v29  ;;  %v14327_v29 = vcombine.low %v18661_v52, %v18661_v52  ;;  %v16539_v52 = vld [vmem:[%s21270_s1 + $0x290] ss:$8 sps:$4 sm:$0xff]  }
 0x28e   : > { %5997 = vmatprep.subr.bf16.mxu0 %v16431_v30  ;;  %7128 = vmatprep.subr.bf16.mxu1 %v16431_v30  ;;  %v18768_v30 = vld [vmem:[%s17589_s17 + $0xa0] sm:$0xff] }
 0x291   : > { %5998 = vmatpush1.bf16.msra.mxu0 %v16429_v31  ;;  %7129 = vmatpush1.bf16.msra.mxu1 %v16429_v31  ;;  %v18771_v31 = vld [vmem:[%s17589_s17 + $0xc4] sm:$0xff] }
 0x292   : > { %5999 = vmatprep.subr.bf16.mxu0 %v16434_v32  ;;  %7130 = vmatprep.subr.bf16.mxu1 %v16434_v32  ;;  %v16510_v32 = vld [vmem:[%s21270_s1 + $0x200] ss:$8 sps:$4 sm:$0xff]  }
 0x295   : > { %6000 = vmatpush1.bf16.msra.mxu0 %v16432_v33  ;;  %7131 = vmatpush1.bf16.msra.mxu1 %v16432_v33  ;;  %v16517_v33 = vld [vmem:[%s21270_s1 + $0x214] ss:$8 sps:$4 sm:$0xff]  }
 0x296   : > { %6001 = vmatprep.subr.bf16.mxu0 %v16437_v34  ;;  %7132 = vmatprep.subr.bf16.mxu1 %v16437_v34  ;;  %v14171_v34 = vcombine.high %v18768_v30, %v18768_v30 }
 0x299   : > { %6002 = vmatpush1.bf16.msra.mxu0 %v16435_v35  ;;  %7133 = vmatpush1.bf16.msra.mxu1 %v16435_v35  ;;  %v14330_v35 = vcombine.high %v18771_v31, %v18771_v31 }
 0x29a   : > { %6003 = vmatprep.subr.bf16.mxu0 %v16440_v36  ;;  %7134 = vmatprep.subr.bf16.mxu1 %v16440_v36  ;;  %v16515_v36 = vld [vmem:[%s21270_s1 + $0x210] ss:$8 sps:$4 sm:$0xff]  }
 0x29d   : > { %6004 = vmatpush1.bf16.msra.mxu0 %v16438_v37  ;;  %7135 = vmatpush1.bf16.msra.mxu1 %v16438_v37  ;;  %v16520_v37 = vld [vmem:[%s21270_s1 + $0x224] ss:$8 sps:$4 sm:$0xff]  }
 0x29e   : > { %6005 = vmatprep.subr.bf16.mxu0 %v16443_v38  ;;  %7136 = vmatprep.subr.bf16.mxu1 %v16443_v38  ;;  %v16518_v38 = vld [vmem:[%s21270_s1 + $0x220] ss:$8 sps:$4 sm:$0xff]  }
 0x2a1   : > { %6006 = vmatpush1.bf16.msra.mxu0 %v16441_v39  ;;  %7137 = vmatpush1.bf16.msra.mxu1 %v16441_v39  ;;  %v16523_v39 = vld [vmem:[%s21270_s1 + $0x234] ss:$8 sps:$4 sm:$0xff]  }
 0x2a2   : > { %6007 = vmatprep.subr.bf16.mxu0 %v16446_v40  ;;  %7138 = vmatprep.subr.bf16.mxu1 %v16446_v40  ;;  %v16521_v40 = vld [vmem:[%s21270_s1 + $0x230] ss:$8 sps:$4 sm:$0xff]  }
 0x2a5   : > { %6008 = vmatpush1.bf16.msra.mxu0 %v16444_v41  ;;  %7139 = vmatpush1.bf16.msra.mxu1 %v16444_v41  ;;  %v16526_v41 = vld [vmem:[%s21270_s1 + $0x244] ss:$8 sps:$4 sm:$0xff]  }
 0x2a6   : > { %6009 = vmatprep.subr.bf16.mxu0 %v16449_v42  ;;  %7140 = vmatprep.subr.bf16.mxu1 %v16449_v42  ;;  %v16524_v42 = vld [vmem:[%s21270_s1 + $0x240] ss:$8 sps:$4 sm:$0xff]  }
 0x2a9   : > { %6010 = vmatpush1.bf16.msra.mxu0 %v16447_v43  ;;  %7141 = vmatpush1.bf16.msra.mxu1 %v16447_v43  ;;  %v16529_v43 = vld [vmem:[%s21270_s1 + $0x254] ss:$8 sps:$4 sm:$0xff]  }
 0x2aa   : > { %6011 = vmatprep.subr.bf16.mxu0 %v16452_v44  ;;  %7142 = vmatprep.subr.bf16.mxu1 %v16452_v44  ;;  %v16527_v44 = vld [vmem:[%s21270_s1 + $0x250] ss:$8 sps:$4 sm:$0xff]  }
 0x2ad   : > { %6012 = vmatpush1.bf16.msra.mxu0 %v16450_v45  ;;  %7143 = vmatpush1.bf16.msra.mxu1 %v16450_v45  ;;  %v16532_v45 = vld [vmem:[%s21270_s1 + $0x264] ss:$8 sps:$4 sm:$0xff]  }
 0x2ae   : > { %6013 = vmatprep.subr.bf16.mxu0 %v16455_v46  ;;  %7144 = vmatprep.subr.bf16.mxu1 %v16455_v46  ;;  %v16530_v46 = vld [vmem:[%s21270_s1 + $0x260] ss:$8 sps:$4 sm:$0xff]  }
 0x2b1   : > { %6014 = vmatpush1.bf16.msra.mxu0 %v16453_v47  ;;  %7145 = vmatpush1.bf16.msra.mxu1 %v16453_v47  ;;  %v16535_v47 = vld [vmem:[%s21270_s1 + $0x274] ss:$8 sps:$4 sm:$0xff]  }
 0x2b2   : > { %6024 = vmatprep.subr.bf16.mxu0 %v16460_v48  ;;  %7155 = vmatprep.subr.bf16.mxu1 %v16460_v48  ;;  %v16533_v48 = vld [vmem:[%s21270_s1 + $0x270] ss:$8 sps:$4 sm:$0xff]  }
 0x2b4   : > { %6016 = vmatmul.mubr.bf16.vlgmr.msra.gmra.mrb[8].mxu0 %v14166_v49  ;;  %7147 = vmatmul.mubr.bf16.vlgmr.msra.gmra.mrb[8].mxu1 %v14325_v50  ;;  %v16538_v49 = vld [vmem:[%s21270_s1 + $0x284] ss:$8 sps:$4 sm:$0xff]   ;;  %v16536_v50 = vld [vmem:[%s21270_s1 + $0x280] ss:$8 sps:$4 sm:$0xff]  }
 0x2b5   : > { %6025 = vmatpush1.bf16.msra.mxu0 %v16458_v53  ;;  %7156 = vmatpush1.bf16.msra.mxu1 %v16458_v53  ;;  %v16544_v53 = vld [vmem:[%s21270_s1 + $0x2a4] ss:$8 sps:$4 sm:$0xff]  }
 0x2b6   : > { %6026 = vmatprep.subr.bf16.mxu0 %v16465_v54  ;;  %7157 = vmatprep.subr.bf16.mxu1 %v16465_v54  ;;  %v16542_v54 = vld [vmem:[%s21270_s1 + $0x2a0] ss:$8 sps:$4 sm:$0xff]  }
 0x2b7   : > { %6056 = vmatprep.mubr.bf16.mxu0 %v14169_v55  ;;  %7187 = vmatprep.mubr.bf16.mxu1 %v14328_v56  ;;  %v16547_v55 = vld [vmem:[%s21270_s1 + $0x2b4] ss:$8 sps:$4 sm:$0xff]   ;;  %v16545_v56 = vld [vmem:[%s21270_s1 + $0x2b0] ss:$8 sps:$4 sm:$0xff]  }
 0x2b9   : > { %6027 = vmatpush1.bf16.msra.mxu0 %v16463_v57  ;;  %7158 = vmatpush1.bf16.msra.mxu1 %v16463_v57  ;;  %v16550_v57 = vld [vmem:[%s21270_s1 + $0x2c4] ss:$8 sps:$4 sm:$0xff]  }
 0x2ba   : > { %6028 = vmatprep.subr.bf16.mxu0 %v16468_v58  ;;  %7159 = vmatprep.subr.bf16.mxu1 %v16468_v58  ;;  %v16548_v58 = vld [vmem:[%s21270_s1 + $0x2c0] ss:$8 sps:$4 sm:$0xff]  }
 0x2bd   : > { %6029 = vmatpush1.bf16.msra.mxu0 %v16466_v59  ;;  %7160 = vmatpush1.bf16.msra.mxu1 %v16466_v59  ;;  %v16553_v59 = vld [vmem:[%s21270_s1 + $0x2d4] ss:$8 sps:$4 sm:$0xff]  }
 0x2be   : > { %6030 = vmatprep.subr.bf16.mxu0 %v16471_v60  ;;  %7161 = vmatprep.subr.bf16.mxu1 %v16471_v60  ;;  %v16551_v60 = vld [vmem:[%s21270_s1 + $0x2d0] ss:$8 sps:$4 sm:$0xff]  }
 0x2c1   : > { %6031 = vmatpush1.bf16.msra.mxu0 %v16469_v61  ;;  %7162 = vmatpush1.bf16.msra.mxu1 %v16469_v61  ;;  %v16556_v61 = vld [vmem:[%s21270_s1 + $0x2e4] ss:$8 sps:$4 sm:$0xff]  }
 0x2c2   : > { %6032 = vmatprep.subr.bf16.mxu0 %v16474_v62  ;;  %7163 = vmatprep.subr.bf16.mxu1 %v16474_v62  ;;  %v16554_v62 = vld [vmem:[%s21270_s1 + $0x2e0] ss:$8 sps:$4 sm:$0xff]  }
 0x2c5   : > { %6033 = vmatpush1.bf16.msra.mxu0 %v16472_v63  ;;  %7164 = vmatpush1.bf16.msra.mxu1 %v16472_v63  ;;  %v16559_v63 = vld [vmem:[%s21270_s1 + $0x2f4] ss:$8 sps:$4 sm:$0xff]  }
 0x2c6   : > { %6034 = vmatprep.subr.bf16.mxu0 %v16477_v0  ;;  %7165 = vmatprep.subr.bf16.mxu1 %v16477_v0  ;;  %v16557_v0 = vld [vmem:[%s21270_s1 + $0x2f0] ss:$8 sps:$4 sm:$0xff]  }
 0x2c9   : > { %6035 = vmatpush1.bf16.msra.mxu0 %v16475_v1  ;;  %7166 = vmatpush1.bf16.msra.mxu1 %v16475_v1  ;;  %v16564_v1 = vld [vmem:[%s21270_s1 + $0x304] ss:$8 sps:$4 sm:$0xff]  }
 0x2ca   : > { %6036 = vmatprep.subr.bf16.mxu0 %v16480_v2  ;;  %7167 = vmatprep.subr.bf16.mxu1 %v16480_v2  ;;  %v14170_v2 = vcombine.low %v18768_v30, %v18768_v30 }
 0x2cd   : > { %6037 = vmatpush1.bf16.msra.mxu0 %v16478_v3  ;;  %7168 = vmatpush1.bf16.msra.mxu1 %v16478_v3  ;;  %v14329_v3 = vcombine.low %v18771_v31, %v18771_v31  ;;  %v16582_v31 = vld [vmem:[%s21270_s1 + $0x360] ss:$8 sps:$4 sm:$0xff]  }
 0x2ce   : > { %6038 = vmatprep.subr.bf16.mxu0 %v16483_v4  ;;  %7169 = vmatprep.subr.bf16.mxu1 %v16483_v4  ;;  %v18878_v4 = vld [vmem:[%s17589_s17 + $0xa8] sm:$0xff] }
 0x2d1   : > { %6039 = vmatpush1.bf16.msra.mxu0 %v16481_v6  ;;  %7170 = vmatpush1.bf16.msra.mxu1 %v16481_v6  ;;  %v18881_v6 = vld [vmem:[%s17589_s17 + $0xcc] sm:$0xff] }
 0x2d2   : > { %6040 = vmatprep.subr.bf16.mxu0 %v16486_v7  ;;  %7171 = vmatprep.subr.bf16.mxu1 %v16486_v7  ;;  %v16562_v7 = vld [vmem:[%s21270_s1 + $0x300] ss:$8 sps:$4 sm:$0xff]  }
 0x2d5   : > { %6041 = vmatpush1.bf16.msra.mxu0 %v16484_v8  ;;  %7172 = vmatpush1.bf16.msra.mxu1 %v16484_v8  ;;  %v16569_v8 = vld [vmem:[%s21270_s1 + $0x314] ss:$8 sps:$4 sm:$0xff]  }
 0x2d6   : > { %6042 = vmatprep.subr.bf16.mxu0 %v16489_v9  ;;  %7173 = vmatprep.subr.bf16.mxu1 %v16489_v9  ;;  %v14173_v9 = vcombine.high %v18878_v4, %v18878_v4 }
 0x2d9   : > { %6043 = vmatpush1.bf16.msra.mxu0 %v16487_v10  ;;  %7174 = vmatpush1.bf16.msra.mxu1 %v16487_v10  ;;  %v14332_v10 = vcombine.high %v18881_v6, %v18881_v6 }
 0x2da   : > { %6044 = vmatprep.subr.bf16.mxu0 %v16492_v11  ;;  %7175 = vmatprep.subr.bf16.mxu1 %v16492_v11  ;;  %v16567_v11 = vld [vmem:[%s21270_s1 + $0x310] ss:$8 sps:$4 sm:$0xff]  }
 0x2dd   : > { %6045 = vmatpush1.bf16.msra.mxu0 %v16490_v12  ;;  %7176 = vmatpush1.bf16.msra.mxu1 %v16490_v12  ;;  %v16572_v12 = vld [vmem:[%s21270_s1 + $0x324] ss:$8 sps:$4 sm:$0xff]  }
 0x2de   : > { %6046 = vmatprep.subr.bf16.mxu0 %v16495_v13  ;;  %7177 = vmatprep.subr.bf16.mxu1 %v16495_v13  ;;  %v16570_v13 = vld [vmem:[%s21270_s1 + $0x320] ss:$8 sps:$4 sm:$0xff]  }
 0x2e1   : > { %6047 = vmatpush1.bf16.msra.mxu0 %v16493_v14  ;;  %7178 = vmatpush1.bf16.msra.mxu1 %v16493_v14  ;;  %v16575_v14 = vld [vmem:[%s21270_s1 + $0x334] ss:$8 sps:$4 sm:$0xff]  }
 0x2e2   : > { %6048 = vmatprep.subr.bf16.mxu0 %v16498_v15  ;;  %7179 = vmatprep.subr.bf16.mxu1 %v16498_v15  ;;  %v16573_v15 = vld [vmem:[%s21270_s1 + $0x330] ss:$8 sps:$4 sm:$0xff]  }
 0x2e5   : > { %6049 = vmatpush1.bf16.msra.mxu0 %v16496_v16  ;;  %7180 = vmatpush1.bf16.msra.mxu1 %v16496_v16  ;;  %v16578_v16 = vld [vmem:[%s21270_s1 + $0x344] ss:$8 sps:$4 sm:$0xff]  }
 0x2e6   : > { %6050 = vmatprep.subr.bf16.mxu0 %v16501_v17  ;;  %7181 = vmatprep.subr.bf16.mxu1 %v16501_v17  ;;  %v16576_v17 = vld [vmem:[%s21270_s1 + $0x340] ss:$8 sps:$4 sm:$0xff]  }
 0x2e9   : > { %6051 = vmatpush1.bf16.msra.mxu0 %v16499_v18  ;;  %7182 = vmatpush1.bf16.msra.mxu1 %v16499_v18  ;;  %v16581_v18 = vld [vmem:[%s21270_s1 + $0x354] ss:$8 sps:$4 sm:$0xff]  }
 0x2ea   : > { %6052 = vmatprep.subr.bf16.mxu0 %v16504_v19  ;;  %7183 = vmatprep.subr.bf16.mxu1 %v16504_v19  ;;  %v16579_v19 = vld [vmem:[%s21270_s1 + $0x350] ss:$8 sps:$4 sm:$0xff]  }
 0x2ed   : > { %6053 = vmatpush1.bf16.msra.mxu0 %v16502_v20  ;;  %7184 = vmatpush1.bf16.msra.mxu1 %v16502_v20  ;;  %v16584_v20 = vld [vmem:[%s21270_s1 + $0x364] ss:$8 sps:$4 sm:$0xff]  }
 0x2ee   : > { %6054 = vmatprep.subr.bf16.mxu0 %v16507_v21  ;;  %7185 = vmatprep.subr.bf16.mxu1 %v16507_v21 }
 0x2f1   : > { %6055 = vmatpush1.bf16.msra.mxu0 %v16505_v22  ;;  %7186 = vmatpush1.bf16.msra.mxu1 %v16505_v22 }
 0x2f2   : > { %6065 = vmatprep.subr.bf16.mxu0 %v16512_v23  ;;  %7196 = vmatprep.subr.bf16.mxu1 %v16512_v23 }
 0x2f4   : > { %6057 = vmatmul.mubr.bf16.vlgmr.msra.gmra.mrb[8].mxu0 %v14168_v28  ;;  %7188 = vmatmul.mubr.bf16.vlgmr.msra.gmra.mrb[8].mxu1 %v14327_v29 }
 0x2f5   : > { %6066 = vmatpush1.bf16.msra.mxu0 %v16510_v32  ;;  %7197 = vmatpush1.bf16.msra.mxu1 %v16510_v32 }
 0x2f6   : > { %6067 = vmatprep.subr.bf16.mxu0 %v16517_v33  ;;  %7198 = vmatprep.subr.bf16.mxu1 %v16517_v33 }
 0x2f7   : > { %6097 = vmatprep.mubr.bf16.mxu0 %v14171_v34  ;;  %7228 = vmatprep.mubr.bf16.mxu1 %v14330_v35  ;;  %v16587_v34 = vld [vmem:[%s21270_s1 + $0x374] ss:$8 sps:$4 sm:$0xff]   ;;  %v16585_v35 = vld [vmem:[%s21270_s1 + $0x370] ss:$8 sps:$4 sm:$0xff]  }
 0x2f9   : > { %6068 = vmatpush1.bf16.msra.mxu0 %v16515_v36  ;;  %7199 = vmatpush1.bf16.msra.mxu1 %v16515_v36  ;;  %v16590_v36 = vld [vmem:[%s21270_s1 + $0x384] ss:$8 sps:$4 sm:$0xff]  }
 0x2fa   : > { %6069 = vmatprep.subr.bf16.mxu0 %v16520_v37  ;;  %7200 = vmatprep.subr.bf16.mxu1 %v16520_v37  ;;  %v16588_v37 = vld [vmem:[%s21270_s1 + $0x380] ss:$8 sps:$4 sm:$0xff]  }
 0x2fd   : > { %6070 = vmatpush1.bf16.msra.mxu0 %v16518_v38  ;;  %7201 = vmatpush1.bf16.msra.mxu1 %v16518_v38  ;;  %v16593_v38 = vld [vmem:[%s21270_s1 + $0x394] ss:$8 sps:$4 sm:$0xff]  }
 0x2fe   : > { %6071 = vmatprep.subr.bf16.mxu0 %v16523_v39  ;;  %7202 = vmatprep.subr.bf16.mxu1 %v16523_v39  ;;  %v16591_v39 = vld [vmem:[%s21270_s1 + $0x390] ss:$8 sps:$4 sm:$0xff]  }
 0x301   : > { %6072 = vmatpush1.bf16.msra.mxu0 %v16521_v40  ;;  %7203 = vmatpush1.bf16.msra.mxu1 %v16521_v40  ;;  %v16596_v40 = vld [vmem:[%s21270_s1 + $0x3a4] ss:$8 sps:$4 sm:$0xff]  }
 0x302   : > { %6073 = vmatprep.subr.bf16.mxu0 %v16526_v41  ;;  %7204 = vmatprep.subr.bf16.mxu1 %v16526_v41  ;;  %v16594_v41 = vld [vmem:[%s21270_s1 + $0x3a0] ss:$8 sps:$4 sm:$0xff]  }
 0x305   : > { %6074 = vmatpush1.bf16.msra.mxu0 %v16524_v42  ;;  %7205 = vmatpush1.bf16.msra.mxu1 %v16524_v42  ;;  %v16599_v42 = vld [vmem:[%s21270_s1 + $0x3b4] ss:$8 sps:$4 sm:$0xff]  }
 0x306   : > { %6075 = vmatprep.subr.bf16.mxu0 %v16529_v43  ;;  %7206 = vmatprep.subr.bf16.mxu1 %v16529_v43  ;;  %v16597_v43 = vld [vmem:[%s21270_s1 + $0x3b0] ss:$8 sps:$4 sm:$0xff]  }
 0x309   : > { %6076 = vmatpush1.bf16.msra.mxu0 %v16527_v44  ;;  %7207 = vmatpush1.bf16.msra.mxu1 %v16527_v44  ;;  %v16602_v44 = vld [vmem:[%s21270_s1 + $0x3c4] ss:$8 sps:$4 sm:$0xff]  }
 0x30a   : > { %6077 = vmatprep.subr.bf16.mxu0 %v16532_v45  ;;  %7208 = vmatprep.subr.bf16.mxu1 %v16532_v45  ;;  %v16600_v45 = vld [vmem:[%s21270_s1 + $0x3c0] ss:$8 sps:$4 sm:$0xff]  }
 0x30d   : > { %6078 = vmatpush1.bf16.msra.mxu0 %v16530_v46  ;;  %7209 = vmatpush1.bf16.msra.mxu1 %v16530_v46  ;;  %v16605_v46 = vld [vmem:[%s21270_s1 + $0x3d4] ss:$8 sps:$4 sm:$0xff]  }
 0x30e   : > { %6079 = vmatprep.subr.bf16.mxu0 %v16535_v47  ;;  %7210 = vmatprep.subr.bf16.mxu1 %v16535_v47  ;;  %v16603_v47 = vld [vmem:[%s21270_s1 + $0x3d0] ss:$8 sps:$4 sm:$0xff]  }
 0x311   : > { %6080 = vmatpush1.bf16.msra.mxu0 %v16533_v48  ;;  %7211 = vmatpush1.bf16.msra.mxu1 %v16533_v48  ;;  %v16608_v48 = vld [vmem:[%s21270_s1 + $0x3e4] ss:$8 sps:$4 sm:$0xff]  }
 0x312   : > { %6081 = vmatprep.subr.bf16.mxu0 %v16538_v49  ;;  %7212 = vmatprep.subr.bf16.mxu1 %v16538_v49  ;;  %v16606_v49 = vld [vmem:[%s21270_s1 + $0x3e0] ss:$8 sps:$4 sm:$0xff]  }
 0x315   : > { %6082 = vmatpush1.bf16.msra.mxu0 %v16536_v50  ;;  %7213 = vmatpush1.bf16.msra.mxu1 %v16536_v50  ;;  %v16611_v50 = vld [vmem:[%s21270_s1 + $0x3f4] ss:$8 sps:$4 sm:$0xff]  }
 0x316   : > { %6083 = vmatprep.subr.bf16.mxu0 %v16541_v51  ;;  %7214 = vmatprep.subr.bf16.mxu1 %v16541_v51  ;;  %v16609_v51 = vld [vmem:[%s21270_s1 + $0x3f0] ss:$8 sps:$4 sm:$0xff]  }
 0x319   : > { %6084 = vmatpush1.bf16.msra.mxu0 %v16539_v52  ;;  %7215 = vmatpush1.bf16.msra.mxu1 %v16539_v52  ;;  %v16616_v52 = vld [vmem:[%s21270_s1 + $0x404] ss:$8 sps:$4 sm:$0xff]  }
 0x31a   : > { %6085 = vmatprep.subr.bf16.mxu0 %v16544_v53  ;;  %7216 = vmatprep.subr.bf16.mxu1 %v16544_v53  ;;  %v14172_v53 = vcombine.low %v18878_v4, %v18878_v4  ;;  %v16639_v4 = vld [vmem:[%s21270_s1 + $0x474] ss:$8 sps:$4 sm:$0xff]  }
 0x31d   : > { %6086 = vmatpush1.bf16.msra.mxu0 %v16542_v54  ;;  %7217 = vmatpush1.bf16.msra.mxu1 %v16542_v54  ;;  %v14331_v54 = vcombine.low %v18881_v6, %v18881_v6  ;;  %v16637_v6 = vld [vmem:[%s21270_s1 + $0x470] ss:$8 sps:$4 sm:$0xff]  }
 0x31e   : > { %6087 = vmatprep.subr.bf16.mxu0 %v16547_v55  ;;  %7218 = vmatprep.subr.bf16.mxu1 %v16547_v55  ;;  %v16614_v55 = vld [vmem:[%s21270_s1 + $0x400] ss:$8 sps:$4 sm:$0xff]  }
 0x321   : > { %6088 = vmatpush1.bf16.msra.mxu0 %v16545_v56  ;;  %7219 = vmatpush1.bf16.msra.mxu1 %v16545_v56  ;;  %v16621_v56 = vld [vmem:[%s21270_s1 + $0x414] ss:$8 sps:$4 sm:$0xff]  }
 0x322   : > { %6089 = vmatprep.subr.bf16.mxu0 %v16550_v57  ;;  %7220 = vmatprep.subr.bf16.mxu1 %v16550_v57  ;;  %v16619_v57 = vld [vmem:[%s21270_s1 + $0x410] ss:$8 sps:$4 sm:$0xff]  }
 0x325   : > { %6090 = vmatpush1.bf16.msra.mxu0 %v16548_v58  ;;  %7221 = vmatpush1.bf16.msra.mxu1 %v16548_v58  ;;  %v16624_v58 = vld [vmem:[%s21270_s1 + $0x424] ss:$8 sps:$4 sm:$0xff]  }
 0x326   : > { %6091 = vmatprep.subr.bf16.mxu0 %v16553_v59  ;;  %7222 = vmatprep.subr.bf16.mxu1 %v16553_v59  ;;  %v16622_v59 = vld [vmem:[%s21270_s1 + $0x420] ss:$8 sps:$4 sm:$0xff]  }
 0x329   : > { %6092 = vmatpush1.bf16.msra.mxu0 %v16551_v60  ;;  %7223 = vmatpush1.bf16.msra.mxu1 %v16551_v60  ;;  %v16627_v60 = vld [vmem:[%s21270_s1 + $0x434] ss:$8 sps:$4 sm:$0xff]  }
 0x32a   : > { %6093 = vmatprep.subr.bf16.mxu0 %v16556_v61  ;;  %7224 = vmatprep.subr.bf16.mxu1 %v16556_v61  ;;  %v16625_v61 = vld [vmem:[%s21270_s1 + $0x430] ss:$8 sps:$4 sm:$0xff]  }
 0x32d   : > { %6094 = vmatpush1.bf16.msra.mxu0 %v16554_v62  ;;  %7225 = vmatpush1.bf16.msra.mxu1 %v16554_v62  ;;  %v16630_v62 = vld [vmem:[%s21270_s1 + $0x444] ss:$8 sps:$4 sm:$0xff]  }
 0x32e   : > { %6095 = vmatprep.subr.bf16.mxu0 %v16559_v63  ;;  %7226 = vmatprep.subr.bf16.mxu1 %v16559_v63  ;;  %v16628_v63 = vld [vmem:[%s21270_s1 + $0x440] ss:$8 sps:$4 sm:$0xff]  }
 0x331   : > { %6096 = vmatpush1.bf16.msra.mxu0 %v16557_v0  ;;  %7227 = vmatpush1.bf16.msra.mxu1 %v16557_v0  ;;  %v16633_v0 = vld [vmem:[%s21270_s1 + $0x454] ss:$8 sps:$4 sm:$0xff]  }
 0x332   : > { %6106 = vmatprep.subr.bf16.mxu0 %v16564_v1  ;;  %7237 = vmatprep.subr.bf16.mxu1 %v16564_v1  ;;  %v16631_v1 = vld [vmem:[%s21270_s1 + $0x450] ss:$8 sps:$4 sm:$0xff]  }
 0x334   : > { %6098 = vmatmul.mubr.bf16.vlgmr.msra.gmra.mrb[8].mxu0 %v14170_v2  ;;  %7229 = vmatmul.mubr.bf16.vlgmr.msra.gmra.mrb[8].mxu1 %v14329_v3  ;;  %v16636_v2 = vld [vmem:[%s21270_s1 + $0x464] ss:$8 sps:$4 sm:$0xff]   ;;  %v16634_v3 = vld [vmem:[%s21270_s1 + $0x460] ss:$8 sps:$4 sm:$0xff]  }
 0x335   : > { %6107 = vmatpush1.bf16.msra.mxu0 %v16562_v7  ;;  %7238 = vmatpush1.bf16.msra.mxu1 %v16562_v7  ;;  %v16644_v7 = vld [vmem:[%s21270_s1 + $0x4] ss:$8 sps:$4 sm:$0xff]  }
 0x336   : > { %6108 = vmatprep.subr.bf16.mxu0 %v16569_v8  ;;  %7239 = vmatprep.subr.bf16.mxu1 %v16569_v8  ;;  %v16640_v8 = vld [vmem:[%s17589_s17 + $0xb0] ss:$0 sps:$4 sm:$0xff]  }
 0x337   : > { %6138 = vmatprep.mubr.bf16.mxu0 %v14173_v9  ;;  %7269 = vmatprep.mubr.bf16.mxu1 %v14332_v10  ;;  %v16641_v9 = vld [vmem:[%s17589_s17 + $0xd4] ss:$0 sps:$4 sm:$0xff]   ;;  %v19048_v10 = vld [vmem:[%s17589_s17 + $0xd8] sm:$0xff] }
 0x339   : > { %6109 = vmatpush1.bf16.msra.mxu0 %v16567_v11  ;;  %7240 = vmatpush1.bf16.msra.mxu1 %v16567_v11  ;;  %v19051_v11 = vld [vmem:[%s17589_s17 + $0xfc] sm:$0xff] }
 0x33a   : > { %6110 = vmatprep.subr.bf16.mxu0 %v16572_v12  ;;  %7241 = vmatprep.subr.bf16.mxu1 %v16572_v12  ;;  %v16642_v12 = vld [vmem:[%s21270_s1] ss:$8 sps:$4 sm:$0xff]  }
 0x33d   : > { %6111 = vmatpush1.bf16.msra.mxu0 %v16570_v13  ;;  %7242 = vmatpush1.bf16.msra.mxu1 %v16570_v13  ;;  %v16647_v13 = vld [vmem:[%s21270_s1 + $0x14] ss:$8 sps:$4 sm:$0xff]  }
 0x33e   : > { %6112 = vmatprep.subr.bf16.mxu0 %v16575_v14  ;;  %7243 = vmatprep.subr.bf16.mxu1 %v16575_v14  ;;  %v14485_v14 = vcombine.high %v19048_v10, %v19048_v10 }
 0x341   : > { %6113 = vmatpush1.bf16.msra.mxu0 %v16573_v15  ;;  %7244 = vmatpush1.bf16.msra.mxu1 %v16573_v15  ;;  %v14644_v15 = vcombine.high %v19051_v11, %v19051_v11 }
 0x342   : > { %6114 = vmatprep.subr.bf16.mxu0 %v16578_v16  ;;  %7245 = vmatprep.subr.bf16.mxu1 %v16578_v16  ;;  %v16645_v16 = vld [vmem:[%s21270_s1 + $0x10] ss:$8 sps:$4 sm:$0xff]  }
 0x345   : > { %6115 = vmatpush1.bf16.msra.mxu0 %v16576_v17  ;;  %7246 = vmatpush1.bf16.msra.mxu1 %v16576_v17  ;;  %v16650_v17 = vld [vmem:[%s21270_s1 + $0x24] ss:$8 sps:$4 sm:$0xff]  }
 0x346   : > { %6116 = vmatprep.subr.bf16.mxu0 %v16581_v18  ;;  %7247 = vmatprep.subr.bf16.mxu1 %v16581_v18  ;;  %v16648_v18 = vld [vmem:[%s21270_s1 + $0x20] ss:$8 sps:$4 sm:$0xff]  }
 0x347   : > { %v18923_v21 = vpop.f32.mrb[4].mxu0  ;;  %v18925_v22 = vpop.f32.mrb[4].mxu1 }
 0x348   : > { %v18927_v23 = vpop.f32.mrb[5].mxu0  ;;  %v18929_v28 = vpop.f32.mrb[5].mxu1 }
 0x349   : > { %v3923_v29 = vpop.f32.mrb[6].mxu0  ;;  %v5054_v30 = vpop.f32.mrb[6].mxu1  ;;  %6117 = vmatpush1.bf16.msra.mxu0 %v16579_v19  ;;  %7248 = vmatpush1.bf16.msra.mxu1 %v16579_v19  ;;  %v16653_v19 = vld [vmem:[%s21270_s1 + $0x34] ss:$8 sps:$4 sm:$0xff]  }
 0x34a   : > { %v3924_v32 = vpop.f32.mrb[7].mxu0  ;;  %v5055_v33 = vpop.f32.mrb[7].mxu1  ;;  %6118 = vmatprep.subr.bf16.mxu0 %v16584_v20  ;;  %7249 = vmatprep.subr.bf16.mxu1 %v16584_v20  ;;  %v16651_v20 = vld [vmem:[%s21270_s1 + $0x30] ss:$8 sps:$4 sm:$0xff]   ;;  %v16656_v29 = vld [vmem:[%s21270_s1 + $0x44] ss:$8 sps:$4 sm:$0xff]  }
 0x34b   : > { %v16654_v30 = vld [vmem:[%s21270_s1 + $0x40] ss:$8 sps:$4 sm:$0xff]   ;;  %v16657_v32 = vld [vmem:[%s21270_s1 + $0x50] ss:$8 sps:$4 sm:$0xff]   ;;  %v16662_v33 = vld [vmem:[%s21270_s1 + $0x64] ss:$8 sps:$4 sm:$0xff]  }
 0x34d   : > { %6119 = vmatpush1.bf16.msra.mxu0 %v16582_v31  ;;  %7250 = vmatpush1.bf16.msra.mxu1 %v16582_v31  ;;  %v16659_v31 = vld [vmem:[%s21270_s1 + $0x54] ss:$8 sps:$4 sm:$0xff]  }
 0x34e   : > { %6120 = vmatprep.subr.bf16.mxu0 %v16587_v34  ;;  %7251 = vmatprep.subr.bf16.mxu1 %v16587_v34  ;;  %v16660_v34 = vld [vmem:[%s21270_s1 + $0x60] ss:$8 sps:$4 sm:$0xff]  }
 0x351   : > { %6121 = vmatpush1.bf16.msra.mxu0 %v16585_v35  ;;  %7252 = vmatpush1.bf16.msra.mxu1 %v16585_v35  ;;  %v16665_v35 = vld [vmem:[%s21270_s1 + $0x74] ss:$8 sps:$4 sm:$0xff]  }
 0x352   : > { %6122 = vmatprep.subr.bf16.mxu0 %v16590_v36  ;;  %7253 = vmatprep.subr.bf16.mxu1 %v16590_v36  ;;  %v16663_v36 = vld [vmem:[%s21270_s1 + $0x70] ss:$8 sps:$4 sm:$0xff]  }
 0x355   : > { %6123 = vmatpush1.bf16.msra.mxu0 %v16588_v37  ;;  %7254 = vmatpush1.bf16.msra.mxu1 %v16588_v37  ;;  %v16668_v37 = vld [vmem:[%s21270_s1 + $0x84] ss:$8 sps:$4 sm:$0xff]  }
 0x356   : > { %6124 = vmatprep.subr.bf16.mxu0 %v16593_v38  ;;  %7255 = vmatprep.subr.bf16.mxu1 %v16593_v38  ;;  %v16666_v38 = vld [vmem:[%s21270_s1 + $0x80] ss:$8 sps:$4 sm:$0xff]  }
 0x359   : > { %6125 = vmatpush1.bf16.msra.mxu0 %v16591_v39  ;;  %7256 = vmatpush1.bf16.msra.mxu1 %v16591_v39  ;;  %v16671_v39 = vld [vmem:[%s21270_s1 + $0x94] ss:$8 sps:$4 sm:$0xff]  }
 0x35a   : > { %6126 = vmatprep.subr.bf16.mxu0 %v16596_v40  ;;  %7257 = vmatprep.subr.bf16.mxu1 %v16596_v40  ;;  %v16669_v40 = vld [vmem:[%s21270_s1 + $0x90] ss:$8 sps:$4 sm:$0xff]  }
 0x35d   : > { %6127 = vmatpush1.bf16.msra.mxu0 %v16594_v41  ;;  %7258 = vmatpush1.bf16.msra.mxu1 %v16594_v41  ;;  %v16674_v41 = vld [vmem:[%s21270_s1 + $0xa4] ss:$8 sps:$4 sm:$0xff]  }
 0x35e   : > { %6128 = vmatprep.subr.bf16.mxu0 %v16599_v42  ;;  %7259 = vmatprep.subr.bf16.mxu1 %v16599_v42  ;;  %v16672_v42 = vld [vmem:[%s21270_s1 + $0xa0] ss:$8 sps:$4 sm:$0xff]  }
 0x361   : > { %6129 = vmatpush1.bf16.msra.mxu0 %v16597_v43  ;;  %7260 = vmatpush1.bf16.msra.mxu1 %v16597_v43  ;;  %v16677_v43 = vld [vmem:[%s21270_s1 + $0xb4] ss:$8 sps:$4 sm:$0xff]  }
 0x362   : > { %6130 = vmatprep.subr.bf16.mxu0 %v16602_v44  ;;  %7261 = vmatprep.subr.bf16.mxu1 %v16602_v44  ;;  %v16675_v44 = vld [vmem:[%s21270_s1 + $0xb0] ss:$8 sps:$4 sm:$0xff]  }
 0x365   : > { %6131 = vmatpush1.bf16.msra.mxu0 %v16600_v45  ;;  %7262 = vmatpush1.bf16.msra.mxu1 %v16600_v45  ;;  %v16680_v45 = vld [vmem:[%s21270_s1 + $0xc4] ss:$8 sps:$4 sm:$0xff]  }
 0x366   : > { %6132 = vmatprep.subr.bf16.mxu0 %v16605_v46  ;;  %7263 = vmatprep.subr.bf16.mxu1 %v16605_v46  ;;  %v16678_v46 = vld [vmem:[%s21270_s1 + $0xc0] ss:$8 sps:$4 sm:$0xff]  }
 0x369   : > { %6133 = vmatpush1.bf16.msra.mxu0 %v16603_v47  ;;  %7264 = vmatpush1.bf16.msra.mxu1 %v16603_v47  ;;  %v16683_v47 = vld [vmem:[%s21270_s1 + $0xd4] ss:$8 sps:$4 sm:$0xff]  }
 0x36a   : > { %6134 = vmatprep.subr.bf16.mxu0 %v16608_v48  ;;  %7265 = vmatprep.subr.bf16.mxu1 %v16608_v48  ;;  %v16681_v48 = vld [vmem:[%s21270_s1 + $0xd0] ss:$8 sps:$4 sm:$0xff]  }
 0x36d   : > { %6135 = vmatpush1.bf16.msra.mxu0 %v16606_v49  ;;  %7266 = vmatpush1.bf16.msra.mxu1 %v16606_v49  ;;  %v16686_v49 = vld [vmem:[%s21270_s1 + $0xe4] ss:$8 sps:$4 sm:$0xff]  }
 0x36e   : > { %6136 = vmatprep.subr.bf16.mxu0 %v16611_v50  ;;  %7267 = vmatprep.subr.bf16.mxu1 %v16611_v50  ;;  %v16684_v50 = vld [vmem:[%s21270_s1 + $0xe0] ss:$8 sps:$4 sm:$0xff]  }
 0x371   : > { %6137 = vmatpush1.bf16.msra.mxu0 %v16609_v51  ;;  %7268 = vmatpush1.bf16.msra.mxu1 %v16609_v51  ;;  %v16689_v51 = vld [vmem:[%s21270_s1 + $0xf4] ss:$8 sps:$4 sm:$0xff]  }
 0x372   : > { %6147 = vmatprep.subr.bf16.mxu0 %v16616_v52  ;;  %7278 = vmatprep.subr.bf16.mxu1 %v16616_v52  ;;  %v16687_v52 = vld [vmem:[%s21270_s1 + $0xf0] ss:$8 sps:$4 sm:$0xff]  }
 0x374   : > { %6139 = vmatmul.mubr.bf16.vlgmr.msra.gmra.mrb[8].mxu0 %v14172_v53  ;;  %7270 = vmatmul.mubr.bf16.vlgmr.msra.gmra.mrb[8].mxu1 %v14331_v54  ;;  %v16694_v53 = vld [vmem:[%s21270_s1 + $0x104] ss:$8 sps:$4 sm:$0xff]   ;;  %v14484_v54 = vcombine.low %v19048_v10, %v19048_v10  ;;  %v16717_v10 = vld [vmem:[%s21270_s1 + $0x174] ss:$8 sps:$4 sm:$0xff]  }
 0x375   : > { %6148 = vmatpush1.bf16.msra.mxu0 %v16614_v55  ;;  %7279 = vmatpush1.bf16.msra.mxu1 %v16614_v55  ;;  %v14643_v55 = vcombine.low %v19051_v11, %v19051_v11  ;;  %v16715_v11 = vld [vmem:[%s21270_s1 + $0x170] ss:$8 sps:$4 sm:$0xff]  }
 0x376   : > { %6149 = vmatprep.subr.bf16.mxu0 %v16621_v56  ;;  %7280 = vmatprep.subr.bf16.mxu1 %v16621_v56  ;;  %v19158_v56 = vld [vmem:[%s17589_s17 + $0xe0] sm:$0xff] }
 0x377   : > { %6179 = vmatprep.mubr.bf16.mxu0 %v17356_v5  ;;  %7310 = vmatprep.mubr.bf16.mxu1 %v17356_v5 }
 0x379   : > { %6150 = vmatpush1.bf16.msra.mxu0 %v16619_v57  ;;  %7281 = vmatpush1.bf16.msra.mxu1 %v16619_v57  ;;  %v19161_v57 = vld [vmem:[%s17589_s17 + $0x104] sm:$0xff] }
 0x37a   : > { %6151 = vmatprep.subr.bf16.mxu0 %v16624_v58  ;;  %7282 = vmatprep.subr.bf16.mxu1 %v16624_v58  ;;  %v16692_v58 = vld [vmem:[%s21270_s1 + $0x100] ss:$8 sps:$4 sm:$0xff]  }
 0x37d   : > { %6152 = vmatpush1.bf16.msra.mxu0 %v16622_v59  ;;  %7283 = vmatpush1.bf16.msra.mxu1 %v16622_v59  ;;  %v16699_v59 = vld [vmem:[%s21270_s1 + $0x114] ss:$8 sps:$4 sm:$0xff]  }
 0x37e   : > { %6153 = vmatprep.subr.bf16.mxu0 %v16627_v60  ;;  %7284 = vmatprep.subr.bf16.mxu1 %v16627_v60  ;;  %v14487_v60 = vcombine.high %v19158_v56, %v19158_v56 }
 0x381   : > { %6154 = vmatpush1.bf16.msra.mxu0 %v16625_v61  ;;  %7285 = vmatpush1.bf16.msra.mxu1 %v16625_v61  ;;  %v14646_v61 = vcombine.high %v19161_v57, %v19161_v57 }
 0x382   : > { %6155 = vmatprep.subr.bf16.mxu0 %v16630_v62  ;;  %7286 = vmatprep.subr.bf16.mxu1 %v16630_v62  ;;  %v16697_v62 = vld [vmem:[%s21270_s1 + $0x110] ss:$8 sps:$4 sm:$0xff]  }
 0x385   : > { %6156 = vmatpush1.bf16.msra.mxu0 %v16628_v63  ;;  %7287 = vmatpush1.bf16.msra.mxu1 %v16628_v63  ;;  %v16702_v63 = vld [vmem:[%s21270_s1 + $0x124] ss:$8 sps:$4 sm:$0xff]  }
 0x386   : > { %6157 = vmatprep.subr.bf16.mxu0 %v16633_v0  ;;  %7288 = vmatprep.subr.bf16.mxu1 %v16633_v0  ;;  %v16700_v0 = vld [vmem:[%s21270_s1 + $0x120] ss:$8 sps:$4 sm:$0xff]  }
 0x389   : > { %6158 = vmatpush1.bf16.msra.mxu0 %v16631_v1  ;;  %7289 = vmatpush1.bf16.msra.mxu1 %v16631_v1  ;;  %v16705_v1 = vld [vmem:[%s21270_s1 + $0x134] ss:$8 sps:$4 sm:$0xff]  }
 0x38a   : > { %6159 = vmatprep.subr.bf16.mxu0 %v16636_v2  ;;  %7290 = vmatprep.subr.bf16.mxu1 %v16636_v2  ;;  %v16703_v2 = vld [vmem:[%s21270_s1 + $0x130] ss:$8 sps:$4 sm:$0xff]  }
 0x38d   : > { %6160 = vmatpush1.bf16.msra.mxu0 %v16634_v3  ;;  %7291 = vmatpush1.bf16.msra.mxu1 %v16634_v3  ;;  %v16708_v3 = vld [vmem:[%s21270_s1 + $0x144] ss:$8 sps:$4 sm:$0xff]  }
 0x38e   : > { %6161 = vmatprep.subr.bf16.mxu0 %v16639_v4  ;;  %7292 = vmatprep.subr.bf16.mxu1 %v16639_v4  ;;  %v16706_v4 = vld [vmem:[%s21270_s1 + $0x140] ss:$8 sps:$4 sm:$0xff]  }
 0x391   : > { %6162 = vmatpush1.bf16.msra.mxu0 %v16637_v6  ;;  %7293 = vmatpush1.bf16.msra.mxu1 %v16637_v6  ;;  %v16711_v6 = vld [vmem:[%s21270_s1 + $0x154] ss:$8 sps:$4 sm:$0xff]  }
 0x392   : > { %8245 = vmatprep.subr.bf16.mxu0 %v16644_v7  ;;  %9376 = vmatprep.subr.bf16.mxu1 %v16644_v7  ;;  %v16709_v7 = vld [vmem:[%s21270_s1 + $0x150] ss:$8 sps:$4 sm:$0xff]  }
 0x394   : > { %6180 = vmatmul.mubr.bf16.vlgmr.msra.gmra.mrb[8].mxu0 %v16640_v8  ;;  %7311 = vmatmul.mubr.bf16.vlgmr.msra.gmra.mrb[8].mxu1 %v16641_v9  ;;  %v16714_v8 = vld [vmem:[%s21270_s1 + $0x164] ss:$8 sps:$4 sm:$0xff]   ;;  %v16712_v9 = vld [vmem:[%s21270_s1 + $0x160] ss:$8 sps:$4 sm:$0xff]  }
 0x395   : > { %8246 = vmatpush1.bf16.msra.mxu0 %v16642_v12  ;;  %9377 = vmatpush1.bf16.msra.mxu1 %v16642_v12  ;;  %v16720_v12 = vld [vmem:[%s21270_s1 + $0x184] ss:$8 sps:$4 sm:$0xff]  }
 0x396   : > { %8247 = vmatprep.subr.bf16.mxu0 %v16647_v13  ;;  %9378 = vmatprep.subr.bf16.mxu1 %v16647_v13  ;;  %v16718_v13 = vld [vmem:[%s21270_s1 + $0x180] ss:$8 sps:$4 sm:$0xff]  }
 0x397   : > { %8277 = vmatprep.mubr.bf16.mxu0 %v14485_v14  ;;  %9408 = vmatprep.mubr.bf16.mxu1 %v14644_v15  ;;  %v16723_v14 = vld [vmem:[%s21270_s1 + $0x194] ss:$8 sps:$4 sm:$0xff]   ;;  %v16721_v15 = vld [vmem:[%s21270_s1 + $0x190] ss:$8 sps:$4 sm:$0xff]  }
 0x399   : > { %8248 = vmatpush1.bf16.msra.mxu0 %v16645_v16  ;;  %9379 = vmatpush1.bf16.msra.mxu1 %v16645_v16  ;;  %v16726_v16 = vld [vmem:[%s21270_s1 + $0x1a4] ss:$8 sps:$4 sm:$0xff]  }
 0x39a   : > { %8249 = vmatprep.subr.bf16.mxu0 %v16650_v17  ;;  %9380 = vmatprep.subr.bf16.mxu1 %v16650_v17  ;;  %v16724_v17 = vld [vmem:[%s21270_s1 + $0x1a0] ss:$8 sps:$4 sm:$0xff]  }
 0x39d   : > { %8250 = vmatpush1.bf16.msra.mxu0 %v16648_v18  ;;  %9381 = vmatpush1.bf16.msra.mxu1 %v16648_v18  ;;  %v16729_v18 = vld [vmem:[%s21270_s1 + $0x1b4] ss:$8 sps:$4 sm:$0xff]  }
 0x39e   : > { %8251 = vmatprep.subr.bf16.mxu0 %v16653_v19  ;;  %9382 = vmatprep.subr.bf16.mxu1 %v16653_v19  ;;  %v16727_v19 = vld [vmem:[%s21270_s1 + $0x1b0] ss:$8 sps:$4 sm:$0xff]  }
 0x3a1   : > { %8252 = vmatpush1.bf16.msra.mxu0 %v16651_v20  ;;  %9383 = vmatpush1.bf16.msra.mxu1 %v16651_v20  ;;  %v16732_v20 = vld [vmem:[%s21270_s1 + $0x1c4] ss:$8 sps:$4 sm:$0xff]  }
 0x3a2   : > { %8253 = vmatprep.subr.bf16.mxu0 %v16656_v29  ;;  %9384 = vmatprep.subr.bf16.mxu1 %v16656_v29  ;;  %v16730_v29 = vld [vmem:[%s21270_s1 + $0x1c0] ss:$8 sps:$4 sm:$0xff]  }
 0x3a5   : > { %8254 = vmatpush1.bf16.msra.mxu0 %v16654_v30  ;;  %9385 = vmatpush1.bf16.msra.mxu1 %v16654_v30  ;;  %v16735_v30 = vld [vmem:[%s21270_s1 + $0x1d4] ss:$8 sps:$4 sm:$0xff]  }
 0x3a6   : > { %8255 = vmatprep.subr.bf16.mxu0 %v16659_v31  ;;  %9386 = vmatprep.subr.bf16.mxu1 %v16659_v31  ;;  %v16733_v31 = vld [vmem:[%s21270_s1 + $0x1d0] ss:$8 sps:$4 sm:$0xff]  }
 0x3a9   : > { %8256 = vmatpush1.bf16.msra.mxu0 %v16657_v32  ;;  %9387 = vmatpush1.bf16.msra.mxu1 %v16657_v32  ;;  %v16738_v32 = vld [vmem:[%s21270_s1 + $0x1e4] ss:$8 sps:$4 sm:$0xff]  }
 0x3aa   : > { %8257 = vmatprep.subr.bf16.mxu0 %v16662_v33  ;;  %9388 = vmatprep.subr.bf16.mxu1 %v16662_v33  ;;  %v16736_v33 = vld [vmem:[%s21270_s1 + $0x1e0] ss:$8 sps:$4 sm:$0xff]  }
 0x3ad   : > { %8258 = vmatpush1.bf16.msra.mxu0 %v16660_v34  ;;  %9389 = vmatpush1.bf16.msra.mxu1 %v16660_v34  ;;  %v16741_v34 = vld [vmem:[%s21270_s1 + $0x1f4] ss:$8 sps:$4 sm:$0xff]  }
 0x3ae   : > { %8259 = vmatprep.subr.bf16.mxu0 %v16665_v35  ;;  %9390 = vmatprep.subr.bf16.mxu1 %v16665_v35  ;;  %v16739_v35 = vld [vmem:[%s21270_s1 + $0x1f0] ss:$8 sps:$4 sm:$0xff]  }
 0x3b1   : > { %8260 = vmatpush1.bf16.msra.mxu0 %v16663_v36  ;;  %9391 = vmatpush1.bf16.msra.mxu1 %v16663_v36  ;;  %v16746_v36 = vld [vmem:[%s21270_s1 + $0x204] ss:$8 sps:$4 sm:$0xff]  }
 0x3b2   : > { %8261 = vmatprep.subr.bf16.mxu0 %v16668_v37  ;;  %9392 = vmatprep.subr.bf16.mxu1 %v16668_v37  ;;  %v14486_v37 = vcombine.low %v19158_v56, %v19158_v56  ;;  %v16769_v56 = vld [vmem:[%s21270_s1 + $0x274] ss:$8 sps:$4 sm:$0xff]  }
 0x3b5   : > { %8262 = vmatpush1.bf16.msra.mxu0 %v16666_v38  ;;  %9393 = vmatpush1.bf16.msra.mxu1 %v16666_v38  ;;  %v14645_v38 = vcombine.low %v19161_v57, %v19161_v57  ;;  %v16767_v57 = vld [vmem:[%s21270_s1 + $0x270] ss:$8 sps:$4 sm:$0xff]  }
 0x3b6   : > { %8263 = vmatprep.subr.bf16.mxu0 %v16671_v39  ;;  %9394 = vmatprep.subr.bf16.mxu1 %v16671_v39  ;;  %v19268_v39 = vld [vmem:[%s17589_s17 + $0xe8] sm:$0xff] }
 0x3b9   : > { %8264 = vmatpush1.bf16.msra.mxu0 %v16669_v40  ;;  %9395 = vmatpush1.bf16.msra.mxu1 %v16669_v40  ;;  %v19271_v40 = vld [vmem:[%s17589_s17 + $0x10c] sm:$0xff] }
 0x3ba   : > { %8265 = vmatprep.subr.bf16.mxu0 %v16674_v41  ;;  %9396 = vmatprep.subr.bf16.mxu1 %v16674_v41  ;;  %v16744_v41 = vld [vmem:[%s21270_s1 + $0x200] ss:$8 sps:$4 sm:$0xff]  }
 0x3bd   : > { %8266 = vmatpush1.bf16.msra.mxu0 %v16672_v42  ;;  %9397 = vmatpush1.bf16.msra.mxu1 %v16672_v42  ;;  %v16751_v42 = vld [vmem:[%s21270_s1 + $0x214] ss:$8 sps:$4 sm:$0xff]  }
 0x3be   : > { %8267 = vmatprep.subr.bf16.mxu0 %v16677_v43  ;;  %9398 = vmatprep.subr.bf16.mxu1 %v16677_v43  ;;  %v14489_v43 = vcombine.high %v19268_v39, %v19268_v39 }
 0x3c1   : > { %8268 = vmatpush1.bf16.msra.mxu0 %v16675_v44  ;;  %9399 = vmatpush1.bf16.msra.mxu1 %v16675_v44  ;;  %v14648_v44 = vcombine.high %v19271_v40, %v19271_v40 }
 0x3c2   : > { %8269 = vmatprep.subr.bf16.mxu0 %v16680_v45  ;;  %9400 = vmatprep.subr.bf16.mxu1 %v16680_v45  ;;  %v16749_v45 = vld [vmem:[%s21270_s1 + $0x210] ss:$8 sps:$4 sm:$0xff]  }
 0x3c5   : > { %8270 = vmatpush1.bf16.msra.mxu0 %v16678_v46  ;;  %9401 = vmatpush1.bf16.msra.mxu1 %v16678_v46  ;;  %v16754_v46 = vld [vmem:[%s21270_s1 + $0x224] ss:$8 sps:$4 sm:$0xff]  }
 0x3c6   : > { %8271 = vmatprep.subr.bf16.mxu0 %v16683_v47  ;;  %9402 = vmatprep.subr.bf16.mxu1 %v16683_v47  ;;  %v16752_v47 = vld [vmem:[%s21270_s1 + $0x220] ss:$8 sps:$4 sm:$0xff]  }
 0x3c9   : > { %8272 = vmatpush1.bf16.msra.mxu0 %v16681_v48  ;;  %9403 = vmatpush1.bf16.msra.mxu1 %v16681_v48  ;;  %v16757_v48 = vld [vmem:[%s21270_s1 + $0x234] ss:$8 sps:$4 sm:$0xff]  }
 0x3ca   : > { %8273 = vmatprep.subr.bf16.mxu0 %v16686_v49  ;;  %9404 = vmatprep.subr.bf16.mxu1 %v16686_v49  ;;  %v16755_v49 = vld [vmem:[%s21270_s1 + $0x230] ss:$8 sps:$4 sm:$0xff]  }
 0x3cd   : > { %8274 = vmatpush1.bf16.msra.mxu0 %v16684_v50  ;;  %9405 = vmatpush1.bf16.msra.mxu1 %v16684_v50  ;;  %v16760_v50 = vld [vmem:[%s21270_s1 + $0x244] ss:$8 sps:$4 sm:$0xff]  }
 0x3ce   : > { %8275 = vmatprep.subr.bf16.mxu0 %v16689_v51  ;;  %9406 = vmatprep.subr.bf16.mxu1 %v16689_v51  ;;  %v16758_v51 = vld [vmem:[%s21270_s1 + $0x240] ss:$8 sps:$4 sm:$0xff]  }
 0x3d1   : > { %8276 = vmatpush1.bf16.msra.mxu0 %v16687_v52  ;;  %9407 = vmatpush1.bf16.msra.mxu1 %v16687_v52  ;;  %v16763_v52 = vld [vmem:[%s21270_s1 + $0x254] ss:$8 sps:$4 sm:$0xff]  }
 0x3d2   : > { %8286 = vmatprep.subr.bf16.mxu0 %v16694_v53  ;;  %9417 = vmatprep.subr.bf16.mxu1 %v16694_v53  ;;  %v16761_v53 = vld [vmem:[%s21270_s1 + $0x250] ss:$8 sps:$4 sm:$0xff]  }
 0x3d4   : > { %8278 = vmatmul.mubr.bf16.vlgmr.msra.gmra.mrb[12].mxu0 %v14484_v54  ;;  %9409 = vmatmul.mubr.bf16.vlgmr.msra.gmra.mrb[12].mxu1 %v14643_v55  ;;  %v16766_v54 = vld [vmem:[%s21270_s1 + $0x264] ss:$8 sps:$4 sm:$0xff]   ;;  %v16764_v55 = vld [vmem:[%s21270_s1 + $0x260] ss:$8 sps:$4 sm:$0xff]  }
 0x3d5   : > { %8287 = vmatpush1.bf16.msra.mxu0 %v16692_v58  ;;  %9418 = vmatpush1.bf16.msra.mxu1 %v16692_v58  ;;  %v16772_v58 = vld [vmem:[%s21270_s1 + $0x284] ss:$8 sps:$4 sm:$0xff]  }
 0x3d6   : > { %8288 = vmatprep.subr.bf16.mxu0 %v16699_v59  ;;  %9419 = vmatprep.subr.bf16.mxu1 %v16699_v59  ;;  %v16770_v59 = vld [vmem:[%s21270_s1 + $0x280] ss:$8 sps:$4 sm:$0xff]  }
 0x3d7   : > { %8318 = vmatprep.mubr.bf16.mxu0 %v14487_v60  ;;  %9449 = vmatprep.mubr.bf16.mxu1 %v14646_v61  ;;  %v16775_v60 = vld [vmem:[%s21270_s1 + $0x294] ss:$8 sps:$4 sm:$0xff]   ;;  %v16773_v61 = vld [vmem:[%s21270_s1 + $0x290] ss:$8 sps:$4 sm:$0xff]  }
 0x3d9   : > { %8289 = vmatpush1.bf16.msra.mxu0 %v16697_v62  ;;  %9420 = vmatpush1.bf16.msra.mxu1 %v16697_v62  ;;  %v16778_v62 = vld [vmem:[%s21270_s1 + $0x2a4] ss:$8 sps:$4 sm:$0xff]  }
 0x3da   : > { %8290 = vmatprep.subr.bf16.mxu0 %v16702_v63  ;;  %9421 = vmatprep.subr.bf16.mxu1 %v16702_v63  ;;  %v16776_v63 = vld [vmem:[%s21270_s1 + $0x2a0] ss:$8 sps:$4 sm:$0xff]  }
 0x3dd   : > { %8291 = vmatpush1.bf16.msra.mxu0 %v16700_v0  ;;  %9422 = vmatpush1.bf16.msra.mxu1 %v16700_v0  ;;  %v16781_v0 = vld [vmem:[%s21270_s1 + $0x2b4] ss:$8 sps:$4 sm:$0xff]  }
 0x3de   : > { %8292 = vmatprep.subr.bf16.mxu0 %v16705_v1  ;;  %9423 = vmatprep.subr.bf16.mxu1 %v16705_v1  ;;  %v16779_v1 = vld [vmem:[%s21270_s1 + $0x2b0] ss:$8 sps:$4 sm:$0xff]  }
 0x3e1   : > { %8293 = vmatpush1.bf16.msra.mxu0 %v16703_v2  ;;  %9424 = vmatpush1.bf16.msra.mxu1 %v16703_v2  ;;  %v16784_v2 = vld [vmem:[%s21270_s1 + $0x2c4] ss:$8 sps:$4 sm:$0xff]  }
 0x3e2   : > { %8294 = vmatprep.subr.bf16.mxu0 %v16708_v3  ;;  %9425 = vmatprep.subr.bf16.mxu1 %v16708_v3  ;;  %v16782_v3 = vld [vmem:[%s21270_s1 + $0x2c0] ss:$8 sps:$4 sm:$0xff]  }
 0x3e5   : > { %8295 = vmatpush1.bf16.msra.mxu0 %v16706_v4  ;;  %9426 = vmatpush1.bf16.msra.mxu1 %v16706_v4  ;;  %v16787_v4 = vld [vmem:[%s21270_s1 + $0x2d4] ss:$8 sps:$4 sm:$0xff]  }
 0x3e6   : > { %8296 = vmatprep.subr.bf16.mxu0 %v16711_v6  ;;  %9427 = vmatprep.subr.bf16.mxu1 %v16711_v6  ;;  %v16785_v6 = vld [vmem:[%s21270_s1 + $0x2d0] ss:$8 sps:$4 sm:$0xff]  }
 0x3e9   : > { %8297 = vmatpush1.bf16.msra.mxu0 %v16709_v7  ;;  %9428 = vmatpush1.bf16.msra.mxu1 %v16709_v7  ;;  %v16790_v7 = vld [vmem:[%s21270_s1 + $0x2e4] ss:$8 sps:$4 sm:$0xff]  }
 0x3ea   : > { %8298 = vmatprep.subr.bf16.mxu0 %v16714_v8  ;;  %9429 = vmatprep.subr.bf16.mxu1 %v16714_v8  ;;  %v16788_v8 = vld [vmem:[%s21270_s1 + $0x2e0] ss:$8 sps:$4 sm:$0xff]  }
 0x3ed   : > { %8299 = vmatpush1.bf16.msra.mxu0 %v16712_v9  ;;  %9430 = vmatpush1.bf16.msra.mxu1 %v16712_v9  ;;  %v16793_v9 = vld [vmem:[%s21270_s1 + $0x2f4] ss:$8 sps:$4 sm:$0xff]  }
 0x3ee   : > { %8300 = vmatprep.subr.bf16.mxu0 %v16717_v10  ;;  %9431 = vmatprep.subr.bf16.mxu1 %v16717_v10  ;;  %v16791_v10 = vld [vmem:[%s21270_s1 + $0x2f0] ss:$8 sps:$4 sm:$0xff]  }
 0x3f1   : > { %8301 = vmatpush1.bf16.msra.mxu0 %v16715_v11  ;;  %9432 = vmatpush1.bf16.msra.mxu1 %v16715_v11  ;;  %v16798_v11 = vld [vmem:[%s21270_s1 + $0x304] ss:$8 sps:$4 sm:$0xff]  }
 0x3f2   : > { %8302 = vmatprep.subr.bf16.mxu0 %v16720_v12  ;;  %9433 = vmatprep.subr.bf16.mxu1 %v16720_v12  ;;  %v14488_v12 = vcombine.low %v19268_v39, %v19268_v39 }
 0x3f5   : > { %8303 = vmatpush1.bf16.msra.mxu0 %v16718_v13  ;;  %9434 = vmatpush1.bf16.msra.mxu1 %v16718_v13  ;;  %v14647_v13 = vcombine.low %v19271_v40, %v19271_v40 }
 0x3f6   : > { %8304 = vmatprep.subr.bf16.mxu0 %v16723_v14  ;;  %9435 = vmatprep.subr.bf16.mxu1 %v16723_v14  ;;  %v19378_v14 = vld [vmem:[%s17589_s17 + $0xf0] sm:$0xff] }
 0x3f9   : > { %8305 = vmatpush1.bf16.msra.mxu0 %v16721_v15  ;;  %9436 = vmatpush1.bf16.msra.mxu1 %v16721_v15  ;;  %v19381_v15 = vld [vmem:[%s17589_s17 + $0x114] sm:$0xff] }
 0x3fa   : > { %8306 = vmatprep.subr.bf16.mxu0 %v16726_v16  ;;  %9437 = vmatprep.subr.bf16.mxu1 %v16726_v16  ;;  %v16796_v16 = vld [vmem:[%s21270_s1 + $0x300] ss:$8 sps:$4 sm:$0xff]  }
 0x3fd   : > { %8307 = vmatpush1.bf16.msra.mxu0 %v16724_v17  ;;  %9438 = vmatpush1.bf16.msra.mxu1 %v16724_v17  ;;  %v16803_v17 = vld [vmem:[%s21270_s1 + $0x314] ss:$8 sps:$4 sm:$0xff]  }
 0x3fe   : > { %8308 = vmatprep.subr.bf16.mxu0 %v16729_v18  ;;  %9439 = vmatprep.subr.bf16.mxu1 %v16729_v18  ;;  %v14491_v18 = vcombine.high %v19378_v14, %v19378_v14 }
 0x401   : > { %8309 = vmatpush1.bf16.msra.mxu0 %v16727_v19  ;;  %9440 = vmatpush1.bf16.msra.mxu1 %v16727_v19  ;;  %v14650_v19 = vcombine.high %v19381_v15, %v19381_v15 }
 0x402   : > { %8310 = vmatprep.subr.bf16.mxu0 %v16732_v20  ;;  %9441 = vmatprep.subr.bf16.mxu1 %v16732_v20  ;;  %v16801_v20 = vld [vmem:[%s21270_s1 + $0x310] ss:$8 sps:$4 sm:$0xff]  }
 0x405   : > { %8311 = vmatpush1.bf16.msra.mxu0 %v16730_v29  ;;  %9442 = vmatpush1.bf16.msra.mxu1 %v16730_v29  ;;  %v16806_v29 = vld [vmem:[%s21270_s1 + $0x324] ss:$8 sps:$4 sm:$0xff]  }
 0x406   : > { %8312 = vmatprep.subr.bf16.mxu0 %v16735_v30  ;;  %9443 = vmatprep.subr.bf16.mxu1 %v16735_v30  ;;  %v16804_v30 = vld [vmem:[%s21270_s1 + $0x320] ss:$8 sps:$4 sm:$0xff]  }
 0x409   : > { %8313 = vmatpush1.bf16.msra.mxu0 %v16733_v31  ;;  %9444 = vmatpush1.bf16.msra.mxu1 %v16733_v31  ;;  %v16809_v31 = vld [vmem:[%s21270_s1 + $0x334] ss:$8 sps:$4 sm:$0xff]  }
 0x40a   : > { %8314 = vmatprep.subr.bf16.mxu0 %v16738_v32  ;;  %9445 = vmatprep.subr.bf16.mxu1 %v16738_v32  ;;  %v16807_v32 = vld [vmem:[%s21270_s1 + $0x330] ss:$8 sps:$4 sm:$0xff]  }
 0x40d   : > { %8315 = vmatpush1.bf16.msra.mxu0 %v16736_v33  ;;  %9446 = vmatpush1.bf16.msra.mxu1 %v16736_v33  ;;  %v16812_v33 = vld [vmem:[%s21270_s1 + $0x344] ss:$8 sps:$4 sm:$0xff]  }
 0x40e   : > { %8316 = vmatprep.subr.bf16.mxu0 %v16741_v34  ;;  %9447 = vmatprep.subr.bf16.mxu1 %v16741_v34  ;;  %v16810_v34 = vld [vmem:[%s21270_s1 + $0x340] ss:$8 sps:$4 sm:$0xff]  }
 0x411   : > { %8317 = vmatpush1.bf16.msra.mxu0 %v16739_v35  ;;  %9448 = vmatpush1.bf16.msra.mxu1 %v16739_v35  ;;  %v16815_v35 = vld [vmem:[%s21270_s1 + $0x354] ss:$8 sps:$4 sm:$0xff]  }
 0x412   : > { %8327 = vmatprep.subr.bf16.mxu0 %v16746_v36  ;;  %9458 = vmatprep.subr.bf16.mxu1 %v16746_v36  ;;  %v16813_v36 = vld [vmem:[%s21270_s1 + $0x350] ss:$8 sps:$4 sm:$0xff]  }
 0x414   : > { %8319 = vmatmul.mubr.bf16.vlgmr.msra.gmra.mrb[12].mxu0 %v14486_v37  ;;  %9450 = vmatmul.mubr.bf16.vlgmr.msra.gmra.mrb[12].mxu1 %v14645_v38  ;;  %v16818_v37 = vld [vmem:[%s21270_s1 + $0x364] ss:$8 sps:$4 sm:$0xff]  }
 0x415   : > { %8328 = vmatpush1.bf16.msra.mxu0 %v16744_v41  ;;  %9459 = vmatpush1.bf16.msra.mxu1 %v16744_v41 }
 0x416   : > { %8329 = vmatprep.subr.bf16.mxu0 %v16751_v42  ;;  %9460 = vmatprep.subr.bf16.mxu1 %v16751_v42 }
 0x417   : > { %8359 = vmatprep.mubr.bf16.mxu0 %v14489_v43  ;;  %9490 = vmatprep.mubr.bf16.mxu1 %v14648_v44  ;;  %v16816_v44 = vld [vmem:[%s21270_s1 + $0x360] ss:$8 sps:$4 sm:$0xff]  }
 0x419   : > { %8330 = vmatpush1.bf16.msra.mxu0 %v16749_v45  ;;  %9461 = vmatpush1.bf16.msra.mxu1 %v16749_v45 }
 0x41a   : > { %8331 = vmatprep.subr.bf16.mxu0 %v16754_v46  ;;  %9462 = vmatprep.subr.bf16.mxu1 %v16754_v46 }
 0x41d   : > { %8332 = vmatpush1.bf16.msra.mxu0 %v16752_v47  ;;  %9463 = vmatpush1.bf16.msra.mxu1 %v16752_v47  ;;  %v16821_v47 = vld [vmem:[%s21270_s1 + $0x374] ss:$8 sps:$4 sm:$0xff]  }
 0x41e   : > { %8333 = vmatprep.subr.bf16.mxu0 %v16757_v48  ;;  %9464 = vmatprep.subr.bf16.mxu1 %v16757_v48  ;;  %v16819_v48 = vld [vmem:[%s21270_s1 + $0x370] ss:$8 sps:$4 sm:$0xff]  }
 0x421   : > { %8334 = vmatpush1.bf16.msra.mxu0 %v16755_v49  ;;  %9465 = vmatpush1.bf16.msra.mxu1 %v16755_v49  ;;  %v16824_v49 = vld [vmem:[%s21270_s1 + $0x384] ss:$8 sps:$4 sm:$0xff]  }
 0x422   : > { %8335 = vmatprep.subr.bf16.mxu0 %v16760_v50  ;;  %9466 = vmatprep.subr.bf16.mxu1 %v16760_v50  ;;  %v16822_v50 = vld [vmem:[%s21270_s1 + $0x380] ss:$8 sps:$4 sm:$0xff]  }
 0x425   : > { %8336 = vmatpush1.bf16.msra.mxu0 %v16758_v51  ;;  %9467 = vmatpush1.bf16.msra.mxu1 %v16758_v51  ;;  %v16827_v51 = vld [vmem:[%s21270_s1 + $0x394] ss:$8 sps:$4 sm:$0xff]  }
 0x426   : > { %8337 = vmatprep.subr.bf16.mxu0 %v16763_v52  ;;  %9468 = vmatprep.subr.bf16.mxu1 %v16763_v52  ;;  %v16825_v52 = vld [vmem:[%s21270_s1 + $0x390] ss:$8 sps:$4 sm:$0xff]  }
 0x429   : > { %8338 = vmatpush1.bf16.msra.mxu0 %v16761_v53  ;;  %9469 = vmatpush1.bf16.msra.mxu1 %v16761_v53  ;;  %v16830_v53 = vld [vmem:[%s21270_s1 + $0x3a4] ss:$8 sps:$4 sm:$0xff]  }
 0x42a   : > { %8339 = vmatprep.subr.bf16.mxu0 %v16766_v54  ;;  %9470 = vmatprep.subr.bf16.mxu1 %v16766_v54  ;;  %v16828_v54 = vld [vmem:[%s21270_s1 + $0x3a0] ss:$8 sps:$4 sm:$0xff]  }
 0x42d   : > { %8340 = vmatpush1.bf16.msra.mxu0 %v16764_v55  ;;  %9471 = vmatpush1.bf16.msra.mxu1 %v16764_v55  ;;  %v16833_v55 = vld [vmem:[%s21270_s1 + $0x3b4] ss:$8 sps:$4 sm:$0xff]  }
 0x42e   : > { %8341 = vmatprep.subr.bf16.mxu0 %v16769_v56  ;;  %9472 = vmatprep.subr.bf16.mxu1 %v16769_v56  ;;  %v16831_v56 = vld [vmem:[%s21270_s1 + $0x3b0] ss:$8 sps:$4 sm:$0xff]  }
 0x431   : > { %8342 = vmatpush1.bf16.msra.mxu0 %v16767_v57  ;;  %9473 = vmatpush1.bf16.msra.mxu1 %v16767_v57  ;;  %v16836_v57 = vld [vmem:[%s21270_s1 + $0x3c4] ss:$8 sps:$4 sm:$0xff]  }
 0x432   : > { %8343 = vmatprep.subr.bf16.mxu0 %v16772_v58  ;;  %9474 = vmatprep.subr.bf16.mxu1 %v16772_v58  ;;  %v16834_v58 = vld [vmem:[%s21270_s1 + $0x3c0] ss:$8 sps:$4 sm:$0xff]  }
 0x435   : > { %8344 = vmatpush1.bf16.msra.mxu0 %v16770_v59  ;;  %9475 = vmatpush1.bf16.msra.mxu1 %v16770_v59  ;;  %v16839_v59 = vld [vmem:[%s21270_s1 + $0x3d4] ss:$8 sps:$4 sm:$0xff]  }
 0x436   : > { %8345 = vmatprep.subr.bf16.mxu0 %v16775_v60  ;;  %9476 = vmatprep.subr.bf16.mxu1 %v16775_v60  ;;  %v16837_v60 = vld [vmem:[%s21270_s1 + $0x3d0] ss:$8 sps:$4 sm:$0xff]  }
 0x439   : > { %8346 = vmatpush1.bf16.msra.mxu0 %v16773_v61  ;;  %9477 = vmatpush1.bf16.msra.mxu1 %v16773_v61  ;;  %v16842_v61 = vld [vmem:[%s21270_s1 + $0x3e4] ss:$8 sps:$4 sm:$0xff]  }
 0x43a   : > { %8347 = vmatprep.subr.bf16.mxu0 %v16778_v62  ;;  %9478 = vmatprep.subr.bf16.mxu1 %v16778_v62  ;;  %v16840_v62 = vld [vmem:[%s21270_s1 + $0x3e0] ss:$8 sps:$4 sm:$0xff]  }
 0x43d   : > { %8348 = vmatpush1.bf16.msra.mxu0 %v16776_v63  ;;  %9479 = vmatpush1.bf16.msra.mxu1 %v16776_v63  ;;  %v16845_v63 = vld [vmem:[%s21270_s1 + $0x3f4] ss:$8 sps:$4 sm:$0xff]  }
 0x43e   : > { %8349 = vmatprep.subr.bf16.mxu0 %v16781_v0  ;;  %9480 = vmatprep.subr.bf16.mxu1 %v16781_v0  ;;  %v16843_v0 = vld [vmem:[%s21270_s1 + $0x3f0] ss:$8 sps:$4 sm:$0xff]  }
 0x441   : > { %8350 = vmatpush1.bf16.msra.mxu0 %v16779_v1  ;;  %9481 = vmatpush1.bf16.msra.mxu1 %v16779_v1  ;;  %v16850_v1 = vld [vmem:[%s21270_s1 + $0x404] ss:$8 sps:$4 sm:$0xff]  }
 0x442   : > { %8351 = vmatprep.subr.bf16.mxu0 %v16784_v2  ;;  %9482 = vmatprep.subr.bf16.mxu1 %v16784_v2  ;;  %v14490_v2 = vcombine.low %v19378_v14, %v19378_v14  ;;  %v16862_v14 = vld [vmem:[%s21270_s1 + $0x440] ss:$8 sps:$4 sm:$0xff]  }
 0x445   : > { %8352 = vmatpush1.bf16.msra.mxu0 %v16782_v3  ;;  %9483 = vmatpush1.bf16.msra.mxu1 %v16782_v3  ;;  %v14649_v3 = vcombine.low %v19381_v15, %v19381_v15  ;;  %v16867_v15 = vld [vmem:[%s21270_s1 + $0x454] ss:$8 sps:$4 sm:$0xff]  }
 0x446   : > { %8353 = vmatprep.subr.bf16.mxu0 %v16787_v4  ;;  %9484 = vmatprep.subr.bf16.mxu1 %v16787_v4  ;;  %v16848_v4 = vld [vmem:[%s21270_s1 + $0x400] ss:$8 sps:$4 sm:$0xff]  }
 0x449   : > { %8354 = vmatpush1.bf16.msra.mxu0 %v16785_v6  ;;  %9485 = vmatpush1.bf16.msra.mxu1 %v16785_v6  ;;  %v16855_v6 = vld [vmem:[%s21270_s1 + $0x414] ss:$8 sps:$4 sm:$0xff]  }
 0x44a   : > { %8355 = vmatprep.subr.bf16.mxu0 %v16790_v7  ;;  %9486 = vmatprep.subr.bf16.mxu1 %v16790_v7  ;;  %v16853_v7 = vld [vmem:[%s21270_s1 + $0x410] ss:$8 sps:$4 sm:$0xff]  }
 0x44d   : > { %8356 = vmatpush1.bf16.msra.mxu0 %v16788_v8  ;;  %9487 = vmatpush1.bf16.msra.mxu1 %v16788_v8  ;;  %v16858_v8 = vld [vmem:[%s21270_s1 + $0x424] ss:$8 sps:$4 sm:$0xff]  }
 0x44e   : > { %8357 = vmatprep.subr.bf16.mxu0 %v16793_v9  ;;  %9488 = vmatprep.subr.bf16.mxu1 %v16793_v9  ;;  %v16856_v9 = vld [vmem:[%s21270_s1 + $0x420] ss:$8 sps:$4 sm:$0xff]  }
 0x451   : > { %8358 = vmatpush1.bf16.msra.mxu0 %v16791_v10  ;;  %9489 = vmatpush1.bf16.msra.mxu1 %v16791_v10  ;;  %v16861_v10 = vld [vmem:[%s21270_s1 + $0x434] ss:$8 sps:$4 sm:$0xff]  }
 0x452   : > { %8368 = vmatprep.subr.bf16.mxu0 %v16798_v11  ;;  %9499 = vmatprep.subr.bf16.mxu1 %v16798_v11  ;;  %v698_v11 = vlaneseq }
 0x454   : > { %8360 = vmatmul.mubr.bf16.vlgmr.msra.gmra.mrb[12].mxu0 %v14488_v12  ;;  %9491 = vmatmul.mubr.bf16.vlgmr.msra.gmra.mrb[12].mxu1 %v14647_v13  ;;  %v16859_v12 = vld [vmem:[%s21270_s1 + $0x430] ss:$8 sps:$4 sm:$0xff]   ;;  %v19521_v13 = vshrl.u32 %v698_v11, 7 }
 0x455   : > { %8369 = vmatpush1.bf16.msra.mxu0 %v16796_v16  ;;  %9500 = vmatpush1.bf16.msra.mxu1 %v16796_v16  ;;  %v19748_v11 = vld [vmem:[%s21272_s3 + $0x170] ss:$8 sps:$4 sm:$0xff]  }
 0x456   : > { %8370 = vmatprep.subr.bf16.mxu0 %v16803_v17  ;;  %9501 = vmatprep.subr.bf16.mxu1 %v16803_v17  ;;  %v19530_v16 = vsub.s32 1, %v19521_v13  ;;  %v19535_v17 = vld [vmem:[%s21271_s2] sm:$0x3] }
 0x457   : > { %8400 = vmatprep.mubr.bf16.mxu0 %v14491_v18  ;;  %9531 = vmatprep.mubr.bf16.mxu1 %v14650_v19  ;;  %v19540_v18 = vld [vmem:[%s21271_s2] sm:$0x3]  ;;  %v16865_v19 = vld [vmem:[%s21270_s1 + $0x450] ss:$8 sps:$4 sm:$0xff]  }
 0x459   : > { %8371 = vmatpush1.bf16.msra.mxu0 %v16801_v20  ;;  %9502 = vmatpush1.bf16.msra.mxu1 %v16801_v20  ;;  %v16870_v20 = vld [vmem:[%s21270_s1 + $0x464] ss:$8 sps:$4 sm:$0xff]  }
 0x45a   : > { %8372 = vmatprep.subr.bf16.mxu0 %v16806_v29  ;;  %9503 = vmatprep.subr.bf16.mxu1 %v16806_v29  ;;  %v1835_v29 = vrot.slane %v19535_v17, %v19530_v16 }
 0x45d   : > { %8373 = vmatpush1.bf16.msra.mxu0 %v16804_v30  ;;  %9504 = vmatpush1.bf16.msra.mxu1 %v16804_v30  ;;  %v4097_v30 = vrot.slane %v19540_v18, %v19530_v16 }
 0x45e   : > { %8374 = vmatprep.subr.bf16.mxu0 %v16809_v31  ;;  %9505 = vmatprep.subr.bf16.mxu1 %v16809_v31  ;;  %v16868_v31 = vld [vmem:[%s21270_s1 + $0x460] ss:$8 sps:$4 sm:$0xff]  }
 0x461   : > { %8375 = vmatpush1.bf16.msra.mxu0 %v16807_v32  ;;  %9506 = vmatpush1.bf16.msra.mxu1 %v16807_v32  ;;  %v16873_v32 = vld [vmem:[%s21270_s1 + $0x474] ss:$8 sps:$4 sm:$0xff]  }
 0x462   : > { %8376 = vmatprep.subr.bf16.mxu0 %v16812_v33  ;;  %9507 = vmatprep.subr.bf16.mxu1 %v16812_v33  ;;  %v15769_v33 = vadd.f32 %v18429_v27, %v1835_v29  ;;  %v19790_v29 = vld [vmem:[%s21272_s3 + $0x394] ss:$8 sps:$4 sm:$0xff]  }
 0x464   : > { %v2796_v27 = vmax.f32 %v15769_v33, 0.0  ;;  %v19814_v33 = vld [vmem:[%s21272_s3 + $0x3a4] ss:$8 sps:$4 sm:$0xff]  }
 0x465   : > { %8377 = vmatpush1.bf16.msra.mxu0 %v16810_v34  ;;  %9508 = vmatpush1.bf16.msra.mxu1 %v16810_v34  ;;  %v15773_v34 = vadd.f32 %v18929_v28, %v4097_v30  ;;  %v19796_v30 = vld [vmem:[%s21272_s3 + $0x190] ss:$8 sps:$4 sm:$0xff]   ;;  %21366 = vst [vmem:[#allocation10_spill] sm:$0xff] %v19814_v33 }
 0x466   : > { %8378 = vmatprep.subr.bf16.mxu0 %v16815_v35  ;;  %9509 = vmatprep.subr.bf16.mxu1 %v16815_v35  ;;  %v16871_v35 = vld [vmem:[%s21270_s1 + $0x470] ss:$8 sps:$4 sm:$0xff]  }
 0x467   : > { %v19423_v38 = vpop.f32.mrb[8].mxu0  ;;  %v19425_v39 = vpop.f32.mrb[8].mxu1  ;;  %v5058_v28 = vmax.f32 %v15773_v34, 0.0  ;;  %v19820_v34 = vld [vmem:[%s21272_s3 + $0x1a0] ss:$8 sps:$4 sm:$0xff]  }
 0x468   : > { %21361 = vst [vmem:[#allocation5_spill] sm:$0xff] %v19423_v38  ;;  %21362 = vst [vmem:[#allocation6_spill] sm:$0xff] %v19425_v39  ;;  %v19427_v40 = vpop.f32.mrb[9].mxu0  ;;  %v19429_v41 = vpop.f32.mrb[9].mxu1  ;;  %v19862_v38 = vld [vmem:[%s21272_s3 + $0x3c4] ss:$8 sps:$4 sm:$0xff]  }
 0x469   : > { %21363 = vst [vmem:[#allocation7_spill] sm:$0xff] %v19427_v40  ;;  %v6185_v42 = vpop.f32.mrb[10].mxu0  ;;  %v7316_v43 = vpop.f32.mrb[10].mxu1  ;;  %8379 = vmatpush1.bf16.msra.mxu0 %v16813_v36  ;;  %9510 = vmatpush1.bf16.msra.mxu1 %v16813_v36  ;;  %v19566_v36 = vld [vmem:[%s21272_s3 + $0x104] ss:$8 sps:$4 sm:$0xff]   ;;  %21367 = vst [vmem:[#allocation11_spill] sm:$0xff] %v19820_v34 }
 0x46a   : > { %v6186_v45 = vpop.f32.mrb[11].mxu0  ;;  %v7317_v46 = vpop.f32.mrb[11].mxu1  ;;  %8380 = vmatprep.subr.bf16.mxu0 %v16818_v37  ;;  %9511 = vmatprep.subr.bf16.mxu1 %v16818_v37  ;;  %v19571_v37 = vld [vmem:[%s21272_s3 + $0x304] ss:$8 sps:$4 sm:$0xff]   ;;  %v16874_v42 = vld [vmem:[%s17589_s17 + $0xf8] ss:$0 sps:$4 sm:$0xff]  }
 0x46b   : > { %v16875_v43 = vld [vmem:[%s17589_s17 + $0x11c] ss:$0 sps:$4 sm:$0xff]   ;;  %v19584_v45 = vld [vmem:[%s21272_s3 + $0x300] ss:$8 sps:$4 sm:$0xff]   ;;  %v15592_v46 = vpack.c.bf16 %v2796_v27, %v2796_v27  ;;  %21374 = vst [vmem:[#allocation18_spill] sm:$0xff] %v19862_v38  ;;  %v19871_v39 = vsub.s32 0, %v19521_v13 }
 0x46c   : > { %v19832_v27 = vld [vmem:[%s21272_s3 + $0x1b4] ss:$8 sps:$4 sm:$0xff]   ;;  %v19868_v40 = vld [vmem:[%s21272_s3 + $0x1c0] ss:$8 sps:$4 sm:$0xff]  }
 0x46d   : > { %8381 = vmatpush1.bf16.msra.mxu0 %v16816_v44  ;;  %9512 = vmatpush1.bf16.msra.mxu1 %v16816_v44  ;;  %v19578_v44 = vld [vmem:[%s21272_s3 + $0x100] ss:$8 sps:$4 sm:$0xff]   ;;  %21369 = vst [vmem:[#allocation13_spill] sm:$0xff] %v19832_v27  ;;  %21375 = vst [vmem:[#allocation19_spill] sm:$0xff] %v19868_v40  ;;  %v19889_v13 = vld [vmem:[%s21272_s3 + $0x3d4] ss:$8 sps:$4 sm:$0xff]  }
 0x46e   : > { %8382 = vmatprep.subr.bf16.mxu0 %v16821_v47  ;;  %9513 = vmatprep.subr.bf16.mxu1 %v16821_v47  ;;  %v19590_v47 = vld [vmem:[%s21272_s3 + $0x114] ss:$8 sps:$4 sm:$0xff]   ;;  %21378 = vst [vmem:[#allocation22_spill] sm:$0xff] %v19889_v13 }
 0x471   : > { %8383 = vmatpush1.bf16.msra.mxu0 %v16819_v48  ;;  %9514 = vmatpush1.bf16.msra.mxu1 %v16819_v48  ;;  %v19595_v48 = vld [vmem:[%s21272_s3 + $0x314] ss:$8 sps:$4 sm:$0xff]  }
 0x472   : > { %8384 = vmatprep.subr.bf16.mxu0 %v16824_v49  ;;  %9515 = vmatprep.subr.bf16.mxu1 %v16824_v49  ;;  %v19597_v49 = vpack.c.bf16 %v5058_v28, %v5058_v28  ;;  %v19838_v28 = vld [vmem:[%s21272_s3 + $0x3b4] ss:$8 sps:$4 sm:$0xff]  }
 0x473   : > { %21370 = vst [vmem:[#allocation14_spill] sm:$0xff] %v19838_v28 }
 0x475   : > { %8385 = vmatpush1.bf16.msra.mxu0 %v16822_v50  ;;  %9516 = vmatpush1.bf16.msra.mxu1 %v16822_v50  ;;  %v19603_v50 = vld [vmem:[%s21272_s3 + $0x110] ss:$8 sps:$4 sm:$0xff]  }
 0x476   : > { %8386 = vmatprep.subr.bf16.mxu0 %v16827_v51  ;;  %9517 = vmatprep.subr.bf16.mxu1 %v16827_v51  ;;  %v19610_v51 = vld [vmem:[%s21272_s3 + $0x310] ss:$8 sps:$4 sm:$0xff]  }
 0x479   : > { %8387 = vmatpush1.bf16.msra.mxu0 %v16825_v52  ;;  %9518 = vmatpush1.bf16.msra.mxu1 %v16825_v52  ;;  %v19615_v52 = vld [vmem:[%s21272_s3 + $0x124] ss:$8 sps:$4 sm:$0xff]  }
 0x47a   : > { %8388 = vmatprep.subr.bf16.mxu0 %v16830_v53  ;;  %9519 = vmatprep.subr.bf16.mxu1 %v16830_v53  ;;  %v19622_v53 = vld [vmem:[%s21272_s3 + $0x324] ss:$8 sps:$4 sm:$0xff]  }
 0x47d   : > { %8389 = vmatpush1.bf16.msra.mxu0 %v16828_v54  ;;  %9520 = vmatpush1.bf16.msra.mxu1 %v16828_v54  ;;  %v19628_v54 = vld [vmem:[%s21272_s3 + $0x120] ss:$8 sps:$4 sm:$0xff]  }
 0x47e   : > { %8390 = vmatprep.subr.bf16.mxu0 %v16833_v55  ;;  %9521 = vmatprep.subr.bf16.mxu1 %v16833_v55  ;;  %v19635_v55 = vld [vmem:[%s21272_s3 + $0x320] ss:$8 sps:$4 sm:$0xff]  }
 0x481   : > { %8391 = vmatpush1.bf16.msra.mxu0 %v16831_v56  ;;  %9522 = vmatpush1.bf16.msra.mxu1 %v16831_v56  ;;  %v19640_v56 = vld [vmem:[%s21272_s3 + $0x134] ss:$8 sps:$4 sm:$0xff]  }
 0x482   : > { %8392 = vmatprep.subr.bf16.mxu0 %v16836_v57  ;;  %9523 = vmatprep.subr.bf16.mxu1 %v16836_v57  ;;  %v19646_v57 = vld [vmem:[%s21272_s3 + $0x334] ss:$8 sps:$4 sm:$0xff]  }
 0x485   : > { %8393 = vmatpush1.bf16.msra.mxu0 %v16834_v58  ;;  %9524 = vmatpush1.bf16.msra.mxu1 %v16834_v58  ;;  %v19652_v58 = vld [vmem:[%s21272_s3 + $0x130] ss:$8 sps:$4 sm:$0xff]  }
 0x486   : > { %8394 = vmatprep.subr.bf16.mxu0 %v16839_v59  ;;  %9525 = vmatprep.subr.bf16.mxu1 %v16839_v59  ;;  %v19659_v59 = vld [vmem:[%s21272_s3 + $0x330] ss:$8 sps:$4 sm:$0xff]  }
 0x489   : > { %8395 = vmatpush1.bf16.msra.mxu0 %v16837_v60  ;;  %9526 = vmatpush1.bf16.msra.mxu1 %v16837_v60  ;;  %v19664_v60 = vld [vmem:[%s21272_s3 + $0x144] ss:$8 sps:$4 sm:$0xff]  }
 0x48a   : > { %8396 = vmatprep.subr.bf16.mxu0 %v16842_v61  ;;  %9527 = vmatprep.subr.bf16.mxu1 %v16842_v61  ;;  %v19670_v61 = vld [vmem:[%s21272_s3 + $0x344] ss:$8 sps:$4 sm:$0xff]  }
 0x48d   : > { %8397 = vmatpush1.bf16.msra.mxu0 %v16840_v62  ;;  %9528 = vmatpush1.bf16.msra.mxu1 %v16840_v62  ;;  %v19676_v62 = vld [vmem:[%s21272_s3 + $0x140] ss:$8 sps:$4 sm:$0xff]  }
 0x48e   : > { %8398 = vmatprep.subr.bf16.mxu0 %v16845_v63  ;;  %9529 = vmatprep.subr.bf16.mxu1 %v16845_v63  ;;  %v19683_v63 = vld [vmem:[%s21272_s3 + $0x340] ss:$8 sps:$4 sm:$0xff]  }
 0x491   : > { %8399 = vmatpush1.bf16.msra.mxu0 %v16843_v0  ;;  %9530 = vmatpush1.bf16.msra.mxu1 %v16843_v0  ;;  %v19688_v0 = vld [vmem:[%s21272_s3 + $0x154] ss:$8 sps:$4 sm:$0xff]  }
 0x492   : > { %8409 = vmatprep.subr.bf16.mxu0 %v16850_v1  ;;  %9540 = vmatprep.subr.bf16.mxu1 %v16850_v1  ;;  %v19694_v1 = vld [vmem:[%s21272_s3 + $0x354] ss:$8 sps:$4 sm:$0xff]  }
 0x494   : > { %8401 = vmatmul.mubr.bf16.vlgmr.msra.gmra.mrb[12].mxu0 %v14490_v2  ;;  %9532 = vmatmul.mubr.bf16.vlgmr.msra.gmra.mrb[12].mxu1 %v14649_v3  ;;  %v19700_v2 = vld [vmem:[%s21272_s3 + $0x150] ss:$8 sps:$4 sm:$0xff]  }
 0x495   : > { %8410 = vmatpush1.bf16.msra.mxu0 %v16848_v4  ;;  %9541 = vmatpush1.bf16.msra.mxu1 %v16848_v4  ;;  %v19707_v3 = vld [vmem:[%s21272_s3 + $0x350] ss:$8 sps:$4 sm:$0xff]   ;;  %v19712_v4 = vld [vmem:[%s21272_s3 + $0x164] ss:$8 sps:$4 sm:$0xff]  }
 0x496   : > { %8411 = vmatprep.subr.bf16.mxu0 %v16855_v6  ;;  %9542 = vmatprep.subr.bf16.mxu1 %v16855_v6  ;;  %v19718_v6 = vld [vmem:[%s21272_s3 + $0x364] ss:$8 sps:$4 sm:$0xff]  }
 0x497   : > { %8441 = vmatprep.mubr.bf16.mxu0 %v17356_v5  ;;  %9572 = vmatprep.mubr.bf16.mxu1 %v17356_v5  ;;  %v16864_v5 = vld [vmem:[%s21270_s1 + $0x444] ss:$8 sps:$4 sm:$0xff]  }
 0x499   : > { %8412 = vmatpush1.bf16.msra.mxu0 %v16853_v7  ;;  %9543 = vmatpush1.bf16.msra.mxu1 %v16853_v7  ;;  %v19724_v7 = vld [vmem:[%s21272_s3 + $0x160] ss:$8 sps:$4 sm:$0xff]  }
 0x49a   : > { %8413 = vmatprep.subr.bf16.mxu0 %v16858_v8  ;;  %9544 = vmatprep.subr.bf16.mxu1 %v16858_v8  ;;  %v19731_v8 = vld [vmem:[%s21272_s3 + $0x360] ss:$8 sps:$4 sm:$0xff]  }
 0x49d   : > { %8414 = vmatpush1.bf16.msra.mxu0 %v16856_v9  ;;  %9545 = vmatpush1.bf16.msra.mxu1 %v16856_v9  ;;  %v19736_v9 = vld [vmem:[%s21272_s3 + $0x174] ss:$8 sps:$4 sm:$0xff]  }
 0x49e   : > { %8415 = vmatprep.subr.bf16.mxu0 %v16861_v10  ;;  %9546 = vmatprep.subr.bf16.mxu1 %v16861_v10  ;;  %v19742_v10 = vld [vmem:[%s21272_s3 + $0x374] ss:$8 sps:$4 sm:$0xff]  }
 0x4a1   : > { %8416 = vmatpush1.bf16.msra.mxu0 %v16859_v12  ;;  %9547 = vmatpush1.bf16.msra.mxu1 %v16859_v12  ;;  %v19755_v12 = vld [vmem:[%s21272_s3 + $0x370] ss:$8 sps:$4 sm:$0xff]  }
 0x4a2   : > { %8417 = vmatprep.subr.bf16.mxu0 %v16864_v5  ;;  %9548 = vmatprep.subr.bf16.mxu1 %v16864_v5  ;;  %v19760_v5 = vld [vmem:[%s21272_s3 + $0x184] ss:$8 sps:$4 sm:$0xff]  }
 0x4a5   : > { %8418 = vmatpush1.bf16.msra.mxu0 %v16862_v14  ;;  %9549 = vmatpush1.bf16.msra.mxu1 %v16862_v14  ;;  %v19766_v14 = vld [vmem:[%s21272_s3 + $0x384] ss:$8 sps:$4 sm:$0xff]  }
 0x4a6   : > { %8419 = vmatprep.subr.bf16.mxu0 %v16867_v15  ;;  %9550 = vmatprep.subr.bf16.mxu1 %v16867_v15  ;;  %v19772_v15 = vld [vmem:[%s21272_s3 + $0x180] ss:$8 sps:$4 sm:$0xff]  }
 0x4a9   : > { %8420 = vmatpush1.bf16.msra.mxu0 %v16865_v19  ;;  %9551 = vmatpush1.bf16.msra.mxu1 %v16865_v19  ;;  %v19779_v19 = vld [vmem:[%s21272_s3 + $0x380] ss:$8 sps:$4 sm:$0xff]  }
 0x4aa   : > { %8421 = vmatprep.subr.bf16.mxu0 %v16870_v20  ;;  %9552 = vmatprep.subr.bf16.mxu1 %v16870_v20  ;;  %v19784_v20 = vld [vmem:[%s21272_s3 + $0x194] ss:$8 sps:$4 sm:$0xff]  }
 0x4ad   : > { %8422 = vmatpush1.bf16.msra.mxu0 %v16868_v31  ;;  %9553 = vmatpush1.bf16.msra.mxu1 %v16868_v31  ;;  %v19803_v31 = vld [vmem:[%s21272_s3 + $0x390] ss:$8 sps:$4 sm:$0xff]  }
 0x4ae   : > { %8423 = vmatprep.subr.bf16.mxu0 %v16873_v32  ;;  %9554 = vmatprep.subr.bf16.mxu1 %v16873_v32  ;;  %21364 = vst [vmem:[#allocation8_spill] sm:$0xff] %v19803_v31  ;;  %v19808_v32 = vld [vmem:[%s21272_s3 + $0x1a4] ss:$8 sps:$4 sm:$0xff]  }
 0x4af   : > { %21365 = vst [vmem:[#allocation9_spill] sm:$0xff] %v19808_v32 }
 0x4b1   : > { %8424 = vmatpush1.bf16.msra.mxu0 %v16871_v35  ;;  %9555 = vmatpush1.bf16.msra.mxu1 %v16871_v35  ;;  %v19827_v35 = vld [vmem:[%s21272_s3 + $0x3a0] ss:$8 sps:$4 sm:$0xff]  }
 0x4b2   : > { %9827 = vmatprep.subr.bf16.mxu0 %v19566_v36  ;;  %10103 = vmatprep.subr.bf16.mxu1 %v19571_v37  ;;  %21368 = vst [vmem:[#allocation12_spill] sm:$0xff] %v19827_v35 }
 0x4b4   : > { %8442 = vmatmul.mubr.bf16.vlgmr.msra.gmra.mrb[12].mxu0 %v16874_v42  ;;  %9573 = vmatmul.mubr.bf16.vlgmr.msra.gmra.mrb[12].mxu1 %v16875_v43  ;;  %v19844_v42 = vld [vmem:[%s21272_s3 + $0x1b0] ss:$8 sps:$4 sm:$0xff]  }
 0x4b5   : > { %9828 = vmatpush1.bf16.msra.mxu0 %v19578_v44  ;;  %9859 = vmatprep.mubr.bf16.mxu0 %v15592_v46  ;;  %21371 = vst [vmem:[#allocation15_spill] sm:$0xff] %v19844_v42  ;;  %v19851_v43 = vld [vmem:[%s21272_s3 + $0x3b0] ss:$8 sps:$4 sm:$0xff]   ;;  %v19856_v46 = vld [vmem:[%s21272_s3 + $0x1c4] ss:$8 sps:$4 sm:$0xff]  }
 0x4b6   : > { %10104 = vmatpush1.bf16.msra.mxu1 %v19584_v45  ;;  %10135 = vmatprep.mubr.bf16.mxu1 %v19597_v49  ;;  %21372 = vst [vmem:[#allocation16_spill] sm:$0xff] %v19851_v43  ;;  %21373 = vst [vmem:[#allocation17_spill] sm:$0xff] %v19856_v46 }
 0x4b7   : > { %9829 = vmatprep.subr.bf16.mxu0 %v19590_v47  ;;  %10105 = vmatprep.subr.bf16.mxu1 %v19595_v48 }
 0x4b9   : > { %9830 = vmatpush1.bf16.msra.mxu0 %v19603_v50 }
 0x4ba   : > { %10106 = vmatpush1.bf16.msra.mxu1 %v19610_v51  ;;  %9831 = vmatprep.subr.bf16.mxu0 %v19615_v52 }
 0x4bb   : > { %10107 = vmatprep.subr.bf16.mxu1 %v19622_v53 }
 0x4bd   : > { %9832 = vmatpush1.bf16.msra.mxu0 %v19628_v54 }
 0x4be   : > { %10108 = vmatpush1.bf16.msra.mxu1 %v19635_v55  ;;  %9833 = vmatprep.subr.bf16.mxu0 %v19640_v56 }
 0x4bf   : > { %10109 = vmatprep.subr.bf16.mxu1 %v19646_v57 }
 0x4c1   : > { %9834 = vmatpush1.bf16.msra.mxu0 %v19652_v58 }
 0x4c2   : > { %10110 = vmatpush1.bf16.msra.mxu1 %v19659_v59  ;;  %9835 = vmatprep.subr.bf16.mxu0 %v19664_v60 }
 0x4c3   : > { %10111 = vmatprep.subr.bf16.mxu1 %v19670_v61 }
 0x4c5   : > { %9836 = vmatpush1.bf16.msra.mxu0 %v19676_v62 }
 0x4c6   : > { %10112 = vmatpush1.bf16.msra.mxu1 %v19683_v63  ;;  %9837 = vmatprep.subr.bf16.mxu0 %v19688_v0 }
 0x4c7   : > { %10113 = vmatprep.subr.bf16.mxu1 %v19694_v1 }
 0x4c9   : > { %9838 = vmatpush1.bf16.msra.mxu0 %v19700_v2 }
 0x4ca   : > { %10114 = vmatpush1.bf16.msra.mxu1 %v19707_v3  ;;  %9839 = vmatprep.subr.bf16.mxu0 %v19712_v4 }
 0x4cb   : > { %10115 = vmatprep.subr.bf16.mxu1 %v19718_v6 }
 0x4cd   : > { %9840 = vmatpush1.bf16.msra.mxu0 %v19724_v7 }
 0x4ce   : > { %10116 = vmatpush1.bf16.msra.mxu1 %v19731_v8  ;;  %9841 = vmatprep.subr.bf16.mxu0 %v19736_v9 }
 0x4cf   : > { %10117 = vmatprep.subr.bf16.mxu1 %v19742_v10 }
 0x4d1   : > { %9842 = vmatpush1.bf16.msra.mxu0 %v19748_v11 }
 0x4d2   : > { %10118 = vmatpush1.bf16.msra.mxu1 %v19755_v12  ;;  %9843 = vmatprep.subr.bf16.mxu0 %v19760_v5 }
 0x4d3   : > { %10119 = vmatprep.subr.bf16.mxu1 %v19766_v14 }
 0x4d5   : > { %9844 = vmatpush1.bf16.msra.mxu0 %v19772_v15 }
 0x4d6   : > { %10120 = vmatpush1.bf16.msra.mxu1 %v19779_v19  ;;  %9845 = vmatprep.subr.bf16.mxu0 %v19784_v20 }
 0x4d7   : > { %10121 = vmatprep.subr.bf16.mxu1 %v19790_v29 }
 0x4d9   : > { %9846 = vmatpush1.bf16.msra.mxu0 %v19796_v30 }
 0x4da   : > { %10122 = vmatpush1.bf16.msra.mxu1 %v19803_v31  ;;  %9847 = vmatprep.subr.bf16.mxu0 %v19808_v32 }
 0x4db   : > { %10123 = vmatprep.subr.bf16.mxu1 %v19814_v33  ;;  %v19937_v33 = vld [vmem:[%s21272_s3 + $0x1e0] ss:$8 sps:$4 sm:$0xff]  }
 0x4dd   : > { %9848 = vmatpush1.bf16.msra.mxu0 %v19820_v34 }
 0x4de   : > { %10124 = vmatpush1.bf16.msra.mxu1 %v19827_v35  ;;  %9849 = vmatprep.subr.bf16.mxu0 %v19832_v27  ;;  %v19907_v27 = vld [vmem:[%s21271_s2] sm:$0x3]  ;;  %v19919_v35 = vld [vmem:[%s21272_s3 + $0x1e4] ss:$8 sps:$4 sm:$0xff]  }
 0x4df   : > { %10125 = vmatprep.subr.bf16.mxu1 %v19838_v28  ;;  %v19878_v28 = vld [vmem:[%s21272_s3 + $0x3c0] ss:$8 sps:$4 sm:$0xff]   ;;  %21381 = vst [vmem:[#allocation25_spill] sm:$0xff] %v19919_v35  ;;  %v2966_v34 = vrot.slane %v19907_v27, %v19530_v16 }
 0x4e0   : > { %21376 = vst [vmem:[#allocation20_spill] sm:$0xff] %v19878_v28 }
 0x4e1   : > { %9850 = vmatpush1.bf16.msra.mxu0 %v19844_v42  ;;  %v19883_v42 = vld [vmem:[%s21272_s3 + $0x1d4] ss:$8 sps:$4 sm:$0xff]  }
 0x4e2   : > { %10126 = vmatpush1.bf16.msra.mxu1 %v19851_v43  ;;  %9851 = vmatprep.subr.bf16.mxu0 %v19856_v46  ;;  %21377 = vst [vmem:[#allocation21_spill] sm:$0xff] %v19883_v42  ;;  %v19894_v46 = vld [vmem:[%s21271_s2] sm:$0x3]  ;;  %v19900_v43 = vld [vmem:[%s21272_s3 + $0x1d0] ss:$8 sps:$4 sm:$0xff]  }
 0x4e3   : > { %10127 = vmatprep.subr.bf16.mxu1 %v19862_v38  ;;  %21379 = vst [vmem:[#allocation23_spill] sm:$0xff] %v19900_v43  ;;  %v1831_v38 = vrot.slane %v19535_v17, %v19871_v39  ;;  %v4093_v17 = vrot.slane %v19540_v18, %v19871_v39 }
 0x4e5   : > { %9852 = vmatpush1.bf16.msra.mxu0 %v19868_v40  ;;  %v19914_v40 = vld [vmem:[%s21272_s3 + $0x3d0] ss:$8 sps:$4 sm:$0xff]   ;;  %v15768_v18 = vadd.f32 %v18425_v25, %v1831_v38  ;;  %v15772_v32 = vadd.f32 %v18925_v22, %v4093_v17  ;;  %v19957_v25 = vld [vmem:[%s21272_s3 + $0x3f4] ss:$8 sps:$4 sm:$0xff]  }
 0x4e6   : > { %10128 = vmatpush1.bf16.msra.mxu1 %v19878_v28  ;;  %9853 = vmatprep.subr.bf16.mxu0 %v19883_v42  ;;  %21380 = vst [vmem:[#allocation24_spill] sm:$0xff] %v19914_v40  ;;  %v19927_v28 = vld [vmem:[%s21272_s3 + $0x3e4] ss:$8 sps:$4 sm:$0xff]   ;;  %v705_v42 = vrot.slane %v19894_v46, %v19530_v16  ;;  %21383 = vst [vmem:[#allocation27_spill] sm:$0xff] %v19957_v25  ;;  %v19972_v22 = vld [vmem:[%s21272_s3 + $0x3f0] ss:$8 sps:$4 sm:$0xff]  }
 0x4e7   : > { %10129 = vmatprep.subr.bf16.mxu1 %v19889_v13  ;;  %v19945_v13 = vld [vmem:[%s21272_s3 + $0x3e0] ss:$8 sps:$4 sm:$0xff]   ;;  %v2795_v31 = vmax.f32 %v15768_v18, 0.0 }
 0x4e8   : > { %v15767_v38 = vadd.f32 %v18427_v26, %v705_v42  ;;  %v19977_v26 = vld [vmem:[%s21272_s3 + $0x4] ss:$8 sps:$4 sm:$0xff]   ;;  %v19989_v18 = vld [vmem:[%s21272_s3] ss:$8 sps:$4 sm:$0xff]  }
 0x4e9   : > { %9854 = vmatpush1.bf16.msra.mxu0 %v19900_v43  ;;  %v19950_v43 = vld [vmem:[%s21272_s3 + $0x1f4] ss:$8 sps:$4 sm:$0xff]   ;;  %21384 = vst [vmem:[#allocation28_spill] sm:$0xff] %v19977_v26  ;;  %21385 = vst [vmem:[#allocation29_spill] sm:$0xff] %v19989_v18 }
 0x4ea   : > { %10130 = vmatpush1.bf16.msra.mxu1 %v19914_v40  ;;  %9855 = vmatprep.subr.bf16.mxu0 %v19919_v35  ;;  %21382 = vst [vmem:[#allocation26_spill] sm:$0xff] %v19950_v43  ;;  %v15771_v35 = vadd.f32 %v18927_v23, %v2966_v34  ;;  %v19965_v40 = vld [vmem:[%s21272_s3 + $0x1f0] ss:$8 sps:$4 sm:$0xff]   ;;  %v5057_v23 = vmax.f32 %v15772_v32, 0.0  ;;  %v19983_v34 = vld [vmem:[%s21272_s3 + $0x204] ss:$8 sps:$4 sm:$0xff]  }
 0x4eb   : > { %10131 = vmatprep.subr.bf16.mxu1 %v19927_v28  ;;  %v1666_v42 = vmax.f32 %v15767_v38, 0.0  ;;  %v19996_v32 = vld [vmem:[%s21272_s3 + $0x200] ss:$8 sps:$4 sm:$0xff]  }
 0x4ec   : > { %v3927_v17 = vmax.f32 %v15771_v35, 0.0  ;;  %21386 = vst [vmem:[#allocation30_spill] sm:$0xff] %v19996_v32  ;;  %v20004_v35 = vld [vmem:[%s21272_s3 + $0x14] ss:$8 sps:$4 sm:$0xff]  }
 0x4ed   : > { %9856 = vmatpush1.bf16.msra.mxu0 %v19937_v33  ;;  %21387 = vst [vmem:[#allocation31_spill] sm:$0xff] %v20004_v35  ;;  %v15596_v38 = vpack.c.bf16 %v1666_v42, %v1666_v42  ;;  %v20029_v42 = vld [vmem:[%s21272_s3 + $0x24] ss:$8 sps:$4 sm:$0xff]  }
 0x4ee   : > { %10132 = vmatpush1.bf16.msra.mxu1 %v19945_v13  ;;  %9857 = vmatprep.subr.bf16.mxu0 %v19950_v43  ;;  %v15591_v43 = vpack.c.bf16 %v2795_v31, %v2795_v31  ;;  %v20009_v31 = vld [vmem:[%s21272_s3 + $0x214] ss:$8 sps:$4 sm:$0xff]   ;;  %21392 = vst [vmem:[#allocation36_spill] sm:$0xff] %v20029_v42 }
 0x4ef   : > { %10133 = vmatprep.subr.bf16.mxu1 %v19957_v25  ;;  %v19998_v25 = vpack.c.bf16 %v5057_v23, %v5057_v23  ;;  %21388 = vst [vmem:[#allocation32_spill] sm:$0xff] %v20009_v31  ;;  %v20018_v23 = vld [vmem:[%s21272_s3 + $0x10] ss:$8 sps:$4 sm:$0xff]  }
 0x4f0   : > { %21390 = vst [vmem:[#allocation34_spill] sm:$0xff] %v20018_v23 }
 0x4f1   : > { %9858 = vmatpush1.bf16.msra.mxu0 %v19965_v40 }
 0x4f2   : > { %10134 = vmatpush1.bf16.msra.mxu1 %v19972_v22  ;;  %10311 = vmatprep.subr.bf16.mxu0 %v19977_v26  ;;  %v20011_v26 = vpack.c.bf16 %v3927_v17, %v3927_v17  ;;  %v20036_v17 = vld [vmem:[%s21272_s3 + $0x224] ss:$8 sps:$4 sm:$0xff]  }
 0x4f3   : > { %10519 = vmatprep.subr.bf16.mxu1 %v19983_v34  ;;  %21393 = vst [vmem:[#allocation37_spill] sm:$0xff] %v20036_v17 }
 0x4f4   : > { %9860 = vmatmul.mubr.bf16.vlgmr.msra.gmra.mrb[16].mxu0 %v15591_v43  ;;  %21389 = vst [vmem:[#allocation33_spill] sm:$0xff] %v20011_v26  ;;  %v20024_v43 = vld [vmem:[%s21272_s3 + $0x210] ss:$8 sps:$4 sm:$0xff]  }
 0x4f5   : > { %10136 = vmatmul.mubr.bf16.vlgmr.msra.gmra.mrb[16].mxu1 %v19998_v25  ;;  %10312 = vmatpush1.bf16.msra.mxu0 %v19989_v18  ;;  %21391 = vst [vmem:[#allocation35_spill] sm:$0xff] %v20024_v43 }
 0x4f6   : > { %10343 = vmatprep.mubr.bf16.mxu0 %v15596_v38  ;;  %10520 = vmatpush1.bf16.msra.mxu1 %v19996_v32  ;;  %v20043_v38 = vld [vmem:[%s21272_s3 + $0x20] ss:$8 sps:$4 sm:$0xff]  }
 0x4f7   : > { %10551 = vmatprep.mubr.bf16.mxu1 %v20011_v26  ;;  %10313 = vmatprep.subr.bf16.mxu0 %v20004_v35  ;;  %21394 = vst [vmem:[#allocation38_spill] sm:$0xff] %v20043_v38  ;;  %v20050_v35 = vld [vmem:[%s21272_s3 + $0x220] ss:$8 sps:$4 sm:$0xff]  }
 0x4f8   : > { %10521 = vmatprep.subr.bf16.mxu1 %v20009_v31  ;;  %21395 = vst [vmem:[#allocation39_spill] sm:$0xff] %v20050_v35  ;;  %v20055_v31 = vld [vmem:[%s21272_s3 + $0x34] ss:$8 sps:$4 sm:$0xff]   ;;  %v20314_v32 = vld [vmem:[%s21271_s2] sm:$0x3] }
 0x4f9   : > { %10314 = vmatpush1.bf16.msra.mxu0 %v20018_v23  ;;  %21396 = vst [vmem:[#allocation40_spill] sm:$0xff] %v20055_v31  ;;  %v20061_v23 = vld [vmem:[%s21272_s3 + $0x234] ss:$8 sps:$4 sm:$0xff]   ;;  %v20342_v26 = vld [vmem:[%s21272_s3 + $0xe0] ss:$8 sps:$4 sm:$0xff]  }
 0x4fa   : > { %10522 = vmatpush1.bf16.msra.mxu1 %v20024_v43  ;;  %10315 = vmatprep.subr.bf16.mxu0 %v20029_v42  ;;  %21397 = vst [vmem:[#allocation41_spill] sm:$0xff] %v20061_v23  ;;  %v20067_v42 = vld [vmem:[%s21272_s3 + $0x30] ss:$8 sps:$4 sm:$0xff]   ;;  %v20079_v43 = vld [vmem:[%s21272_s3 + $0x44] ss:$8 sps:$4 sm:$0xff]  }
 0x4fb   : > { %10523 = vmatprep.subr.bf16.mxu1 %v20036_v17  ;;  %21398 = vst [vmem:[#allocation42_spill] sm:$0xff] %v20067_v42  ;;  %v20074_v17 = vld [vmem:[%s21272_s3 + $0x230] ss:$8 sps:$4 sm:$0xff]   ;;  %21400 = vst [vmem:[#allocation44_spill] sm:$0xff] %v20079_v43 }
 0x4fc   : > { %21399 = vst [vmem:[#allocation43_spill] sm:$0xff] %v20074_v17 }
 0x4fd   : > { %10316 = vmatpush1.bf16.msra.mxu0 %v20043_v38  ;;  %v20085_v38 = vld [vmem:[%s21272_s3 + $0x244] ss:$8 sps:$4 sm:$0xff]  }
 0x4fe   : > { %10524 = vmatpush1.bf16.msra.mxu1 %v20050_v35  ;;  %10317 = vmatprep.subr.bf16.mxu0 %v20055_v31  ;;  %21401 = vst [vmem:[#allocation45_spill] sm:$0xff] %v20085_v38  ;;  %v20091_v31 = vld [vmem:[%s21272_s3 + $0x40] ss:$8 sps:$4 sm:$0xff]   ;;  %v20103_v35 = vld [vmem:[%s21272_s3 + $0x54] ss:$8 sps:$4 sm:$0xff]  }
 0x4ff   : > { %10525 = vmatprep.subr.bf16.mxu1 %v20061_v23  ;;  %21402 = vst [vmem:[#allocation46_spill] sm:$0xff] %v20091_v31  ;;  %v20098_v23 = vld [vmem:[%s21272_s3 + $0x240] ss:$8 sps:$4 sm:$0xff]   ;;  %21404 = vst [vmem:[#allocation48_spill] sm:$0xff] %v20103_v35 }
 0x500   : > { %21403 = vst [vmem:[#allocation47_spill] sm:$0xff] %v20098_v23 }
 0x501   : > { %10318 = vmatpush1.bf16.msra.mxu0 %v20067_v42  ;;  %v20109_v42 = vld [vmem:[%s21272_s3 + $0x254] ss:$8 sps:$4 sm:$0xff]  }
 0x502   : > { %10526 = vmatpush1.bf16.msra.mxu1 %v20074_v17  ;;  %10319 = vmatprep.subr.bf16.mxu0 %v20079_v43  ;;  %21405 = vst [vmem:[#allocation49_spill] sm:$0xff] %v20109_v42  ;;  %v20115_v43 = vld [vmem:[%s21272_s3 + $0x50] ss:$8 sps:$4 sm:$0xff]   ;;  %v20127_v17 = vld [vmem:[%s21272_s3 + $0x64] ss:$8 sps:$4 sm:$0xff]  }
 0x503   : > { %10527 = vmatprep.subr.bf16.mxu1 %v20085_v38  ;;  %21406 = vst [vmem:[#allocation50_spill] sm:$0xff] %v20115_v43  ;;  %v20122_v38 = vld [vmem:[%s21272_s3 + $0x250] ss:$8 sps:$4 sm:$0xff]   ;;  %21408 = vst [vmem:[#allocation52_spill] sm:$0xff] %v20127_v17 }
 0x504   : > { %21407 = vst [vmem:[#allocation51_spill] sm:$0xff] %v20122_v38 }
 0x505   : > { %10320 = vmatpush1.bf16.msra.mxu0 %v20091_v31  ;;  %v20133_v31 = vld [vmem:[%s21272_s3 + $0x264] ss:$8 sps:$4 sm:$0xff]  }
 0x506   : > { %10528 = vmatpush1.bf16.msra.mxu1 %v20098_v23  ;;  %10321 = vmatprep.subr.bf16.mxu0 %v20103_v35  ;;  %21409 = vst [vmem:[#allocation53_spill] sm:$0xff] %v20133_v31  ;;  %v20139_v35 = vld [vmem:[%s21272_s3 + $0x60] ss:$8 sps:$4 sm:$0xff]   ;;  %v20151_v23 = vld [vmem:[%s21272_s3 + $0x74] ss:$8 sps:$4 sm:$0xff]  }
 0x507   : > { %10529 = vmatprep.subr.bf16.mxu1 %v20109_v42  ;;  %21410 = vst [vmem:[#allocation54_spill] sm:$0xff] %v20139_v35  ;;  %v20146_v42 = vld [vmem:[%s21272_s3 + $0x260] ss:$8 sps:$4 sm:$0xff]   ;;  %21412 = vst [vmem:[#allocation56_spill] sm:$0xff] %v20151_v23 }
 0x508   : > { %21411 = vst [vmem:[#allocation55_spill] sm:$0xff] %v20146_v42 }
 0x509   : > { %10322 = vmatpush1.bf16.msra.mxu0 %v20115_v43  ;;  %v20157_v43 = vld [vmem:[%s21272_s3 + $0x274] ss:$8 sps:$4 sm:$0xff]  }
 0x50a   : > { %10530 = vmatpush1.bf16.msra.mxu1 %v20122_v38  ;;  %10323 = vmatprep.subr.bf16.mxu0 %v20127_v17  ;;  %21413 = vst [vmem:[#allocation57_spill] sm:$0xff] %v20157_v43  ;;  %v20163_v17 = vld [vmem:[%s21272_s3 + $0x70] ss:$8 sps:$4 sm:$0xff]   ;;  %v20175_v38 = vld [vmem:[%s21272_s3 + $0x84] ss:$8 sps:$4 sm:$0xff]  }
 0x50b   : > { %10531 = vmatprep.subr.bf16.mxu1 %v20133_v31  ;;  %21414 = vst [vmem:[#allocation58_spill] sm:$0xff] %v20163_v17  ;;  %v20170_v31 = vld [vmem:[%s21272_s3 + $0x270] ss:$8 sps:$4 sm:$0xff]   ;;  %21416 = vst [vmem:[#allocation60_spill] sm:$0xff] %v20175_v38 }
 0x50c   : > { %21415 = vst [vmem:[#allocation59_spill] sm:$0xff] %v20170_v31 }
 0x50d   : > { %10324 = vmatpush1.bf16.msra.mxu0 %v20139_v35  ;;  %v20181_v35 = vld [vmem:[%s21272_s3 + $0x284] ss:$8 sps:$4 sm:$0xff]  }
 0x50e   : > { %10532 = vmatpush1.bf16.msra.mxu1 %v20146_v42  ;;  %10325 = vmatprep.subr.bf16.mxu0 %v20151_v23  ;;  %21417 = vst [vmem:[#allocation61_spill] sm:$0xff] %v20181_v35  ;;  %v20187_v23 = vld [vmem:[%s21272_s3 + $0x80] ss:$8 sps:$4 sm:$0xff]   ;;  %v20199_v42 = vld [vmem:[%s21272_s3 + $0x94] ss:$8 sps:$4 sm:$0xff]  }
 0x50f   : > { %10533 = vmatprep.subr.bf16.mxu1 %v20157_v43  ;;  %21418 = vst [vmem:[#allocation62_spill] sm:$0xff] %v20187_v23  ;;  %v20194_v43 = vld [vmem:[%s21272_s3 + $0x280] ss:$8 sps:$4 sm:$0xff]   ;;  %21420 = vst [vmem:[#allocation64_spill] sm:$0xff] %v20199_v42 }
 0x510   : > { %21419 = vst [vmem:[#allocation63_spill] sm:$0xff] %v20194_v43 }
 0x511   : > { %10326 = vmatpush1.bf16.msra.mxu0 %v20163_v17  ;;  %v20205_v17 = vld [vmem:[%s21272_s3 + $0x294] ss:$8 sps:$4 sm:$0xff]  }
 0x512   : > { %10534 = vmatpush1.bf16.msra.mxu1 %v20170_v31  ;;  %10327 = vmatprep.subr.bf16.mxu0 %v20175_v38  ;;  %21421 = vst [vmem:[#allocation65_spill] sm:$0xff] %v20205_v17  ;;  %v20211_v38 = vld [vmem:[%s21272_s3 + $0x90] ss:$8 sps:$4 sm:$0xff]   ;;  %v20223_v31 = vld [vmem:[%s21272_s3 + $0xa4] ss:$8 sps:$4 sm:$0xff]  }
 0x513   : > { %10535 = vmatprep.subr.bf16.mxu1 %v20181_v35  ;;  %21422 = vst [vmem:[#allocation66_spill] sm:$0xff] %v20211_v38  ;;  %v20218_v35 = vld [vmem:[%s21272_s3 + $0x290] ss:$8 sps:$4 sm:$0xff]   ;;  %21424 = vst [vmem:[#allocation68_spill] sm:$0xff] %v20223_v31 }
 0x514   : > { %21423 = vst [vmem:[#allocation67_spill] sm:$0xff] %v20218_v35 }
 0x515   : > { %10328 = vmatpush1.bf16.msra.mxu0 %v20187_v23  ;;  %v20229_v23 = vld [vmem:[%s21272_s3 + $0x2a4] ss:$8 sps:$4 sm:$0xff]  }
 0x516   : > { %10536 = vmatpush1.bf16.msra.mxu1 %v20194_v43  ;;  %10329 = vmatprep.subr.bf16.mxu0 %v20199_v42  ;;  %21425 = vst [vmem:[#allocation69_spill] sm:$0xff] %v20229_v23  ;;  %v20235_v42 = vld [vmem:[%s21272_s3 + $0xa0] ss:$8 sps:$4 sm:$0xff]   ;;  %v20247_v43 = vld [vmem:[%s21272_s3 + $0xb4] ss:$8 sps:$4 sm:$0xff]  }
 0x517   : > { %10537 = vmatprep.subr.bf16.mxu1 %v20205_v17  ;;  %21426 = vst [vmem:[#allocation70_spill] sm:$0xff] %v20235_v42  ;;  %v20242_v17 = vld [vmem:[%s21272_s3 + $0x2a0] ss:$8 sps:$4 sm:$0xff]   ;;  %21428 = vst [vmem:[#allocation72_spill] sm:$0xff] %v20247_v43 }
 0x518   : > { %21427 = vst [vmem:[#allocation71_spill] sm:$0xff] %v20242_v17 }
 0x519   : > { %10330 = vmatpush1.bf16.msra.mxu0 %v20211_v38  ;;  %v20253_v38 = vld [vmem:[%s21272_s3 + $0x2b4] ss:$8 sps:$4 sm:$0xff]  }
 0x51a   : > { %10538 = vmatpush1.bf16.msra.mxu1 %v20218_v35  ;;  %10331 = vmatprep.subr.bf16.mxu0 %v20223_v31  ;;  %21429 = vst [vmem:[#allocation73_spill] sm:$0xff] %v20253_v38  ;;  %v20259_v31 = vld [vmem:[%s21272_s3 + $0xb0] ss:$8 sps:$4 sm:$0xff]   ;;  %v20271_v35 = vld [vmem:[%s21272_s3 + $0xc4] ss:$8 sps:$4 sm:$0xff]  }
 0x51b   : > { %10539 = vmatprep.subr.bf16.mxu1 %v20229_v23  ;;  %21430 = vst [vmem:[#allocation74_spill] sm:$0xff] %v20259_v31  ;;  %v20266_v23 = vld [vmem:[%s21272_s3 + $0x2b0] ss:$8 sps:$4 sm:$0xff]   ;;  %21432 = vst [vmem:[#allocation76_spill] sm:$0xff] %v20271_v35 }
 0x51c   : > { %21431 = vst [vmem:[#allocation75_spill] sm:$0xff] %v20266_v23 }
 0x51d   : > { %10332 = vmatpush1.bf16.msra.mxu0 %v20235_v42  ;;  %v20277_v42 = vld [vmem:[%s21272_s3 + $0x2c4] ss:$8 sps:$4 sm:$0xff]  }
 0x51e   : > { %10540 = vmatpush1.bf16.msra.mxu1 %v20242_v17  ;;  %10333 = vmatprep.subr.bf16.mxu0 %v20247_v43  ;;  %21433 = vst [vmem:[#allocation77_spill] sm:$0xff] %v20277_v42  ;;  %v20283_v43 = vld [vmem:[%s21272_s3 + $0xc0] ss:$8 sps:$4 sm:$0xff]   ;;  %v20295_v17 = vld [vmem:[%s21272_s3 + $0xd4] ss:$8 sps:$4 sm:$0xff]  }
 0x51f   : > { %10541 = vmatprep.subr.bf16.mxu1 %v20253_v38  ;;  %21434 = vst [vmem:[#allocation78_spill] sm:$0xff] %v20283_v43  ;;  %v20290_v38 = vld [vmem:[%s21272_s3 + $0x2c0] ss:$8 sps:$4 sm:$0xff]   ;;  %21436 = vst [vmem:[#allocation80_spill] sm:$0xff] %v20295_v17 }
 0x520   : > { %21435 = vst [vmem:[#allocation79_spill] sm:$0xff] %v20290_v38 }
 0x521   : > { %10334 = vmatpush1.bf16.msra.mxu0 %v20259_v31  ;;  %v20301_v31 = vld [vmem:[%s21272_s3 + $0x2d4] ss:$8 sps:$4 sm:$0xff]  }
 0x522   : > { %10542 = vmatpush1.bf16.msra.mxu1 %v20266_v23  ;;  %10335 = vmatprep.subr.bf16.mxu0 %v20271_v35  ;;  %21437 = vst [vmem:[#allocation81_spill] sm:$0xff] %v20301_v31  ;;  %v20307_v35 = vld [vmem:[%s21272_s3 + $0xd0] ss:$8 sps:$4 sm:$0xff]   ;;  %v701_v23 = vrot.slane %v19894_v46, %v19871_v39  ;;  %v2962_v46 = vrot.slane %v19907_v27, %v19871_v39  ;;  %v20350_v27 = vld [vmem:[%s21272_s3 + $0x2e0] ss:$8 sps:$4 sm:$0xff]  }
 0x523   : > { %10543 = vmatprep.subr.bf16.mxu1 %v20277_v42  ;;  %21438 = vst [vmem:[#allocation82_spill] sm:$0xff] %v20307_v35  ;;  %v20326_v42 = vld [vmem:[%s21272_s3 + $0xe4] ss:$8 sps:$4 sm:$0xff]  }
 0x524   : > { %21440 = vst [vmem:[#allocation84_spill] sm:$0xff] %v20326_v42  ;;  %v15766_v18 = vadd.f32 %v18423_v24, %v701_v23  ;;  %v20362_v24 = vld [vmem:[%s21272_s3 + $0x2f4] ss:$8 sps:$4 sm:$0xff]  }
 0x525   : > { %10336 = vmatpush1.bf16.msra.mxu0 %v20283_v43  ;;  %v20321_v43 = vld [vmem:[%s21272_s3 + $0x2d0] ss:$8 sps:$4 sm:$0xff]  }
 0x526   : > { %10544 = vmatpush1.bf16.msra.mxu1 %v20290_v38  ;;  %10337 = vmatprep.subr.bf16.mxu0 %v20295_v17  ;;  %21439 = vst [vmem:[#allocation83_spill] sm:$0xff] %v20321_v43  ;;  %v20334_v38 = vld [vmem:[%s21272_s3 + $0x2e4] ss:$8 sps:$4 sm:$0xff]   ;;  %v6359_v17 = vrot.slane %v20314_v32, %v19530_v16 }
 0x527   : > { %10545 = vmatprep.subr.bf16.mxu1 %v20301_v31  ;;  %v15770_v31 = vadd.f32 %v18923_v21, %v2962_v46  ;;  %v20376_v21 = vld [vmem:[%s21272_s3 + $0x2f0] ss:$8 sps:$4 sm:$0xff]  }
 0x528   : > { %v15777_v23 = vadd.f32 %v19429_v41, %v6359_v17 }
 0x529   : > { %10338 = vmatpush1.bf16.msra.mxu0 %v20307_v35  ;;  %v20355_v35 = vld [vmem:[%s21272_s3 + $0xf4] ss:$8 sps:$4 sm:$0xff]   ;;  %v3926_v46 = vmax.f32 %v15770_v31, 0.0  ;;  %v21481_v31 = vld [vmem:[#allocation45_spill] sm:$0xff] }
 0x52a   : > { %10546 = vmatpush1.bf16.msra.mxu1 %v20321_v43  ;;  %10339 = vmatprep.subr.bf16.mxu0 %v20326_v42  ;;  %21441 = vst [vmem:[#allocation85_spill] sm:$0xff] %v20355_v35  ;;  %v20369_v42 = vld [vmem:[%s21272_s3 + $0xf0] ss:$8 sps:$4 sm:$0xff]   ;;  %v1665_v43 = vmax.f32 %v15766_v18, 0.0  ;;  %v7320_v41 = vmax.f32 %v15777_v23, 0.0 }
 0x52b   : > { %10547 = vmatprep.subr.bf16.mxu1 %v20334_v38  ;;  %v20382_v18 = vpack.c.bf16 %v3926_v46, %v3926_v46  ;;  %v21483_v23 = vld [vmem:[#allocation47_spill] sm:$0xff]  ;;  %v21484_v46 = vld [vmem:[#allocation48_spill] sm:$0xff] }
 0x52c   : > { %v15595_v17 = vpack.c.bf16 %v1665_v43, %v1665_v43  ;;  %v21482_v43 = vld [vmem:[#allocation46_spill] sm:$0xff] }
 0x52d   : > { %10340 = vmatpush1.bf16.msra.mxu0 %v20342_v26 }
 0x52e   : > { %10548 = vmatpush1.bf16.msra.mxu1 %v20350_v27  ;;  %10341 = vmatprep.subr.bf16.mxu0 %v20355_v35  ;;  %v20385_v35 = vpack.c.bf16 %v7320_v41, %v7320_v41 }
 0x52f   : > { %10549 = vmatprep.subr.bf16.mxu1 %v20362_v24 }
 0x531   : > { %10342 = vmatpush1.bf16.msra.mxu0 %v20369_v42 }
 0x532   : > { %10550 = vmatpush1.bf16.msra.mxu1 %v20376_v21  ;;  %10820 = vmatprep.subr.bf16.mxu0 %v19566_v36  ;;  %v21442_v36 = vld [vmem:[#allocation8_spill] sm:$0xff] }
 0x533   : > { %11094 = vmatprep.subr.bf16.mxu1 %v19571_v37  ;;  %v21443_v37 = vld [vmem:[#allocation9_spill] sm:$0xff] }
 0x534   : > { %10344 = vmatmul.mubr.bf16.vlgmr.msra.gmra.mrb[20].mxu0 %v15595_v17 }
 0x535   : > { %10552 = vmatmul.mubr.bf16.vlgmr.msra.gmra.mrb[20].mxu1 %v20382_v18  ;;  %10821 = vmatpush1.bf16.msra.mxu0 %v19578_v44  ;;  %v21444_v44 = vld [vmem:[#allocation10_spill] sm:$0xff] }
 0x536   : > { %10852 = vmatprep.mubr.bf16.mxu0 %v19597_v49  ;;  %11095 = vmatpush1.bf16.msra.mxu1 %v19584_v45  ;;  %v21445_v45 = vld [vmem:[#allocation11_spill] sm:$0xff]  ;;  %v21448_v49 = vld [vmem:[#allocation14_spill] sm:$0xff] }
 0x537   : > { %11126 = vmatprep.mubr.bf16.mxu1 %v20385_v35  ;;  %10822 = vmatprep.subr.bf16.mxu0 %v19590_v47  ;;  %v21446_v47 = vld [vmem:[#allocation12_spill] sm:$0xff] }
 0x538   : > { %11096 = vmatprep.subr.bf16.mxu1 %v19595_v48  ;;  %v21447_v48 = vld [vmem:[#allocation13_spill] sm:$0xff] }
 0x539   : > { %10823 = vmatpush1.bf16.msra.mxu0 %v19603_v50  ;;  %v21449_v50 = vld [vmem:[#allocation15_spill] sm:$0xff] }
 0x53a   : > { %11097 = vmatpush1.bf16.msra.mxu1 %v19610_v51  ;;  %10824 = vmatprep.subr.bf16.mxu0 %v19615_v52  ;;  %v21450_v51 = vld [vmem:[#allocation16_spill] sm:$0xff]  ;;  %v21451_v52 = vld [vmem:[#allocation17_spill] sm:$0xff] }
 0x53b   : > { %11098 = vmatprep.subr.bf16.mxu1 %v19622_v53  ;;  %v21452_v53 = vld [vmem:[#allocation18_spill] sm:$0xff] }
 0x53d   : > { %10825 = vmatpush1.bf16.msra.mxu0 %v19628_v54  ;;  %v21453_v54 = vld [vmem:[#allocation19_spill] sm:$0xff] }
 0x53e   : > { %11099 = vmatpush1.bf16.msra.mxu1 %v19635_v55  ;;  %10826 = vmatprep.subr.bf16.mxu0 %v19640_v56  ;;  %v20442_v55 = vld [vmem:[%s21271_s2] sm:$0x3]  ;;  %v21454_v56 = vld [vmem:[#allocation20_spill] sm:$0xff] }
 0x53f   : > { %11100 = vmatprep.subr.bf16.mxu1 %v19646_v57  ;;  %v21455_v57 = vld [vmem:[#allocation21_spill] sm:$0xff] }
 0x541   : > { %10827 = vmatpush1.bf16.msra.mxu0 %v19652_v58  ;;  %v6355_v58 = vrot.slane %v20314_v32, %v19871_v39  ;;  %v21480_v32 = vld [vmem:[#allocation44_spill] sm:$0xff] }
 0x542   : > { %11101 = vmatpush1.bf16.msra.mxu1 %v19659_v59  ;;  %10828 = vmatprep.subr.bf16.mxu0 %v19664_v60  ;;  %v21456_v59 = vld [vmem:[#allocation22_spill] sm:$0xff]  ;;  %v5228_v60 = vrot.slane %v20442_v55, %v19530_v16 }
 0x543   : > { %11102 = vmatprep.subr.bf16.mxu1 %v19670_v61  ;;  %v21457_v61 = vld [vmem:[#allocation23_spill] sm:$0xff] }
 0x545   : > { %10829 = vmatpush1.bf16.msra.mxu0 %v19676_v62  ;;  %v21458_v62 = vld [vmem:[#allocation24_spill] sm:$0xff] }
 0x546   : > { %11103 = vmatpush1.bf16.msra.mxu1 %v19683_v63  ;;  %10830 = vmatprep.subr.bf16.mxu0 %v19688_v0  ;;  %v21459_v63 = vld [vmem:[#allocation25_spill] sm:$0xff]  ;;  %v21460_v0 = vld [vmem:[#allocation6_spill] sm:$0xff] }
 0x547   : > { %11104 = vmatprep.subr.bf16.mxu1 %v19694_v1  ;;  %v15776_v1 = vadd.f32 %v21460_v0, %v6355_v58  ;;  %v21493_v58 = vld [vmem:[#allocation57_spill] sm:$0xff]  ;;  %v21499_v0 = vld [vmem:[#allocation63_spill] sm:$0xff] }
 0x549   : > { %10831 = vmatpush1.bf16.msra.mxu0 %v19700_v2  ;;  %v21461_v2 = vld [vmem:[#allocation7_spill] sm:$0xff] }
 0x54a   : > { %11105 = vmatpush1.bf16.msra.mxu1 %v19707_v3  ;;  %10832 = vmatprep.subr.bf16.mxu0 %v19712_v4  ;;  %v15775_v3 = vadd.f32 %v21461_v2, %v5228_v60  ;;  %v21462_v4 = vld [vmem:[#allocation26_spill] sm:$0xff]  ;;  %v21495_v60 = vld [vmem:[#allocation59_spill] sm:$0xff]  ;;  %v21501_v2 = vld [vmem:[#allocation65_spill] sm:$0xff] }
 0x54b   : > { %11106 = vmatprep.subr.bf16.mxu1 %v19718_v6  ;;  %v7319_v6 = vmax.f32 %v15776_v1, 0.0  ;;  %v21500_v1 = vld [vmem:[#allocation64_spill] sm:$0xff] }
 0x54d   : > { %10833 = vmatpush1.bf16.msra.mxu0 %v19724_v7  ;;  %v21463_v7 = vld [vmem:[#allocation27_spill] sm:$0xff] }
 0x54e   : > { %11107 = vmatpush1.bf16.msra.mxu1 %v19731_v8  ;;  %10834 = vmatprep.subr.bf16.mxu0 %v19736_v9  ;;  %v6189_v8 = vmax.f32 %v15775_v3, 0.0  ;;  %v21464_v9 = vld [vmem:[#allocation28_spill] sm:$0xff]  ;;  %v21502_v3 = vld [vmem:[#allocation66_spill] sm:$0xff] }
 0x54f   : > { %11108 = vmatprep.subr.bf16.mxu1 %v19742_v10  ;;  %v20464_v10 = vpack.c.bf16 %v7319_v6, %v7319_v6  ;;  %v21504_v6 = vld [vmem:[#allocation68_spill] sm:$0xff] }
 0x551   : > { %10835 = vmatpush1.bf16.msra.mxu0 %v19748_v11  ;;  %v20468_v11 = vpack.c.bf16 %v6189_v8, %v6189_v8  ;;  %v21506_v8 = vld [vmem:[#allocation70_spill] sm:$0xff] }
 0x552   : > { %11109 = vmatpush1.bf16.msra.mxu1 %v19755_v12  ;;  %10836 = vmatprep.subr.bf16.mxu0 %v19760_v5  ;;  %v21465_v12 = vld [vmem:[#allocation29_spill] sm:$0xff] }
 0x553   : > { %11110 = vmatprep.subr.bf16.mxu1 %v19766_v14  ;;  %v21466_v5 = vld [vmem:[#allocation33_spill] sm:$0xff]  ;;  %v21467_v14 = vld [vmem:[#allocation30_spill] sm:$0xff] }
 0x555   : > { %10837 = vmatpush1.bf16.msra.mxu0 %v19772_v15  ;;  %v21469_v15 = vld [vmem:[#allocation32_spill] sm:$0xff] }
 0x556   : > { %11111 = vmatpush1.bf16.msra.mxu1 %v19779_v19  ;;  %10838 = vmatprep.subr.bf16.mxu0 %v19784_v20  ;;  %v21470_v19 = vld [vmem:[#allocation34_spill] sm:$0xff]  ;;  %v21471_v20 = vld [vmem:[#allocation35_spill] sm:$0xff] }
 0x557   : > { %11112 = vmatprep.subr.bf16.mxu1 %v19790_v29  ;;  %v21472_v29 = vld [vmem:[#allocation36_spill] sm:$0xff] }
 0x559   : > { %10839 = vmatpush1.bf16.msra.mxu0 %v19796_v30  ;;  %v21473_v30 = vld [vmem:[#allocation37_spill] sm:$0xff] }
 0x55a   : > { %11113 = vmatpush1.bf16.msra.mxu1 %v21442_v36  ;;  %10840 = vmatprep.subr.bf16.mxu0 %v21443_v37  ;;  %v21485_v36 = vld [vmem:[#allocation49_spill] sm:$0xff] }
 0x55b   : > { %11114 = vmatprep.subr.bf16.mxu1 %v21444_v44 }
 0x55d   : > { %10841 = vmatpush1.bf16.msra.mxu0 %v21445_v45 }
 0x55e   : > { %11115 = vmatpush1.bf16.msra.mxu1 %v21446_v47  ;;  %10842 = vmatprep.subr.bf16.mxu0 %v21447_v48  ;;  %v21486_v48 = vld [vmem:[#allocation50_spill] sm:$0xff] }
 0x55f   : > { %11116 = vmatprep.subr.bf16.mxu1 %v21448_v49  ;;  %v21487_v49 = vld [vmem:[#allocation51_spill] sm:$0xff] }
 0x561   : > { %10843 = vmatpush1.bf16.msra.mxu0 %v21449_v50 }
 0x562   : > { %11117 = vmatpush1.bf16.msra.mxu1 %v21450_v51  ;;  %10844 = vmatprep.subr.bf16.mxu0 %v21451_v52  ;;  %v21488_v52 = vld [vmem:[#allocation52_spill] sm:$0xff] }
 0x563   : > { %11118 = vmatprep.subr.bf16.mxu1 %v21452_v53  ;;  %v21489_v53 = vld [vmem:[#allocation53_spill] sm:$0xff] }
 0x565   : > { %10845 = vmatpush1.bf16.msra.mxu0 %v21453_v54  ;;  %v21490_v54 = vld [vmem:[#allocation54_spill] sm:$0xff] }
 0x566   : > { %11119 = vmatpush1.bf16.msra.mxu1 %v21454_v56  ;;  %10846 = vmatprep.subr.bf16.mxu0 %v21455_v57  ;;  %v21491_v56 = vld [vmem:[#allocation55_spill] sm:$0xff]  ;;  %v21492_v57 = vld [vmem:[#allocation56_spill] sm:$0xff] }
 0x567   : > { %11120 = vmatprep.subr.bf16.mxu1 %v21456_v59  ;;  %v21494_v59 = vld [vmem:[#allocation58_spill] sm:$0xff] }
 0x569   : > { %10847 = vmatpush1.bf16.msra.mxu0 %v21457_v61  ;;  %v21496_v61 = vld [vmem:[#allocation60_spill] sm:$0xff] }
 0x56a   : > { %11121 = vmatpush1.bf16.msra.mxu1 %v21458_v62  ;;  %10848 = vmatprep.subr.bf16.mxu0 %v21459_v63  ;;  %v21497_v62 = vld [vmem:[#allocation61_spill] sm:$0xff]  ;;  %v21498_v63 = vld [vmem:[#allocation62_spill] sm:$0xff] }
 0x56b   : > { %11122 = vmatprep.subr.bf16.mxu1 %v19927_v28  ;;  %v21475_v28 = vld [vmem:[#allocation39_spill] sm:$0xff] }
 0x56d   : > { %10849 = vmatpush1.bf16.msra.mxu0 %v19937_v33  ;;  %v21474_v33 = vld [vmem:[#allocation38_spill] sm:$0xff] }
 0x56e   : > { %11123 = vmatpush1.bf16.msra.mxu1 %v19945_v13  ;;  %10850 = vmatprep.subr.bf16.mxu0 %v21462_v4  ;;  %v21476_v13 = vld [vmem:[#allocation40_spill] sm:$0xff]  ;;  %v21503_v4 = vld [vmem:[#allocation67_spill] sm:$0xff] }
 0x56f   : > { %11124 = vmatprep.subr.bf16.mxu1 %v21463_v7  ;;  %v21505_v7 = vld [vmem:[#allocation69_spill] sm:$0xff] }
 0x571   : > { %10851 = vmatpush1.bf16.msra.mxu0 %v19965_v40  ;;  %v21468_v40 = vld [vmem:[#allocation31_spill] sm:$0xff] }
 0x572   : > { %11125 = vmatpush1.bf16.msra.mxu1 %v19972_v22  ;;  %11302 = vmatprep.subr.bf16.mxu0 %v21464_v9  ;;  %v21478_v22 = vld [vmem:[#allocation42_spill] sm:$0xff]  ;;  %v21507_v9 = vld [vmem:[#allocation71_spill] sm:$0xff] }
 0x573   : > { %11510 = vmatprep.subr.bf16.mxu1 %v19983_v34  ;;  %v21479_v34 = vld [vmem:[#allocation43_spill] sm:$0xff] }
 0x574   : > { %10853 = vmatmul.mubr.bf16.vlgmr.msra.gmra.mrb[24].mxu0 %v19998_v25  ;;  %v21477_v25 = vld [vmem:[#allocation41_spill] sm:$0xff] }
 0x575   : > { %11127 = vmatmul.mubr.bf16.vlgmr.msra.gmra.mrb[24].mxu1 %v20464_v10  ;;  %11303 = vmatpush1.bf16.msra.mxu0 %v21465_v12  ;;  %v21508_v12 = vld [vmem:[#allocation72_spill] sm:$0xff] }
 0x576   : > { %11334 = vmatprep.mubr.bf16.mxu0 %v21466_v5  ;;  %11511 = vmatpush1.bf16.msra.mxu1 %v21467_v14  ;;  %v21509_v5 = vld [vmem:[#allocation73_spill] sm:$0xff]  ;;  %v21510_v14 = vld [vmem:[#allocation74_spill] sm:$0xff] }
 0x577   : > { %11542 = vmatprep.mubr.bf16.mxu1 %v20468_v11  ;;  %11304 = vmatprep.subr.bf16.mxu0 %v21468_v40  ;;  %v21511_v40 = vld [vmem:[#allocation75_spill] sm:$0xff] }
 0x578   : > { %11512 = vmatprep.subr.bf16.mxu1 %v21469_v15  ;;  %v21512_v15 = vld [vmem:[#allocation76_spill] sm:$0xff] }
 0x579   : > { %11305 = vmatpush1.bf16.msra.mxu0 %v21470_v19  ;;  %v21513_v19 = vld [vmem:[#allocation77_spill] sm:$0xff] }
 0x57a   : > { %11513 = vmatpush1.bf16.msra.mxu1 %v21471_v20  ;;  %11306 = vmatprep.subr.bf16.mxu0 %v21472_v29  ;;  %v21514_v20 = vld [vmem:[#allocation78_spill] sm:$0xff]  ;;  %v20531_v29 = vld [vmem:[%s21271_s2] sm:$0x3] }
 0x57b   : > { %11514 = vmatprep.subr.bf16.mxu1 %v21473_v30  ;;  %v21515_v30 = vld [vmem:[#allocation79_spill] sm:$0xff] }
 0x57d   : > { %11307 = vmatpush1.bf16.msra.mxu0 %v21474_v33  ;;  %v21516_v33 = vld [vmem:[#allocation80_spill] sm:$0xff] }
 0x57e   : > { %11515 = vmatpush1.bf16.msra.mxu1 %v21475_v28  ;;  %11308 = vmatprep.subr.bf16.mxu0 %v21476_v13  ;;  %v5224_v28 = vrot.slane %v20442_v55, %v19871_v39  ;;  %v21517_v13 = vld [vmem:[#allocation81_spill] sm:$0xff] }
 0x57f   : > { %11516 = vmatprep.subr.bf16.mxu1 %v21477_v25  ;;  %v8621_v25 = vrot.slane %v20531_v29, %v19530_v16  ;;  %v21522_v55 = vld [vmem:[#allocation85_spill] sm:$0xff] }
 0x581   : > { %11309 = vmatpush1.bf16.msra.mxu0 %v21478_v22  ;;  %v21518_v22 = vld [vmem:[#allocation82_spill] sm:$0xff] }
 0x582   : > { %11517 = vmatpush1.bf16.msra.mxu1 %v21479_v34  ;;  %11310 = vmatprep.subr.bf16.mxu0 %v21480_v32  ;;  %v21519_v34 = vld [vmem:[#allocation83_spill] sm:$0xff]  ;;  %v21520_v32 = vld [vmem:[#allocation84_spill] sm:$0xff] }
 0x583   : > { %11518 = vmatprep.subr.bf16.mxu1 %v21481_v31  ;;  %v21521_v31 = vld [vmem:[#allocation5_spill] sm:$0xff] }
 0x585   : > { %11311 = vmatpush1.bf16.msra.mxu0 %v21482_v43  ;;  %v15774_v43 = vadd.f32 %v21521_v31, %v5224_v28  ;;  %v17116_v28 = vld [vmem:[%s21272_s3 + $0x180] ss:$8 sps:$4 sm:$0xff]   ;;  %v17130_v31 = vld [vmem:[%s21272_s3 + $0x1a4] ss:$8 sps:$4 sm:$0xff]  }
 0x586   : > { %11519 = vmatpush1.bf16.msra.mxu1 %v21483_v23  ;;  %11312 = vmatprep.subr.bf16.mxu0 %v21484_v46  ;;  %v17070_v46 = vld [vmem:[%s21272_s3 + $0x104] ss:$8 sps:$4 sm:$0xff]  }
 0x587   : > { %v20492_v41 = vpop.f32.mrb[12].mxu0  ;;  %v20494_v17 = vpop.f32.mrb[12].mxu1  ;;  %11520 = vmatprep.subr.bf16.mxu1 %v21485_v36  ;;  %v6188_v36 = vmax.f32 %v15774_v43, 0.0  ;;  %v17133_v43 = vld [vmem:[%s21272_s3 + $0x3a4] ss:$8 sps:$4 sm:$0xff]  }
 0x588   : > { %v20497_v37 = vpop.f32.mrb[13].mxu0  ;;  %v9576_v44 = vpop.f32.mrb[13].mxu1 }
 0x589   : > { %v8447_v45 = vpop.f32.mrb[14].mxu0  ;;  %v9578_v47 = vpop.f32.mrb[14].mxu1  ;;  %11313 = vmatpush1.bf16.msra.mxu0 %v21486_v48  ;;  %v15781_v23 = vadd.f32 %v9576_v44, %v8621_v25  ;;  %v17077_v48 = vld [vmem:[%s21272_s3 + $0x310] ss:$8 sps:$4 sm:$0xff]   ;;  %v17124_v25 = vld [vmem:[%s21272_s3 + $0x194] ss:$8 sps:$4 sm:$0xff]  }
 0x58a   : > { %11521 = vmatpush1.bf16.msra.mxu1 %v21487_v49  ;;  %v8448_v50 = vpop.f32.mrb[15].mxu0  ;;  %v9579_v51 = vpop.f32.mrb[15].mxu1  ;;  %11314 = vmatprep.subr.bf16.mxu0 %v21488_v52  ;;  %v17073_v45 = vld [vmem:[%s21272_s3 + $0x304] ss:$8 sps:$4 sm:$0xff]   ;;  %v17091_v52 = vld [vmem:[%s21272_s3 + $0x334] ss:$8 sps:$4 sm:$0xff]  }
 0x58b   : > { %11522 = vmatprep.subr.bf16.mxu1 %v21489_v53  ;;  %v9582_v47 = vmax.f32 %v15781_v23, 0.0  ;;  %v17085_v49 = vld [vmem:[%s21272_s3 + $0x324] ss:$8 sps:$4 sm:$0xff]   ;;  %v17083_v50 = vld [vmem:[%s21272_s3 + $0x320] ss:$8 sps:$4 sm:$0xff]  }
 0x58c   : > { %v17088_v51 = vld [vmem:[%s21272_s3 + $0x134] ss:$8 sps:$4 sm:$0xff]   ;;  %v17086_v53 = vld [vmem:[%s21272_s3 + $0x130] ss:$8 sps:$4 sm:$0xff]   ;;  %v17128_v23 = vld [vmem:[%s21272_s3 + $0x1a0] ss:$8 sps:$4 sm:$0xff]  }
 0x58d   : > { %11315 = vmatpush1.bf16.msra.mxu0 %v21490_v54  ;;  %v15604_v44 = vpack.c.bf16 %v9582_v47, %v9582_v47  ;;  %v17089_v54 = vld [vmem:[%s21272_s3 + $0x330] ss:$8 sps:$4 sm:$0xff]  }
 0x58e   : > { %11523 = vmatpush1.bf16.msra.mxu1 %v21491_v56  ;;  %11316 = vmatprep.subr.bf16.mxu0 %v21492_v57  ;;  %v17094_v56 = vld [vmem:[%s21272_s3 + $0x144] ss:$8 sps:$4 sm:$0xff]   ;;  %v17137_v47 = vld [vmem:[%s21272_s3 + $0x3b0] ss:$8 sps:$4 sm:$0xff]  }
 0x58f   : > { %11524 = vmatprep.subr.bf16.mxu1 %v21493_v58  ;;  %v17097_v57 = vld [vmem:[%s21272_s3 + $0x344] ss:$8 sps:$4 sm:$0xff]   ;;  %v17092_v58 = vld [vmem:[%s21272_s3 + $0x140] ss:$8 sps:$4 sm:$0xff]  }
 0x591   : > { %11317 = vmatpush1.bf16.msra.mxu0 %v21494_v59  ;;  %v17095_v59 = vld [vmem:[%s21272_s3 + $0x340] ss:$8 sps:$4 sm:$0xff]  }
 0x592   : > { %11525 = vmatpush1.bf16.msra.mxu1 %v21495_v60  ;;  %11318 = vmatprep.subr.bf16.mxu0 %v21496_v61  ;;  %v17100_v60 = vld [vmem:[%s21272_s3 + $0x154] ss:$8 sps:$4 sm:$0xff]  }
 0x593   : > { %11526 = vmatprep.subr.bf16.mxu1 %v21497_v62  ;;  %v17103_v61 = vld [vmem:[%s21272_s3 + $0x354] ss:$8 sps:$4 sm:$0xff]   ;;  %v17098_v62 = vld [vmem:[%s21272_s3 + $0x150] ss:$8 sps:$4 sm:$0xff]  }
 0x595   : > { %11319 = vmatpush1.bf16.msra.mxu0 %v21498_v63  ;;  %v17101_v63 = vld [vmem:[%s21272_s3 + $0x350] ss:$8 sps:$4 sm:$0xff]  }
 0x596   : > { %11527 = vmatpush1.bf16.msra.mxu1 %v21499_v0  ;;  %11320 = vmatprep.subr.bf16.mxu0 %v21500_v1  ;;  %v17106_v0 = vld [vmem:[%s21272_s3 + $0x164] ss:$8 sps:$4 sm:$0xff]  }
 0x597   : > { %11528 = vmatprep.subr.bf16.mxu1 %v21501_v2  ;;  %v17109_v2 = vld [vmem:[%s21272_s3 + $0x364] ss:$8 sps:$4 sm:$0xff]  }
 0x599   : > { %11321 = vmatpush1.bf16.msra.mxu0 %v21502_v3 }
 0x59a   : > { %11529 = vmatpush1.bf16.msra.mxu1 %v21503_v4  ;;  %11322 = vmatprep.subr.bf16.mxu0 %v21504_v6 }
 0x59b   : > { %11530 = vmatprep.subr.bf16.mxu1 %v21505_v7 }
 0x59d   : > { %11323 = vmatpush1.bf16.msra.mxu0 %v21506_v8  ;;  %v17104_v8 = vld [vmem:[%s21272_s3 + $0x160] ss:$8 sps:$4 sm:$0xff]  }
 0x59e   : > { %11531 = vmatpush1.bf16.msra.mxu1 %v21507_v9  ;;  %11324 = vmatprep.subr.bf16.mxu0 %v21508_v12 }
 0x59f   : > { %11532 = vmatprep.subr.bf16.mxu1 %v21509_v5  ;;  %v17107_v5 = vld [vmem:[%s21272_s3 + $0x360] ss:$8 sps:$4 sm:$0xff]  }
 0x5a1   : > { %11325 = vmatpush1.bf16.msra.mxu0 %v21510_v14  ;;  %v17112_v14 = vld [vmem:[%s21272_s3 + $0x174] ss:$8 sps:$4 sm:$0xff]  }
 0x5a2   : > { %11533 = vmatpush1.bf16.msra.mxu1 %v21511_v40  ;;  %11326 = vmatprep.subr.bf16.mxu0 %v21512_v15  ;;  %v17115_v15 = vld [vmem:[%s21272_s3 + $0x374] ss:$8 sps:$4 sm:$0xff]  }
 0x5a3   : > { %11534 = vmatprep.subr.bf16.mxu1 %v21513_v19  ;;  %v17110_v19 = vld [vmem:[%s21272_s3 + $0x170] ss:$8 sps:$4 sm:$0xff]  }
 0x5a5   : > { %11327 = vmatpush1.bf16.msra.mxu0 %v21514_v20  ;;  %v17113_v20 = vld [vmem:[%s21272_s3 + $0x370] ss:$8 sps:$4 sm:$0xff]  }
 0x5a6   : > { %11535 = vmatpush1.bf16.msra.mxu1 %v21515_v30  ;;  %11328 = vmatprep.subr.bf16.mxu0 %v21516_v33  ;;  %v17118_v30 = vld [vmem:[%s21272_s3 + $0x184] ss:$8 sps:$4 sm:$0xff]  }
 0x5a7   : > { %11536 = vmatprep.subr.bf16.mxu1 %v21517_v13  ;;  %v17121_v33 = vld [vmem:[%s21272_s3 + $0x384] ss:$8 sps:$4 sm:$0xff]   ;;  %v17119_v13 = vld [vmem:[%s21272_s3 + $0x380] ss:$8 sps:$4 sm:$0xff]  }
 0x5a9   : > { %11329 = vmatpush1.bf16.msra.mxu0 %v21518_v22  ;;  %v17127_v22 = vld [vmem:[%s21272_s3 + $0x394] ss:$8 sps:$4 sm:$0xff]  }
 0x5aa   : > { %11537 = vmatpush1.bf16.msra.mxu1 %v21519_v34  ;;  %11330 = vmatprep.subr.bf16.mxu0 %v21520_v32  ;;  %v17122_v34 = vld [vmem:[%s21272_s3 + $0x190] ss:$8 sps:$4 sm:$0xff]  }
 0x5ab   : > { %11538 = vmatprep.subr.bf16.mxu1 %v20334_v38  ;;  %v17071_v38 = vld [vmem:[%s21272_s3 + $0x300] ss:$8 sps:$4 sm:$0xff]   ;;  %v17125_v32 = vld [vmem:[%s21272_s3 + $0x390] ss:$8 sps:$4 sm:$0xff]  }
 0x5ad   : > { %11331 = vmatpush1.bf16.msra.mxu0 %v20342_v26  ;;  %v17068_v26 = vld [vmem:[%s21272_s3 + $0x100] ss:$8 sps:$4 sm:$0xff]  }
 0x5ae   : > { %11539 = vmatpush1.bf16.msra.mxu1 %v20350_v27  ;;  %11332 = vmatprep.subr.bf16.mxu0 %v21522_v55  ;;  %v20563_v27 = vpack.c.bf16 %v6188_v36, %v6188_v36  ;;  %v17131_v55 = vld [vmem:[%s21272_s3 + $0x3a0] ss:$8 sps:$4 sm:$0xff]   ;;  %v17139_v36 = vld [vmem:[%s21272_s3 + $0x3b4] ss:$8 sps:$4 sm:$0xff]  }
 0x5af   : > { %11540 = vmatprep.subr.bf16.mxu1 %v20362_v24  ;;  %v17076_v24 = vld [vmem:[%s21272_s3 + $0x114] ss:$8 sps:$4 sm:$0xff]  }
 0x5b1   : > { %11333 = vmatpush1.bf16.msra.mxu0 %v20369_v42  ;;  %v17079_v42 = vld [vmem:[%s21272_s3 + $0x314] ss:$8 sps:$4 sm:$0xff]  }
 0x5b2   : > { %11541 = vmatpush1.bf16.msra.mxu1 %v20376_v21  ;;  %11811 = vmatprep.subr.bf16.mxu0 %v17070_v46  ;;  %v17074_v21 = vld [vmem:[%s21272_s3 + $0x110] ss:$8 sps:$4 sm:$0xff]   ;;  %v17136_v46 = vld [vmem:[%s21272_s3 + $0x1b4] ss:$8 sps:$4 sm:$0xff]  }
 0x5b3   : > { %12085 = vmatprep.subr.bf16.mxu1 %v17073_v45  ;;  %v17134_v45 = vld [vmem:[%s21272_s3 + $0x1b0] ss:$8 sps:$4 sm:$0xff]  }
 0x5b4   : > { %11335 = vmatmul.mubr.bf16.vlgmr.msra.gmra.mrb[28].mxu0 %v20382_v18  ;;  %v17082_v18 = vld [vmem:[%s21272_s3 + $0x124] ss:$8 sps:$4 sm:$0xff]  }
 0x5b5   : > { %11543 = vmatmul.mubr.bf16.vlgmr.msra.gmra.mrb[28].mxu1 %v20563_v27  ;;  %11812 = vmatpush1.bf16.msra.mxu0 %v17068_v26  ;;  %v17142_v26 = vld [vmem:[%s21272_s3 + $0x1c4] ss:$8 sps:$4 sm:$0xff]  }
 0x5b6   : > { %11843 = vmatprep.mubr.bf16.mxu0 %v20385_v35  ;;  %12086 = vmatpush1.bf16.msra.mxu1 %v17071_v38  ;;  %v17080_v35 = vld [vmem:[%s21272_s3 + $0x120] ss:$8 sps:$4 sm:$0xff]   ;;  %v17145_v38 = vld [vmem:[%s21272_s3 + $0x3c4] ss:$8 sps:$4 sm:$0xff]  }
 0x5b7   : > { %12117 = vmatprep.mubr.bf16.mxu1 %v15604_v44  ;;  %11813 = vmatprep.subr.bf16.mxu0 %v17076_v24  ;;  %v17140_v24 = vld [vmem:[%s21272_s3 + $0x1c0] ss:$8 sps:$4 sm:$0xff]   ;;  %v17148_v44 = vld [vmem:[%s21272_s3 + $0x1d4] ss:$8 sps:$4 sm:$0xff]  }
 0x5b8   : > { %12087 = vmatprep.subr.bf16.mxu1 %v17079_v42  ;;  %v17143_v42 = vld [vmem:[%s21272_s3 + $0x3c0] ss:$8 sps:$4 sm:$0xff]  }
 0x5b9   : > { %11814 = vmatpush1.bf16.msra.mxu0 %v17074_v21  ;;  %v17151_v21 = vld [vmem:[%s21272_s3 + $0x3d4] ss:$8 sps:$4 sm:$0xff]  }
 0x5ba   : > { %12088 = vmatpush1.bf16.msra.mxu1 %v17077_v48  ;;  %11815 = vmatprep.subr.bf16.mxu0 %v17082_v18  ;;  %v17146_v48 = vld [vmem:[%s21272_s3 + $0x1d0] ss:$8 sps:$4 sm:$0xff]   ;;  %v20732_v18 = vld [vmem:[%s21271_s2] sm:$0x3] }
 0x5bb   : > { %12089 = vmatprep.subr.bf16.mxu1 %v17085_v49  ;;  %v17149_v49 = vld [vmem:[%s21272_s3 + $0x3d0] ss:$8 sps:$4 sm:$0xff]  }
 0x5bd   : > { %11816 = vmatpush1.bf16.msra.mxu0 %v17080_v35  ;;  %v17154_v35 = vld [vmem:[%s21272_s3 + $0x1e4] ss:$8 sps:$4 sm:$0xff]  }
 0x5be   : > { %12090 = vmatpush1.bf16.msra.mxu1 %v17083_v50  ;;  %11817 = vmatprep.subr.bf16.mxu0 %v17088_v51  ;;  %v8617_v50 = vrot.slane %v20531_v29, %v19871_v39  ;;  %v17157_v51 = vld [vmem:[%s21272_s3 + $0x3e4] ss:$8 sps:$4 sm:$0xff]   ;;  %v17160_v29 = vld [vmem:[%s21272_s3 + $0x1f4] ss:$8 sps:$4 sm:$0xff]  }
 0x5bf   : > { %12091 = vmatprep.subr.bf16.mxu1 %v17091_v52  ;;  %v7490_v52 = vrot.slane %v20732_v18, %v19530_v16 }
 0x5c1   : > { %11818 = vmatpush1.bf16.msra.mxu0 %v17086_v53  ;;  %v17152_v53 = vld [vmem:[%s21272_s3 + $0x1e0] ss:$8 sps:$4 sm:$0xff]  }
 0x5c2   : > { %12092 = vmatpush1.bf16.msra.mxu1 %v17089_v54  ;;  %11819 = vmatprep.subr.bf16.mxu0 %v17094_v56  ;;  %v17155_v54 = vld [vmem:[%s21272_s3 + $0x3e0] ss:$8 sps:$4 sm:$0xff]   ;;  %v15780_v56 = vadd.f32 %v20494_v17, %v8617_v50  ;;  %v17166_v17 = vld [vmem:[%s21272_s3 + $0x4] ss:$8 sps:$4 sm:$0xff]   ;;  %v17206_v50 = vld [vmem:[%s21272_s3 + $0x70] ss:$8 sps:$4 sm:$0xff]  }
 0x5c3   : > { %12093 = vmatprep.subr.bf16.mxu1 %v17097_v57  ;;  %v17163_v57 = vld [vmem:[%s21272_s3 + $0x3f4] ss:$8 sps:$4 sm:$0xff]  }
 0x5c5   : > { %11820 = vmatpush1.bf16.msra.mxu0 %v17092_v58  ;;  %v15779_v58 = vadd.f32 %v20497_v37, %v7490_v52  ;;  %v17169_v37 = vld [vmem:[%s21272_s3 + $0x204] ss:$8 sps:$4 sm:$0xff]  }
 0x5c6   : > { %12094 = vmatpush1.bf16.msra.mxu1 %v17095_v59  ;;  %11821 = vmatprep.subr.bf16.mxu0 %v17100_v60  ;;  %v17158_v59 = vld [vmem:[%s21272_s3 + $0x1f0] ss:$8 sps:$4 sm:$0xff]   ;;  %v17214_v52 = vld [vmem:[%s21272_s3 + $0x84] ss:$8 sps:$4 sm:$0xff]  }
 0x5c7   : > { %v20631_v1 = vpop.f32.mrb[16].mxu0  ;;  %12095 = vmatprep.subr.bf16.mxu1 %v17103_v61  ;;  %v17161_v60 = vld [vmem:[%s21272_s3 + $0x3f0] ss:$8 sps:$4 sm:$0xff]   ;;  %v9581_v61 = vmax.f32 %v15780_v56, 0.0  ;;  %v17220_v56 = vld [vmem:[%s21272_s3 + $0x94] ss:$8 sps:$4 sm:$0xff]  }
 0x5c8   : > { %v20636_v3 = vpop.f32.mrb[16].mxu1  ;;  %v20638_v4 = vpop.f32.mrb[17].mxu0 }
 0x5c9   : > { %v20640_v6 = vpop.f32.mrb[17].mxu1  ;;  %v9865_v7 = vpop.f32.mrb[18].mxu0  ;;  %11822 = vmatpush1.bf16.msra.mxu0 %v17098_v62  ;;  %v8451_v62 = vmax.f32 %v15779_v58, 0.0  ;;  %v17218_v58 = vld [vmem:[%s21272_s3 + $0x90] ss:$8 sps:$4 sm:$0xff]  }
 0x5ca   : > { %v10141_v9 = vpop.f32.mrb[18].mxu1  ;;  %12096 = vmatpush1.bf16.msra.mxu1 %v17101_v63  ;;  %v9866_v12 = vpop.f32.mrb[19].mxu0  ;;  %11823 = vmatprep.subr.bf16.mxu0 %v17106_v0  ;;  %v17164_v63 = vld [vmem:[%s21272_s3] ss:$8 sps:$4 sm:$0xff]   ;;  %v17172_v7 = vld [vmem:[%s21272_s3 + $0x14] ss:$8 sps:$4 sm:$0xff]  }
 0x5cb   : > { %v10142_v40 = vpop.f32.mrb[19].mxu1  ;;  %12097 = vmatprep.subr.bf16.mxu1 %v17109_v2  ;;  %v17167_v0 = vld [vmem:[%s21272_s3 + $0x200] ss:$8 sps:$4 sm:$0xff]   ;;  %v15603_v2 = vpack.c.bf16 %v9581_v61, %v9581_v61  ;;  %v15606_v9 = vpack.c.bf16 %v8451_v62, %v8451_v62  ;;  %v17170_v12 = vld [vmem:[%s21272_s3 + $0x10] ss:$8 sps:$4 sm:$0xff]  }
 0x5cc   : > { %v17179_v40 = vld [vmem:[%s21272_s3 + $0x220] ss:$8 sps:$4 sm:$0xff]   ;;  %v17232_v62 = vld [vmem:[%s21272_s3 + $0xb4] ss:$8 sps:$4 sm:$0xff]  }
 0x5cd   : > { %11824 = vmatpush1.bf16.msra.mxu0 %v17104_v8  ;;  %v17175_v8 = vld [vmem:[%s21272_s3 + $0x214] ss:$8 sps:$4 sm:$0xff]   ;;  %v17224_v61 = vld [vmem:[%s21272_s3 + $0xa0] ss:$8 sps:$4 sm:$0xff]  }
 0x5ce   : > { %12098 = vmatpush1.bf16.msra.mxu1 %v17107_v5  ;;  %11825 = vmatprep.subr.bf16.mxu0 %v17112_v14  ;;  %v17173_v5 = vld [vmem:[%s21272_s3 + $0x210] ss:$8 sps:$4 sm:$0xff]   ;;  %v17181_v14 = vld [vmem:[%s21272_s3 + $0x224] ss:$8 sps:$4 sm:$0xff]  }
 0x5cf   : > { %12099 = vmatprep.subr.bf16.mxu1 %v17115_v15  ;;  %v17184_v15 = vld [vmem:[%s21272_s3 + $0x34] ss:$8 sps:$4 sm:$0xff]  }
 0x5d1   : > { %11826 = vmatpush1.bf16.msra.mxu0 %v17110_v19  ;;  %v17187_v19 = vld [vmem:[%s21272_s3 + $0x234] ss:$8 sps:$4 sm:$0xff]  }
 0x5d2   : > { %12100 = vmatpush1.bf16.msra.mxu1 %v17113_v20  ;;  %11827 = vmatprep.subr.bf16.mxu0 %v17118_v30  ;;  %v17182_v20 = vld [vmem:[%s21272_s3 + $0x30] ss:$8 sps:$4 sm:$0xff]  }
 0x5d3   : > { %12101 = vmatprep.subr.bf16.mxu1 %v17121_v33  ;;  %v17185_v30 = vld [vmem:[%s21272_s3 + $0x230] ss:$8 sps:$4 sm:$0xff]   ;;  %v17190_v33 = vld [vmem:[%s21272_s3 + $0x44] ss:$8 sps:$4 sm:$0xff]  }
 0x5d5   : > { %11828 = vmatpush1.bf16.msra.mxu0 %v17116_v28  ;;  %v17193_v28 = vld [vmem:[%s21272_s3 + $0x244] ss:$8 sps:$4 sm:$0xff]  }
 0x5d6   : > { %12102 = vmatpush1.bf16.msra.mxu1 %v17119_v13  ;;  %11829 = vmatprep.subr.bf16.mxu0 %v17124_v25  ;;  %v17188_v13 = vld [vmem:[%s21272_s3 + $0x40] ss:$8 sps:$4 sm:$0xff]  }
 0x5d7   : > { %12103 = vmatprep.subr.bf16.mxu1 %v17127_v22  ;;  %v17191_v25 = vld [vmem:[%s21272_s3 + $0x240] ss:$8 sps:$4 sm:$0xff]   ;;  %v17196_v22 = vld [vmem:[%s21272_s3 + $0x54] ss:$8 sps:$4 sm:$0xff]  }
 0x5d9   : > { %11830 = vmatpush1.bf16.msra.mxu0 %v17122_v34  ;;  %v17199_v34 = vld [vmem:[%s21272_s3 + $0x254] ss:$8 sps:$4 sm:$0xff]  }
 0x5da   : > { %12104 = vmatpush1.bf16.msra.mxu1 %v17125_v32  ;;  %11831 = vmatprep.subr.bf16.mxu0 %v17130_v31  ;;  %v17194_v32 = vld [vmem:[%s21272_s3 + $0x50] ss:$8 sps:$4 sm:$0xff]  }
 0x5db   : > { %12105 = vmatprep.subr.bf16.mxu1 %v17133_v43  ;;  %v17197_v31 = vld [vmem:[%s21272_s3 + $0x250] ss:$8 sps:$4 sm:$0xff]   ;;  %v17202_v43 = vld [vmem:[%s21272_s3 + $0x64] ss:$8 sps:$4 sm:$0xff]  }
 0x5dd   : > { %11832 = vmatpush1.bf16.msra.mxu0 %v17128_v23 }
 0x5de   : > { %12106 = vmatpush1.bf16.msra.mxu1 %v17131_v55  ;;  %11833 = vmatprep.subr.bf16.mxu0 %v17136_v46  ;;  %v17205_v55 = vld [vmem:[%s21272_s3 + $0x264] ss:$8 sps:$4 sm:$0xff]  }
 0x5df   : > { %12107 = vmatprep.subr.bf16.mxu1 %v17139_v36 }
 0x5e1   : > { %11834 = vmatpush1.bf16.msra.mxu0 %v17134_v45 }
 0x5e2   : > { %12108 = vmatpush1.bf16.msra.mxu1 %v17137_v47  ;;  %11835 = vmatprep.subr.bf16.mxu0 %v17142_v26 }
 0x5e3   : > { %12109 = vmatprep.subr.bf16.mxu1 %v17145_v38 }
 0x5e5   : > { %11836 = vmatpush1.bf16.msra.mxu0 %v17140_v24 }
 0x5e6   : > { %12110 = vmatpush1.bf16.msra.mxu1 %v17143_v42  ;;  %11837 = vmatprep.subr.bf16.mxu0 %v17148_v44  ;;  %v17200_v42 = vld [vmem:[%s21272_s3 + $0x60] ss:$8 sps:$4 sm:$0xff]  }
 0x5e7   : > { %12111 = vmatprep.subr.bf16.mxu1 %v17151_v21 }
 0x5e9   : > { %11838 = vmatpush1.bf16.msra.mxu0 %v17146_v48 }
 0x5ea   : > { %12112 = vmatpush1.bf16.msra.mxu1 %v17149_v49  ;;  %11839 = vmatprep.subr.bf16.mxu0 %v17154_v35 }
 0x5eb   : > { %12113 = vmatprep.subr.bf16.mxu1 %v17157_v51  ;;  %v17209_v51 = vld [vmem:[%s21272_s3 + $0x270] ss:$8 sps:$4 sm:$0xff]  }
 0x5ed   : > { %11840 = vmatpush1.bf16.msra.mxu0 %v17152_v53  ;;  %v17217_v53 = vld [vmem:[%s21272_s3 + $0x284] ss:$8 sps:$4 sm:$0xff]  }
 0x5ee   : > { %12114 = vmatpush1.bf16.msra.mxu1 %v17155_v54  ;;  %11841 = vmatprep.subr.bf16.mxu0 %v17160_v29  ;;  %v17212_v54 = vld [vmem:[%s21272_s3 + $0x80] ss:$8 sps:$4 sm:$0xff]  }
 0x5ef   : > { %12115 = vmatprep.subr.bf16.mxu1 %v17163_v57  ;;  %v17215_v29 = vld [vmem:[%s21272_s3 + $0x280] ss:$8 sps:$4 sm:$0xff]   ;;  %v17223_v57 = vld [vmem:[%s21272_s3 + $0x294] ss:$8 sps:$4 sm:$0xff]  }
 0x5f1   : > { %11842 = vmatpush1.bf16.msra.mxu0 %v17158_v59  ;;  %v17221_v59 = vld [vmem:[%s21272_s3 + $0x290] ss:$8 sps:$4 sm:$0xff]  }
 0x5f2   : > { %12116 = vmatpush1.bf16.msra.mxu1 %v17161_v60  ;;  %12293 = vmatprep.subr.bf16.mxu0 %v17166_v17  ;;  %v17226_v60 = vld [vmem:[%s21272_s3 + $0xa4] ss:$8 sps:$4 sm:$0xff]  }
 0x5f3   : > { %12501 = vmatprep.subr.bf16.mxu1 %v17169_v37  ;;  %v17229_v17 = vld [vmem:[%s21272_s3 + $0x2a4] ss:$8 sps:$4 sm:$0xff]   ;;  %v17227_v37 = vld [vmem:[%s21272_s3 + $0x2a0] ss:$8 sps:$4 sm:$0xff]  }
 0x5f4   : > { %11844 = vmatmul.mubr.bf16.vlgmr.msra.gmra.mrb[32].mxu0 %v20464_v10  ;;  %v17178_v10 = vld [vmem:[%s21272_s3 + $0x24] ss:$8 sps:$4 sm:$0xff]  }
 0x5f5   : > { %12118 = vmatmul.mubr.bf16.vlgmr.msra.gmra.mrb[32].mxu1 %v15603_v2  ;;  %12294 = vmatpush1.bf16.msra.mxu0 %v17164_v63  ;;  %v17235_v63 = vld [vmem:[%s21272_s3 + $0x2b4] ss:$8 sps:$4 sm:$0xff]   ;;  %v17233_v2 = vld [vmem:[%s21272_s3 + $0x2b0] ss:$8 sps:$4 sm:$0xff]  }
 0x5f6   : > { %12325 = vmatprep.mubr.bf16.mxu0 %v20468_v11  ;;  %12502 = vmatpush1.bf16.msra.mxu1 %v17167_v0  ;;  %v17176_v11 = vld [vmem:[%s21272_s3 + $0x20] ss:$8 sps:$4 sm:$0xff]   ;;  %v17230_v0 = vld [vmem:[%s21272_s3 + $0xb0] ss:$8 sps:$4 sm:$0xff]  }
 0x5f7   : > { %12533 = vmatprep.mubr.bf16.mxu1 %v15606_v9  ;;  %12295 = vmatprep.subr.bf16.mxu0 %v17172_v7  ;;  %v17238_v7 = vld [vmem:[%s21272_s3 + $0xc4] ss:$8 sps:$4 sm:$0xff]   ;;  %v17236_v9 = vld [vmem:[%s21272_s3 + $0xc0] ss:$8 sps:$4 sm:$0xff]  }
 0x5f8   : > { %12503 = vmatprep.subr.bf16.mxu1 %v17175_v8  ;;  %v17241_v8 = vld [vmem:[%s21272_s3 + $0x2c4] ss:$8 sps:$4 sm:$0xff]  }
 0x5f9   : > { %12296 = vmatpush1.bf16.msra.mxu0 %v17170_v12  ;;  %v17239_v12 = vld [vmem:[%s21272_s3 + $0x2c0] ss:$8 sps:$4 sm:$0xff]  }
 0x5fa   : > { %12504 = vmatpush1.bf16.msra.mxu1 %v17173_v5  ;;  %12297 = vmatprep.subr.bf16.mxu0 %v17178_v10  ;;  %v17244_v5 = vld [vmem:[%s21272_s3 + $0xd4] ss:$8 sps:$4 sm:$0xff]  }
 0x5fb   : > { %12505 = vmatprep.subr.bf16.mxu1 %v17181_v14  ;;  %v17247_v10 = vld [vmem:[%s21272_s3 + $0x2d4] ss:$8 sps:$4 sm:$0xff]   ;;  %v20942_v14 = vld [vmem:[%s21273_s4] sm:$0x3] }
 0x5fd   : > { %12298 = vmatpush1.bf16.msra.mxu0 %v17176_v11  ;;  %v17242_v11 = vld [vmem:[%s21272_s3 + $0xd0] ss:$8 sps:$4 sm:$0xff]  }
 0x5fe   : > { %12506 = vmatpush1.bf16.msra.mxu1 %v17179_v40  ;;  %12299 = vmatprep.subr.bf16.mxu0 %v17184_v15  ;;  %v17245_v40 = vld [vmem:[%s21272_s3 + $0x2d0] ss:$8 sps:$4 sm:$0xff]   ;;  %v17250_v15 = vld [vmem:[%s21272_s3 + $0xe4] ss:$8 sps:$4 sm:$0xff]  }
 0x5ff   : > { %12507 = vmatprep.subr.bf16.mxu1 %v17187_v19  ;;  %v7486_v19 = vrot.slane %v20732_v18, %v19871_v39  ;;  %v17256_v18 = vld [vmem:[%s21272_s3 + $0xf4] ss:$8 sps:$4 sm:$0xff]  }
 0x601   : > { %12300 = vmatpush1.bf16.msra.mxu0 %v17182_v20  ;;  %v17253_v20 = vld [vmem:[%s21272_s3 + $0x2e4] ss:$8 sps:$4 sm:$0xff]  }
 0x602   : > { %12508 = vmatpush1.bf16.msra.mxu1 %v17185_v30  ;;  %12301 = vmatprep.subr.bf16.mxu0 %v17190_v33  ;;  %v10571_v30 = vrot.slane %v20942_v14, %v19530_v16  ;;  %v17248_v33 = vld [vmem:[%s21272_s3 + $0xe0] ss:$8 sps:$4 sm:$0xff]  }
 0x603   : > { %12509 = vmatprep.subr.bf16.mxu1 %v17193_v28  ;;  %v17251_v28 = vld [vmem:[%s21272_s3 + $0x2e0] ss:$8 sps:$4 sm:$0xff]  }
 0x605   : > { %12302 = vmatpush1.bf16.msra.mxu0 %v17188_v13  ;;  %v15778_v13 = vadd.f32 %v20492_v41, %v7486_v19  ;;  %v17260_v41 = vld [vmem:[%s21274_s5 + $0x40] sm:$0xff]   ;;  %v17295_v19 = vld [vmem:[%s21274_s5 + $0x108] sm:$0xff]  }
 0x606   : > { %12510 = vmatpush1.bf16.msra.mxu1 %v17191_v25  ;;  %12303 = vmatprep.subr.bf16.mxu0 %v17196_v22  ;;  %v17259_v25 = vld [vmem:[%s21272_s3 + $0x2f4] ss:$8 sps:$4 sm:$0xff]  }
 0x607   : > { %v10345_v23 = vpop.f32.mrb[20].mxu0  ;;  %12511 = vmatprep.subr.bf16.mxu1 %v17199_v34  ;;  %v17254_v34 = vld [vmem:[%s21272_s3 + $0xf0] ss:$8 sps:$4 sm:$0xff]  }
 0x608   : > { %v10346_v46 = vadd.f32 %v10345_v23, %v20631_v1  ;;  %v10553_v36 = vpop.f32.mrb[20].mxu1  ;;  %v10347_v45 = vpop.f32.mrb[21].mxu0  ;;  %v17203_v1 = vld [vmem:[%s21272_s3 + $0x260] ss:$8 sps:$4 sm:$0xff]  }
 0x609   : > { %v10554_v47 = vadd.f32 %v10553_v36, %v20636_v3  ;;  %v10348_v26 = vadd.f32 %v10347_v45, %v20638_v4  ;;  %v10555_v38 = vpop.f32.mrb[21].mxu1  ;;  %v10349_v24 = vpop.f32.mrb[22].mxu0  ;;  %12304 = vmatpush1.bf16.msra.mxu0 %v17194_v32  ;;  %v17208_v3 = vld [vmem:[%s21272_s3 + $0x74] ss:$8 sps:$4 sm:$0xff]   ;;  %v17257_v32 = vld [vmem:[%s21272_s3 + $0x2f0] ss:$8 sps:$4 sm:$0xff]  }
 0x60a   : > { %v10556_v44 = vadd.f32 %v10555_v38, %v20640_v6  ;;  %v10557_v21 = vpop.f32.mrb[22].mxu1  ;;  %12512 = vmatpush1.bf16.msra.mxu1 %v17197_v31  ;;  %v10350_v48 = vpop.f32.mrb[23].mxu0  ;;  %12305 = vmatprep.subr.bf16.mxu0 %v17202_v43  ;;  %v17211_v6 = vld [vmem:[%s21272_s3 + $0x274] ss:$8 sps:$4 sm:$0xff]   ;;  %v8450_v31 = vmax.f32 %v15778_v13, 0.0  ;;  %v17276_v43 = vld [vmem:[%s21274_s5 + $0xc0] sm:$0xff]  }
 0x60b   : > { %v20860_v4 = vadd.f32 %v10554_v47, %v10346_v46  ;;  %v10558_v49 = vpop.f32.mrb[23].mxu1  ;;  %12513 = vmatprep.subr.bf16.mxu1 %v17205_v55  ;;  %v17261_v55 = vld [vmem:[%s21274_s5] sm:$0xff]   ;;  %v17262_v46 = vld [vmem:[%s21274_s5 + $0x48] sm:$0xff]   ;;  %v17264_v24 = vld [vmem:[%s21274_s5 + $0x50] sm:$0xff]  }
 0x60c   : > { %v20865_v35 = vadd.f32 %v10556_v44, %v10348_v26  ;;  %v15605_v36 = vpack.c.bf16 %v8450_v31, %v8450_v31  ;;  %v17277_v45 = vld [vmem:[%s21274_s5 + $0x80] sm:$0xff]   ;;  %v17278_v26 = vld [vmem:[%s21274_s5 + $0xc8] sm:$0xff]   ;;  %v17265_v44 = vld [vmem:[%s21274_s5 + $0x10] sm:$0xff]  }
 0x60d   : > { %12306 = vmatpush1.bf16.msra.mxu0 %v17200_v42  ;;  %v17263_v38 = vld [vmem:[%s21274_s5 + $0x8] sm:$0xff]   ;;  %v17280_v42 = vld [vmem:[%s21274_s5 + $0xd0] sm:$0xff]   ;;  %v17266_v21 = vld [vmem:[%s21274_s5 + $0x58] sm:$0xff]  }
 0x60e   : > { %12514 = vmatpush1.bf16.msra.mxu1 %v17203_v1  ;;  %12307 = vmatprep.subr.bf16.mxu0 %v17208_v3  ;;  %v10575_v22 = vadd.f32 %v10571_v30, %v20865_v35  ;;  %v17281_v48 = vld [vmem:[%s21274_s5 + $0x90] sm:$0xff]   ;;  %v17282_v1 = vld [vmem:[%s21274_s5 + $0xd8] sm:$0xff]   ;;  %v17268_v49 = vld [vmem:[%s21274_s5 + $0x60] sm:$0xff]  }
 0x60f   : > { %12515 = vmatprep.subr.bf16.mxu1 %v17211_v6  ;;  %v17267_v3 = vld [vmem:[%s21274_s5 + $0x18] sm:$0xff]   ;;  %v17284_v35 = vld [vmem:[%s21274_s5 + $0xe0] sm:$0xff]   ;;  %v17297_v30 = vld [vmem:[%s21274_s5 + $0x110] sm:$0xff]  }
 0x610   : > { %v10577_v23 = vmax.f32 %v10575_v22, 0.0  ;;  %v17283_v6 = vld [vmem:[%s21274_s5 + $0x98] sm:$0xff]   ;;  %v17301_v13 = vld [vmem:[%s21274_s5 + $0x120] sm:$0xff]   ;;  %v17302_v31 = vld [vmem:[%s21274_s5 + $0x168] sm:$0xff]  }
 0x611   : > { %12308 = vmatpush1.bf16.msra.mxu0 %v17206_v50  ;;  %v17269_v50 = vld [vmem:[%s21274_s5 + $0x20] sm:$0xff]  }
 0x612   : > { %12516 = vmatpush1.bf16.msra.mxu1 %v17209_v51  ;;  %12309 = vmatprep.subr.bf16.mxu0 %v17214_v52  ;;  %v15608_v47 = vpack.c.bf16 %v10577_v23, %v10577_v23  ;;  %v17270_v51 = vld [vmem:[%s21274_s5 + $0x68] sm:$0xff]   ;;  %v17285_v52 = vld [vmem:[%s21274_s5 + $0xa0] sm:$0xff]  }
 0x613   : > { %12517 = vmatprep.subr.bf16.mxu1 %v17217_v53  ;;  %v17286_v53 = vld [vmem:[%s21274_s5 + $0xe8] sm:$0xff]  }
 0x615   : > { %12310 = vmatpush1.bf16.msra.mxu0 %v17212_v54  ;;  %v17271_v54 = vld [vmem:[%s21274_s5 + $0x28] sm:$0xff]  }
 0x616   : > { %12518 = vmatpush1.bf16.msra.mxu1 %v17215_v29  ;;  %12311 = vmatprep.subr.bf16.mxu0 %v17220_v56  ;;  %v10567_v29 = vrot.slane %v20942_v14, %v19871_v39  ;;  %v17272_v56 = vld [vmem:[%s21274_s5 + $0x70] sm:$0xff]   ;;  %v17291_v14 = vld [vmem:[%s21274_s5 + $0xb8] sm:$0xff]  }
 0x617   : > { %12519 = vmatprep.subr.bf16.mxu1 %v17223_v57 }
 0x619   : > { %12312 = vmatpush1.bf16.msra.mxu0 %v17218_v58  ;;  %v17287_v58 = vld [vmem:[%s21274_s5 + $0xa8] sm:$0xff]  }
 0x61a   : > { %12520 = vmatpush1.bf16.msra.mxu1 %v17221_v59  ;;  %12313 = vmatprep.subr.bf16.mxu0 %v17226_v60 }
 0x61b   : > { %12521 = vmatprep.subr.bf16.mxu1 %v17229_v17  ;;  %v17288_v17 = vld [vmem:[%s21274_s5 + $0xf0] sm:$0xff]  }
 0x61d   : > { %12314 = vmatpush1.bf16.msra.mxu0 %v17224_v61 }
 0x61e   : > { %12522 = vmatpush1.bf16.msra.mxu1 %v17227_v37  ;;  %12315 = vmatprep.subr.bf16.mxu0 %v17232_v62  ;;  %v17273_v62 = vld [vmem:[%s21274_s5 + $0x30] sm:$0xff]  }
 0x61f   : > { %12523 = vmatprep.subr.bf16.mxu1 %v17235_v63  ;;  %v10574_v63 = vadd.f32 %v10567_v29, %v20860_v4  ;;  %v17275_v4 = vld [vmem:[%s21274_s5 + $0x38] sm:$0xff]  }
 0x621   : > { %12316 = vmatpush1.bf16.msra.mxu0 %v17230_v0 }
 0x622   : > { %12524 = vmatpush1.bf16.msra.mxu1 %v17233_v2  ;;  %12317 = vmatprep.subr.bf16.mxu0 %v17238_v7  ;;  %v17274_v7 = vld [vmem:[%s21274_s5 + $0x78] sm:$0xff]  }
 0x623   : > { %12525 = vmatprep.subr.bf16.mxu1 %v17241_v8 }
 0x625   : > { %12318 = vmatpush1.bf16.msra.mxu0 %v17236_v9  ;;  %v17289_v9 = vld [vmem:[%s21274_s5 + $0xb0] sm:$0xff]  }
 0x626   : > { %12526 = vmatpush1.bf16.msra.mxu1 %v17239_v12  ;;  %12319 = vmatprep.subr.bf16.mxu0 %v17244_v5  ;;  %v17290_v12 = vld [vmem:[%s21274_s5 + $0xf8] sm:$0xff]   ;;  %v10576_v5 = vmax.f32 %v10574_v63, 0.0 }
 0x627   : > { %12527 = vmatprep.subr.bf16.mxu1 %v17247_v10  ;;  %v17292_v10 = vld [vmem:[%s21274_s5 + $0x140] sm:$0xff]   ;;  %v17311_v63 = vld [vmem:[%s21276_s7 + $0x18] sm:$0xff]  }
 0x629   : > { %12320 = vmatpush1.bf16.msra.mxu0 %v17242_v11  ;;  %v17293_v11 = vld [vmem:[%s21274_s5 + $0x100] sm:$0xff]  }
 0x62a   : > { %12528 = vmatpush1.bf16.msra.mxu1 %v17245_v40  ;;  %12321 = vmatprep.subr.bf16.mxu0 %v17250_v15  ;;  %v15607_v40 = vpack.c.bf16 %v10576_v5, %v10576_v5  ;;  %v17294_v15 = vld [vmem:[%s21274_s5 + $0x148] sm:$0xff]  }
 0x62b   : > { %12529 = vmatprep.subr.bf16.mxu1 %v17253_v20  ;;  %v17296_v20 = vld [vmem:[%s21274_s5 + $0x150] sm:$0xff]  }
 0x62d   : > { %12322 = vmatpush1.bf16.msra.mxu0 %v17248_v33  ;;  %v17298_v33 = vld [vmem:[%s21274_s5 + $0x158] sm:$0xff]  }
 0x62e   : > { %12530 = vmatpush1.bf16.msra.mxu1 %v17251_v28  ;;  %12323 = vmatprep.subr.bf16.mxu0 %v17256_v18  ;;  %v17299_v28 = vld [vmem:[%s21274_s5 + $0x118] sm:$0xff]   ;;  %v17300_v18 = vld [vmem:[%s21274_s5 + $0x160] sm:$0xff]  }
 0x62f   : > { %12531 = vmatprep.subr.bf16.mxu1 %v17259_v25  ;;  %v11553_v25 = vld [vmem:[%s21273_s4] sm:$0x3] }
 0x630   : > { %v11558_v23 = vrot.slane %v11553_v25, %v19871_v39 }
 0x631   : > { %12324 = vmatpush1.bf16.msra.mxu0 %v17254_v34 }
 0x632   : > { %12532 = vmatpush1.bf16.msra.mxu1 %v17257_v32  ;;  %15613 = vmatprep.subr.bf16.mxu0 %v17260_v41 }
 0x633   : > { %15635 = vmatprep.subr.bf16.mxu1 %v17276_v43 }
 0x634   : > { %12326 = vmatmul.mubr.bf16.vlgmr.msra.gmra.mrb[36].mxu0 %v20563_v27  ;;  %v17279_v27 = vld [vmem:[%s21274_s5 + $0x88] sm:$0xff]  }
 0x635   : > { %12534 = vmatmul.mubr.bf16.vlgmr.msra.gmra.mrb[36].mxu1 %v15605_v36  ;;  %15614 = vmatpush3.bf16.msra.mxu0 %v17261_v55 }
 0x636   : > { %13016 = vmatprep.mubr.bf16.mxu0 %v15608_v47  ;;  %15615 = vmatprep.subr.bf16.mxu0 %v17262_v46 }
 0x637   : > { %15636 = vmatpush3.bf16.msra.mxu1 %v17277_v45  ;;  %v17303_v45 = vld [vmem:[%s21274_s5 + $0x128] sm:$0xff]  }
 0x638   : > { %15637 = vmatprep.subr.bf16.mxu1 %v17278_v26  ;;  %v11562_v26 = vrot.slane %v11553_v25, %v19530_v16 }
 0x639   : > { %15616 = vmatpush3.bf16.msra.mxu0 %v17263_v38 }
 0x63a   : > { %15617 = vmatprep.subr.bf16.mxu0 %v17264_v24 }
 0x63b   : > { %15638 = vmatpush3.bf16.msra.mxu1 %v17279_v27 }
 0x63c   : > { %15639 = vmatprep.subr.bf16.mxu1 %v17280_v42 }
 0x63d   : > { %15618 = vmatpush3.bf16.msra.mxu0 %v17265_v44 }
 0x63e   : > { %15619 = vmatprep.subr.bf16.mxu0 %v17266_v21  ;;  %v17304_v21 = vld [vmem:[%s21274_s5 + $0x170] sm:$0xff]  }
 0x63f   : > { %15640 = vmatpush3.bf16.msra.mxu1 %v17281_v48 }
 0x640   : > { %15641 = vmatprep.subr.bf16.mxu1 %v17282_v1  ;;  %v17305_v1 = vld [vmem:[%s21274_s5 + $0x130] sm:$0xff]  }
 0x641   : > { %15620 = vmatpush3.bf16.msra.mxu0 %v17267_v3 }
 0x642   : > { %15621 = vmatprep.subr.bf16.mxu0 %v17268_v49 }
 0x643   : > { %15642 = vmatpush3.bf16.msra.mxu1 %v17283_v6 }
 0x644   : > { %15643 = vmatprep.subr.bf16.mxu1 %v17284_v35  ;;  %v17306_v35 = vld [vmem:[%s21274_s5 + $0x178] sm:$0xff]  }
 0x645   : > { %15622 = vmatpush3.bf16.msra.mxu0 %v17269_v50  ;;  %v17307_v50 = vld [vmem:[%s21274_s5 + $0x138] sm:$0xff]  }
 0x646   : > { %15623 = vmatprep.subr.bf16.mxu0 %v17270_v51 }
 0x647   : > { %v10854_v57 = vpop.f32.mrb[24].mxu0  ;;  %15644 = vmatpush3.bf16.msra.mxu1 %v17285_v52 }
 0x648   : > { %v11128_v59 = vpop.f32.mrb[24].mxu1  ;;  %v10856_v60 = vpop.f32.mrb[25].mxu0  ;;  %15645 = vmatprep.subr.bf16.mxu1 %v17286_v53 }
 0x649   : > { %v11130_v61 = vpop.f32.mrb[25].mxu1  ;;  %v10858_v37 = vpop.f32.mrb[26].mxu0  ;;  %15624 = vmatpush3.bf16.msra.mxu0 %v17271_v54 }
 0x64a   : > { %v11132_v0 = vpop.f32.mrb[26].mxu1  ;;  %v10859_v2 = vpop.f32.mrb[27].mxu0  ;;  %15625 = vmatprep.subr.bf16.mxu0 %v17272_v56  ;;  %v17309_v37 = vld [vmem:[%s21276_s7 + $0x8] sm:$0xff]  }
 0x64b   : > { %v11133_v8 = vpop.f32.mrb[27].mxu1  ;;  %15646 = vmatpush3.bf16.msra.mxu1 %v17287_v58  ;;  %v17312_v0 = vld [vmem:[%s21276_s7 + $0x20] sm:$0xff]   ;;  %v17313_v2 = vld [vmem:[%s21276_s7 + $0x28] sm:$0xff]  }
 0x64c   : > { %15647 = vmatprep.subr.bf16.mxu1 %v17288_v17  ;;  %v17308_v17 = vld [vmem:[%s21276_s7] sm:$0xff]  }
 0x64d   : > { %15626 = vmatpush3.bf16.msra.mxu0 %v17273_v62  ;;  %v17310_v62 = vld [vmem:[%s21276_s7 + $0x10] sm:$0xff]  }
 0x64e   : > { %15627 = vmatprep.subr.bf16.mxu0 %v17274_v7  ;;  %v12544_v7 = vld [vmem:[%s21273_s4] sm:$0x3] }
 0x64f   : > { %15648 = vmatpush3.bf16.msra.mxu1 %v17289_v9 }
 0x650   : > { %15649 = vmatprep.subr.bf16.mxu1 %v17290_v12 }
 0x651   : > { %15628 = vmatpush3.bf16.msra.mxu0 %v17275_v4 }
 0x652   : > { %15657 = vmatprep.subr.bf16.mxu0 %v17292_v10  ;;  %v12549_v10 = vrot.slane %v12544_v7, %v19871_v39 }
 0x653   : > { %15650 = vmatpush3.bf16.msra.mxu1 %v17291_v14 }
 0x654   : > { %13017 = vmatmul.mubr.bf16.vlgmr.msra.gmra.mrb[40].mxu0 %v15607_v40 }
 0x655   : > { %15658 = vmatpush3.bf16.msra.mxu0 %v17293_v11 }
 0x656   : > { %15659 = vmatprep.subr.bf16.mxu0 %v17294_v15 }
 0x659   : > { %15660 = vmatpush3.bf16.msra.mxu0 %v17295_v19  ;;  %v12553_v19 = vrot.slane %v12544_v7, %v19530_v16  ;;  %v15496_v16 = vld [vmem:[%s21275_s6] ss:$0 sm:$0xff] }
 0x65a   : > { %15661 = vmatprep.subr.bf16.mxu0 %v17296_v20 }
 0x65d   : > { %15662 = vmatpush3.bf16.msra.mxu0 %v17297_v30 }
 0x65e   : > { %15663 = vmatprep.subr.bf16.mxu0 %v17298_v33 }
 0x661   : > { %15664 = vmatpush3.bf16.msra.mxu0 %v17299_v28 }
 0x662   : > { %15665 = vmatprep.subr.bf16.mxu0 %v17300_v18 }
 0x665   : > { %15666 = vmatpush3.bf16.msra.mxu0 %v17301_v13 }
 0x666   : > { %15667 = vmatprep.subr.bf16.mxu0 %v17302_v31 }
 0x669   : > { %15668 = vmatpush3.bf16.msra.mxu0 %v17303_v45 }
 0x66a   : > { %15669 = vmatprep.subr.bf16.mxu0 %v17304_v21  ;;  %v17317_v21 = vld [vmem:[%s21278_s9 + $0x8] sm:$0xff]  }
 0x66d   : > { %15670 = vmatpush3.bf16.msra.mxu0 %v17305_v1  ;;  %v17319_v1 = vld [vmem:[%s21278_s9 + $0x18] sm:$0xff]  }
 0x66e   : > { %15671 = vmatprep.subr.bf16.mxu0 %v17306_v35 }
 0x671   : > { %15672 = vmatpush3.bf16.msra.mxu0 %v17307_v50 }
 0x687   : > { %v11336_v22 = vpop.f32.mrb[28].mxu0 }
 0x688   : > { %v11337_v34 = vadd.f32 %v11336_v22, %v10854_v57  ;;  %v11544_v32 = vpop.f32.mrb[28].mxu1  ;;  %v11338_v41 = vpop.f32.mrb[29].mxu0 }
 0x689   : > { %v11545_v43 = vadd.f32 %v11544_v32, %v11128_v59  ;;  %v11339_v55 = vadd.f32 %v11338_v41, %v10856_v60  ;;  %v11546_v46 = vpop.f32.mrb[29].mxu1  ;;  %v11340_v36 = vpop.f32.mrb[30].mxu0 }
 0x68a   : > { %v11547_v47 = vadd.f32 %v11546_v46, %v11130_v61  ;;  %v11548_v38 = vpop.f32.mrb[30].mxu1  ;;  %v11341_v24 = vpop.f32.mrb[31].mxu0  ;;  %v17357_v61 = vmov 0.0  }
 0x68b   : > { %v11551_v27 = vadd.f32 %v11545_v43, %v11337_v34  ;;  %v11549_v42 = vpop.f32.mrb[31].mxu1  ;;  %15706 = vmatprep.subr.bf16.mxu1 %v17357_v61  ;;  %15726 = vmatprep.subr.bf16.mxu0 %v17357_v61  ;;  %v17314_v38 = vld [vmem:[%s21276_s7 + $0x30] sm:$0xff]  }
 0x68c   : > { %v11552_v44 = vadd.f32 %v11547_v47, %v11339_v55  ;;  %v17315_v42 = vld [vmem:[%s21276_s7 + $0x38] sm:$0xff]  }
 0x68d   : > { %v11565_v48 = vadd.f32 %v11558_v23, %v11551_v27 }
 0x68e   : > { %v11566_v3 = vadd.f32 %v11562_v26, %v11552_v44  ;;  %v17316_v44 = vld [vmem:[%s21278_s9] sm:$0xff]  }
 0x68f   : > { %v11567_v49 = vmax.f32 %v11565_v48, 0.0  ;;  %v17318_v48 = vld [vmem:[%s21278_s9 + $0x10] sm:$0xff]  }
 0x690   : > { %v11568_v6 = vmax.f32 %v11566_v3, 0.0  ;;  %v17320_v3 = vld [vmem:[%s21278_s9 + $0x20] sm:$0xff]  }
 0x691   : > { %v15609_v52 = vpack.c.bf16 %v11567_v49, %v11567_v49  ;;  %v17321_v49 = vld [vmem:[%s21278_s9 + $0x28] sm:$0xff]  }
 0x692   : > { %v15610_v51 = vpack.c.bf16 %v11568_v6, %v11568_v6 }
 0x694   : > { %13056 = vmatprep.mubr.bf16.mxu1 %v15610_v51 }
 0x695   : > { %13057 = vmatmul.mubr.bf16.vlgmr.msra.gmra.mrb[40].mxu1 %v15609_v52 }
 0x696   : > { %15707 = vmatpush3.bf16.msra.mxu1 %v17308_v17  ;;  %15722 = vmatprep.mubr.msk.bf16.mxu1 %vm17358_vm0, %v17357_v61  ;;  %v17327_v17 = vld [vmem:[%s21280_s11 + $0x18] sm:$0xff]  }
 0x697   : > { %15708 = vmatprep.subr.bf16.mxu1 %v17357_v61 }
 0x69a   : > { %15709 = vmatpush3.bf16.msra.mxu1 %v17309_v37  ;;  %v17328_v37 = vld [vmem:[%s21280_s11 + $0x20] sm:$0xff]  }
 0x69b   : > { %15710 = vmatprep.subr.bf16.mxu1 %v17357_v61 }
 0x69e   : > { %15711 = vmatpush3.bf16.msra.mxu1 %v17310_v62  ;;  %v17329_v62 = vld [vmem:[%s21280_s11 + $0x28] sm:$0xff]  }
 0x69f   : > { %15712 = vmatprep.subr.bf16.mxu1 %v17357_v61 }
 0x6a2   : > { %15713 = vmatpush3.bf16.msra.mxu1 %v17311_v63  ;;  %v15551_v63 = vld [vmem:[%s21277_s8] ss:$0 sm:$0xff] }
 0x6a3   : > { %15714 = vmatprep.subr.bf16.mxu1 %v17357_v61 }
 0x6a6   : > { %15715 = vmatpush3.bf16.msra.mxu1 %v17312_v0 }
 0x6a7   : > { %15716 = vmatprep.subr.bf16.mxu1 %v17357_v61 }
 0x6aa   : > { %15717 = vmatpush3.bf16.msra.mxu1 %v17313_v2 }
 0x6ab   : > { %15718 = vmatprep.subr.bf16.mxu1 %v17357_v61 }
 0x6ae   : > { %15719 = vmatpush3.bf16.msra.mxu1 %v17314_v38 }
 0x6af   : > { %15720 = vmatprep.subr.bf16.mxu1 %v17357_v61 }
 0x6b2   : > { %15721 = vmatpush3.bf16.msra.mxu1 %v17315_v42 }
 0x6b3   : > { %15746 = vmatprep.subr.bf16.mxu1 %v17357_v61 }
 0x6c7   : > { %v11845_v53 = vpop.f32.mrb[32].mxu0 }
 0x6c8   : > { %v12119_v54 = vpop.f32.mrb[32].mxu1  ;;  %v11847_v29 = vpop.f32.mrb[33].mxu0 }
 0x6c9   : > { %v12121_v56 = vpop.f32.mrb[33].mxu1  ;;  %v11849_v57 = vpop.f32.mrb[34].mxu0 }
 0x6ca   : > { %v12123_v58 = vpop.f32.mrb[34].mxu1  ;;  %v11850_v59 = vpop.f32.mrb[35].mxu0  ;;  %v17323_v57 = vld [vmem:[%s21278_s9 + $0x38] sm:$0xff]  }
 0x6cb   : > { %v12124_v60 = vpop.f32.mrb[35].mxu1  ;;  %v17324_v58 = vld [vmem:[%s21280_s11] sm:$0xff]   ;;  %v17325_v59 = vld [vmem:[%s21280_s11 + $0x8] sm:$0xff]  }
 0x6cc   : > { %v17326_v60 = vld [vmem:[%s21280_s11 + $0x10] sm:$0xff]  }
 0x707   : > { %v12327_v8 = vpop.f32.mrb[36].mxu0 }
 0x708   : > { %v12328_v9 = vadd.f32 %v12327_v8, %v11845_v53  ;;  %v12535_v12 = vpop.f32.mrb[36].mxu1  ;;  %v12329_v4 = vpop.f32.mrb[37].mxu0 }
 0x709   : > { %v12536_v5 = vadd.f32 %v12535_v12, %v12119_v54  ;;  %v12330_v14 = vadd.f32 %v12329_v4, %v11847_v29  ;;  %v12537_v11 = vpop.f32.mrb[37].mxu1  ;;  %v12331_v40 = vpop.f32.mrb[38].mxu0 }
 0x70a   : > { %v12538_v15 = vadd.f32 %v12537_v11, %v12121_v56  ;;  %v12539_v20 = vpop.f32.mrb[38].mxu1  ;;  %v12332_v30 = vpop.f32.mrb[39].mxu0  ;;  %v17322_v56 = vld [vmem:[%s21278_s9 + $0x30] sm:$0xff]  }
 0x70b   : > { %v12542_v33 = vadd.f32 %v12536_v5, %v12328_v9  ;;  %v12540_v28 = vpop.f32.mrb[39].mxu1  ;;  %v17330_v5 = vld [vmem:[%s21280_s11 + $0x30] sm:$0xff]  }
 0x70c   : > { %v12543_v18 = vadd.f32 %v12538_v15, %v12330_v14  ;;  %v15560_v14 = vld [vmem:[%s21279_s10] ss:$0 sm:$0xff] }
 0x70d   : > { %v12556_v13 = vadd.f32 %v12549_v10, %v12542_v33  ;;  %v17331_v10 = vld [vmem:[%s21280_s11 + $0x38] sm:$0xff]  }
 0x70e   : > { %v12557_v25 = vadd.f32 %v12553_v19, %v12543_v18 }
 0x70f   : > { %v12558_v22 = vmax.f32 %v12556_v13, 0.0 }
 0x710   : > { %v12559_v34 = vmax.f32 %v12557_v25, 0.0 }
 0x711   : > { %v15611_v41 = vpack.c.bf16 %v12558_v22, %v12558_v22 }
 0x712   : > { %v15612_v32 = vpack.c.bf16 %v12559_v34, %v12559_v34 }
 0x714   : > { %13096 = vmatprep.mubr.bf16.mxu0 %v15612_v32 }
 0x715   : > { %13097 = vmatmul.mubr.bf16.vlgmr.msra.gmra.mrb[44].mxu0 %v15611_v41 }
 0x716   : > { %15742 = vmatprep.mubr.msk.bf16.mxu0 %vm17358_vm0, %v17357_v61  ;;  %15727 = vmatpush3.bf16.msra.mxu0 %v17316_v44 }
 0x717   : > { %15728 = vmatprep.subr.bf16.mxu0 %v17357_v61 }
 0x71a   : > { %15729 = vmatpush3.bf16.msra.mxu0 %v17317_v21 }
 0x71b   : > { %15730 = vmatprep.subr.bf16.mxu0 %v17357_v61 }
 0x71e   : > { %15731 = vmatpush3.bf16.msra.mxu0 %v17318_v48 }
 0x71f   : > { %15732 = vmatprep.subr.bf16.mxu0 %v17357_v61 }
 0x722   : > { %15733 = vmatpush3.bf16.msra.mxu0 %v17319_v1 }
 0x723   : > { %15734 = vmatprep.subr.bf16.mxu0 %v17357_v61 }
 0x726   : > { %15735 = vmatpush3.bf16.msra.mxu0 %v17320_v3 }
 0x727   : > { %v15629_v39 = vpop.f32.mrb[40].mxu0  ;;  %15736 = vmatprep.subr.bf16.mxu0 %v17357_v61 }
 0x728   : > { %v15630_v31 = vpop.f32.mrb[41].mxu0 }
 0x729   : > { %v15631_v43 = vadd.f32 %v15630_v31, %v15629_v39  ;;  %v15632_v23 = vpop.f32.mrb[42].mxu0 }
 0x72a   : > { %v15633_v55 = vpop.f32.mrb[43].mxu0  ;;  %15737 = vmatpush3.bf16.msra.mxu0 %v17321_v49 }
 0x72b   : > { %v13019_v45 = vadd.f32 %v15631_v43, %v15496_v16  ;;  %15738 = vmatprep.subr.bf16.mxu0 %v17357_v61 }
 0x72e   : > { %15739 = vmatpush3.bf16.msra.mxu0 %v17322_v56 }
 0x72f   : > { %15740 = vmatprep.subr.bf16.mxu0 %v17357_v61 }
 0x732   : > { %15741 = vmatpush3.bf16.msra.mxu0 %v17323_v57 }
 0x768   : > { %v15651_v46 = vpop.f32.mrb[40].mxu1 }
 0x769   : > { %v15652_v36 = vpop.f32.mrb[41].mxu1 }
 0x76a   : > { %v15653_v47 = vadd.f32 %v15652_v36, %v15651_v46  ;;  %v15654_v26 = vpop.f32.mrb[42].mxu1 }
 0x76b   : > { %v15655_v24 = vpop.f32.mrb[43].mxu1 }
 0x76c   : > { %v13059_v27 = vadd.f32 %v15653_v47, %v13019_v45 }
 0x7e8   : > { %v15673_v6 = vpop.f32.mrb[44].mxu0 }
 0x7e9   : > { %v15674_v35 = vpop.f32.mrb[45].mxu0 }
 0x7ea   : > { %v15675_v50 = vadd.f32 %v15674_v35, %v15673_v6  ;;  %v15676_v51 = vpop.f32.mrb[46].mxu0 }
 0x7eb   : > { %v15677_v52 = vpop.f32.mrb[47].mxu0 }
 0x7ec   : > { %v13099_v53 = vadd.f32 %v15675_v50, %v13059_v27 }
 0x7ee   : > { %v13104_v54 = vmax.f32 %v13099_v53, 0.0 }
 0x7f0   : > { %v13105_v29 = vpack.c.bf16 %v13104_v54, %v13104_v54 }
 0x7f2   : > { %15723 = vmatmul.mubr.bf16.vlgmr.msra.gmra.mrb[44].mxu1 %v13105_v29 }
 0x7f3   : > { %15762 = vmatprep.mubr.msk.bf16.mxu1 %vm17358_vm0, %v17357_v61  ;;  %15747 = vmatpush3.bf16.msra.mxu1 %v17324_v58 }
 0x7f4   : > { %15748 = vmatprep.subr.bf16.mxu1 %v17357_v61 }
 0x7f7   : > { %15749 = vmatpush3.bf16.msra.mxu1 %v17325_v59 }
 0x7f8   : > { %15750 = vmatprep.subr.bf16.mxu1 %v17357_v61 }
 0x7fb   : > { %15751 = vmatpush3.bf16.msra.mxu1 %v17326_v60 }
 0x7fc   : > { %15752 = vmatprep.subr.bf16.mxu1 %v17357_v61 }
 0x7ff   : > { %15753 = vmatpush3.bf16.msra.mxu1 %v17327_v17 }
 0x800   : > { %15754 = vmatprep.subr.bf16.mxu1 %v17357_v61 }
 0x803   : > { %15755 = vmatpush3.bf16.msra.mxu1 %v17328_v37 }
 0x804   : > { %15756 = vmatprep.subr.bf16.mxu1 %v17357_v61 }
 0x807   : > { %15757 = vmatpush3.bf16.msra.mxu1 %v17329_v62 }
 0x808   : > { %15758 = vmatprep.subr.bf16.mxu1 %v17357_v61 }
 0x80b   : > { %15759 = vmatpush3.bf16.msra.mxu1 %v17330_v5 }
 0x80c   : > { %15760 = vmatprep.subr.bf16.mxu1 %v17357_v61  ;;  %v15569_v61 = vld [vmem:[%s21281_s12] ss:$0 sm:$0xff] }
 0x80f   : > { %15761 = vmatpush3.bf16.msra.mxu1 %v17331_v10 }
 0x8c5   : > { %v13211_v0 = vpop.f32.mrb[44].mxu1 }
 0x8c6   : > { %v13212_v2 = vadd.f32 %v15551_v63, %v13211_v0  ;;  %v15724_v7 = vpop.f32.mrb[45].mxu1 }
 0x8c7   : > { %v13214_v8 = vpop.f32.mrb[46].mxu1 }
 0x8c8   : > { %v13217_v9 = vmax.f32 %v13212_v2, 0.0  ;;  %v15725_v12 = vpop.f32.mrb[47].mxu1 }
 0x8ca   : > { %v13218_v4 = vpack.c.bf16 %v13217_v9, %v13217_v9 }
 0x8cc   : > { %15743 = vmatmul.mubr.bf16.vlgmr.msra.gmra.mrb[48].mxu0 %v13218_v4 }
 0x99f   : > { %v13324_v11 = vpop.f32.mrb[48].mxu0 }
 0x9a0   : > { %v13325_v40 = vadd.f32 %v15560_v14, %v13324_v11  ;;  %v15744_v15 = vpop.f32.mrb[49].mxu0 }
 0x9a1   : > { %v13327_v19 = vpop.f32.mrb[50].mxu0 }
 0x9a2   : > { %v13330_v20 = vmax.f32 %v13325_v40, 0.0  ;;  %v15745_v30 = vpop.f32.mrb[51].mxu0 }
 0x9a4   : > { %v13331_v33 = vpack.c.bf16 %v13330_v20, %v13330_v20 }
 0x9a6   : > { %15763 = vmatmul.mubr.bf16.vlgmr.msra.gmra.mrb[48].mxu1 %v13331_v33 }
 0xa79   : > { %v13437_v28 = vpop.f32.mrb[48].mxu1 }
 0xa7a   : > { %v13438_v18 = vadd.f32 %v15569_v61, %v13437_v28  ;;  %v15764_v13 = vpop.f32.mrb[49].mxu1 }
 0xa7b   : > { %v13440_v25 = vpop.f32.mrb[50].mxu1 }
 0xa7c   : > { %13443 = vst [vmem:[%s545_s14] sm:$0xff] %v13438_v18  ;;  %v15765_v22 = vpop.f32.mrb[51].mxu1 }
 0xa7d PF: > { %p20_p9 = scmp.ge.s32.totalorder %s17446_s29, 4   ;;  %s21523_s25 = smov %s17350_s26 }
 0xa7e   : > { %s21524_s26 = smov %s17455_s15  ;;  %s21525_s27 = smov %s17446_s29 }
 0xa7f   :  { %22 = sbr.rel (!%p20_p9) target bundleno = 2 (0x2), region = 156 }

</bundles_post_ra>
